<compile_context>
chip_gen: v7x
topology: tpu7x:2x2x1
jax: 0.10.0
libtpu: 0.0.40
codegen_flags: <defaults>
</compile_context>

<pallas_src>
import jax
import jax.numpy as jnp
import numpy as np
from jax.experimental import pallas as pl
from jax.experimental.pallas import tpu as pltpu


# ---------------------------------------------------------------------------
# Kernels
# ---------------------------------------------------------------------------

def _ffn_resident_kernel(x_ref, w1_ref, b1_ref, w2_ref, b2_ref, o_ref):
    """One grid step = one row tile. Full weights are VMEM-resident."""
    # h = relu(x @ W1^T + b1) : (block_m, C) @ (C, 4C) -> (block_m, 4C), f32 acc
    h = jnp.dot(x_ref[...], w1_ref[...], preferred_element_type=jnp.float32)
    h = jnp.maximum(h + b1_ref[...], 0.0)
    # out = h @ W2^T + b2 : (block_m, 4C) @ (4C, C) -> (block_m, C), f32 acc
    out = jnp.dot(h.astype(w2_ref.dtype), w2_ref[...],
                  preferred_element_type=jnp.float32)
    # TODO(synk): nn.Dropout(0.25) omitted (identity at inference).
    o_ref[...] = (out + b2_ref[...]).astype(o_ref.dtype)


def _ffn_streaming_kernel(x_ref, w1_ref, b1_ref, w2_ref, b2_ref, o_ref, acc_ref):
    """Fallback for very large C: grid = (row tile i, hidden tile j)."""
    j = pl.program_id(1)

    @pl.when(j == 0)
    def _init():
        acc_ref[...] = jnp.zeros_like(acc_ref)

    h = jnp.dot(x_ref[...], w1_ref[...], preferred_element_type=jnp.float32)
    h = jnp.maximum(h + b1_ref[...], 0.0)
    acc_ref[...] += jnp.dot(h.astype(w2_ref.dtype), w2_ref[...],
                            preferred_element_type=jnp.float32)

    @pl.when(j == pl.num_programs(1) - 1)
    def _finalize():
        # TODO(synk): nn.Dropout(0.25) omitted (identity at inference).
        o_ref[...] = (acc_ref[...] + b2_ref[...]).astype(o_ref.dtype)


# ---------------------------------------------------------------------------
# Tiling helpers
# ---------------------------------------------------------------------------

def _round_up(x, m):
    return ((x + m - 1) // m) * m


def _pick_block_m(M, quantum, target=512):
    """Row tile: multiple of `quantum`, <= `target`, >=2 tiles when possible
    so both v7x TensorCores get work (no-op on single-TC v5e/v6e)."""
    Mp = _round_up(M, quantum)
    if Mp < 2 * quantum:
        return Mp
    n_tiles = max(2, -(-Mp // target))
    bm = _round_up(-(-Mp // n_tiles), quantum)
    return min(bm, target)


def _pick_hidden_tile(h4, target=512, quantum=128):
    """Largest tile <= target that divides h4 and is a multiple of `quantum`."""
    if h4 <= target:
        return h4
    for t in range(target, quantum - 1, -1):
        if h4 % t == 0 and t % quantum == 0:
            return t
    return h4  # fallback: single hidden tile


def _vmem_capacity_bytes():
    """Per-generation VMEM (128 MiB v5e/v6e, 64 MiB v7x); conservative fallback."""
    try:
        info = pltpu.get_tpu_info()
        cap = getattr(info, "vmem_capacity_bytes", None)
        if cap:
            return int(cap)
    except Exception:
        pass
    return 64 * 1024 * 1024


# ---------------------------------------------------------------------------
# Forward pass
# ---------------------------------------------------------------------------

def prepare_ffn_params(w1, b1, w2, b2, compute_dtype=jnp.bfloat16):
    """Pre-transpose + cast ONCE at parameter init (not per forward call)."""
    w1t = jnp.asarray(w1).T.astype(compute_dtype)           # (C, 4C)
    w2t = jnp.asarray(w2).T.astype(compute_dtype)           # (4C, C)
    b1r = jnp.asarray(b1, jnp.float32).reshape(1, -1)        # (1, 4C), f32
    b2r = jnp.asarray(b2, jnp.float32).reshape(1, -1)        # (1, C),  f32
    return w1t, b1r, w2t, b2r


def _feed_forward_2d(x2, w1t, b1r, w2t, b2r, out_dtype):
    M, C = x2.shape
    H4 = w1t.shape[1]
    compute_dtype = x2.dtype
    itemsize = jnp.dtype(compute_dtype).itemsize
    out_itemsize = jnp.dtype(out_dtype).itemsize
    quantum = 16 if itemsize == 2 else 8

    vmem_cap = _vmem_capacity_bytes()

    block_m = _pick_block_m(M, quantum)
    Mp = _round_up(M, block_m)
    if Mp != M:
        x2 = jnp.pad(x2, ((0, Mp - M), (0, 0)))

    # VMEM estimate for the resident-weight schedule (weights counted x2 in case
    # the pipeliner still allocates double buffers for constant-index blocks).
    weight_bytes = 2 * C * H4 * itemsize
    bias_bytes = (H4 + C) * 4
    x_tiles = 2 * block_m * C * itemsize
    out_tiles = 2 * block_m * C * out_itemsize
    h_bytes = block_m * H4 * 4                    # f32 intermediate activations
    resident_need = 2 * weight_bytes + bias_bytes + x_tiles + out_tiles + h_bytes
    use_resident = resident_need <= int(0.7 * vmem_cap)

    if use_resident:
        grid = (Mp // block_m,)
        in_specs = [
            pl.BlockSpec((block_m, C), lambda i: (i, 0)),    # x rows
            pl.BlockSpec((C, H4),      lambda i: (0, 0)),    # W1^T (resident)
            pl.BlockSpec((1, H4),      lambda i: (0, 0)),    # b1   (resident)
            pl.BlockSpec((H4, C),      lambda i: (0, 0)),    # W2^T (resident)
            pl.BlockSpec((1, C),       lambda i: (0, 0)),    # b2   (resident)
        ]
        out_specs = pl.BlockSpec((block_m, C), lambda i: (i, 0))
        scratch_shapes = []
        kernel = _ffn_resident_kernel
        dims = ("parallel",)
        vmem_limit = min(max(2 * resident_need, 48 * 1024 * 1024),
                         int(vmem_cap * 0.9))
    else:
        # Weight-streaming fallback for very large C (weights don't fit VMEM).
        block_h = _pick_hidden_tile(H4)
        grid = (Mp // block_m, H4 // block_h)
        in_specs = [
            pl.BlockSpec((block_m, C), lambda i, j: (i, 0)),   # x rows
            pl.BlockSpec((C, block_h), lambda i, j: (0, j)),   # W1^T hidden tile
            pl.BlockSpec((1, block_h), lambda i, j: (0, j)),   # b1 hidden tile
            pl.BlockSpec((block_h, C), lambda i, j: (j, 0)),   # W2^T hidden tile
            pl.BlockSpec((1, C),       lambda i, j: (0, 0)),   # b2
        ]
        out_specs = pl.BlockSpec((block_m, C), lambda i, j: (i, 0))
        scratch_shapes = [pltpu.VMEM((block_m, C), jnp.float32)]
        kernel = _ffn_streaming_kernel
        dims = ("parallel", "arbitrary")
        block_bytes = (block_m * C * itemsize            # x tile
                       + 2 * C * block_h * itemsize      # W1^T / W2^T tiles
                       + (block_h + C) * 4               # bias tiles
                       + block_m * C * out_itemsize      # out tile
                       + block_m * block_h * 4)          # h intermediate
        vmem_limit = min(max(4 * block_bytes + block_m * C * 4, 48 * 1024 * 1024),
                         int(vmem_cap * 0.9))

    out_flat = pl.pallas_call(
        kernel,
        out_shape=jax.ShapeDtypeStruct((Mp, C), out_dtype),
        grid_spec=pltpu.PrefetchScalarGridSpec(
            num_scalar_prefetch=0,
            grid=grid,
            in_specs=in_specs,
            out_specs=out_specs,
            scratch_shapes=scratch_shapes,
        ),
        compiler_params=pltpu.CompilerParams(
            dimension_semantics=dims,
            vmem_limit_bytes=int(vmem_limit),
        ),
    )(x2, w1t, b1r, w2t, b2r)

    return out_flat[:M]


@jax.jit
def feed_forward(x, w1t, b1r, w2t, b2r):
    """Pallas FeedForward forward pass. Params are pre-transposed / pre-cast
    (see prepare_ffn_params); only x is cast per call (cheap relative to weights)."""
    B, T, C = x.shape
    out_dtype = x.dtype
    x2 = x.reshape(B * T, C).astype(w1t.dtype)
    out2 = _feed_forward_2d(x2, w1t, b1r, w2t, b2r, out_dtype)
    return out2.reshape(B, T, C)


def reference_ffn(x, w1, b1, w2, b2, compute_dtype=jnp.bfloat16):
    """Pure-JAX reference mirroring the PyTorch forward (dropout = identity),
    quantized to the kernel's bf16 compute precision (f32 accumulation)."""
    xq = x.astype(compute_dtype).astype(jnp.float32)
    w1q = w1.astype(compute_dtype).astype(jnp.float32)
    w2q = w2.astype(compute_dtype).astype(jnp.float32)
    h = jnp.maximum(xq @ w1q.T + b1, 0.0)
    hq = h.astype(compute_dtype).astype(jnp.float32)
    return hq @ w2q.T + b2


if __name__ == "__main__":
    # Small shapes consistent with the module: n_embd = 640 (as in the source file),
    # tiny batch/sequence.
    B, T = 2, 8
    n_embd = 640
    hidden = 4 * n_embd

    key = jax.random.PRNGKey(0)
    kx, k1, kb1, k2, kb2 = jax.random.split(key, 5)

    x = jax.random.normal(kx, (B, T, n_embd), jnp.float32)
    w1 = jax.random.normal(k1, (hidden, n_embd), jnp.float32) * (n_embd ** -0.5)
    b1 = jax.random.normal(kb1, (hidden,), jnp.float32) * 0.1
    w2 = jax.random.normal(k2, (n_embd, hidden), jnp.float32) * (hidden ** -0.5)
    b2 = jax.random.normal(kb2, (n_embd,), jnp.float32) * 0.1

    # One-time parameter prep (transposes + bf16 cast), outside the hot path.
    w1t, b1r, w2t, b2r = prepare_ffn_params(w1, b1, w2, b2)

    out = feed_forward(x, w1t, b1r, w2t, b2r)
    out = jax.block_until_ready(out)

    ref = reference_ffn(x, w1, b1, w2, b2)
    np.testing.assert_allclose(np.asarray(out, np.float32), np.asarray(ref),
                               rtol=2e-2, atol=2e-2)

    print("KERNEL_OK")
</pallas_src>

<mosaic_0001>
module attributes {stable_mosaic.version = 11 : i64} {
  func.func @_ffn_resident_kernel(%arg0: i32, %arg1: memref<16x640xbf16, #tpu.memory_space<vmem>>, %arg2: memref<640x2560xbf16, #tpu.memory_space<vmem>>, %arg3: memref<1x2560xf32, #tpu.memory_space<vmem>>, %arg4: memref<2560x640xbf16, #tpu.memory_space<vmem>>, %arg5: memref<1x640xf32, #tpu.memory_space<vmem>>, %arg6: memref<16x640xf32, #tpu.memory_space<vmem>>) attributes {dimension_semantics = [#tpu.dimension_semantics<parallel>], iteration_bounds = array<i64: 1>, scalar_prefetch = 0 : i64, scratch_operands = 0 : i64, tpu.core_type = #tpu.core_type<tc>, window_params = [{transform_indices = @transform_0, window_bounds = array<i64: 16, 640>}, {pipeline_mode = #tpu.pipeline_mode<synchronous>, transform_indices = @transform_1, window_bounds = array<i64: 640, 2560>}, {pipeline_mode = #tpu.pipeline_mode<synchronous>, transform_indices = @transform_2, window_bounds = array<i64: 1, 2560>}, {pipeline_mode = #tpu.pipeline_mode<synchronous>, transform_indices = @transform_3, window_bounds = array<i64: 2560, 640>}, {pipeline_mode = #tpu.pipeline_mode<synchronous>, transform_indices = @transform_4, window_bounds = array<i64: 1, 640>}, {transform_indices = @transform_5, window_bounds = array<i64: 16, 640>}]} {
    %c0 = arith.constant 0 : index
    %c0_0 = arith.constant 0 : index
    %0 = vector.load %arg1[%c0, %c0_0] : memref<16x640xbf16, #tpu.memory_space<vmem>>, vector<16x640xbf16>
    %c0_1 = arith.constant 0 : index
    %c0_2 = arith.constant 0 : index
    %1 = vector.load %arg2[%c0_1, %c0_2] : memref<640x2560xbf16, #tpu.memory_space<vmem>>, vector<640x2560xbf16>
    %cst = arith.constant dense<0.000000e+00> : vector<16x2560xf32>
    %2 = tpu.matmul %0, %1, %cst {dimension_numbers = #tpu.dot_dimension_numbers<[1], [0], [0], [1], [0, 0, 1, 1], [], []>} : vector<16x640xbf16>, vector<640x2560xbf16>, vector<16x2560xf32> -> vector<16x2560xf32>
    %c0_3 = arith.constant 0 : index
    %c0_4 = arith.constant 0 : index
    %3 = vector.load %arg3[%c0_3, %c0_4] : memref<1x2560xf32, #tpu.memory_space<vmem>>, vector<1x2560xf32>
    %4 = vector.broadcast %3 : vector<1x2560xf32> to vector<16x2560xf32>
    %5 = arith.addf %2, %4 : vector<16x2560xf32>
    %cst_5 = arith.constant 0.000000e+00 : f32
    %6 = vector.broadcast %cst_5 : f32 to vector<16x2560xf32>
    %7 = arith.maximumf %5, %6 : vector<16x2560xf32>
    %8 = arith.truncf %7 : vector<16x2560xf32> to vector<16x2560xbf16>
    %c0_6 = arith.constant 0 : index
    %c0_7 = arith.constant 0 : index
    %9 = vector.load %arg4[%c0_6, %c0_7] : memref<2560x640xbf16, #tpu.memory_space<vmem>>, vector<2560x640xbf16>
    %cst_8 = arith.constant dense<0.000000e+00> : vector<16x640xf32>
    %10 = tpu.matmul %8, %9, %cst_8 {dimension_numbers = #tpu.dot_dimension_numbers<[1], [0], [0], [1], [0, 0, 1, 1], [], []>} : vector<16x2560xbf16>, vector<2560x640xbf16>, vector<16x640xf32> -> vector<16x640xf32>
    %c0_9 = arith.constant 0 : index
    %c0_10 = arith.constant 0 : index
    %11 = vector.load %arg5[%c0_9, %c0_10] : memref<1x640xf32, #tpu.memory_space<vmem>>, vector<1x640xf32>
    %12 = vector.broadcast %11 : vector<1x640xf32> to vector<16x640xf32>
    %13 = arith.addf %10, %12 : vector<16x640xf32>
    %c0_11 = arith.constant 0 : index
    %c0_12 = arith.constant 0 : index
    %14 = vector.load %arg6[%c0_11, %c0_12] : memref<16x640xf32, #tpu.memory_space<vmem>>, vector<16x640xf32>
    tpu.vector_store %arg6[%c0_11, %c0_12], %13 {strides = array<i32>} : memref<16x640xf32, #tpu.memory_space<vmem>>, vector<16x640xf32>,
    return
  }
  func.func @transform_0(%arg0: i32) -> (i32, i32) {
    %c0_i32 = arith.constant 0 : i32
    %c0_i32_0 = arith.constant 0 : i32
    return %arg0, %c0_i32 : i32, i32
  }
  func.func @transform_1(%arg0: i32) -> (i32, i32) {
    %c0_i32 = arith.constant 0 : i32
    %c0_i32_0 = arith.constant 0 : i32
    %c0_i32_1 = arith.constant 0 : i32
    return %c0_i32, %c0_i32_0 : i32, i32
  }
  func.func @transform_2(%arg0: i32) -> (i32, i32) {
    %c0_i32 = arith.constant 0 : i32
    %c0_i32_0 = arith.constant 0 : i32
    %c0_i32_1 = arith.constant 0 : i32
    return %c0_i32, %c0_i32_0 : i32, i32
  }
  func.func @transform_3(%arg0: i32) -> (i32, i32) {
    %c0_i32 = arith.constant 0 : i32
    %c0_i32_0 = arith.constant 0 : i32
    %c0_i32_1 = arith.constant 0 : i32
    return %c0_i32, %c0_i32_0 : i32, i32
  }
  func.func @transform_4(%arg0: i32) -> (i32, i32) {
    %c0_i32 = arith.constant 0 : i32
    %c0_i32_0 = arith.constant 0 : i32
    %c0_i32_1 = arith.constant 0 : i32
    return %c0_i32, %c0_i32_0 : i32, i32
  }
  func.func @transform_5(%arg0: i32) -> (i32, i32) {
    %c0_i32 = arith.constant 0 : i32
    %c0_i32_0 = arith.constant 0 : i32
    return %arg0, %c0_i32 : i32, i32
  }
}

</mosaic_0001>

<bundles_post_ra>
// kernel: feed_forward.1
= control target key start
LH: loop header
LB: loop body
LE: loop exit
PB: predicated region body
PF: predicated region fallthrough
CT: control target
= control target key end

     0   :  { %10 = vsyncpa [#allocation3], 0  ;;  %s17658_s0 = inlined_call_operand.vmem [shape: bf16[16,640], index: 0, kind: input, shape index: {}]   ;;  %s17659_s1 = inlined_call_operand.hbm [shape: bf16[640,2560], index: 1, kind: input, shape index: {}]   ;;  %s17660_s2 = inlined_call_operand.hbm [shape: f32[1,2560], index: 2, kind: input, shape index: {}]   ;;  %s17661_s3 = inlined_call_operand.hbm [shape: bf16[2560,640], index: 3, kind: input, shape index: {}]   ;;  %s17662_s4 = inlined_call_operand.hbm [shape: f32[1,640], index: 4, kind: input, shape index: {}]   ;;  %s17663_s5 = inlined_call_operand.hbm [shape: f32[16,640], index: 5, kind: output, shape index: {}]  }
   0x1   :  { %11 = vsyncpa [#allocation6], 0 }
   0x2   :  { %12 = vsyncpa [#allocation9], 0 }
   0x3   :  { %13 = vsyncpa [#allocation4], 0  ;;  %s17310_s18 = smov [#allocation5]   ;;  %s17311_s20 = smov [#allocation2]  }
   0x4   :  { %s34_s19 = sshll.u32 %s17310_s18, 4  ;;  %s21_s21 = sshll.u32 %s17311_s20, 4  ;;  %s35_s19 = int_to_ptr.vmem [resolvable:$true] %s34_s19  ;;  %s17352_s21 = int_to_ptr.vmem [resolvable:$true] %s21_s21 }
   0x5   :  { %s17192_s24 = scalar_lea.hbm %s17660_s2, 320 }
   0x6   :  { %p17193_p0 = scmp.ne.s32.totalorder %s17660_s2, %s17192_s24  ;;  %p17196_p1 = scmp.lt.u32.totalorder %s17192_s24, %s17660_s2 }
   0x8   :  { %p17198_p2 = pnand %p17196_p1, %p17193_p0 }
   0xa   :  { %17201 = shalt.err (!%p17198_p2)
}
   0xb   :  { %s17202_s29 = scalar_lea.vmem %s35_s19, 320  ;;  %p17207_p4 = scmp.lt.s32.totalorder %s35_s19, %s35_s19 }
   0xc   :  { %p17203_p3 = scmp.ne.s32.totalorder %s35_s19, %s17202_s29  ;;  %p17208_p5 = scmp.lt.s32.totalorder %s17202_s29, %s17202_s29 }
   0xe   :  { %p17209_p6 = por %p17208_p5, %p17207_p4 }
  0x10   :  { %p17210_p7 = pnand %p17209_p6, %p17203_p3 }
  0x12   :  { %17213 = shalt.err (!%p17210_p7)
}
  0x13   :  { %37 = dma.hbm_to_vmem [thread:$0]  %s17660_s2, 320, %s35_s19, [#allocation6]  }
  0x14   :  { %s17214_s9 = scalar_lea.hbm %s17659_s1, 102400 }
  0x15   :  { %p17215_p8 = scmp.ne.s32.totalorder %s17659_s1, %s17214_s9  ;;  %p17218_p9 = scmp.lt.u32.totalorder %s17214_s9, %s17659_s1 }
  0x17   :  { %p17220_p10 = pnand %p17218_p9, %p17215_p8 }
  0x19   :  { %17223 = shalt.err (!%p17220_p10)
}
  0x1a   :  { %s17224_s14 = scalar_lea.vmem %s17352_s21, 102400  ;;  %p17229_p12 = scmp.lt.s32.totalorder %s17352_s21, %s17352_s21 }
  0x1b   :  { %p17225_p11 = scmp.ne.s32.totalorder %s17352_s21, %s17224_s14  ;;  %p17230_p13 = scmp.lt.s32.totalorder %s17224_s14, %s17224_s14 }
  0x1d   :  { %p17231_p0 = por %p17230_p13, %p17229_p12 }
  0x1f   :  { %p17232_p1 = pnand %p17231_p0, %p17225_p11 }
  0x21   :  { %17235 = shalt.err (!%p17232_p1)
}
  0x22   :  { %s17312_s2 = smov 1280   ;;  %s17313_s15 = smov 80  }
  0x23   :  { %27 = dma.hbm_to_vmem [thread:$0]  %s17659_s1, 102400, %s17352_s21, [#allocation3], %s17312_s2, %s17312_s2, %s17313_s15  }
  0x24   :  { %s17314_s18 = smov [#allocation7]   ;;  %s17236_s23 = scalar_lea.hbm %s17661_s3, 102400 }
  0x25   :  { %s43_s19 = sshll.u32 %s17314_s18, 4  ;;  %p17237_p2 = scmp.ne.s32.totalorder %s17661_s3, %s17236_s23  ;;  %s44_s19 = int_to_ptr.vmem [resolvable:$true] %s43_s19 }
  0x26   :  { %p17240_p3 = scmp.lt.u32.totalorder %s17236_s23, %s17661_s3 }
  0x28   :  { %p17242_p4 = pnand %p17240_p3, %p17237_p2 }
  0x2a   :  { %17245 = shalt.err (!%p17242_p4)
}
  0x2b   :  { %s17246_s28 = scalar_lea.vmem %s44_s19, 102400  ;;  %p17251_p6 = scmp.lt.s32.totalorder %s44_s19, %s44_s19 }
  0x2c   :  { %p17247_p5 = scmp.ne.s32.totalorder %s44_s19, %s17246_s28  ;;  %p17252_p7 = scmp.lt.s32.totalorder %s17246_s28, %s17246_s28 }
  0x2e   :  { %p17253_p8 = por %p17252_p7, %p17251_p6 }
  0x30   :  { %p17254_p9 = pnand %p17253_p8, %p17247_p5 }
  0x32   :  { %17257 = shalt.err (!%p17254_p9)
}
  0x33   :  { %s17315_s1 = smov 320   ;;  %s17316_s21 = smov 20  }
  0x34   :  { %49 = dma.hbm_to_vmem [thread:$0]  %s17661_s3, 102400, %s44_s19, [#allocation6], %s17315_s1, %s17315_s1, %s17316_s21  }
  0x35   :  { %s17317_s6 = smov [#allocation8]   ;;  %s17258_s10 = scalar_lea.hbm %s17662_s4, 80 }
  0x36   :  { %s56_s7 = sshll.u32 %s17317_s6, 4  ;;  %p17259_p10 = scmp.ne.s32.totalorder %s17662_s4, %s17258_s10  ;;  %s57_s7 = int_to_ptr.vmem [resolvable:$true] %s56_s7 }
  0x37   :  { %p17262_p11 = scmp.lt.u32.totalorder %s17258_s10, %s17662_s4 }
  0x39   :  { %p17264_p12 = pnand %p17262_p11, %p17259_p10 }
  0x3b   :  { %17267 = shalt.err (!%p17264_p12)
}
  0x3c   :  { %s17268_s2 = scalar_lea.vmem %s57_s7, 80  ;;  %s17272_s3 = scalar_lea.vmem %s57_s7, 96 }
  0x3d   :  { %p17269_p13 = scmp.ne.s32.totalorder %s57_s7, %s17268_s2  ;;  %p17273_p0 = scmp.lt.s32.totalorder %s57_s7, %s57_s7 }
  0x3e   :  { %p17274_p1 = scmp.lt.s32.totalorder %s17272_s3, %s17268_s2 }
  0x40   :  { %p17275_p2 = por %p17274_p1, %p17273_p0 }
  0x42   :  { %p17276_p3 = pnand %p17275_p2, %p17269_p13 }
  0x44   :  { %17279 = shalt.err (!%p17276_p3)
}
  0x45   :  { %59 = dma.hbm_to_vmem [thread:$0]  %s17662_s4, 80, %s57_s7, [#allocation9]  }
  0x46   :  { %17302 = dma.done.wait [#allocation3], 102400  }
  0x47   :  { %17303 = vsyncadd [#allocation3], 4294864896 }
  0x48   :  { %17304 = dma.done.wait [#allocation6], 102720  }
  0x49   :  { %17305 = vsyncadd [#allocation6], 4294864576 }
  0x4a   :  { %17306 = dma.done.wait [#allocation9], 80  }
  0x4b   :  { %17307 = vsyncadd [#allocation9], 4294967216  ;;  %v14844_v0 = vld [vmem:[#allocation2 + $0x4] ss:$80 sps:$4 sm:$0xff]   ;;  %v14846_v1 = vld [vmem:[#allocation2 + $0xc] ss:$80 sps:$4 sm:$0xff]  }
  0x4c   :  { %5011 = vmatprep.subr.bf16.mxu0 %v14844_v0  ;;  %v14848_v2 = vld [vmem:[#allocation2] ss:$80 sps:$4 sm:$0xff]   ;;  %v14849_v3 = vld [vmem:[#allocation2 + $0x8] ss:$80 sps:$4 sm:$0xff]   ;;  %5140 = vmatprep.subr.bf16.mxu1 %v14846_v1  ;;  %v14850_v4 = vld [vmem:[#allocation2 + $0xa4] ss:$80 sps:$4 sm:$0xff]  }
  0x4d   :  { %5012 = vmatpush1.bf16.msra.mxu0 %v14848_v2  ;;  %5141 = vmatpush1.bf16.msra.mxu1 %v14849_v3  ;;  %v14852_v5 = vld [vmem:[#allocation2 + $0xac] ss:$80 sps:$4 sm:$0xff]   ;;  %v14854_v6 = vld [vmem:[#allocation2 + $0xa0] ss:$80 sps:$4 sm:$0xff]   ;;  %v14855_v7 = vld [vmem:[#allocation2 + $0xa8] ss:$80 sps:$4 sm:$0xff]  }
  0x4e   :  { %5013 = vmatprep.subr.bf16.mxu0 %v14850_v4  ;;  %5142 = vmatprep.subr.bf16.mxu1 %v14852_v5  ;;  %v14856_v8 = vld [vmem:[#allocation2 + $0x144] ss:$80 sps:$4 sm:$0xff]   ;;  %v14858_v9 = vld [vmem:[#allocation2 + $0x14c] ss:$80 sps:$4 sm:$0xff]   ;;  %v14860_v10 = vld [vmem:[#allocation2 + $0x140] ss:$80 sps:$4 sm:$0xff]  }
  0x4f   :  { %v14861_v11 = vld [vmem:[#allocation2 + $0x148] ss:$80 sps:$4 sm:$0xff]   ;;  %v14862_v12 = vld [vmem:[#allocation2 + $0x1e4] ss:$80 sps:$4 sm:$0xff]   ;;  %v14864_v13 = vld [vmem:[#allocation2 + $0x1ec] ss:$80 sps:$4 sm:$0xff]  }
  0x50   :  { %v14866_v14 = vld [vmem:[#allocation2 + $0x1e0] ss:$80 sps:$4 sm:$0xff]   ;;  %v14867_v15 = vld [vmem:[#allocation2 + $0x1e8] ss:$80 sps:$4 sm:$0xff]   ;;  %v14868_v16 = vld [vmem:[#allocation2 + $0x284] ss:$80 sps:$4 sm:$0xff]  }
  0x51   :  { %5014 = vmatpush1.bf16.msra.mxu0 %v14854_v6  ;;  %5143 = vmatpush1.bf16.msra.mxu1 %v14855_v7  ;;  %v14870_v17 = vld [vmem:[#allocation2 + $0x28c] ss:$80 sps:$4 sm:$0xff]   ;;  %v14872_v18 = vld [vmem:[#allocation2 + $0x280] ss:$80 sps:$4 sm:$0xff]   ;;  %v14873_v19 = vld [vmem:[#allocation2 + $0x288] ss:$80 sps:$4 sm:$0xff]  }
  0x52   :  { %5015 = vmatprep.subr.bf16.mxu0 %v14856_v8  ;;  %5144 = vmatprep.subr.bf16.mxu1 %v14858_v9  ;;  %v14874_v20 = vld [vmem:[#allocation2 + $0x324] ss:$80 sps:$4 sm:$0xff]   ;;  %v14876_v21 = vld [vmem:[#allocation2 + $0x32c] ss:$80 sps:$4 sm:$0xff]   ;;  %v14878_v22 = vld [vmem:[#allocation2 + $0x320] ss:$80 sps:$4 sm:$0xff]  }
  0x53   :  { %v14879_v23 = vld [vmem:[#allocation2 + $0x328] ss:$80 sps:$4 sm:$0xff]   ;;  %v14880_v24 = vld [vmem:[#allocation2 + $0x3c4] ss:$80 sps:$4 sm:$0xff]   ;;  %v14882_v25 = vld [vmem:[#allocation2 + $0x3cc] ss:$80 sps:$4 sm:$0xff]  }
  0x54   :  { %v14884_v26 = vld [vmem:[#allocation2 + $0x3c0] ss:$80 sps:$4 sm:$0xff]   ;;  %v14885_v27 = vld [vmem:[#allocation2 + $0x3c8] ss:$80 sps:$4 sm:$0xff]   ;;  %v14886_v28 = vld [vmem:[#allocation2 + $0x464] ss:$80 sps:$4 sm:$0xff]  }
  0x55   :  { %5016 = vmatpush1.bf16.msra.mxu0 %v14860_v10  ;;  %5145 = vmatpush1.bf16.msra.mxu1 %v14861_v11  ;;  %v14888_v29 = vld [vmem:[#allocation2 + $0x46c] ss:$80 sps:$4 sm:$0xff]   ;;  %v14890_v30 = vld [vmem:[#allocation2 + $0x460] ss:$80 sps:$4 sm:$0xff]   ;;  %v14891_v31 = vld [vmem:[#allocation2 + $0x468] ss:$80 sps:$4 sm:$0xff]  }
  0x56   :  { %5017 = vmatprep.subr.bf16.mxu0 %v14862_v12  ;;  %5146 = vmatprep.subr.bf16.mxu1 %v14864_v13  ;;  %v14892_v32 = vld [vmem:[#allocation2 + $0x504] ss:$80 sps:$4 sm:$0xff]   ;;  %v14894_v33 = vld [vmem:[#allocation2 + $0x50c] ss:$80 sps:$4 sm:$0xff]   ;;  %v14896_v34 = vld [vmem:[#allocation2 + $0x500] ss:$80 sps:$4 sm:$0xff]  }
  0x57   :  { %v14897_v35 = vld [vmem:[#allocation2 + $0x508] ss:$80 sps:$4 sm:$0xff]   ;;  %v14898_v36 = vld [vmem:[#allocation2 + $0x5a4] ss:$80 sps:$4 sm:$0xff]   ;;  %v14900_v37 = vld [vmem:[#allocation2 + $0x5ac] ss:$80 sps:$4 sm:$0xff]  }
  0x58   :  { %v14902_v38 = vld [vmem:[#allocation2 + $0x5a0] ss:$80 sps:$4 sm:$0xff]   ;;  %v14903_v39 = vld [vmem:[#allocation2 + $0x5a8] ss:$80 sps:$4 sm:$0xff]   ;;  %v14904_v40 = vld [vmem:[#allocation2 + $0x644] ss:$80 sps:$4 sm:$0xff]  }
  0x59   :  { %5018 = vmatpush1.bf16.msra.mxu0 %v14866_v14  ;;  %5147 = vmatpush1.bf16.msra.mxu1 %v14867_v15  ;;  %v14906_v41 = vld [vmem:[#allocation2 + $0x64c] ss:$80 sps:$4 sm:$0xff]   ;;  %v14908_v42 = vld [vmem:[#allocation2 + $0x640] ss:$80 sps:$4 sm:$0xff]   ;;  %v14909_v43 = vld [vmem:[#allocation2 + $0x648] ss:$80 sps:$4 sm:$0xff]  }
  0x5a   :  { %5019 = vmatprep.subr.bf16.mxu0 %v14868_v16  ;;  %5148 = vmatprep.subr.bf16.mxu1 %v14870_v17  ;;  %v14910_v44 = vld [vmem:[#allocation2 + $0x6e4] ss:$80 sps:$4 sm:$0xff]   ;;  %v14912_v45 = vld [vmem:[#allocation2 + $0x6ec] ss:$80 sps:$4 sm:$0xff]   ;;  %v14914_v46 = vld [vmem:[#allocation2 + $0x6e0] ss:$80 sps:$4 sm:$0xff]  }
  0x5b   :  { %v17410_v47 = vld [vmem:[%s17658_s0 + $0x4] ss:$20 sps:$4 sm:$0xff]   ;;  %v14915_v48 = vld [vmem:[#allocation2 + $0x6e8] ss:$80 sps:$4 sm:$0xff]   ;;  %v14916_v49 = vld [vmem:[#allocation2 + $0x784] ss:$80 sps:$4 sm:$0xff]  }
  0x5c   :  { %v14918_v50 = vld [vmem:[#allocation2 + $0x78c] ss:$80 sps:$4 sm:$0xff]   ;;  %5043 = vmatprep.mubr.bf16.mxu0 %v17410_v47  ;;  %5172 = vmatprep.mubr.bf16.mxu1 %v17410_v47  ;;  %v14920_v51 = vld [vmem:[#allocation2 + $0x780] ss:$80 sps:$4 sm:$0xff]   ;;  %v14921_v52 = vld [vmem:[#allocation2 + $0x788] ss:$80 sps:$4 sm:$0xff]  }
  0x5d   :  { %5020 = vmatpush1.bf16.msra.mxu0 %v14872_v18  ;;  %5149 = vmatpush1.bf16.msra.mxu1 %v14873_v19  ;;  %v14922_v53 = vld [vmem:[#allocation2 + $0x824] ss:$80 sps:$4 sm:$0xff]   ;;  %v14924_v54 = vld [vmem:[#allocation2 + $0x82c] ss:$80 sps:$4 sm:$0xff]   ;;  %v14926_v55 = vld [vmem:[#allocation2 + $0x820] ss:$80 sps:$4 sm:$0xff]  }
  0x5e   :  { %5021 = vmatprep.subr.bf16.mxu0 %v14874_v20  ;;  %5150 = vmatprep.subr.bf16.mxu1 %v14876_v21  ;;  %v14927_v56 = vld [vmem:[#allocation2 + $0x828] ss:$80 sps:$4 sm:$0xff]   ;;  %v14928_v57 = vld [vmem:[#allocation2 + $0x8c4] ss:$80 sps:$4 sm:$0xff]   ;;  %v14930_v58 = vld [vmem:[#allocation2 + $0x8cc] ss:$80 sps:$4 sm:$0xff]  }
  0x5f   :  { %v14932_v59 = vld [vmem:[#allocation2 + $0x8c0] ss:$80 sps:$4 sm:$0xff]   ;;  %v14933_v60 = vld [vmem:[#allocation2 + $0x8c8] ss:$80 sps:$4 sm:$0xff]   ;;  %v14934_v61 = vld [vmem:[#allocation2 + $0x964] ss:$80 sps:$4 sm:$0xff]  }
  0x60   :  { %v14936_v62 = vld [vmem:[#allocation2 + $0x96c] ss:$80 sps:$4 sm:$0xff]   ;;  %v14938_v63 = vld [vmem:[#allocation2 + $0x960] ss:$80 sps:$4 sm:$0xff]   ;;  %v14939_v0 = vld [vmem:[#allocation2 + $0x968] ss:$80 sps:$4 sm:$0xff]  }
  0x61   :  { %5022 = vmatpush1.bf16.msra.mxu0 %v14878_v22  ;;  %5151 = vmatpush1.bf16.msra.mxu1 %v14879_v23  ;;  %v14944_v1 = vld [vmem:[#allocation2 + $0xa04] ss:$80 sps:$4 sm:$0xff]   ;;  %v14947_v2 = vld [vmem:[#allocation2 + $0xa0c] ss:$80 sps:$4 sm:$0xff]   ;;  %v14942_v3 = vld [vmem:[#allocation2 + $0xa00] ss:$80 sps:$4 sm:$0xff]  }
  0x62   :  { %5023 = vmatprep.subr.bf16.mxu0 %v14880_v24  ;;  %5152 = vmatprep.subr.bf16.mxu1 %v14882_v25  ;;  %v14945_v4 = vld [vmem:[#allocation2 + $0xa08] ss:$80 sps:$4 sm:$0xff]   ;;  %v14951_v6 = vld [vmem:[#allocation2 + $0xaa4] ss:$80 sps:$4 sm:$0xff]   ;;  %v14954_v7 = vld [vmem:[#allocation2 + $0xaac] ss:$80 sps:$4 sm:$0xff]  }
  0x63   :  { %v14948_v5 = vld [vmem:[%s17658_s0] ss:$20 sps:$4 sm:$0xff]   ;;  %v14949_v8 = vld [vmem:[#allocation2 + $0xaa0] ss:$80 sps:$4 sm:$0xff]   ;;  %v14957_v10 = vld [vmem:[#allocation2 + $0xb44] ss:$80 sps:$4 sm:$0xff]  }
  0x64   :  { %v14952_v9 = vld [vmem:[#allocation2 + $0xaa8] ss:$80 sps:$4 sm:$0xff]   ;;  %v14960_v11 = vld [vmem:[#allocation2 + $0xb4c] ss:$80 sps:$4 sm:$0xff]   ;;  %v14955_v12 = vld [vmem:[#allocation2 + $0xb40] ss:$80 sps:$4 sm:$0xff]  }
  0x65   :  { %5024 = vmatpush1.bf16.msra.mxu0 %v14884_v26  ;;  %5153 = vmatpush1.bf16.msra.mxu1 %v14885_v27  ;;  %v14958_v13 = vld [vmem:[#allocation2 + $0xb48] ss:$80 sps:$4 sm:$0xff]   ;;  %v14963_v14 = vld [vmem:[#allocation2 + $0xbe4] ss:$80 sps:$4 sm:$0xff]   ;;  %v14966_v15 = vld [vmem:[#allocation2 + $0xbec] ss:$80 sps:$4 sm:$0xff]  }
  0x66   :  { %5025 = vmatprep.subr.bf16.mxu0 %v14886_v28  ;;  %5154 = vmatprep.subr.bf16.mxu1 %v14888_v29  ;;  %v14961_v16 = vld [vmem:[#allocation2 + $0xbe0] ss:$80 sps:$4 sm:$0xff]   ;;  %v14964_v17 = vld [vmem:[#allocation2 + $0xbe8] ss:$80 sps:$4 sm:$0xff]   ;;  %v14969_v18 = vld [vmem:[#allocation2 + $0xc84] ss:$80 sps:$4 sm:$0xff]  }
  0x67   :  { %v14972_v19 = vld [vmem:[#allocation2 + $0xc8c] ss:$80 sps:$4 sm:$0xff]   ;;  %v14967_v20 = vld [vmem:[#allocation2 + $0xc80] ss:$80 sps:$4 sm:$0xff]   ;;  %v14970_v21 = vld [vmem:[#allocation2 + $0xc88] ss:$80 sps:$4 sm:$0xff]  }
  0x68   :  { %v14975_v22 = vld [vmem:[#allocation2 + $0xd24] ss:$80 sps:$4 sm:$0xff]   ;;  %v14978_v23 = vld [vmem:[#allocation2 + $0xd2c] ss:$80 sps:$4 sm:$0xff]   ;;  %v14973_v24 = vld [vmem:[#allocation2 + $0xd20] ss:$80 sps:$4 sm:$0xff]  }
  0x69   :  { %5026 = vmatpush1.bf16.msra.mxu0 %v14890_v30  ;;  %5155 = vmatpush1.bf16.msra.mxu1 %v14891_v31  ;;  %v14976_v25 = vld [vmem:[#allocation2 + $0xd28] ss:$80 sps:$4 sm:$0xff]   ;;  %v14981_v26 = vld [vmem:[#allocation2 + $0xdc4] ss:$80 sps:$4 sm:$0xff]   ;;  %v14984_v27 = vld [vmem:[#allocation2 + $0xdcc] ss:$80 sps:$4 sm:$0xff]  }
  0x6a   :  { %5027 = vmatprep.subr.bf16.mxu0 %v14892_v32  ;;  %5156 = vmatprep.subr.bf16.mxu1 %v14894_v33  ;;  %v14979_v28 = vld [vmem:[#allocation2 + $0xdc0] ss:$80 sps:$4 sm:$0xff]   ;;  %v15039_v29 = vld [vmem:[%s17658_s0 + $0xc] ss:$20 sps:$4 sm:$0xff]   ;;  %v14990_v32 = vld [vmem:[#allocation2 + $0xe6c] ss:$80 sps:$4 sm:$0xff]  }
  0x6b   :  { %v14982_v30 = vld [vmem:[#allocation2 + $0xdc8] ss:$80 sps:$4 sm:$0xff]   ;;  %v14987_v31 = vld [vmem:[#allocation2 + $0xe64] ss:$80 sps:$4 sm:$0xff]   ;;  %v14985_v33 = vld [vmem:[#allocation2 + $0xe60] ss:$80 sps:$4 sm:$0xff]  }
  0x6d   :  { %5028 = vmatpush1.bf16.msra.mxu0 %v14896_v34  ;;  %5157 = vmatpush1.bf16.msra.mxu1 %v14897_v35  ;;  %v14988_v34 = vld [vmem:[#allocation2 + $0xe68] ss:$80 sps:$4 sm:$0xff]   ;;  %v14993_v35 = vld [vmem:[#allocation2 + $0xf04] ss:$80 sps:$4 sm:$0xff]  }
  0x6e   :  { %5029 = vmatprep.subr.bf16.mxu0 %v14898_v36  ;;  %5158 = vmatprep.subr.bf16.mxu1 %v14900_v37  ;;  %v14996_v36 = vld [vmem:[#allocation2 + $0xf0c] ss:$80 sps:$4 sm:$0xff]   ;;  %v14991_v37 = vld [vmem:[#allocation2 + $0xf00] ss:$80 sps:$4 sm:$0xff]  }
  0x71   :  { %5030 = vmatpush1.bf16.msra.mxu0 %v14902_v38  ;;  %5159 = vmatpush1.bf16.msra.mxu1 %v14903_v39  ;;  %v14994_v38 = vld [vmem:[#allocation2 + $0xf08] ss:$80 sps:$4 sm:$0xff]   ;;  %v14999_v39 = vld [vmem:[#allocation2 + $0xfa4] ss:$80 sps:$4 sm:$0xff]  }
  0x72   :  { %5031 = vmatprep.subr.bf16.mxu0 %v14904_v40  ;;  %5160 = vmatprep.subr.bf16.mxu1 %v14906_v41  ;;  %v15002_v40 = vld [vmem:[#allocation2 + $0xfac] ss:$80 sps:$4 sm:$0xff]   ;;  %v14997_v41 = vld [vmem:[#allocation2 + $0xfa0] ss:$80 sps:$4 sm:$0xff]  }
  0x75   :  { %5032 = vmatpush1.bf16.msra.mxu0 %v14908_v42  ;;  %5161 = vmatpush1.bf16.msra.mxu1 %v14909_v43  ;;  %v15000_v42 = vld [vmem:[#allocation2 + $0xfa8] ss:$80 sps:$4 sm:$0xff]   ;;  %v15005_v43 = vld [vmem:[#allocation2 + $0x1044] ss:$80 sps:$4 sm:$0xff]  }
  0x76   :  { %5033 = vmatprep.subr.bf16.mxu0 %v14910_v44  ;;  %5162 = vmatprep.subr.bf16.mxu1 %v14912_v45  ;;  %v15008_v44 = vld [vmem:[#allocation2 + $0x104c] ss:$80 sps:$4 sm:$0xff]   ;;  %v15003_v45 = vld [vmem:[#allocation2 + $0x1040] ss:$80 sps:$4 sm:$0xff]  }
  0x79   :  { %5034 = vmatpush1.bf16.msra.mxu0 %v14914_v46  ;;  %5163 = vmatpush1.bf16.msra.mxu1 %v14915_v48  ;;  %v15006_v46 = vld [vmem:[#allocation2 + $0x1048] ss:$80 sps:$4 sm:$0xff]   ;;  %v15011_v48 = vld [vmem:[#allocation2 + $0x10e4] ss:$80 sps:$4 sm:$0xff]  }
  0x7a   :  { %5035 = vmatprep.subr.bf16.mxu0 %v14916_v49  ;;  %5164 = vmatprep.subr.bf16.mxu1 %v14918_v50  ;;  %v15014_v49 = vld [vmem:[#allocation2 + $0x10ec] ss:$80 sps:$4 sm:$0xff]   ;;  %v15009_v50 = vld [vmem:[#allocation2 + $0x10e0] ss:$80 sps:$4 sm:$0xff]  }
  0x7d   :  { %5036 = vmatpush1.bf16.msra.mxu0 %v14920_v51  ;;  %5165 = vmatpush1.bf16.msra.mxu1 %v14921_v52  ;;  %v15012_v51 = vld [vmem:[#allocation2 + $0x10e8] ss:$80 sps:$4 sm:$0xff]   ;;  %v15017_v52 = vld [vmem:[#allocation2 + $0x1184] ss:$80 sps:$4 sm:$0xff]  }
  0x7e   :  { %5037 = vmatprep.subr.bf16.mxu0 %v14922_v53  ;;  %5166 = vmatprep.subr.bf16.mxu1 %v14924_v54  ;;  %v15020_v53 = vld [vmem:[#allocation2 + $0x118c] ss:$80 sps:$4 sm:$0xff]   ;;  %v15015_v54 = vld [vmem:[#allocation2 + $0x1180] ss:$80 sps:$4 sm:$0xff]  }
  0x81   :  { %5038 = vmatpush1.bf16.msra.mxu0 %v14926_v55  ;;  %5167 = vmatpush1.bf16.msra.mxu1 %v14927_v56  ;;  %v15018_v55 = vld [vmem:[#allocation2 + $0x1188] ss:$80 sps:$4 sm:$0xff]   ;;  %v15023_v56 = vld [vmem:[#allocation2 + $0x1224] ss:$80 sps:$4 sm:$0xff]  }
  0x82   :  { %5039 = vmatprep.subr.bf16.mxu0 %v14928_v57  ;;  %5168 = vmatprep.subr.bf16.mxu1 %v14930_v58  ;;  %v15026_v57 = vld [vmem:[#allocation2 + $0x122c] ss:$80 sps:$4 sm:$0xff]   ;;  %v15021_v58 = vld [vmem:[#allocation2 + $0x1220] ss:$80 sps:$4 sm:$0xff]  }
  0x85   :  { %5040 = vmatpush1.bf16.msra.mxu0 %v14932_v59  ;;  %5169 = vmatpush1.bf16.msra.mxu1 %v14933_v60  ;;  %v15024_v59 = vld [vmem:[#allocation2 + $0x1228] ss:$80 sps:$4 sm:$0xff]   ;;  %v15029_v60 = vld [vmem:[#allocation2 + $0x12c4] ss:$80 sps:$4 sm:$0xff]  }
  0x86   :  { %5041 = vmatprep.subr.bf16.mxu0 %v14934_v61  ;;  %5170 = vmatprep.subr.bf16.mxu1 %v14936_v62  ;;  %v15032_v61 = vld [vmem:[#allocation2 + $0x12cc] ss:$80 sps:$4 sm:$0xff]   ;;  %v15027_v62 = vld [vmem:[#allocation2 + $0x12c0] ss:$80 sps:$4 sm:$0xff]  }
  0x89   :  { %5042 = vmatpush1.bf16.msra.mxu0 %v14938_v63  ;;  %5171 = vmatpush1.bf16.msra.mxu1 %v14939_v0  ;;  %v15030_v63 = vld [vmem:[#allocation2 + $0x12c8] ss:$80 sps:$4 sm:$0xff]   ;;  %v15035_v0 = vld [vmem:[#allocation2 + $0x1364] ss:$80 sps:$4 sm:$0xff]  }
  0x8a   :  { %5054 = vmatprep.subr.bf16.mxu0 %v14944_v1  ;;  %5183 = vmatprep.subr.bf16.mxu1 %v14947_v2  ;;  %v15038_v1 = vld [vmem:[#allocation2 + $0x136c] ss:$80 sps:$4 sm:$0xff]   ;;  %v15033_v2 = vld [vmem:[#allocation2 + $0x1360] ss:$80 sps:$4 sm:$0xff]  }
  0x8c   :  { %5044 = vmatmul.mubr.bf16.vlgmr.msra.gmra.mrb[0].mxu0 %v14948_v5  ;;  %5173 = vmatmul.mubr.bf16.vlgmr.msra.gmra.mrb[0].mxu1 %v14948_v5  ;;  %v15046_v5 = vld [vmem:[#allocation2 + $0x140c] ss:$80 sps:$4 sm:$0xff]  }
  0x8d   :  { %5055 = vmatpush1.bf16.msra.mxu0 %v14942_v3  ;;  %5184 = vmatpush1.bf16.msra.mxu1 %v14945_v4  ;;  %v15036_v3 = vld [vmem:[#allocation2 + $0x1368] ss:$80 sps:$4 sm:$0xff]   ;;  %v15043_v4 = vld [vmem:[#allocation2 + $0x1404] ss:$80 sps:$4 sm:$0xff]  }
  0x8e   :  { %5056 = vmatprep.subr.bf16.mxu0 %v14951_v6  ;;  %5185 = vmatprep.subr.bf16.mxu1 %v14954_v7  ;;  %v15041_v6 = vld [vmem:[#allocation2 + $0x1400] ss:$80 sps:$4 sm:$0xff]  }
  0x8f   :  { %5086 = vmatprep.mubr.bf16.mxu0 %v15039_v29  ;;  %5215 = vmatprep.mubr.bf16.mxu1 %v15039_v29  ;;  %v15047_v7 = vld [vmem:[%s17658_s0 + $0x8] ss:$20 sps:$4 sm:$0xff]   ;;  %v15075_v29 = vld [vmem:[#allocation2 + $0x1728] ss:$80 sps:$4 sm:$0xff]  }
  0x91   :  { %5057 = vmatpush1.bf16.msra.mxu0 %v14949_v8  ;;  %5186 = vmatpush1.bf16.msra.mxu1 %v14952_v9  ;;  %v15044_v8 = vld [vmem:[#allocation2 + $0x1408] ss:$80 sps:$4 sm:$0xff]   ;;  %v15050_v9 = vld [vmem:[#allocation2 + $0x14a4] ss:$80 sps:$4 sm:$0xff]  }
  0x92   :  { %5058 = vmatprep.subr.bf16.mxu0 %v14957_v10  ;;  %5187 = vmatprep.subr.bf16.mxu1 %v14960_v11  ;;  %v15053_v10 = vld [vmem:[#allocation2 + $0x14ac] ss:$80 sps:$4 sm:$0xff]   ;;  %v15048_v11 = vld [vmem:[#allocation2 + $0x14a0] ss:$80 sps:$4 sm:$0xff]  }
  0x95   :  { %5059 = vmatpush1.bf16.msra.mxu0 %v14955_v12  ;;  %5188 = vmatpush1.bf16.msra.mxu1 %v14958_v13  ;;  %v15051_v12 = vld [vmem:[#allocation2 + $0x14a8] ss:$80 sps:$4 sm:$0xff]   ;;  %v15056_v13 = vld [vmem:[#allocation2 + $0x1544] ss:$80 sps:$4 sm:$0xff]  }
  0x96   :  { %5060 = vmatprep.subr.bf16.mxu0 %v14963_v14  ;;  %5189 = vmatprep.subr.bf16.mxu1 %v14966_v15  ;;  %v15059_v14 = vld [vmem:[#allocation2 + $0x154c] ss:$80 sps:$4 sm:$0xff]   ;;  %v17318_v15 = vmov 0  }
  0x99   :  { %5061 = vmatpush1.bf16.msra.mxu0 %v14961_v16  ;;  %5190 = vmatpush1.bf16.msra.mxu1 %v14964_v17  ;;  %v15054_v16 = vld [vmem:[#allocation2 + $0x1540] ss:$80 sps:$4 sm:$0xff]   ;;  %v15057_v17 = vld [vmem:[#allocation2 + $0x1548] ss:$80 sps:$4 sm:$0xff]  }
  0x9a   :  { %5062 = vmatprep.subr.bf16.mxu0 %v14969_v18  ;;  %5191 = vmatprep.subr.bf16.mxu1 %v14972_v19  ;;  %v15062_v18 = vld [vmem:[#allocation2 + $0x15e4] ss:$80 sps:$4 sm:$0xff]   ;;  %v15065_v19 = vld [vmem:[#allocation2 + $0x15ec] ss:$80 sps:$4 sm:$0xff]  }
  0x9d   :  { %5063 = vmatpush1.bf16.msra.mxu0 %v14967_v20  ;;  %5192 = vmatpush1.bf16.msra.mxu1 %v14970_v21  ;;  %v15060_v20 = vld [vmem:[#allocation2 + $0x15e0] ss:$80 sps:$4 sm:$0xff]   ;;  %v15063_v21 = vld [vmem:[#allocation2 + $0x15e8] ss:$80 sps:$4 sm:$0xff]  }
  0x9e   :  { %5064 = vmatprep.subr.bf16.mxu0 %v14975_v22  ;;  %5193 = vmatprep.subr.bf16.mxu1 %v14978_v23  ;;  %v15068_v22 = vld [vmem:[#allocation2 + $0x1684] ss:$80 sps:$4 sm:$0xff]   ;;  %v15071_v23 = vld [vmem:[#allocation2 + $0x168c] ss:$80 sps:$4 sm:$0xff]  }
  0xa1   :  { %5065 = vmatpush1.bf16.msra.mxu0 %v14973_v24  ;;  %5194 = vmatpush1.bf16.msra.mxu1 %v14976_v25  ;;  %v15066_v24 = vld [vmem:[#allocation2 + $0x1680] ss:$80 sps:$4 sm:$0xff]   ;;  %v15069_v25 = vld [vmem:[#allocation2 + $0x1688] ss:$80 sps:$4 sm:$0xff]  }
  0xa2   :  { %5066 = vmatprep.subr.bf16.mxu0 %v14981_v26  ;;  %5195 = vmatprep.subr.bf16.mxu1 %v14984_v27  ;;  %v15074_v26 = vld [vmem:[#allocation2 + $0x1724] ss:$80 sps:$4 sm:$0xff]   ;;  %v15077_v27 = vld [vmem:[#allocation2 + $0x172c] ss:$80 sps:$4 sm:$0xff]  }
  0xa5   :  { %5067 = vmatpush1.bf16.msra.mxu0 %v14979_v28  ;;  %5196 = vmatpush1.bf16.msra.mxu1 %v14982_v30  ;;  %v15072_v28 = vld [vmem:[#allocation2 + $0x1720] ss:$80 sps:$4 sm:$0xff]   ;;  %v15080_v30 = vld [vmem:[#allocation2 + $0x17c4] ss:$80 sps:$4 sm:$0xff]  }
  0xa6   :  { %5068 = vmatprep.subr.bf16.mxu0 %v14987_v31  ;;  %5197 = vmatprep.subr.bf16.mxu1 %v14990_v32  ;;  %v15083_v31 = vld [vmem:[#allocation2 + $0x17cc] ss:$80 sps:$4 sm:$0xff]   ;;  %v15078_v32 = vld [vmem:[#allocation2 + $0x17c0] ss:$80 sps:$4 sm:$0xff]  }
  0xa9   :  { %5069 = vmatpush1.bf16.msra.mxu0 %v14985_v33  ;;  %5198 = vmatpush1.bf16.msra.mxu1 %v14988_v34  ;;  %v15081_v33 = vld [vmem:[#allocation2 + $0x17c8] ss:$80 sps:$4 sm:$0xff]   ;;  %v15086_v34 = vld [vmem:[#allocation2 + $0x1864] ss:$80 sps:$4 sm:$0xff]  }
  0xaa   :  { %5070 = vmatprep.subr.bf16.mxu0 %v14993_v35  ;;  %5199 = vmatprep.subr.bf16.mxu1 %v14996_v36  ;;  %v15089_v35 = vld [vmem:[#allocation2 + $0x186c] ss:$80 sps:$4 sm:$0xff]   ;;  %v15084_v36 = vld [vmem:[#allocation2 + $0x1860] ss:$80 sps:$4 sm:$0xff]  }
  0xad   :  { %5071 = vmatpush1.bf16.msra.mxu0 %v14991_v37  ;;  %5200 = vmatpush1.bf16.msra.mxu1 %v14994_v38  ;;  %v15087_v37 = vld [vmem:[#allocation2 + $0x1868] ss:$80 sps:$4 sm:$0xff]   ;;  %v15093_v38 = vld [vmem:[#allocation2 + $0x14] ss:$80 sps:$4 sm:$0xff]  }
  0xae   :  { %5072 = vmatprep.subr.bf16.mxu0 %v14999_v39  ;;  %5201 = vmatprep.subr.bf16.mxu1 %v15002_v40  ;;  %v15096_v39 = vld [vmem:[#allocation2 + $0x1c] ss:$80 sps:$4 sm:$0xff]  }
  0xaf   :  { %v15090_v40 = vld [vmem:[%s17658_s0 + $0x10] ss:$20 sps:$4 sm:$0xff]  }
  0xb1   :  { %5073 = vmatpush1.bf16.msra.mxu0 %v14997_v41  ;;  %5202 = vmatpush1.bf16.msra.mxu1 %v15000_v42  ;;  %v15091_v41 = vld [vmem:[#allocation2 + $0x10] ss:$80 sps:$4 sm:$0xff]   ;;  %v15094_v42 = vld [vmem:[#allocation2 + $0x18] ss:$80 sps:$4 sm:$0xff]  }
  0xb2   :  { %5074 = vmatprep.subr.bf16.mxu0 %v15005_v43  ;;  %5203 = vmatprep.subr.bf16.mxu1 %v15008_v44  ;;  %v15099_v43 = vld [vmem:[#allocation2 + $0xb4] ss:$80 sps:$4 sm:$0xff]   ;;  %v15102_v44 = vld [vmem:[#allocation2 + $0xbc] ss:$80 sps:$4 sm:$0xff]  }
  0xb5   :  { %5075 = vmatpush1.bf16.msra.mxu0 %v15003_v45  ;;  %5204 = vmatpush1.bf16.msra.mxu1 %v15006_v46  ;;  %v15097_v45 = vld [vmem:[#allocation2 + $0xb0] ss:$80 sps:$4 sm:$0xff]   ;;  %v15100_v46 = vld [vmem:[#allocation2 + $0xb8] ss:$80 sps:$4 sm:$0xff]  }
  0xb6   :  { %5076 = vmatprep.subr.bf16.mxu0 %v15011_v48  ;;  %5205 = vmatprep.subr.bf16.mxu1 %v15014_v49  ;;  %v15105_v48 = vld [vmem:[#allocation2 + $0x154] ss:$80 sps:$4 sm:$0xff]   ;;  %v15108_v49 = vld [vmem:[#allocation2 + $0x15c] ss:$80 sps:$4 sm:$0xff]  }
  0xb9   :  { %5077 = vmatpush1.bf16.msra.mxu0 %v15009_v50  ;;  %5206 = vmatpush1.bf16.msra.mxu1 %v15012_v51  ;;  %v15103_v50 = vld [vmem:[#allocation2 + $0x150] ss:$80 sps:$4 sm:$0xff]   ;;  %v15106_v51 = vld [vmem:[#allocation2 + $0x158] ss:$80 sps:$4 sm:$0xff]  }
  0xba   :  { %5078 = vmatprep.subr.bf16.mxu0 %v15017_v52  ;;  %5207 = vmatprep.subr.bf16.mxu1 %v15020_v53  ;;  %v15111_v52 = vld [vmem:[#allocation2 + $0x1f4] ss:$80 sps:$4 sm:$0xff]   ;;  %v15114_v53 = vld [vmem:[#allocation2 + $0x1fc] ss:$80 sps:$4 sm:$0xff]  }
  0xbd   :  { %5079 = vmatpush1.bf16.msra.mxu0 %v15015_v54  ;;  %5208 = vmatpush1.bf16.msra.mxu1 %v15018_v55  ;;  %v15109_v54 = vld [vmem:[#allocation2 + $0x1f0] ss:$80 sps:$4 sm:$0xff]   ;;  %v15112_v55 = vld [vmem:[#allocation2 + $0x1f8] ss:$80 sps:$4 sm:$0xff]  }
  0xbe   :  { %5080 = vmatprep.subr.bf16.mxu0 %v15023_v56  ;;  %5209 = vmatprep.subr.bf16.mxu1 %v15026_v57  ;;  %v15117_v56 = vld [vmem:[#allocation2 + $0x294] ss:$80 sps:$4 sm:$0xff]   ;;  %v15120_v57 = vld [vmem:[#allocation2 + $0x29c] ss:$80 sps:$4 sm:$0xff]  }
  0xc1   :  { %5081 = vmatpush1.bf16.msra.mxu0 %v15021_v58  ;;  %5210 = vmatpush1.bf16.msra.mxu1 %v15024_v59  ;;  %v15115_v58 = vld [vmem:[#allocation2 + $0x290] ss:$80 sps:$4 sm:$0xff]   ;;  %v15123_v59 = vld [vmem:[#allocation2 + $0x334] ss:$80 sps:$4 sm:$0xff]  }
  0xc2   :  { %5082 = vmatprep.subr.bf16.mxu0 %v15029_v60  ;;  %5211 = vmatprep.subr.bf16.mxu1 %v15032_v61  ;;  %v15126_v60 = vld [vmem:[#allocation2 + $0x33c] ss:$80 sps:$4 sm:$0xff]   ;;  %v15121_v61 = vld [vmem:[#allocation2 + $0x330] ss:$80 sps:$4 sm:$0xff]  }
  0xc5   :  { %5083 = vmatpush1.bf16.msra.mxu0 %v15027_v62  ;;  %5212 = vmatpush1.bf16.msra.mxu1 %v15030_v63  ;;  %v15124_v62 = vld [vmem:[#allocation2 + $0x338] ss:$80 sps:$4 sm:$0xff]   ;;  %v15129_v63 = vld [vmem:[#allocation2 + $0x3d4] ss:$80 sps:$4 sm:$0xff]  }
  0xc6   :  { %5084 = vmatprep.subr.bf16.mxu0 %v15035_v0  ;;  %5213 = vmatprep.subr.bf16.mxu1 %v15038_v1  ;;  %v15132_v0 = vld [vmem:[#allocation2 + $0x3dc] ss:$80 sps:$4 sm:$0xff]   ;;  %v15127_v1 = vld [vmem:[#allocation2 + $0x3d0] ss:$80 sps:$4 sm:$0xff]  }
  0xc9   :  { %5085 = vmatpush1.bf16.msra.mxu0 %v15033_v2  ;;  %5214 = vmatpush1.bf16.msra.mxu1 %v15036_v3  ;;  %v15130_v2 = vld [vmem:[#allocation2 + $0x3d8] ss:$80 sps:$4 sm:$0xff]   ;;  %v15135_v3 = vld [vmem:[#allocation2 + $0x474] ss:$80 sps:$4 sm:$0xff]  }
  0xca   :  { %5097 = vmatprep.subr.bf16.mxu0 %v15043_v4  ;;  %5226 = vmatprep.subr.bf16.mxu1 %v15046_v5  ;;  %v15138_v4 = vld [vmem:[#allocation2 + $0x47c] ss:$80 sps:$4 sm:$0xff]   ;;  %v15133_v5 = vld [vmem:[#allocation2 + $0x470] ss:$80 sps:$4 sm:$0xff]  }
  0xcc   :  { %5087 = vmatmul.mubr.bf16.vlgmr.msra.gmra.mrb[0].mxu0 %v15047_v7  ;;  %5216 = vmatmul.mubr.bf16.vlgmr.msra.gmra.mrb[0].mxu1 %v15047_v7  ;;  %v15141_v7 = vld [vmem:[#allocation2 + $0x514] ss:$80 sps:$4 sm:$0xff]  }
  0xcd   :  { %5098 = vmatpush1.bf16.msra.mxu0 %v15041_v6  ;;  %5227 = vmatpush1.bf16.msra.mxu1 %v15044_v8  ;;  %v15136_v6 = vld [vmem:[#allocation2 + $0x478] ss:$80 sps:$4 sm:$0xff]   ;;  %v15144_v8 = vld [vmem:[#allocation2 + $0x51c] ss:$80 sps:$4 sm:$0xff]  }
  0xce   :  { %5099 = vmatprep.subr.bf16.mxu0 %v15050_v9  ;;  %5228 = vmatprep.subr.bf16.mxu1 %v15053_v10  ;;  %v15139_v9 = vld [vmem:[#allocation2 + $0x510] ss:$80 sps:$4 sm:$0xff]   ;;  %v15142_v10 = vld [vmem:[#allocation2 + $0x518] ss:$80 sps:$4 sm:$0xff]  }
  0xcf   :  { %5129 = vmatprep.mubr.bf16.mxu0 %v17318_v15  ;;  %5258 = vmatprep.mubr.bf16.mxu1 %v17318_v15 }
  0xd1   :  { %5100 = vmatpush1.bf16.msra.mxu0 %v15048_v11  ;;  %5229 = vmatpush1.bf16.msra.mxu1 %v15051_v12  ;;  %v15147_v11 = vld [vmem:[#allocation2 + $0x5b4] ss:$80 sps:$4 sm:$0xff]   ;;  %v15150_v12 = vld [vmem:[#allocation2 + $0x5bc] ss:$80 sps:$4 sm:$0xff]  }
  0xd2   :  { %5101 = vmatprep.subr.bf16.mxu0 %v15056_v13  ;;  %5230 = vmatprep.subr.bf16.mxu1 %v15059_v14  ;;  %v15145_v13 = vld [vmem:[#allocation2 + $0x5b0] ss:$80 sps:$4 sm:$0xff]   ;;  %v15148_v14 = vld [vmem:[#allocation2 + $0x5b8] ss:$80 sps:$4 sm:$0xff]  }
  0xd5   :  { %5102 = vmatpush1.bf16.msra.mxu0 %v15054_v16  ;;  %5231 = vmatpush1.bf16.msra.mxu1 %v15057_v17  ;;  %v15153_v16 = vld [vmem:[#allocation2 + $0x654] ss:$80 sps:$4 sm:$0xff]   ;;  %v15156_v17 = vld [vmem:[#allocation2 + $0x65c] ss:$80 sps:$4 sm:$0xff]  }
  0xd6   :  { %5103 = vmatprep.subr.bf16.mxu0 %v15062_v18  ;;  %5232 = vmatprep.subr.bf16.mxu1 %v15065_v19  ;;  %v15151_v18 = vld [vmem:[#allocation2 + $0x650] ss:$80 sps:$4 sm:$0xff]   ;;  %v15154_v19 = vld [vmem:[#allocation2 + $0x658] ss:$80 sps:$4 sm:$0xff]  }
  0xd9   :  { %5104 = vmatpush1.bf16.msra.mxu0 %v15060_v20  ;;  %5233 = vmatpush1.bf16.msra.mxu1 %v15063_v21  ;;  %v15159_v20 = vld [vmem:[#allocation2 + $0x6f4] ss:$80 sps:$4 sm:$0xff]   ;;  %v15162_v21 = vld [vmem:[#allocation2 + $0x6fc] ss:$80 sps:$4 sm:$0xff]  }
  0xda   :  { %5105 = vmatprep.subr.bf16.mxu0 %v15068_v22  ;;  %5234 = vmatprep.subr.bf16.mxu1 %v15071_v23  ;;  %v15157_v22 = vld [vmem:[#allocation2 + $0x6f0] ss:$80 sps:$4 sm:$0xff]   ;;  %v15160_v23 = vld [vmem:[#allocation2 + $0x6f8] ss:$80 sps:$4 sm:$0xff]  }
  0xdd   :  { %5106 = vmatpush1.bf16.msra.mxu0 %v15066_v24  ;;  %5235 = vmatpush1.bf16.msra.mxu1 %v15069_v25  ;;  %v15165_v24 = vld [vmem:[#allocation2 + $0x794] ss:$80 sps:$4 sm:$0xff]   ;;  %v15168_v25 = vld [vmem:[#allocation2 + $0x79c] ss:$80 sps:$4 sm:$0xff]  }
  0xde   :  { %5107 = vmatprep.subr.bf16.mxu0 %v15074_v26  ;;  %5236 = vmatprep.subr.bf16.mxu1 %v15077_v27  ;;  %v15163_v26 = vld [vmem:[#allocation2 + $0x790] ss:$80 sps:$4 sm:$0xff]   ;;  %v15166_v27 = vld [vmem:[#allocation2 + $0x798] ss:$80 sps:$4 sm:$0xff]  }
  0xe1   :  { %5108 = vmatpush1.bf16.msra.mxu0 %v15072_v28  ;;  %5237 = vmatpush1.bf16.msra.mxu1 %v15075_v29  ;;  %v15171_v28 = vld [vmem:[#allocation2 + $0x834] ss:$80 sps:$4 sm:$0xff]   ;;  %v15174_v29 = vld [vmem:[#allocation2 + $0x83c] ss:$80 sps:$4 sm:$0xff]  }
  0xe2   :  { %5109 = vmatprep.subr.bf16.mxu0 %v15080_v30  ;;  %5238 = vmatprep.subr.bf16.mxu1 %v15083_v31  ;;  %v15169_v30 = vld [vmem:[#allocation2 + $0x830] ss:$80 sps:$4 sm:$0xff]   ;;  %v15172_v31 = vld [vmem:[#allocation2 + $0x838] ss:$80 sps:$4 sm:$0xff]  }
  0xe5   :  { %5110 = vmatpush1.bf16.msra.mxu0 %v15078_v32  ;;  %5239 = vmatpush1.bf16.msra.mxu1 %v15081_v33  ;;  %v15177_v32 = vld [vmem:[#allocation2 + $0x8d4] ss:$80 sps:$4 sm:$0xff]   ;;  %v15180_v33 = vld [vmem:[#allocation2 + $0x8dc] ss:$80 sps:$4 sm:$0xff]  }
  0xe6   :  { %5111 = vmatprep.subr.bf16.mxu0 %v15086_v34  ;;  %5240 = vmatprep.subr.bf16.mxu1 %v15089_v35  ;;  %v15175_v34 = vld [vmem:[#allocation2 + $0x8d0] ss:$80 sps:$4 sm:$0xff]   ;;  %v15178_v35 = vld [vmem:[#allocation2 + $0x8d8] ss:$80 sps:$4 sm:$0xff]  }
  0xe9   :  { %5112 = vmatpush1.bf16.msra.mxu0 %v15084_v36  ;;  %5241 = vmatpush1.bf16.msra.mxu1 %v15087_v37  ;;  %v15183_v36 = vld [vmem:[#allocation2 + $0x974] ss:$80 sps:$4 sm:$0xff]   ;;  %v15186_v37 = vld [vmem:[#allocation2 + $0x97c] ss:$80 sps:$4 sm:$0xff]  }
  0xea   :  { %5269 = vmatprep.subr.bf16.mxu0 %v15093_v38  ;;  %5398 = vmatprep.subr.bf16.mxu1 %v15096_v39  ;;  %v15181_v38 = vld [vmem:[#allocation2 + $0x970] ss:$80 sps:$4 sm:$0xff]   ;;  %v15184_v39 = vld [vmem:[#allocation2 + $0x978] ss:$80 sps:$4 sm:$0xff]  }
  0xec   :  { %5130 = vmatmul.mubr.bf16.vlgmr.msra.gmra.mrb[0].mxu0 %v15090_v40  ;;  %5259 = vmatmul.mubr.bf16.vlgmr.msra.gmra.mrb[0].mxu1 %v15090_v40  ;;  %v15189_v40 = vld [vmem:[#allocation2 + $0xa14] ss:$80 sps:$4 sm:$0xff]  }
  0xed   :  { %5270 = vmatpush1.bf16.msra.mxu0 %v15091_v41  ;;  %5399 = vmatpush1.bf16.msra.mxu1 %v15094_v42  ;;  %v15192_v41 = vld [vmem:[#allocation2 + $0xa1c] ss:$80 sps:$4 sm:$0xff]   ;;  %v15187_v42 = vld [vmem:[#allocation2 + $0xa10] ss:$80 sps:$4 sm:$0xff]  }
  0xee   :  { %5271 = vmatprep.subr.bf16.mxu0 %v15099_v43  ;;  %5400 = vmatprep.subr.bf16.mxu1 %v15102_v44  ;;  %v15190_v43 = vld [vmem:[#allocation2 + $0xa18] ss:$80 sps:$4 sm:$0xff]   ;;  %v15195_v44 = vld [vmem:[#allocation2 + $0xab4] ss:$80 sps:$4 sm:$0xff]  }
  0xef   :  { %5301 = vmatprep.mubr.bf16.mxu0 %v17410_v47  ;;  %5430 = vmatprep.mubr.bf16.mxu1 %v17410_v47  ;;  %v15118_v47 = vld [vmem:[#allocation2 + $0x298] ss:$80 sps:$4 sm:$0xff]  }
  0xf1   :  { %5272 = vmatpush1.bf16.msra.mxu0 %v15097_v45  ;;  %5401 = vmatpush1.bf16.msra.mxu1 %v15100_v46  ;;  %v15198_v45 = vld [vmem:[#allocation2 + $0xabc] ss:$80 sps:$4 sm:$0xff]  }
  0xf2   :  { %5273 = vmatprep.subr.bf16.mxu0 %v15105_v48  ;;  %5402 = vmatprep.subr.bf16.mxu1 %v15108_v49  ;;  %v17171_v46 = vld [vmem:[%s17658_s0] ss:$20 sps:$4 sm:$0xff]   ;;  %v15193_v48 = vld [vmem:[#allocation2 + $0xab0] ss:$80 sps:$4 sm:$0xff]  }
  0xf3   :  { %v15196_v49 = vld [vmem:[#allocation2 + $0xab8] ss:$80 sps:$4 sm:$0xff]  }
  0xf5   :  { %5274 = vmatpush1.bf16.msra.mxu0 %v15103_v50  ;;  %5403 = vmatpush1.bf16.msra.mxu1 %v15106_v51  ;;  %v15201_v50 = vld [vmem:[#allocation2 + $0xb54] ss:$80 sps:$4 sm:$0xff]   ;;  %v15204_v51 = vld [vmem:[#allocation2 + $0xb5c] ss:$80 sps:$4 sm:$0xff]  }
  0xf6   :  { %5275 = vmatprep.subr.bf16.mxu0 %v15111_v52  ;;  %5404 = vmatprep.subr.bf16.mxu1 %v15114_v53  ;;  %v17172_v52 = vld [vmem:[%s17658_s0 + $0xc] ss:$20 sps:$4 sm:$0xff]   ;;  %v15199_v53 = vld [vmem:[#allocation2 + $0xb50] ss:$80 sps:$4 sm:$0xff]  }
  0xf9   :  { %5276 = vmatpush1.bf16.msra.mxu0 %v15109_v54  ;;  %5405 = vmatpush1.bf16.msra.mxu1 %v15112_v55  ;;  %v15202_v54 = vld [vmem:[#allocation2 + $0xb58] ss:$80 sps:$4 sm:$0xff]   ;;  %v15207_v55 = vld [vmem:[#allocation2 + $0xbf4] ss:$80 sps:$4 sm:$0xff]  }
  0xfa   :  { %5277 = vmatprep.subr.bf16.mxu0 %v15117_v56  ;;  %5406 = vmatprep.subr.bf16.mxu1 %v15120_v57  ;;  %v15210_v56 = vld [vmem:[#allocation2 + $0xbfc] ss:$80 sps:$4 sm:$0xff]   ;;  %v15205_v57 = vld [vmem:[#allocation2 + $0xbf0] ss:$80 sps:$4 sm:$0xff]  }
  0xfd   :  { %5278 = vmatpush1.bf16.msra.mxu0 %v15115_v58  ;;  %5407 = vmatpush1.bf16.msra.mxu1 %v15118_v47  ;;  %v15208_v58 = vld [vmem:[#allocation2 + $0xbf8] ss:$80 sps:$4 sm:$0xff]   ;;  %v15213_v47 = vld [vmem:[#allocation2 + $0xc94] ss:$80 sps:$4 sm:$0xff]  }
  0xfe   :  { %5279 = vmatprep.subr.bf16.mxu0 %v15123_v59  ;;  %5408 = vmatprep.subr.bf16.mxu1 %v15126_v60  ;;  %v15216_v59 = vld [vmem:[#allocation2 + $0xc9c] ss:$80 sps:$4 sm:$0xff]   ;;  %v15211_v60 = vld [vmem:[#allocation2 + $0xc90] ss:$80 sps:$4 sm:$0xff]  }
 0x101   :  { %5280 = vmatpush1.bf16.msra.mxu0 %v15121_v61  ;;  %5409 = vmatpush1.bf16.msra.mxu1 %v15124_v62  ;;  %v15214_v61 = vld [vmem:[#allocation2 + $0xc98] ss:$80 sps:$4 sm:$0xff]   ;;  %v15219_v62 = vld [vmem:[#allocation2 + $0xd34] ss:$80 sps:$4 sm:$0xff]  }
 0x102   :  { %5281 = vmatprep.subr.bf16.mxu0 %v15129_v63  ;;  %5410 = vmatprep.subr.bf16.mxu1 %v15132_v0  ;;  %v15222_v63 = vld [vmem:[#allocation2 + $0xd3c] ss:$80 sps:$4 sm:$0xff]   ;;  %v15217_v0 = vld [vmem:[#allocation2 + $0xd30] ss:$80 sps:$4 sm:$0xff]  }
 0x105   :  { %5282 = vmatpush1.bf16.msra.mxu0 %v15127_v1  ;;  %5411 = vmatpush1.bf16.msra.mxu1 %v15130_v2  ;;  %v15220_v1 = vld [vmem:[#allocation2 + $0xd38] ss:$80 sps:$4 sm:$0xff]   ;;  %v15225_v2 = vld [vmem:[#allocation2 + $0xdd4] ss:$80 sps:$4 sm:$0xff]  }
 0x106   :  { %5283 = vmatprep.subr.bf16.mxu0 %v15135_v3  ;;  %5412 = vmatprep.subr.bf16.mxu1 %v15138_v4  ;;  %v15228_v3 = vld [vmem:[#allocation2 + $0xddc] ss:$80 sps:$4 sm:$0xff]   ;;  %v15223_v4 = vld [vmem:[#allocation2 + $0xdd0] ss:$80 sps:$4 sm:$0xff]  }
 0x109   :  { %5284 = vmatpush1.bf16.msra.mxu0 %v15133_v5  ;;  %5413 = vmatpush1.bf16.msra.mxu1 %v15136_v6  ;;  %v15226_v5 = vld [vmem:[#allocation2 + $0xdd8] ss:$80 sps:$4 sm:$0xff]   ;;  %v15231_v6 = vld [vmem:[#allocation2 + $0xe74] ss:$80 sps:$4 sm:$0xff]  }
 0x10a   :  { %5285 = vmatprep.subr.bf16.mxu0 %v15141_v7  ;;  %5414 = vmatprep.subr.bf16.mxu1 %v15144_v8  ;;  %v15234_v7 = vld [vmem:[#allocation2 + $0xe7c] ss:$80 sps:$4 sm:$0xff]   ;;  %v15229_v8 = vld [vmem:[#allocation2 + $0xe70] ss:$80 sps:$4 sm:$0xff]  }
 0x10d   :  { %5286 = vmatpush1.bf16.msra.mxu0 %v15139_v9  ;;  %5415 = vmatpush1.bf16.msra.mxu1 %v15142_v10  ;;  %v15232_v9 = vld [vmem:[#allocation2 + $0xe78] ss:$80 sps:$4 sm:$0xff]   ;;  %v15237_v10 = vld [vmem:[#allocation2 + $0xf14] ss:$80 sps:$4 sm:$0xff]  }
 0x10e   :  { %5287 = vmatprep.subr.bf16.mxu0 %v15147_v11  ;;  %5416 = vmatprep.subr.bf16.mxu1 %v15150_v12  ;;  %v15240_v11 = vld [vmem:[#allocation2 + $0xf1c] ss:$80 sps:$4 sm:$0xff]   ;;  %v15235_v12 = vld [vmem:[#allocation2 + $0xf10] ss:$80 sps:$4 sm:$0xff]  }
 0x111   :  { %5288 = vmatpush1.bf16.msra.mxu0 %v15145_v13  ;;  %5417 = vmatpush1.bf16.msra.mxu1 %v15148_v14  ;;  %v15238_v13 = vld [vmem:[#allocation2 + $0xf18] ss:$80 sps:$4 sm:$0xff]   ;;  %v15243_v14 = vld [vmem:[#allocation2 + $0xfb4] ss:$80 sps:$4 sm:$0xff]  }
 0x112   :  { %5289 = vmatprep.subr.bf16.mxu0 %v15153_v16  ;;  %5418 = vmatprep.subr.bf16.mxu1 %v15156_v17  ;;  %v15246_v16 = vld [vmem:[#allocation2 + $0xfbc] ss:$80 sps:$4 sm:$0xff]   ;;  %v15241_v17 = vld [vmem:[#allocation2 + $0xfb0] ss:$80 sps:$4 sm:$0xff]  }
 0x115   :  { %5290 = vmatpush1.bf16.msra.mxu0 %v15151_v18  ;;  %5419 = vmatpush1.bf16.msra.mxu1 %v15154_v19  ;;  %v15244_v18 = vld [vmem:[#allocation2 + $0xfb8] ss:$80 sps:$4 sm:$0xff]   ;;  %v15249_v19 = vld [vmem:[#allocation2 + $0x1054] ss:$80 sps:$4 sm:$0xff]  }
 0x116   :  { %5291 = vmatprep.subr.bf16.mxu0 %v15159_v20  ;;  %5420 = vmatprep.subr.bf16.mxu1 %v15162_v21  ;;  %v15252_v20 = vld [vmem:[#allocation2 + $0x105c] ss:$80 sps:$4 sm:$0xff]   ;;  %v15247_v21 = vld [vmem:[#allocation2 + $0x1050] ss:$80 sps:$4 sm:$0xff]  }
 0x119   :  { %5292 = vmatpush1.bf16.msra.mxu0 %v15157_v22  ;;  %5421 = vmatpush1.bf16.msra.mxu1 %v15160_v23  ;;  %v15250_v22 = vld [vmem:[#allocation2 + $0x1058] ss:$80 sps:$4 sm:$0xff]   ;;  %v15255_v23 = vld [vmem:[#allocation2 + $0x10f4] ss:$80 sps:$4 sm:$0xff]  }
 0x11a   :  { %5293 = vmatprep.subr.bf16.mxu0 %v15165_v24  ;;  %5422 = vmatprep.subr.bf16.mxu1 %v15168_v25  ;;  %v15258_v24 = vld [vmem:[#allocation2 + $0x10fc] ss:$80 sps:$4 sm:$0xff]   ;;  %v15253_v25 = vld [vmem:[#allocation2 + $0x10f0] ss:$80 sps:$4 sm:$0xff]  }
 0x11d   :  { %5294 = vmatpush1.bf16.msra.mxu0 %v15163_v26  ;;  %5423 = vmatpush1.bf16.msra.mxu1 %v15166_v27  ;;  %v15256_v26 = vld [vmem:[#allocation2 + $0x10f8] ss:$80 sps:$4 sm:$0xff]   ;;  %v15261_v27 = vld [vmem:[#allocation2 + $0x1194] ss:$80 sps:$4 sm:$0xff]  }
 0x11e   :  { %5295 = vmatprep.subr.bf16.mxu0 %v15171_v28  ;;  %5424 = vmatprep.subr.bf16.mxu1 %v15174_v29  ;;  %v15264_v28 = vld [vmem:[#allocation2 + $0x119c] ss:$80 sps:$4 sm:$0xff]   ;;  %v15259_v29 = vld [vmem:[#allocation2 + $0x1190] ss:$80 sps:$4 sm:$0xff]  }
 0x121   :  { %5296 = vmatpush1.bf16.msra.mxu0 %v15169_v30  ;;  %5425 = vmatpush1.bf16.msra.mxu1 %v15172_v31  ;;  %v15262_v30 = vld [vmem:[#allocation2 + $0x1198] ss:$80 sps:$4 sm:$0xff]   ;;  %v15267_v31 = vld [vmem:[#allocation2 + $0x1234] ss:$80 sps:$4 sm:$0xff]  }
 0x122   :  { %5297 = vmatprep.subr.bf16.mxu0 %v15177_v32  ;;  %5426 = vmatprep.subr.bf16.mxu1 %v15180_v33  ;;  %v15270_v32 = vld [vmem:[#allocation2 + $0x123c] ss:$80 sps:$4 sm:$0xff]   ;;  %v15265_v33 = vld [vmem:[#allocation2 + $0x1230] ss:$80 sps:$4 sm:$0xff]  }
 0x125   :  { %5298 = vmatpush1.bf16.msra.mxu0 %v15175_v34  ;;  %5427 = vmatpush1.bf16.msra.mxu1 %v15178_v35  ;;  %v15268_v34 = vld [vmem:[#allocation2 + $0x1238] ss:$80 sps:$4 sm:$0xff]   ;;  %v15273_v35 = vld [vmem:[#allocation2 + $0x12d4] ss:$80 sps:$4 sm:$0xff]  }
 0x126   :  { %5299 = vmatprep.subr.bf16.mxu0 %v15183_v36  ;;  %5428 = vmatprep.subr.bf16.mxu1 %v15186_v37  ;;  %v15276_v36 = vld [vmem:[#allocation2 + $0x12dc] ss:$80 sps:$4 sm:$0xff]   ;;  %v15271_v37 = vld [vmem:[#allocation2 + $0x12d0] ss:$80 sps:$4 sm:$0xff]  }
 0x129   :  { %5300 = vmatpush1.bf16.msra.mxu0 %v15181_v38  ;;  %5429 = vmatpush1.bf16.msra.mxu1 %v15184_v39  ;;  %v15274_v38 = vld [vmem:[#allocation2 + $0x12d8] ss:$80 sps:$4 sm:$0xff]   ;;  %v15279_v39 = vld [vmem:[#allocation2 + $0x1374] ss:$80 sps:$4 sm:$0xff]  }
 0x12a   :  { %5312 = vmatprep.subr.bf16.mxu0 %v15189_v40  ;;  %5441 = vmatprep.subr.bf16.mxu1 %v15192_v41  ;;  %v15282_v40 = vld [vmem:[#allocation2 + $0x137c] ss:$80 sps:$4 sm:$0xff]   ;;  %v15277_v41 = vld [vmem:[#allocation2 + $0x1370] ss:$80 sps:$4 sm:$0xff]  }
 0x12c   :  { %5302 = vmatmul.mubr.bf16.vlgmr.msra.gmra.mrb[4].mxu0 %v17171_v46  ;;  %5431 = vmatmul.mubr.bf16.vlgmr.msra.gmra.mrb[4].mxu1 %v17171_v46  ;;  %v15286_v46 = vld [vmem:[#allocation2 + $0x1418] ss:$80 sps:$4 sm:$0xff]  }
 0x12d   :  { %5313 = vmatpush1.bf16.msra.mxu0 %v15187_v42  ;;  %5442 = vmatpush1.bf16.msra.mxu1 %v15190_v43  ;;  %v15280_v42 = vld [vmem:[#allocation2 + $0x1378] ss:$80 sps:$4 sm:$0xff]   ;;  %v15285_v43 = vld [vmem:[#allocation2 + $0x1414] ss:$80 sps:$4 sm:$0xff]  }
 0x12e   :  { %5314 = vmatprep.subr.bf16.mxu0 %v15195_v44  ;;  %5443 = vmatprep.subr.bf16.mxu1 %v15198_v45  ;;  %v15288_v44 = vld [vmem:[#allocation2 + $0x141c] ss:$80 sps:$4 sm:$0xff]   ;;  %v15283_v45 = vld [vmem:[#allocation2 + $0x1410] ss:$80 sps:$4 sm:$0xff]  }
 0x12f   :  { %5344 = vmatprep.mubr.bf16.mxu0 %v17172_v52  ;;  %5473 = vmatprep.mubr.bf16.mxu1 %v17172_v52  ;;  %v15292_v52 = vld [vmem:[#allocation2 + $0x14b8] ss:$80 sps:$4 sm:$0xff]  }
 0x131   :  { %5315 = vmatpush1.bf16.msra.mxu0 %v15193_v48  ;;  %5444 = vmatpush1.bf16.msra.mxu1 %v15196_v49  ;;  %v15291_v48 = vld [vmem:[#allocation2 + $0x14b4] ss:$80 sps:$4 sm:$0xff]   ;;  %v15294_v49 = vld [vmem:[#allocation2 + $0x14bc] ss:$80 sps:$4 sm:$0xff]  }
 0x132   :  { %5316 = vmatprep.subr.bf16.mxu0 %v15201_v50  ;;  %5445 = vmatprep.subr.bf16.mxu1 %v15204_v51  ;;  %v17173_v50 = vld [vmem:[%s17658_s0 + $0x8] ss:$20 sps:$4 sm:$0xff]  }
 0x133   :  { %v15289_v51 = vld [vmem:[#allocation2 + $0x14b0] ss:$80 sps:$4 sm:$0xff]  }
 0x135   :  { %5317 = vmatpush1.bf16.msra.mxu0 %v15199_v53  ;;  %5446 = vmatpush1.bf16.msra.mxu1 %v15202_v54  ;;  %v15297_v53 = vld [vmem:[#allocation2 + $0x1554] ss:$80 sps:$4 sm:$0xff]   ;;  %v15300_v54 = vld [vmem:[#allocation2 + $0x155c] ss:$80 sps:$4 sm:$0xff]  }
 0x136   :  { %5318 = vmatprep.subr.bf16.mxu0 %v15207_v55  ;;  %5447 = vmatprep.subr.bf16.mxu1 %v15210_v56  ;;  %v15295_v55 = vld [vmem:[#allocation2 + $0x1550] ss:$80 sps:$4 sm:$0xff]   ;;  %v15298_v56 = vld [vmem:[#allocation2 + $0x1558] ss:$80 sps:$4 sm:$0xff]  }
 0x139   :  { %5319 = vmatpush1.bf16.msra.mxu0 %v15205_v57  ;;  %5448 = vmatpush1.bf16.msra.mxu1 %v15208_v58  ;;  %v15303_v57 = vld [vmem:[#allocation2 + $0x15f4] ss:$80 sps:$4 sm:$0xff]   ;;  %v15306_v58 = vld [vmem:[#allocation2 + $0x15fc] ss:$80 sps:$4 sm:$0xff]  }
 0x13a   :  { %5320 = vmatprep.subr.bf16.mxu0 %v15213_v47  ;;  %5449 = vmatprep.subr.bf16.mxu1 %v15216_v59  ;;  %v15301_v47 = vld [vmem:[#allocation2 + $0x15f0] ss:$80 sps:$4 sm:$0xff]   ;;  %v15304_v59 = vld [vmem:[#allocation2 + $0x15f8] ss:$80 sps:$4 sm:$0xff]  }
 0x13d   :  { %5321 = vmatpush1.bf16.msra.mxu0 %v15211_v60  ;;  %5450 = vmatpush1.bf16.msra.mxu1 %v15214_v61  ;;  %v15309_v60 = vld [vmem:[#allocation2 + $0x1694] ss:$80 sps:$4 sm:$0xff]   ;;  %v15312_v61 = vld [vmem:[#allocation2 + $0x169c] ss:$80 sps:$4 sm:$0xff]  }
 0x13e   :  { %5322 = vmatprep.subr.bf16.mxu0 %v15219_v62  ;;  %5451 = vmatprep.subr.bf16.mxu1 %v15222_v63  ;;  %v15307_v62 = vld [vmem:[#allocation2 + $0x1690] ss:$80 sps:$4 sm:$0xff]   ;;  %v15310_v63 = vld [vmem:[#allocation2 + $0x1698] ss:$80 sps:$4 sm:$0xff]  }
 0x141   :  { %5323 = vmatpush1.bf16.msra.mxu0 %v15217_v0  ;;  %5452 = vmatpush1.bf16.msra.mxu1 %v15220_v1  ;;  %v15315_v0 = vld [vmem:[#allocation2 + $0x1734] ss:$80 sps:$4 sm:$0xff]   ;;  %v15318_v1 = vld [vmem:[#allocation2 + $0x173c] ss:$80 sps:$4 sm:$0xff]  }
 0x142   :  { %5324 = vmatprep.subr.bf16.mxu0 %v15225_v2  ;;  %5453 = vmatprep.subr.bf16.mxu1 %v15228_v3  ;;  %v15313_v2 = vld [vmem:[#allocation2 + $0x1730] ss:$80 sps:$4 sm:$0xff]   ;;  %v15316_v3 = vld [vmem:[#allocation2 + $0x1738] ss:$80 sps:$4 sm:$0xff]  }
 0x145   :  { %5325 = vmatpush1.bf16.msra.mxu0 %v15223_v4  ;;  %5454 = vmatpush1.bf16.msra.mxu1 %v15226_v5  ;;  %v15321_v4 = vld [vmem:[#allocation2 + $0x17d4] ss:$80 sps:$4 sm:$0xff]   ;;  %v15324_v5 = vld [vmem:[#allocation2 + $0x17dc] ss:$80 sps:$4 sm:$0xff]  }
 0x146   :  { %5326 = vmatprep.subr.bf16.mxu0 %v15231_v6  ;;  %5455 = vmatprep.subr.bf16.mxu1 %v15234_v7  ;;  %v15319_v6 = vld [vmem:[#allocation2 + $0x17d0] ss:$80 sps:$4 sm:$0xff]   ;;  %v15322_v7 = vld [vmem:[#allocation2 + $0x17d8] ss:$80 sps:$4 sm:$0xff]  }
 0x149   :  { %5327 = vmatpush1.bf16.msra.mxu0 %v15229_v8  ;;  %5456 = vmatpush1.bf16.msra.mxu1 %v15232_v9  ;;  %v15327_v8 = vld [vmem:[#allocation2 + $0x1874] ss:$80 sps:$4 sm:$0xff]   ;;  %v15330_v9 = vld [vmem:[#allocation2 + $0x187c] ss:$80 sps:$4 sm:$0xff]  }
 0x14a   :  { %5328 = vmatprep.subr.bf16.mxu0 %v15237_v10  ;;  %5457 = vmatprep.subr.bf16.mxu1 %v15240_v11  ;;  %v15325_v10 = vld [vmem:[#allocation2 + $0x1870] ss:$80 sps:$4 sm:$0xff]   ;;  %v15328_v11 = vld [vmem:[#allocation2 + $0x1878] ss:$80 sps:$4 sm:$0xff]  }
 0x14d   :  { %5329 = vmatpush1.bf16.msra.mxu0 %v15235_v12  ;;  %5458 = vmatpush1.bf16.msra.mxu1 %v15238_v13  ;;  %v15333_v12 = vld [vmem:[#allocation2 + $0x24] ss:$80 sps:$4 sm:$0xff]   ;;  %v15336_v13 = vld [vmem:[#allocation2 + $0x2c] ss:$80 sps:$4 sm:$0xff]  }
 0x14e   :  { %5330 = vmatprep.subr.bf16.mxu0 %v15243_v14  ;;  %5459 = vmatprep.subr.bf16.mxu1 %v15246_v16  ;;  %v15331_v14 = vld [vmem:[#allocation2 + $0x20] ss:$80 sps:$4 sm:$0xff]   ;;  %v15334_v16 = vld [vmem:[#allocation2 + $0x28] ss:$80 sps:$4 sm:$0xff]  }
 0x151   :  { %5331 = vmatpush1.bf16.msra.mxu0 %v15241_v17  ;;  %5460 = vmatpush1.bf16.msra.mxu1 %v15244_v18  ;;  %v15339_v17 = vld [vmem:[#allocation2 + $0xc4] ss:$80 sps:$4 sm:$0xff]   ;;  %v15342_v18 = vld [vmem:[#allocation2 + $0xcc] ss:$80 sps:$4 sm:$0xff]  }
 0x152   :  { %5332 = vmatprep.subr.bf16.mxu0 %v15249_v19  ;;  %5461 = vmatprep.subr.bf16.mxu1 %v15252_v20  ;;  %v17174_v19 = vld [vmem:[%s17658_s0 + $0x10] ss:$20 sps:$4 sm:$0xff]   ;;  %v15337_v20 = vld [vmem:[#allocation2 + $0xc0] ss:$80 sps:$4 sm:$0xff]  }
 0x155   :  { %5333 = vmatpush1.bf16.msra.mxu0 %v15247_v21  ;;  %5462 = vmatpush1.bf16.msra.mxu1 %v15250_v22  ;;  %v15340_v21 = vld [vmem:[#allocation2 + $0xc8] ss:$80 sps:$4 sm:$0xff]   ;;  %v15345_v22 = vld [vmem:[#allocation2 + $0x164] ss:$80 sps:$4 sm:$0xff]  }
 0x156   :  { %5334 = vmatprep.subr.bf16.mxu0 %v15255_v23  ;;  %5463 = vmatprep.subr.bf16.mxu1 %v15258_v24  ;;  %v15348_v23 = vld [vmem:[#allocation2 + $0x16c] ss:$80 sps:$4 sm:$0xff]  }
 0x157   :  { %v17175_v24 = vld [vmem:[%s17658_s0 + $0x4] ss:$20 sps:$4 sm:$0xff]  }
 0x159   :  { %5335 = vmatpush1.bf16.msra.mxu0 %v15253_v25  ;;  %5464 = vmatpush1.bf16.msra.mxu1 %v15256_v26  ;;  %v15343_v25 = vld [vmem:[#allocation2 + $0x160] ss:$80 sps:$4 sm:$0xff]   ;;  %v15346_v26 = vld [vmem:[#allocation2 + $0x168] ss:$80 sps:$4 sm:$0xff]  }
 0x15a   :  { %5336 = vmatprep.subr.bf16.mxu0 %v15261_v27  ;;  %5465 = vmatprep.subr.bf16.mxu1 %v15264_v28  ;;  %v15351_v27 = vld [vmem:[#allocation2 + $0x204] ss:$80 sps:$4 sm:$0xff]   ;;  %v15354_v28 = vld [vmem:[#allocation2 + $0x20c] ss:$80 sps:$4 sm:$0xff]  }
 0x15d   :  { %5337 = vmatpush1.bf16.msra.mxu0 %v15259_v29  ;;  %5466 = vmatpush1.bf16.msra.mxu1 %v15262_v30  ;;  %v15349_v29 = vld [vmem:[#allocation2 + $0x200] ss:$80 sps:$4 sm:$0xff]   ;;  %v15352_v30 = vld [vmem:[#allocation2 + $0x208] ss:$80 sps:$4 sm:$0xff]  }
 0x15e   :  { %5338 = vmatprep.subr.bf16.mxu0 %v15267_v31  ;;  %5467 = vmatprep.subr.bf16.mxu1 %v15270_v32  ;;  %v15357_v31 = vld [vmem:[#allocation2 + $0x2a4] ss:$80 sps:$4 sm:$0xff]   ;;  %v15360_v32 = vld [vmem:[#allocation2 + $0x2ac] ss:$80 sps:$4 sm:$0xff]  }
 0x161   :  { %5339 = vmatpush1.bf16.msra.mxu0 %v15265_v33  ;;  %5468 = vmatpush1.bf16.msra.mxu1 %v15268_v34  ;;  %v15355_v33 = vld [vmem:[#allocation2 + $0x2a0] ss:$80 sps:$4 sm:$0xff]   ;;  %v15358_v34 = vld [vmem:[#allocation2 + $0x2a8] ss:$80 sps:$4 sm:$0xff]  }
 0x162   :  { %5340 = vmatprep.subr.bf16.mxu0 %v15273_v35  ;;  %5469 = vmatprep.subr.bf16.mxu1 %v15276_v36  ;;  %v15363_v35 = vld [vmem:[#allocation2 + $0x344] ss:$80 sps:$4 sm:$0xff]   ;;  %v15366_v36 = vld [vmem:[#allocation2 + $0x34c] ss:$80 sps:$4 sm:$0xff]  }
 0x165   :  { %5341 = vmatpush1.bf16.msra.mxu0 %v15271_v37  ;;  %5470 = vmatpush1.bf16.msra.mxu1 %v15274_v38  ;;  %v15361_v37 = vld [vmem:[#allocation2 + $0x340] ss:$80 sps:$4 sm:$0xff]   ;;  %v15364_v38 = vld [vmem:[#allocation2 + $0x348] ss:$80 sps:$4 sm:$0xff]  }
 0x166   :  { %5342 = vmatprep.subr.bf16.mxu0 %v15279_v39  ;;  %5471 = vmatprep.subr.bf16.mxu1 %v15282_v40  ;;  %v15369_v39 = vld [vmem:[#allocation2 + $0x3e4] ss:$80 sps:$4 sm:$0xff]   ;;  %v15372_v40 = vld [vmem:[#allocation2 + $0x3ec] ss:$80 sps:$4 sm:$0xff]  }
 0x169   :  { %5343 = vmatpush1.bf16.msra.mxu0 %v15277_v41  ;;  %5472 = vmatpush1.bf16.msra.mxu1 %v15280_v42  ;;  %v15367_v41 = vld [vmem:[#allocation2 + $0x3e0] ss:$80 sps:$4 sm:$0xff]   ;;  %v15370_v42 = vld [vmem:[#allocation2 + $0x3e8] ss:$80 sps:$4 sm:$0xff]  }
 0x16a   :  { %5355 = vmatprep.subr.bf16.mxu0 %v15285_v43  ;;  %5484 = vmatprep.subr.bf16.mxu1 %v15288_v44  ;;  %v15375_v43 = vld [vmem:[#allocation2 + $0x484] ss:$80 sps:$4 sm:$0xff]   ;;  %v15378_v44 = vld [vmem:[#allocation2 + $0x48c] ss:$80 sps:$4 sm:$0xff]  }
 0x16c   :  { %5345 = vmatmul.mubr.bf16.vlgmr.msra.gmra.mrb[4].mxu0 %v17173_v50  ;;  %5474 = vmatmul.mubr.bf16.vlgmr.msra.gmra.mrb[4].mxu1 %v17173_v50  ;;  %v15379_v50 = vld [vmem:[#allocation2 + $0x520] ss:$80 sps:$4 sm:$0xff]  }
 0x16d   :  { %5356 = vmatpush1.bf16.msra.mxu0 %v15283_v45  ;;  %5485 = vmatpush1.bf16.msra.mxu1 %v15286_v46  ;;  %v15373_v45 = vld [vmem:[#allocation2 + $0x480] ss:$80 sps:$4 sm:$0xff]   ;;  %v15376_v46 = vld [vmem:[#allocation2 + $0x488] ss:$80 sps:$4 sm:$0xff]  }
 0x16e   :  { %5357 = vmatprep.subr.bf16.mxu0 %v15291_v48  ;;  %5486 = vmatprep.subr.bf16.mxu1 %v15294_v49  ;;  %v15381_v48 = vld [vmem:[#allocation2 + $0x524] ss:$80 sps:$4 sm:$0xff]   ;;  %v15384_v49 = vld [vmem:[#allocation2 + $0x52c] ss:$80 sps:$4 sm:$0xff]  }
 0x16f   :  { %5387 = vmatprep.mubr.bf16.mxu0 %v17318_v15  ;;  %5516 = vmatprep.mubr.bf16.mxu1 %v17318_v15 }
 0x171   :  { %5358 = vmatpush1.bf16.msra.mxu0 %v15289_v51  ;;  %5487 = vmatpush1.bf16.msra.mxu1 %v15292_v52  ;;  %v15382_v51 = vld [vmem:[#allocation2 + $0x528] ss:$80 sps:$4 sm:$0xff]   ;;  %v15387_v52 = vld [vmem:[#allocation2 + $0x5c4] ss:$80 sps:$4 sm:$0xff]  }
 0x172   :  { %5359 = vmatprep.subr.bf16.mxu0 %v15297_v53  ;;  %5488 = vmatprep.subr.bf16.mxu1 %v15300_v54  ;;  %v15390_v53 = vld [vmem:[#allocation2 + $0x5cc] ss:$80 sps:$4 sm:$0xff]   ;;  %v15385_v54 = vld [vmem:[#allocation2 + $0x5c0] ss:$80 sps:$4 sm:$0xff]  }
 0x175   :  { %5360 = vmatpush1.bf16.msra.mxu0 %v15295_v55  ;;  %5489 = vmatpush1.bf16.msra.mxu1 %v15298_v56  ;;  %v15388_v55 = vld [vmem:[#allocation2 + $0x5c8] ss:$80 sps:$4 sm:$0xff]   ;;  %v15393_v56 = vld [vmem:[#allocation2 + $0x664] ss:$80 sps:$4 sm:$0xff]  }
 0x176   :  { %5361 = vmatprep.subr.bf16.mxu0 %v15303_v57  ;;  %5490 = vmatprep.subr.bf16.mxu1 %v15306_v58  ;;  %v15396_v57 = vld [vmem:[#allocation2 + $0x66c] ss:$80 sps:$4 sm:$0xff]   ;;  %v885_v58 = vlaneseq }
 0x179   :  { %5362 = vmatpush1.bf16.msra.mxu0 %v15301_v47  ;;  %5491 = vmatpush1.bf16.msra.mxu1 %v15304_v59  ;;  %v15391_v47 = vld [vmem:[#allocation2 + $0x660] ss:$80 sps:$4 sm:$0xff]   ;;  %v15394_v59 = vld [vmem:[#allocation2 + $0x668] ss:$80 sps:$4 sm:$0xff]  }
 0x17a   :  { %5363 = vmatprep.subr.bf16.mxu0 %v15309_v60  ;;  %5492 = vmatprep.subr.bf16.mxu1 %v15312_v61  ;;  %v15399_v60 = vld [vmem:[#allocation2 + $0x704] ss:$80 sps:$4 sm:$0xff]   ;;  %v15402_v61 = vld [vmem:[#allocation2 + $0x70c] ss:$80 sps:$4 sm:$0xff]  }
 0x17d   :  { %5364 = vmatpush1.bf16.msra.mxu0 %v15307_v62  ;;  %5493 = vmatpush1.bf16.msra.mxu1 %v15310_v63  ;;  %v17447_v62 = vshrl.u32 %v885_v58, 7  ;;  %v15397_v63 = vld [vmem:[#allocation2 + $0x700] ss:$80 sps:$4 sm:$0xff]  }
 0x17e   :  { %5365 = vmatprep.subr.bf16.mxu0 %v15315_v0  ;;  %5494 = vmatprep.subr.bf16.mxu1 %v15318_v1  ;;  %v15400_v0 = vld [vmem:[#allocation2 + $0x708] ss:$80 sps:$4 sm:$0xff]   ;;  %v15405_v1 = vld [vmem:[#allocation2 + $0x7a4] ss:$80 sps:$4 sm:$0xff]   ;;  %v15427_v58 = vld [vmem:[#allocation2 + $0xa20] ss:$80 sps:$4 sm:$0xff]  }
 0x181   :  { %5366 = vmatpush1.bf16.msra.mxu0 %v15313_v2  ;;  %5495 = vmatpush1.bf16.msra.mxu1 %v15316_v3  ;;  %v15408_v2 = vld [vmem:[#allocation2 + $0x7ac] ss:$80 sps:$4 sm:$0xff]   ;;  %v15403_v3 = vld [vmem:[#allocation2 + $0x7a0] ss:$80 sps:$4 sm:$0xff]  }
 0x182   :  { %5367 = vmatprep.subr.bf16.mxu0 %v15321_v4  ;;  %5496 = vmatprep.subr.bf16.mxu1 %v15324_v5  ;;  %v17450_v4 = vsub.s32 0, %v17447_v62  ;;  %v17453_v5 = vsub.s32 2, %v17447_v62 }
 0x185   :  { %5368 = vmatpush1.bf16.msra.mxu0 %v15319_v6  ;;  %5497 = vmatpush1.bf16.msra.mxu1 %v15322_v7  ;;  %v15406_v6 = vld [vmem:[#allocation2 + $0x7a8] ss:$80 sps:$4 sm:$0xff]   ;;  %v879_v7 = vld [vmem:[#allocation5] sm:$0xff] }
 0x186   :  { %5369 = vmatprep.subr.bf16.mxu0 %v15327_v8  ;;  %5498 = vmatprep.subr.bf16.mxu1 %v15330_v9  ;;  %v17456_v8 = vsub.s32 1, %v17447_v62  ;;  %v17459_v9 = vsub.s32 3, %v17447_v62 }
 0x189   :  { %5370 = vmatpush1.bf16.msra.mxu0 %v15325_v10  ;;  %5499 = vmatpush1.bf16.msra.mxu1 %v15328_v11  ;;  %v15411_v10 = vld [vmem:[#allocation2 + $0x844] ss:$80 sps:$4 sm:$0xff]   ;;  %v15414_v11 = vld [vmem:[#allocation2 + $0x84c] ss:$80 sps:$4 sm:$0xff]  }
 0x18a   :  { %5527 = vmatprep.subr.bf16.mxu0 %v15333_v12  ;;  %5656 = vmatprep.subr.bf16.mxu1 %v15336_v13  ;;  %v888_v12 = vrot.slane %v879_v7, %v17450_v4  ;;  %v896_v13 = vrot.slane %v879_v7, %v17453_v5 }
 0x18c   :  { %5388 = vmatmul.mubr.bf16.vlgmr.msra.gmra.mrb[4].mxu0 %v17174_v19  ;;  %5517 = vmatmul.mubr.bf16.vlgmr.msra.gmra.mrb[4].mxu1 %v17174_v19  ;;  %v15417_v19 = vld [vmem:[#allocation2 + $0x8e4] ss:$80 sps:$4 sm:$0xff]  }
 0x18d   :  { %5528 = vmatpush1.bf16.msra.mxu0 %v15331_v14  ;;  %5657 = vmatpush1.bf16.msra.mxu1 %v15334_v16  ;;  %v892_v14 = vrot.slane %v879_v7, %v17456_v8  ;;  %v900_v16 = vrot.slane %v879_v7, %v17459_v9  ;;  %v15442_v7 = vld [vmem:[#allocation2 + $0xb68] ss:$80 sps:$4 sm:$0xff]  }
 0x18e   :  { %5529 = vmatprep.subr.bf16.mxu0 %v15339_v17  ;;  %5658 = vmatprep.subr.bf16.mxu1 %v15342_v18  ;;  %v15409_v17 = vld [vmem:[#allocation2 + $0x840] ss:$80 sps:$4 sm:$0xff]   ;;  %v15412_v18 = vld [vmem:[#allocation2 + $0x848] ss:$80 sps:$4 sm:$0xff]  }
 0x18f   :  { %5559 = vmatprep.mubr.bf16.mxu0 %v17175_v24  ;;  %5688 = vmatprep.mubr.bf16.mxu1 %v17175_v24 }
 0x191   :  { %5530 = vmatpush1.bf16.msra.mxu0 %v15337_v20  ;;  %5659 = vmatpush1.bf16.msra.mxu1 %v15340_v21  ;;  %v15420_v20 = vld [vmem:[#allocation2 + $0x8ec] ss:$80 sps:$4 sm:$0xff]  }
 0x192   :  { %5531 = vmatprep.subr.bf16.mxu0 %v15345_v22  ;;  %5660 = vmatprep.subr.bf16.mxu1 %v15348_v23 }
 0x195   :  { %5532 = vmatpush1.bf16.msra.mxu0 %v15343_v25  ;;  %5661 = vmatpush1.bf16.msra.mxu1 %v15346_v26 }
 0x196   :  { %5533 = vmatprep.subr.bf16.mxu0 %v15351_v27  ;;  %5662 = vmatprep.subr.bf16.mxu1 %v15354_v28 }
 0x199   :  { %5534 = vmatpush1.bf16.msra.mxu0 %v15349_v29  ;;  %5663 = vmatpush1.bf16.msra.mxu1 %v15352_v30 }
 0x19a   :  { %5535 = vmatprep.subr.bf16.mxu0 %v15357_v31  ;;  %5664 = vmatprep.subr.bf16.mxu1 %v15360_v32  ;;  %v15415_v31 = vld [vmem:[#allocation2 + $0x8e0] ss:$80 sps:$4 sm:$0xff]   ;;  %v15418_v32 = vld [vmem:[#allocation2 + $0x8e8] ss:$80 sps:$4 sm:$0xff]  }
 0x19d   :  { %5536 = vmatpush1.bf16.msra.mxu0 %v15355_v33  ;;  %5665 = vmatpush1.bf16.msra.mxu1 %v15358_v34 }
 0x19e   :  { %5537 = vmatprep.subr.bf16.mxu0 %v15363_v35  ;;  %5666 = vmatprep.subr.bf16.mxu1 %v15366_v36 }
 0x1a1   :  { %5538 = vmatpush1.bf16.msra.mxu0 %v15361_v37  ;;  %5667 = vmatpush1.bf16.msra.mxu1 %v15364_v38  ;;  %v15423_v37 = vld [vmem:[#allocation2 + $0x984] ss:$80 sps:$4 sm:$0xff]   ;;  %v15426_v38 = vld [vmem:[#allocation2 + $0x98c] ss:$80 sps:$4 sm:$0xff]  }
 0x1a2   :  { %5539 = vmatprep.subr.bf16.mxu0 %v15369_v39  ;;  %5668 = vmatprep.subr.bf16.mxu1 %v15372_v40 }
 0x1a5   :  { %5540 = vmatpush1.bf16.msra.mxu0 %v15367_v41  ;;  %5669 = vmatpush1.bf16.msra.mxu1 %v15370_v42  ;;  %v15421_v42 = vld [vmem:[#allocation2 + $0x980] ss:$80 sps:$4 sm:$0xff]  }
 0x1a6   :  { %5541 = vmatprep.subr.bf16.mxu0 %v15375_v43  ;;  %5670 = vmatprep.subr.bf16.mxu1 %v15378_v44 }
 0x1a9   :  { %5542 = vmatpush1.bf16.msra.mxu0 %v15373_v45  ;;  %5671 = vmatpush1.bf16.msra.mxu1 %v15376_v46 }
 0x1aa   :  { %5543 = vmatprep.subr.bf16.mxu0 %v15381_v48  ;;  %5672 = vmatprep.subr.bf16.mxu1 %v15384_v49 }
 0x1ad   :  { %5544 = vmatpush1.bf16.msra.mxu0 %v15379_v50  ;;  %5673 = vmatpush1.bf16.msra.mxu1 %v15382_v51  ;;  %v15424_v51 = vld [vmem:[#allocation2 + $0x988] ss:$80 sps:$4 sm:$0xff]  }
 0x1ae   :  { %5545 = vmatprep.subr.bf16.mxu0 %v15387_v52  ;;  %5674 = vmatprep.subr.bf16.mxu1 %v15390_v53 }
 0x1b1   :  { %5546 = vmatpush1.bf16.msra.mxu0 %v15385_v54  ;;  %5675 = vmatpush1.bf16.msra.mxu1 %v15388_v55  ;;  %v15429_v54 = vld [vmem:[#allocation2 + $0xa24] ss:$80 sps:$4 sm:$0xff]   ;;  %v15432_v55 = vld [vmem:[#allocation2 + $0xa2c] ss:$80 sps:$4 sm:$0xff]  }
 0x1b2   :  { %5547 = vmatprep.subr.bf16.mxu0 %v15393_v56  ;;  %5676 = vmatprep.subr.bf16.mxu1 %v15396_v57 }
 0x1b5   :  { %5548 = vmatpush1.bf16.msra.mxu0 %v15391_v47  ;;  %5677 = vmatpush1.bf16.msra.mxu1 %v15394_v59  ;;  %v15430_v47 = vld [vmem:[#allocation2 + $0xa28] ss:$80 sps:$4 sm:$0xff]   ;;  %v15435_v59 = vld [vmem:[#allocation2 + $0xac4] ss:$80 sps:$4 sm:$0xff]  }
 0x1b6   :  { %5549 = vmatprep.subr.bf16.mxu0 %v15399_v60  ;;  %5678 = vmatprep.subr.bf16.mxu1 %v15402_v61  ;;  %v15438_v60 = vld [vmem:[#allocation2 + $0xacc] ss:$80 sps:$4 sm:$0xff]  }
 0x1b7   :  { %v17176_v61 = vld [vmem:[%s17658_s0] ss:$20 sps:$4 sm:$0xff]  }
 0x1b9   :  { %5550 = vmatpush1.bf16.msra.mxu0 %v15397_v63  ;;  %5679 = vmatpush1.bf16.msra.mxu1 %v15400_v0  ;;  %v15433_v63 = vld [vmem:[#allocation2 + $0xac0] ss:$80 sps:$4 sm:$0xff]   ;;  %v15436_v0 = vld [vmem:[#allocation2 + $0xac8] ss:$80 sps:$4 sm:$0xff]  }
 0x1ba   :  { %5551 = vmatprep.subr.bf16.mxu0 %v15405_v1  ;;  %5680 = vmatprep.subr.bf16.mxu1 %v15408_v2  ;;  %v15441_v1 = vld [vmem:[#allocation2 + $0xb64] ss:$80 sps:$4 sm:$0xff]   ;;  %v15444_v2 = vld [vmem:[#allocation2 + $0xb6c] ss:$80 sps:$4 sm:$0xff]  }
 0x1bd   :  { %5552 = vmatpush1.bf16.msra.mxu0 %v15403_v3  ;;  %5681 = vmatpush1.bf16.msra.mxu1 %v15406_v6  ;;  %v17177_v3 = vld [vmem:[%s17658_s0 + $0xc] ss:$20 sps:$4 sm:$0xff]   ;;  %v15439_v6 = vld [vmem:[#allocation2 + $0xb60] ss:$80 sps:$4 sm:$0xff]  }
 0x1be   :  { %5553 = vmatprep.subr.bf16.mxu0 %v15411_v10  ;;  %5682 = vmatprep.subr.bf16.mxu1 %v15414_v11  ;;  %v15447_v10 = vld [vmem:[#allocation2 + $0xc04] ss:$80 sps:$4 sm:$0xff]   ;;  %v15450_v11 = vld [vmem:[#allocation2 + $0xc0c] ss:$80 sps:$4 sm:$0xff]  }
 0x1bf   :  { %v5131_v21 = vpop.f32.mrb[0].mxu0  ;;  %v5260_v22 = vpop.f32.mrb[0].mxu1 }
 0x1c0   :  { %v14632_v23 = vadd.f32 %v5131_v21, %v888_v12  ;;  %v14636_v24 = vadd.f32 %v5260_v22, %v896_v13  ;;  %v5133_v25 = vpop.f32.mrb[1].mxu0  ;;  %v5262_v26 = vpop.f32.mrb[1].mxu1  ;;  %v15457_v21 = vld [vmem:[#allocation2 + $0xd40] ss:$80 sps:$4 sm:$0xff]   ;;  %v15460_v22 = vld [vmem:[#allocation2 + $0xd48] ss:$80 sps:$4 sm:$0xff]  }
 0x1c1   :  { %v14633_v27 = vadd.f32 %v5133_v25, %v892_v14  ;;  %v14637_v28 = vadd.f32 %v5262_v26, %v900_v16  ;;  %v5135_v29 = vpop.f32.mrb[2].mxu0  ;;  %v5264_v30 = vpop.f32.mrb[2].mxu1  ;;  %5554 = vmatpush1.bf16.msra.mxu0 %v15409_v17  ;;  %5683 = vmatpush1.bf16.msra.mxu1 %v15412_v18  ;;  %v15451_v17 = vld [vmem:[#allocation2 + $0xca0] ss:$80 sps:$4 sm:$0xff]   ;;  %v15454_v18 = vld [vmem:[#allocation2 + $0xca8] ss:$80 sps:$4 sm:$0xff]  }
 0x1c2   :  { %v14634_v33 = vadd.f32 %v5135_v29, %v888_v12  ;;  %v14638_v34 = vadd.f32 %v5264_v30, %v896_v13  ;;  %v5137_v35 = vpop.f32.mrb[3].mxu0  ;;  %v5266_v36 = vpop.f32.mrb[3].mxu1  ;;  %5555 = vmatprep.subr.bf16.mxu0 %v15417_v19  ;;  %5684 = vmatprep.subr.bf16.mxu1 %v15420_v20  ;;  %v6301_v39 = vmax.f32 %v14632_v23, 0.0  ;;  %v6303_v43 = vmax.f32 %v14636_v24, 0.0  ;;  %v15445_v12 = vld [vmem:[#allocation2 + $0xc00] ss:$80 sps:$4 sm:$0xff]  }
 0x1c3   :  { %v14635_v40 = vadd.f32 %v5137_v35, %v892_v14  ;;  %v14639_v41 = vadd.f32 %v5266_v36, %v900_v16  ;;  %v6302_v46 = vmax.f32 %v14633_v27, 0.0  ;;  %v6304_v48 = vmax.f32 %v14637_v28, 0.0  ;;  %v15448_v13 = vld [vmem:[#allocation2 + $0xc08] ss:$80 sps:$4 sm:$0xff]   ;;  %v15453_v14 = vld [vmem:[#allocation2 + $0xca4] ss:$80 sps:$4 sm:$0xff]  }
 0x1c4   :  { %v6321_v44 = vmax.f32 %v14634_v33, 0.0  ;;  %v6323_v45 = vmax.f32 %v14638_v34, 0.0  ;;  %v15456_v16 = vld [vmem:[#allocation2 + $0xcac] ss:$80 sps:$4 sm:$0xff]   ;;  %v15459_v19 = vld [vmem:[#allocation2 + $0xd44] ss:$80 sps:$4 sm:$0xff]  }
 0x1c5   :  { %v6322_v49 = vmax.f32 %v14635_v40, 0.0  ;;  %v6324_v50 = vmax.f32 %v14639_v41, 0.0  ;;  %5556 = vmatpush1.bf16.msra.mxu0 %v15415_v31  ;;  %5685 = vmatpush1.bf16.msra.mxu1 %v15418_v32  ;;  %v15462_v20 = vld [vmem:[#allocation2 + $0xd4c] ss:$80 sps:$4 sm:$0xff]   ;;  %v15465_v23 = vld [vmem:[#allocation2 + $0xde4] ss:$80 sps:$4 sm:$0xff]  }
 0x1c6   :  { %v17465_v52 = vpack.c.bf16 %v6321_v44, %v6301_v39  ;;  %v17467_v53 = vpack.c.bf16 %v6323_v45, %v6303_v43  ;;  %5557 = vmatprep.subr.bf16.mxu0 %v15423_v37  ;;  %5686 = vmatprep.subr.bf16.mxu1 %v15426_v38  ;;  %v15468_v24 = vld [vmem:[#allocation2 + $0xdec] ss:$80 sps:$4 sm:$0xff]   ;;  %v15463_v25 = vld [vmem:[#allocation2 + $0xde0] ss:$80 sps:$4 sm:$0xff]   ;;  %v15466_v26 = vld [vmem:[#allocation2 + $0xde8] ss:$80 sps:$4 sm:$0xff]  }
 0x1c7   :  { %v17469_v56 = vpack.c.bf16 %v6322_v49, %v6302_v46  ;;  %v17471_v57 = vpack.c.bf16 %v6324_v50, %v6304_v48  ;;  %v15471_v27 = vld [vmem:[#allocation2 + $0xe84] ss:$80 sps:$4 sm:$0xff]   ;;  %v15474_v28 = vld [vmem:[#allocation2 + $0xe8c] ss:$80 sps:$4 sm:$0xff]   ;;  %v15469_v29 = vld [vmem:[#allocation2 + $0xe80] ss:$80 sps:$4 sm:$0xff]  }
 0x1c8   :  { %v15472_v30 = vld [vmem:[#allocation2 + $0xe88] ss:$80 sps:$4 sm:$0xff]   ;;  %v15477_v31 = vld [vmem:[#allocation2 + $0xf24] ss:$80 sps:$4 sm:$0xff]   ;;  %v15480_v32 = vld [vmem:[#allocation2 + $0xf2c] ss:$80 sps:$4 sm:$0xff]  }
 0x1c9   :  { %5558 = vmatpush1.bf16.msra.mxu0 %v15421_v42  ;;  %5687 = vmatpush1.bf16.msra.mxu1 %v15424_v51  ;;  %v15475_v33 = vld [vmem:[#allocation2 + $0xf20] ss:$80 sps:$4 sm:$0xff]   ;;  %v15478_v34 = vld [vmem:[#allocation2 + $0xf28] ss:$80 sps:$4 sm:$0xff]   ;;  %v15483_v35 = vld [vmem:[#allocation2 + $0xfc4] ss:$80 sps:$4 sm:$0xff]  }
 0x1ca   :  { %5570 = vmatprep.subr.bf16.mxu0 %v15429_v54  ;;  %5699 = vmatprep.subr.bf16.mxu1 %v15432_v55  ;;  %v15486_v36 = vld [vmem:[#allocation2 + $0xfcc] ss:$80 sps:$4 sm:$0xff]   ;;  %v15481_v37 = vld [vmem:[#allocation2 + $0xfc0] ss:$80 sps:$4 sm:$0xff]   ;;  %v15484_v38 = vld [vmem:[#allocation2 + $0xfc8] ss:$80 sps:$4 sm:$0xff]  }
 0x1cb   :  { %v15489_v39 = vld [vmem:[#allocation2 + $0x1064] ss:$80 sps:$4 sm:$0xff]   ;;  %v15492_v40 = vld [vmem:[#allocation2 + $0x106c] ss:$80 sps:$4 sm:$0xff]   ;;  %v15487_v41 = vld [vmem:[#allocation2 + $0x1060] ss:$80 sps:$4 sm:$0xff]  }
 0x1cc   :  { %5560 = vmatmul.mubr.bf16.vlgmr.msra.gmra.mrb[8].mxu0 %v17176_v61  ;;  %5689 = vmatmul.mubr.bf16.vlgmr.msra.gmra.mrb[8].mxu1 %v17176_v61  ;;  %v15490_v42 = vld [vmem:[#allocation2 + $0x1068] ss:$80 sps:$4 sm:$0xff]   ;;  %v15495_v43 = vld [vmem:[#allocation2 + $0x1104] ss:$80 sps:$4 sm:$0xff]   ;;  %v15498_v44 = vld [vmem:[#allocation2 + $0x110c] ss:$80 sps:$4 sm:$0xff]  }
 0x1cd   :  { %5571 = vmatpush1.bf16.msra.mxu0 %v15427_v58  ;;  %5700 = vmatpush1.bf16.msra.mxu1 %v15430_v47  ;;  %v15493_v45 = vld [vmem:[#allocation2 + $0x1100] ss:$80 sps:$4 sm:$0xff]   ;;  %v15496_v46 = vld [vmem:[#allocation2 + $0x1108] ss:$80 sps:$4 sm:$0xff]   ;;  %v15501_v48 = vld [vmem:[#allocation2 + $0x11a4] ss:$80 sps:$4 sm:$0xff]  }
 0x1ce   :  { %5572 = vmatprep.subr.bf16.mxu0 %v15435_v59  ;;  %5701 = vmatprep.subr.bf16.mxu1 %v15438_v60  ;;  %v15504_v49 = vld [vmem:[#allocation2 + $0x11ac] ss:$80 sps:$4 sm:$0xff]   ;;  %v15499_v50 = vld [vmem:[#allocation2 + $0x11a0] ss:$80 sps:$4 sm:$0xff]   ;;  %v15502_v51 = vld [vmem:[#allocation2 + $0x11a8] ss:$80 sps:$4 sm:$0xff]  }
 0x1cf   :  { %5602 = vmatprep.mubr.bf16.mxu0 %v17177_v3  ;;  %5731 = vmatprep.mubr.bf16.mxu1 %v17177_v3  ;;  %v15507_v54 = vld [vmem:[#allocation2 + $0x1244] ss:$80 sps:$4 sm:$0xff]   ;;  %v15510_v55 = vld [vmem:[#allocation2 + $0x124c] ss:$80 sps:$4 sm:$0xff]   ;;  %v15505_v58 = vld [vmem:[#allocation2 + $0x1240] ss:$80 sps:$4 sm:$0xff]  }
 0x1d0   :  { %v15508_v47 = vld [vmem:[#allocation2 + $0x1248] ss:$80 sps:$4 sm:$0xff]   ;;  %v15513_v59 = vld [vmem:[#allocation2 + $0x12e4] ss:$80 sps:$4 sm:$0xff]   ;;  %v15516_v60 = vld [vmem:[#allocation2 + $0x12ec] ss:$80 sps:$4 sm:$0xff]  }
 0x1d1   :  { %5573 = vmatpush1.bf16.msra.mxu0 %v15433_v63  ;;  %5702 = vmatpush1.bf16.msra.mxu1 %v15436_v0  ;;  %v15511_v61 = vld [vmem:[#allocation2 + $0x12e0] ss:$80 sps:$4 sm:$0xff]   ;;  %v15514_v63 = vld [vmem:[#allocation2 + $0x12e8] ss:$80 sps:$4 sm:$0xff]   ;;  %v15519_v0 = vld [vmem:[#allocation2 + $0x1384] ss:$80 sps:$4 sm:$0xff]  }
 0x1d2   :  { %5574 = vmatprep.subr.bf16.mxu0 %v15441_v1  ;;  %5703 = vmatprep.subr.bf16.mxu1 %v15444_v2  ;;  %v15522_v1 = vld [vmem:[#allocation2 + $0x138c] ss:$80 sps:$4 sm:$0xff]   ;;  %v15517_v2 = vld [vmem:[#allocation2 + $0x1380] ss:$80 sps:$4 sm:$0xff]   ;;  %v15520_v3 = vld [vmem:[#allocation2 + $0x1388] ss:$80 sps:$4 sm:$0xff]  }
 0x1d5   :  { %5575 = vmatpush1.bf16.msra.mxu0 %v15439_v6  ;;  %5704 = vmatpush1.bf16.msra.mxu1 %v15442_v7  ;;  %v15525_v6 = vld [vmem:[#allocation2 + $0x1424] ss:$80 sps:$4 sm:$0xff]   ;;  %v15528_v7 = vld [vmem:[#allocation2 + $0x142c] ss:$80 sps:$4 sm:$0xff]  }
 0x1d6   :  { %5576 = vmatprep.subr.bf16.mxu0 %v15447_v10  ;;  %5705 = vmatprep.subr.bf16.mxu1 %v15450_v11  ;;  %v15523_v10 = vld [vmem:[#allocation2 + $0x1420] ss:$80 sps:$4 sm:$0xff]   ;;  %v15526_v11 = vld [vmem:[#allocation2 + $0x1428] ss:$80 sps:$4 sm:$0xff]  }
 0x1d9   :  { %5577 = vmatpush1.bf16.msra.mxu0 %v15445_v12  ;;  %5706 = vmatpush1.bf16.msra.mxu1 %v15448_v13  ;;  %v15531_v12 = vld [vmem:[#allocation2 + $0x14c4] ss:$80 sps:$4 sm:$0xff]   ;;  %v15534_v13 = vld [vmem:[#allocation2 + $0x14cc] ss:$80 sps:$4 sm:$0xff]  }
 0x1da   :  { %5578 = vmatprep.subr.bf16.mxu0 %v15453_v14  ;;  %5707 = vmatprep.subr.bf16.mxu1 %v15456_v16  ;;  %v17178_v14 = vld [vmem:[%s17658_s0 + $0x8] ss:$20 sps:$4 sm:$0xff]  }
 0x1db   :  { %v15529_v16 = vld [vmem:[#allocation2 + $0x14c0] ss:$80 sps:$4 sm:$0xff]  }
 0x1dd   :  { %5579 = vmatpush1.bf16.msra.mxu0 %v15451_v17  ;;  %5708 = vmatpush1.bf16.msra.mxu1 %v15454_v18  ;;  %v15532_v17 = vld [vmem:[#allocation2 + $0x14c8] ss:$80 sps:$4 sm:$0xff]   ;;  %v15537_v18 = vld [vmem:[#allocation2 + $0x1564] ss:$80 sps:$4 sm:$0xff]  }
 0x1de   :  { %5580 = vmatprep.subr.bf16.mxu0 %v15459_v19  ;;  %5709 = vmatprep.subr.bf16.mxu1 %v15462_v20  ;;  %v15540_v19 = vld [vmem:[#allocation2 + $0x156c] ss:$80 sps:$4 sm:$0xff]   ;;  %v15535_v20 = vld [vmem:[#allocation2 + $0x1560] ss:$80 sps:$4 sm:$0xff]  }
 0x1e1   :  { %5581 = vmatpush1.bf16.msra.mxu0 %v15457_v21  ;;  %5710 = vmatpush1.bf16.msra.mxu1 %v15460_v22  ;;  %v15538_v21 = vld [vmem:[#allocation2 + $0x1568] ss:$80 sps:$4 sm:$0xff]   ;;  %v15543_v22 = vld [vmem:[#allocation2 + $0x1604] ss:$80 sps:$4 sm:$0xff]  }
 0x1e2   :  { %5582 = vmatprep.subr.bf16.mxu0 %v15465_v23  ;;  %5711 = vmatprep.subr.bf16.mxu1 %v15468_v24  ;;  %v15546_v23 = vld [vmem:[#allocation2 + $0x160c] ss:$80 sps:$4 sm:$0xff]   ;;  %v15541_v24 = vld [vmem:[#allocation2 + $0x1600] ss:$80 sps:$4 sm:$0xff]  }
 0x1e5   :  { %5583 = vmatpush1.bf16.msra.mxu0 %v15463_v25  ;;  %5712 = vmatpush1.bf16.msra.mxu1 %v15466_v26  ;;  %v15544_v25 = vld [vmem:[#allocation2 + $0x1608] ss:$80 sps:$4 sm:$0xff]   ;;  %v15549_v26 = vld [vmem:[#allocation2 + $0x16a4] ss:$80 sps:$4 sm:$0xff]  }
 0x1e6   :  { %5584 = vmatprep.subr.bf16.mxu0 %v15471_v27  ;;  %5713 = vmatprep.subr.bf16.mxu1 %v15474_v28  ;;  %v15552_v27 = vld [vmem:[#allocation2 + $0x16ac] ss:$80 sps:$4 sm:$0xff]   ;;  %v15547_v28 = vld [vmem:[#allocation2 + $0x16a0] ss:$80 sps:$4 sm:$0xff]  }
 0x1e9   :  { %5585 = vmatpush1.bf16.msra.mxu0 %v15469_v29  ;;  %5714 = vmatpush1.bf16.msra.mxu1 %v15472_v30  ;;  %v15550_v29 = vld [vmem:[#allocation2 + $0x16a8] ss:$80 sps:$4 sm:$0xff]   ;;  %v15555_v30 = vld [vmem:[#allocation2 + $0x1744] ss:$80 sps:$4 sm:$0xff]  }
 0x1ea   :  { %5586 = vmatprep.subr.bf16.mxu0 %v15477_v31  ;;  %5715 = vmatprep.subr.bf16.mxu1 %v15480_v32  ;;  %v15558_v31 = vld [vmem:[#allocation2 + $0x174c] ss:$80 sps:$4 sm:$0xff]   ;;  %v15553_v32 = vld [vmem:[#allocation2 + $0x1740] ss:$80 sps:$4 sm:$0xff]  }
 0x1ed   :  { %5587 = vmatpush1.bf16.msra.mxu0 %v15475_v33  ;;  %5716 = vmatpush1.bf16.msra.mxu1 %v15478_v34  ;;  %v15556_v33 = vld [vmem:[#allocation2 + $0x1748] ss:$80 sps:$4 sm:$0xff]   ;;  %v15561_v34 = vld [vmem:[#allocation2 + $0x17e4] ss:$80 sps:$4 sm:$0xff]  }
 0x1ee   :  { %5588 = vmatprep.subr.bf16.mxu0 %v15483_v35  ;;  %5717 = vmatprep.subr.bf16.mxu1 %v15486_v36  ;;  %v15564_v35 = vld [vmem:[#allocation2 + $0x17ec] ss:$80 sps:$4 sm:$0xff]   ;;  %v15559_v36 = vld [vmem:[#allocation2 + $0x17e0] ss:$80 sps:$4 sm:$0xff]  }
 0x1f1   :  { %5589 = vmatpush1.bf16.msra.mxu0 %v15481_v37  ;;  %5718 = vmatpush1.bf16.msra.mxu1 %v15484_v38  ;;  %v15562_v37 = vld [vmem:[#allocation2 + $0x17e8] ss:$80 sps:$4 sm:$0xff]   ;;  %v15567_v38 = vld [vmem:[#allocation2 + $0x1884] ss:$80 sps:$4 sm:$0xff]  }
 0x1f2   :  { %5590 = vmatprep.subr.bf16.mxu0 %v15489_v39  ;;  %5719 = vmatprep.subr.bf16.mxu1 %v15492_v40  ;;  %v15570_v39 = vld [vmem:[#allocation2 + $0x188c] ss:$80 sps:$4 sm:$0xff]   ;;  %v15565_v40 = vld [vmem:[#allocation2 + $0x1880] ss:$80 sps:$4 sm:$0xff]  }
 0x1f5   :  { %5591 = vmatpush1.bf16.msra.mxu0 %v15487_v41  ;;  %5720 = vmatpush1.bf16.msra.mxu1 %v15490_v42  ;;  %v15568_v41 = vld [vmem:[#allocation2 + $0x1888] ss:$80 sps:$4 sm:$0xff]   ;;  %v15573_v42 = vld [vmem:[#allocation2 + $0x34] ss:$80 sps:$4 sm:$0xff]  }
 0x1f6   :  { %5592 = vmatprep.subr.bf16.mxu0 %v15495_v43  ;;  %5721 = vmatprep.subr.bf16.mxu1 %v15498_v44  ;;  %v15576_v43 = vld [vmem:[#allocation2 + $0x3c] ss:$80 sps:$4 sm:$0xff]   ;;  %v15571_v44 = vld [vmem:[#allocation2 + $0x30] ss:$80 sps:$4 sm:$0xff]  }
 0x1f9   :  { %5593 = vmatpush1.bf16.msra.mxu0 %v15493_v45  ;;  %5722 = vmatpush1.bf16.msra.mxu1 %v15496_v46  ;;  %v15574_v45 = vld [vmem:[#allocation2 + $0x38] ss:$80 sps:$4 sm:$0xff]   ;;  %v15579_v46 = vld [vmem:[#allocation2 + $0xd4] ss:$80 sps:$4 sm:$0xff]  }
 0x1fa   :  { %5594 = vmatprep.subr.bf16.mxu0 %v15501_v48  ;;  %5723 = vmatprep.subr.bf16.mxu1 %v15504_v49  ;;  %v15582_v48 = vld [vmem:[#allocation2 + $0xdc] ss:$80 sps:$4 sm:$0xff]  }
 0x1fb   :  { %v17179_v49 = vld [vmem:[%s17658_s0 + $0x10] ss:$20 sps:$4 sm:$0xff]  }
 0x1fd   :  { %5595 = vmatpush1.bf16.msra.mxu0 %v15499_v50  ;;  %5724 = vmatpush1.bf16.msra.mxu1 %v15502_v51  ;;  %v15577_v50 = vld [vmem:[#allocation2 + $0xd0] ss:$80 sps:$4 sm:$0xff]   ;;  %v15580_v51 = vld [vmem:[#allocation2 + $0xd8] ss:$80 sps:$4 sm:$0xff]  }
 0x1fe   :  { %5596 = vmatprep.subr.bf16.mxu0 %v15507_v54  ;;  %5725 = vmatprep.subr.bf16.mxu1 %v15510_v55  ;;  %v15585_v54 = vld [vmem:[#allocation2 + $0x174] ss:$80 sps:$4 sm:$0xff]   ;;  %v15588_v55 = vld [vmem:[#allocation2 + $0x17c] ss:$80 sps:$4 sm:$0xff]  }
 0x201   :  { %5597 = vmatpush1.bf16.msra.mxu0 %v15505_v58  ;;  %5726 = vmatpush1.bf16.msra.mxu1 %v15508_v47  ;;  %v17180_v58 = vld [vmem:[%s17658_s0 + $0x4] ss:$20 sps:$4 sm:$0xff]  }
 0x202   :  { %5598 = vmatprep.subr.bf16.mxu0 %v15513_v59  ;;  %5727 = vmatprep.subr.bf16.mxu1 %v15516_v60  ;;  %v15583_v47 = vld [vmem:[#allocation2 + $0x170] ss:$80 sps:$4 sm:$0xff]   ;;  %v15586_v59 = vld [vmem:[#allocation2 + $0x178] ss:$80 sps:$4 sm:$0xff]   ;;  %v15591_v60 = vld [vmem:[#allocation2 + $0x214] ss:$80 sps:$4 sm:$0xff]  }
 0x205   :  { %5599 = vmatpush1.bf16.msra.mxu0 %v15511_v61  ;;  %5728 = vmatpush1.bf16.msra.mxu1 %v15514_v63  ;;  %v15594_v61 = vld [vmem:[#allocation2 + $0x21c] ss:$80 sps:$4 sm:$0xff]   ;;  %v15589_v63 = vld [vmem:[#allocation2 + $0x210] ss:$80 sps:$4 sm:$0xff]  }
 0x206   :  { %5600 = vmatprep.subr.bf16.mxu0 %v15519_v0  ;;  %5729 = vmatprep.subr.bf16.mxu1 %v15522_v1  ;;  %v15592_v0 = vld [vmem:[#allocation2 + $0x218] ss:$80 sps:$4 sm:$0xff]   ;;  %v15597_v1 = vld [vmem:[#allocation2 + $0x2b4] ss:$80 sps:$4 sm:$0xff]  }
 0x209   :  { %5601 = vmatpush1.bf16.msra.mxu0 %v15517_v2  ;;  %5730 = vmatpush1.bf16.msra.mxu1 %v15520_v3  ;;  %v15600_v2 = vld [vmem:[#allocation2 + $0x2bc] ss:$80 sps:$4 sm:$0xff]   ;;  %v15595_v3 = vld [vmem:[#allocation2 + $0x2b0] ss:$80 sps:$4 sm:$0xff]  }
 0x20a   :  { %5613 = vmatprep.subr.bf16.mxu0 %v15525_v6  ;;  %5742 = vmatprep.subr.bf16.mxu1 %v15528_v7  ;;  %v15598_v6 = vld [vmem:[#allocation2 + $0x2b8] ss:$80 sps:$4 sm:$0xff]   ;;  %v15603_v7 = vld [vmem:[#allocation2 + $0x354] ss:$80 sps:$4 sm:$0xff]  }
 0x20c   :  { %5603 = vmatmul.mubr.bf16.vlgmr.msra.gmra.mrb[8].mxu0 %v17178_v14  ;;  %5732 = vmatmul.mubr.bf16.vlgmr.msra.gmra.mrb[8].mxu1 %v17178_v14  ;;  %v15612_v14 = vld [vmem:[#allocation2 + $0x3fc] ss:$80 sps:$4 sm:$0xff]  }
 0x20d   :  { %5614 = vmatpush1.bf16.msra.mxu0 %v15523_v10  ;;  %5743 = vmatpush1.bf16.msra.mxu1 %v15526_v11  ;;  %v15606_v10 = vld [vmem:[#allocation2 + $0x35c] ss:$80 sps:$4 sm:$0xff]   ;;  %v15601_v11 = vld [vmem:[#allocation2 + $0x350] ss:$80 sps:$4 sm:$0xff]  }
 0x20e   :  { %5615 = vmatprep.subr.bf16.mxu0 %v15531_v12  ;;  %5744 = vmatprep.subr.bf16.mxu1 %v15534_v13  ;;  %v15604_v12 = vld [vmem:[#allocation2 + $0x358] ss:$80 sps:$4 sm:$0xff]   ;;  %v15609_v13 = vld [vmem:[#allocation2 + $0x3f4] ss:$80 sps:$4 sm:$0xff]  }
 0x20f   :  { %5645 = vmatprep.mubr.bf16.mxu0 %v17318_v15  ;;  %5774 = vmatprep.mubr.bf16.mxu1 %v17318_v15 }
 0x211   :  { %5616 = vmatpush1.bf16.msra.mxu0 %v15529_v16  ;;  %5745 = vmatpush1.bf16.msra.mxu1 %v15532_v17  ;;  %v15607_v16 = vld [vmem:[#allocation2 + $0x3f0] ss:$80 sps:$4 sm:$0xff]   ;;  %v15610_v17 = vld [vmem:[#allocation2 + $0x3f8] ss:$80 sps:$4 sm:$0xff]  }
 0x212   :  { %5617 = vmatprep.subr.bf16.mxu0 %v15537_v18  ;;  %5746 = vmatprep.subr.bf16.mxu1 %v15540_v19  ;;  %v15615_v18 = vld [vmem:[#allocation2 + $0x494] ss:$80 sps:$4 sm:$0xff]   ;;  %v15618_v19 = vld [vmem:[#allocation2 + $0x49c] ss:$80 sps:$4 sm:$0xff]  }
 0x215   :  { %5618 = vmatpush1.bf16.msra.mxu0 %v15535_v20  ;;  %5747 = vmatpush1.bf16.msra.mxu1 %v15538_v21  ;;  %v15613_v20 = vld [vmem:[#allocation2 + $0x490] ss:$80 sps:$4 sm:$0xff]   ;;  %v15616_v21 = vld [vmem:[#allocation2 + $0x498] ss:$80 sps:$4 sm:$0xff]  }
 0x216   :  { %5619 = vmatprep.subr.bf16.mxu0 %v15543_v22  ;;  %5748 = vmatprep.subr.bf16.mxu1 %v15546_v23  ;;  %v15621_v22 = vld [vmem:[#allocation2 + $0x534] ss:$80 sps:$4 sm:$0xff]   ;;  %v15624_v23 = vld [vmem:[#allocation2 + $0x53c] ss:$80 sps:$4 sm:$0xff]  }
 0x219   :  { %5620 = vmatpush1.bf16.msra.mxu0 %v15541_v24  ;;  %5749 = vmatpush1.bf16.msra.mxu1 %v15544_v25  ;;  %v15619_v24 = vld [vmem:[#allocation2 + $0x530] ss:$80 sps:$4 sm:$0xff]   ;;  %v15622_v25 = vld [vmem:[#allocation2 + $0x538] ss:$80 sps:$4 sm:$0xff]  }
 0x21a   :  { %5621 = vmatprep.subr.bf16.mxu0 %v15549_v26  ;;  %5750 = vmatprep.subr.bf16.mxu1 %v15552_v27  ;;  %v15627_v26 = vld [vmem:[#allocation2 + $0x5d4] ss:$80 sps:$4 sm:$0xff]   ;;  %v15630_v27 = vld [vmem:[#allocation2 + $0x5dc] ss:$80 sps:$4 sm:$0xff]  }
 0x21d   :  { %5622 = vmatpush1.bf16.msra.mxu0 %v15547_v28  ;;  %5751 = vmatpush1.bf16.msra.mxu1 %v15550_v29  ;;  %v15625_v28 = vld [vmem:[#allocation2 + $0x5d0] ss:$80 sps:$4 sm:$0xff]   ;;  %v15628_v29 = vld [vmem:[#allocation2 + $0x5d8] ss:$80 sps:$4 sm:$0xff]  }
 0x21e   :  { %5623 = vmatprep.subr.bf16.mxu0 %v15555_v30  ;;  %5752 = vmatprep.subr.bf16.mxu1 %v15558_v31  ;;  %v15633_v30 = vld [vmem:[#allocation2 + $0x674] ss:$80 sps:$4 sm:$0xff]   ;;  %v15636_v31 = vld [vmem:[#allocation2 + $0x67c] ss:$80 sps:$4 sm:$0xff]  }
 0x221   :  { %5624 = vmatpush1.bf16.msra.mxu0 %v15553_v32  ;;  %5753 = vmatpush1.bf16.msra.mxu1 %v15556_v33  ;;  %v15631_v32 = vld [vmem:[#allocation2 + $0x670] ss:$80 sps:$4 sm:$0xff]   ;;  %v15634_v33 = vld [vmem:[#allocation2 + $0x678] ss:$80 sps:$4 sm:$0xff]  }
 0x222   :  { %5625 = vmatprep.subr.bf16.mxu0 %v15561_v34  ;;  %5754 = vmatprep.subr.bf16.mxu1 %v15564_v35  ;;  %v15639_v34 = vld [vmem:[#allocation2 + $0x714] ss:$80 sps:$4 sm:$0xff]   ;;  %v15642_v35 = vld [vmem:[#allocation2 + $0x71c] ss:$80 sps:$4 sm:$0xff]  }
 0x225   :  { %5626 = vmatpush1.bf16.msra.mxu0 %v15559_v36  ;;  %5755 = vmatpush1.bf16.msra.mxu1 %v15562_v37  ;;  %v15637_v36 = vld [vmem:[#allocation2 + $0x710] ss:$80 sps:$4 sm:$0xff]   ;;  %v15640_v37 = vld [vmem:[#allocation2 + $0x718] ss:$80 sps:$4 sm:$0xff]  }
 0x226   :  { %5627 = vmatprep.subr.bf16.mxu0 %v15567_v38  ;;  %5756 = vmatprep.subr.bf16.mxu1 %v15570_v39  ;;  %v15645_v38 = vld [vmem:[#allocation2 + $0x7b4] ss:$80 sps:$4 sm:$0xff]   ;;  %v15648_v39 = vld [vmem:[#allocation2 + $0x7bc] ss:$80 sps:$4 sm:$0xff]  }
 0x229   :  { %5628 = vmatpush1.bf16.msra.mxu0 %v15565_v40  ;;  %5757 = vmatpush1.bf16.msra.mxu1 %v15568_v41  ;;  %v15643_v40 = vld [vmem:[#allocation2 + $0x7b0] ss:$80 sps:$4 sm:$0xff]   ;;  %v17491_v41 = vsub.s32 4, %v17447_v62 }
 0x22a   :  { %5785 = vmatprep.subr.bf16.mxu0 %v15573_v42  ;;  %5914 = vmatprep.subr.bf16.mxu1 %v15576_v43  ;;  %v911_v42 = vsub.s32 6, %v17447_v62  ;;  %v15646_v43 = vld [vmem:[#allocation2 + $0x7b8] ss:$80 sps:$4 sm:$0xff]  }
 0x22c   :  { %5646 = vmatmul.mubr.bf16.vlgmr.msra.gmra.mrb[8].mxu0 %v17179_v49  ;;  %5775 = vmatmul.mubr.bf16.vlgmr.msra.gmra.mrb[8].mxu1 %v17179_v49  ;;  %v17181_v49 = vld [vmem:[#allocation5] sm:$0xff] }
 0x22d   :  { %5786 = vmatpush1.bf16.msra.mxu0 %v15571_v44  ;;  %5915 = vmatpush1.bf16.msra.mxu1 %v15574_v45  ;;  %v907_v44 = vsub.s32 5, %v17447_v62  ;;  %v915_v45 = vsub.s32 7, %v17447_v62 }
 0x22e   :  { %5787 = vmatprep.subr.bf16.mxu0 %v15579_v46  ;;  %5916 = vmatprep.subr.bf16.mxu1 %v15582_v48  ;;  %v15651_v46 = vld [vmem:[#allocation2 + $0x854] ss:$80 sps:$4 sm:$0xff]   ;;  %v15654_v48 = vld [vmem:[#allocation2 + $0x85c] ss:$80 sps:$4 sm:$0xff]  }
 0x22f   :  { %5817 = vmatprep.mubr.bf16.mxu0 %v17180_v58  ;;  %5946 = vmatprep.mubr.bf16.mxu1 %v17180_v58  ;;  %v15649_v58 = vld [vmem:[#allocation2 + $0x850] ss:$80 sps:$4 sm:$0xff]  }
 0x231   :  { %5788 = vmatpush1.bf16.msra.mxu0 %v15577_v50  ;;  %5917 = vmatpush1.bf16.msra.mxu1 %v15580_v51  ;;  %v904_v50 = vrot.slane %v17181_v49, %v17491_v41  ;;  %v912_v51 = vrot.slane %v17181_v49, %v911_v42 }
 0x232   :  { %5789 = vmatprep.subr.bf16.mxu0 %v15585_v54  ;;  %5918 = vmatprep.subr.bf16.mxu1 %v15588_v55  ;;  %v908_v54 = vrot.slane %v17181_v49, %v907_v44  ;;  %v916_v55 = vrot.slane %v17181_v49, %v915_v45  ;;  %v15673_v49 = vld [vmem:[#allocation2 + $0xad0] ss:$80 sps:$4 sm:$0xff]  }
 0x235   :  { %5790 = vmatpush1.bf16.msra.mxu0 %v15583_v47  ;;  %5919 = vmatpush1.bf16.msra.mxu1 %v15586_v59  ;;  %v15652_v47 = vld [vmem:[#allocation2 + $0x858] ss:$80 sps:$4 sm:$0xff]   ;;  %v15657_v59 = vld [vmem:[#allocation2 + $0x8f4] ss:$80 sps:$4 sm:$0xff]  }
 0x236   :  { %5791 = vmatprep.subr.bf16.mxu0 %v15591_v60  ;;  %5920 = vmatprep.subr.bf16.mxu1 %v15594_v61  ;;  %v15660_v60 = vld [vmem:[#allocation2 + $0x8fc] ss:$80 sps:$4 sm:$0xff]  }
 0x239   :  { %5792 = vmatpush1.bf16.msra.mxu0 %v15589_v63  ;;  %5921 = vmatpush1.bf16.msra.mxu1 %v15592_v0 }
 0x23a   :  { %5793 = vmatprep.subr.bf16.mxu0 %v15597_v1  ;;  %5922 = vmatprep.subr.bf16.mxu1 %v15600_v2 }
 0x23d   :  { %5794 = vmatpush1.bf16.msra.mxu0 %v15595_v3  ;;  %5923 = vmatpush1.bf16.msra.mxu1 %v15598_v6 }
 0x23e   :  { %5795 = vmatprep.subr.bf16.mxu0 %v15603_v7  ;;  %5924 = vmatprep.subr.bf16.mxu1 %v15606_v10 }
 0x241   :  { %5796 = vmatpush1.bf16.msra.mxu0 %v15601_v11  ;;  %5925 = vmatpush1.bf16.msra.mxu1 %v15604_v12  ;;  %v15655_v12 = vld [vmem:[#allocation2 + $0x8f0] ss:$80 sps:$4 sm:$0xff]  }
 0x242   :  { %5797 = vmatprep.subr.bf16.mxu0 %v15609_v13  ;;  %5926 = vmatprep.subr.bf16.mxu1 %v15612_v14  ;;  %v15658_v13 = vld [vmem:[#allocation2 + $0x8f8] ss:$80 sps:$4 sm:$0xff]  }
 0x245   :  { %5798 = vmatpush1.bf16.msra.mxu0 %v15607_v16  ;;  %5927 = vmatpush1.bf16.msra.mxu1 %v15610_v17 }
 0x246   :  { %5799 = vmatprep.subr.bf16.mxu0 %v15615_v18  ;;  %5928 = vmatprep.subr.bf16.mxu1 %v15618_v19  ;;  %v15663_v19 = vld [vmem:[#allocation2 + $0x994] ss:$80 sps:$4 sm:$0xff]  }
 0x249   :  { %5800 = vmatpush1.bf16.msra.mxu0 %v15613_v20  ;;  %5929 = vmatpush1.bf16.msra.mxu1 %v15616_v21  ;;  %v15666_v20 = vld [vmem:[#allocation2 + $0x99c] ss:$80 sps:$4 sm:$0xff]  }
 0x24a   :  { %5801 = vmatprep.subr.bf16.mxu0 %v15621_v22  ;;  %5930 = vmatprep.subr.bf16.mxu1 %v15624_v23 }
 0x24d   :  { %5802 = vmatpush1.bf16.msra.mxu0 %v15619_v24  ;;  %5931 = vmatpush1.bf16.msra.mxu1 %v15622_v25  ;;  %v15661_v24 = vld [vmem:[#allocation2 + $0x990] ss:$80 sps:$4 sm:$0xff]  }
 0x24e   :  { %5803 = vmatprep.subr.bf16.mxu0 %v15627_v26  ;;  %5932 = vmatprep.subr.bf16.mxu1 %v15630_v27 }
 0x251   :  { %5804 = vmatpush1.bf16.msra.mxu0 %v15625_v28  ;;  %5933 = vmatpush1.bf16.msra.mxu1 %v15628_v29 }
 0x252   :  { %5805 = vmatprep.subr.bf16.mxu0 %v15633_v30  ;;  %5934 = vmatprep.subr.bf16.mxu1 %v15636_v31 }
 0x255   :  { %5806 = vmatpush1.bf16.msra.mxu0 %v15631_v32  ;;  %5935 = vmatpush1.bf16.msra.mxu1 %v15634_v33  ;;  %v15664_v32 = vld [vmem:[#allocation2 + $0x998] ss:$80 sps:$4 sm:$0xff]  }
 0x256   :  { %5807 = vmatprep.subr.bf16.mxu0 %v15639_v34  ;;  %5936 = vmatprep.subr.bf16.mxu1 %v15642_v35  ;;  %v15669_v35 = vld [vmem:[#allocation2 + $0xa34] ss:$80 sps:$4 sm:$0xff]  }
 0x259   :  { %5808 = vmatpush1.bf16.msra.mxu0 %v15637_v36  ;;  %5937 = vmatpush1.bf16.msra.mxu1 %v15640_v37  ;;  %v15672_v36 = vld [vmem:[#allocation2 + $0xa3c] ss:$80 sps:$4 sm:$0xff]  }
 0x25a   :  { %5809 = vmatprep.subr.bf16.mxu0 %v15645_v38  ;;  %5938 = vmatprep.subr.bf16.mxu1 %v15648_v39  ;;  %v15667_v39 = vld [vmem:[#allocation2 + $0xa30] ss:$80 sps:$4 sm:$0xff]  }
 0x25d   :  { %5810 = vmatpush1.bf16.msra.mxu0 %v15643_v40  ;;  %5939 = vmatpush1.bf16.msra.mxu1 %v15646_v43  ;;  %v15670_v40 = vld [vmem:[#allocation2 + $0xa38] ss:$80 sps:$4 sm:$0xff]   ;;  %v15675_v43 = vld [vmem:[#allocation2 + $0xad4] ss:$80 sps:$4 sm:$0xff]  }
 0x25e   :  { %5811 = vmatprep.subr.bf16.mxu0 %v15651_v46  ;;  %5940 = vmatprep.subr.bf16.mxu1 %v15654_v48  ;;  %v15678_v46 = vld [vmem:[#allocation2 + $0xadc] ss:$80 sps:$4 sm:$0xff]  }
 0x25f   :  { %v5389_v61 = vpop.f32.mrb[4].mxu0  ;;  %v5518_v63 = vpop.f32.mrb[4].mxu1  ;;  %v17182_v48 = vld [vmem:[%s17658_s0] ss:$20 sps:$4 sm:$0xff]  }
 0x260   :  { %v14640_v0 = vadd.f32 %v5389_v61, %v904_v50  ;;  %v14644_v1 = vadd.f32 %v5518_v63, %v912_v51  ;;  %v5391_v2 = vpop.f32.mrb[5].mxu0  ;;  %v5520_v3 = vpop.f32.mrb[5].mxu1  ;;  %v15685_v61 = vld [vmem:[#allocation2 + $0xc10] ss:$80 sps:$4 sm:$0xff]   ;;  %v15688_v63 = vld [vmem:[#allocation2 + $0xc18] ss:$80 sps:$4 sm:$0xff]  }
 0x261   :  { %v14641_v6 = vadd.f32 %v5391_v2, %v908_v54  ;;  %v14645_v7 = vadd.f32 %v5520_v3, %v916_v55  ;;  %v5393_v10 = vpop.f32.mrb[6].mxu0  ;;  %v5522_v11 = vpop.f32.mrb[6].mxu1  ;;  %5812 = vmatpush1.bf16.msra.mxu0 %v15649_v58  ;;  %5941 = vmatpush1.bf16.msra.mxu1 %v15652_v47  ;;  %v15679_v58 = vld [vmem:[#allocation2 + $0xb70] ss:$80 sps:$4 sm:$0xff]   ;;  %v15682_v47 = vld [vmem:[#allocation2 + $0xb78] ss:$80 sps:$4 sm:$0xff]  }
 0x262   :  { %v14642_v14 = vadd.f32 %v5393_v10, %v904_v50  ;;  %v14646_v16 = vadd.f32 %v5522_v11, %v912_v51  ;;  %v5395_v17 = vpop.f32.mrb[7].mxu0  ;;  %v5524_v18 = vpop.f32.mrb[7].mxu1  ;;  %5813 = vmatprep.subr.bf16.mxu0 %v15657_v59  ;;  %5942 = vmatprep.subr.bf16.mxu1 %v15660_v60  ;;  %v6305_v21 = vmax.f32 %v14640_v0, 0.0  ;;  %v6307_v25 = vmax.f32 %v14644_v1, 0.0  ;;  %v15676_v50 = vld [vmem:[#allocation2 + $0xad8] ss:$80 sps:$4 sm:$0xff]  }
 0x263   :  { %v14643_v22 = vadd.f32 %v5395_v17, %v908_v54  ;;  %v14647_v23 = vadd.f32 %v5524_v18, %v916_v55  ;;  %v6306_v28 = vmax.f32 %v14641_v6, 0.0  ;;  %v6308_v29 = vmax.f32 %v14645_v7, 0.0  ;;  %v15681_v51 = vld [vmem:[#allocation2 + $0xb74] ss:$80 sps:$4 sm:$0xff]   ;;  %v15684_v54 = vld [vmem:[#allocation2 + $0xb7c] ss:$80 sps:$4 sm:$0xff]  }
 0x264   :  { %v6325_v26 = vmax.f32 %v14642_v14, 0.0  ;;  %v6327_v27 = vmax.f32 %v14646_v16, 0.0  ;;  %v17183_v55 = vld [vmem:[%s17658_s0 + $0xc] ss:$20 sps:$4 sm:$0xff]   ;;  %v15690_v60 = vld [vmem:[#allocation2 + $0xc1c] ss:$80 sps:$4 sm:$0xff]  }
 0x265   :  { %v6326_v30 = vmax.f32 %v14643_v22, 0.0  ;;  %v6328_v31 = vmax.f32 %v14647_v23, 0.0  ;;  %5814 = vmatpush1.bf16.msra.mxu0 %v15655_v12  ;;  %5943 = vmatpush1.bf16.msra.mxu1 %v15658_v13  ;;  %v15687_v59 = vld [vmem:[#allocation2 + $0xc14] ss:$80 sps:$4 sm:$0xff]   ;;  %v15696_v1 = vld [vmem:[#allocation2 + $0xcbc] ss:$80 sps:$4 sm:$0xff]  }
 0x266   :  { %v17503_v33 = vpack.c.bf16 %v6325_v26, %v6305_v21  ;;  %v17505_v34 = vpack.c.bf16 %v6327_v27, %v6307_v25  ;;  %5815 = vmatprep.subr.bf16.mxu0 %v15663_v19  ;;  %5944 = vmatprep.subr.bf16.mxu1 %v15666_v20  ;;  %v15693_v0 = vld [vmem:[#allocation2 + $0xcb4] ss:$80 sps:$4 sm:$0xff]   ;;  %v15691_v2 = vld [vmem:[#allocation2 + $0xcb0] ss:$80 sps:$4 sm:$0xff]   ;;  %v15694_v3 = vld [vmem:[#allocation2 + $0xcb8] ss:$80 sps:$4 sm:$0xff]  }
 0x267   :  { %v17507_v37 = vpack.c.bf16 %v6326_v30, %v6306_v28  ;;  %v17509_v38 = vpack.c.bf16 %v6328_v31, %v6308_v29  ;;  %v15699_v6 = vld [vmem:[#allocation2 + $0xd54] ss:$80 sps:$4 sm:$0xff]   ;;  %v15702_v7 = vld [vmem:[#allocation2 + $0xd5c] ss:$80 sps:$4 sm:$0xff]   ;;  %v15697_v10 = vld [vmem:[#allocation2 + $0xd50] ss:$80 sps:$4 sm:$0xff]  }
 0x268   :  { %v15700_v11 = vld [vmem:[#allocation2 + $0xd58] ss:$80 sps:$4 sm:$0xff]   ;;  %v15705_v12 = vld [vmem:[#allocation2 + $0xdf4] ss:$80 sps:$4 sm:$0xff]   ;;  %v15708_v13 = vld [vmem:[#allocation2 + $0xdfc] ss:$80 sps:$4 sm:$0xff]  }
 0x269   :  { %5816 = vmatpush1.bf16.msra.mxu0 %v15661_v24  ;;  %5945 = vmatpush1.bf16.msra.mxu1 %v15664_v32  ;;  %v15703_v14 = vld [vmem:[#allocation2 + $0xdf0] ss:$80 sps:$4 sm:$0xff]   ;;  %v15706_v16 = vld [vmem:[#allocation2 + $0xdf8] ss:$80 sps:$4 sm:$0xff]   ;;  %v15711_v17 = vld [vmem:[#allocation2 + $0xe94] ss:$80 sps:$4 sm:$0xff]  }
 0x26a   :  { %5828 = vmatprep.subr.bf16.mxu0 %v15669_v35  ;;  %5957 = vmatprep.subr.bf16.mxu1 %v15672_v36  ;;  %v15714_v18 = vld [vmem:[#allocation2 + $0xe9c] ss:$80 sps:$4 sm:$0xff]   ;;  %v15709_v19 = vld [vmem:[#allocation2 + $0xe90] ss:$80 sps:$4 sm:$0xff]   ;;  %v15712_v20 = vld [vmem:[#allocation2 + $0xe98] ss:$80 sps:$4 sm:$0xff]  }
 0x26b   :  { %v15717_v21 = vld [vmem:[#allocation2 + $0xf34] ss:$80 sps:$4 sm:$0xff]   ;;  %v15720_v22 = vld [vmem:[#allocation2 + $0xf3c] ss:$80 sps:$4 sm:$0xff]   ;;  %v15715_v23 = vld [vmem:[#allocation2 + $0xf30] ss:$80 sps:$4 sm:$0xff]  }
 0x26c   :  { %5818 = vmatmul.mubr.bf16.vlgmr.msra.gmra.mrb[12].mxu0 %v17182_v48  ;;  %5947 = vmatmul.mubr.bf16.vlgmr.msra.gmra.mrb[12].mxu1 %v17182_v48  ;;  %v15718_v24 = vld [vmem:[#allocation2 + $0xf38] ss:$80 sps:$4 sm:$0xff]   ;;  %v15723_v25 = vld [vmem:[#allocation2 + $0xfd4] ss:$80 sps:$4 sm:$0xff]   ;;  %v15726_v26 = vld [vmem:[#allocation2 + $0xfdc] ss:$80 sps:$4 sm:$0xff]  }
 0x26d   :  { %5829 = vmatpush1.bf16.msra.mxu0 %v15667_v39  ;;  %5958 = vmatpush1.bf16.msra.mxu1 %v15670_v40  ;;  %v15721_v27 = vld [vmem:[#allocation2 + $0xfd0] ss:$80 sps:$4 sm:$0xff]   ;;  %v15724_v28 = vld [vmem:[#allocation2 + $0xfd8] ss:$80 sps:$4 sm:$0xff]   ;;  %v15729_v29 = vld [vmem:[#allocation2 + $0x1074] ss:$80 sps:$4 sm:$0xff]  }
 0x26e   :  { %5830 = vmatprep.subr.bf16.mxu0 %v15675_v43  ;;  %5959 = vmatprep.subr.bf16.mxu1 %v15678_v46  ;;  %v15732_v30 = vld [vmem:[#allocation2 + $0x107c] ss:$80 sps:$4 sm:$0xff]   ;;  %v15727_v31 = vld [vmem:[#allocation2 + $0x1070] ss:$80 sps:$4 sm:$0xff]   ;;  %v15730_v32 = vld [vmem:[#allocation2 + $0x1078] ss:$80 sps:$4 sm:$0xff]  }
 0x26f   :  { %5860 = vmatprep.mubr.bf16.mxu0 %v17183_v55  ;;  %5989 = vmatprep.mubr.bf16.mxu1 %v17183_v55  ;;  %v15735_v35 = vld [vmem:[#allocation2 + $0x1114] ss:$80 sps:$4 sm:$0xff]   ;;  %v15738_v36 = vld [vmem:[#allocation2 + $0x111c] ss:$80 sps:$4 sm:$0xff]   ;;  %v15733_v39 = vld [vmem:[#allocation2 + $0x1110] ss:$80 sps:$4 sm:$0xff]  }
 0x270   :  { %v15736_v40 = vld [vmem:[#allocation2 + $0x1118] ss:$80 sps:$4 sm:$0xff]   ;;  %v15741_v43 = vld [vmem:[#allocation2 + $0x11b4] ss:$80 sps:$4 sm:$0xff]   ;;  %v15744_v46 = vld [vmem:[#allocation2 + $0x11bc] ss:$80 sps:$4 sm:$0xff]  }
 0x271   :  { %5831 = vmatpush1.bf16.msra.mxu0 %v15673_v49  ;;  %5960 = vmatpush1.bf16.msra.mxu1 %v15676_v50  ;;  %v15739_v48 = vld [vmem:[#allocation2 + $0x11b0] ss:$80 sps:$4 sm:$0xff]   ;;  %v15742_v49 = vld [vmem:[#allocation2 + $0x11b8] ss:$80 sps:$4 sm:$0xff]   ;;  %v15747_v50 = vld [vmem:[#allocation2 + $0x1254] ss:$80 sps:$4 sm:$0xff]  }
 0x272   :  { %5832 = vmatprep.subr.bf16.mxu0 %v15681_v51  ;;  %5961 = vmatprep.subr.bf16.mxu1 %v15684_v54  ;;  %v15750_v51 = vld [vmem:[#allocation2 + $0x125c] ss:$80 sps:$4 sm:$0xff]   ;;  %v15745_v54 = vld [vmem:[#allocation2 + $0x1250] ss:$80 sps:$4 sm:$0xff]   ;;  %v15748_v55 = vld [vmem:[#allocation2 + $0x1258] ss:$80 sps:$4 sm:$0xff]  }
 0x275   :  { %5833 = vmatpush1.bf16.msra.mxu0 %v15679_v58  ;;  %5962 = vmatpush1.bf16.msra.mxu1 %v15682_v47  ;;  %v15753_v58 = vld [vmem:[#allocation2 + $0x12f4] ss:$80 sps:$4 sm:$0xff]   ;;  %v15756_v47 = vld [vmem:[#allocation2 + $0x12fc] ss:$80 sps:$4 sm:$0xff]  }
 0x276   :  { %5834 = vmatprep.subr.bf16.mxu0 %v15687_v59  ;;  %5963 = vmatprep.subr.bf16.mxu1 %v15690_v60  ;;  %v15751_v59 = vld [vmem:[#allocation2 + $0x12f0] ss:$80 sps:$4 sm:$0xff]   ;;  %v15754_v60 = vld [vmem:[#allocation2 + $0x12f8] ss:$80 sps:$4 sm:$0xff]  }
 0x279   :  { %5835 = vmatpush1.bf16.msra.mxu0 %v15685_v61  ;;  %5964 = vmatpush1.bf16.msra.mxu1 %v15688_v63  ;;  %v15759_v61 = vld [vmem:[#allocation2 + $0x1394] ss:$80 sps:$4 sm:$0xff]   ;;  %v15762_v63 = vld [vmem:[#allocation2 + $0x139c] ss:$80 sps:$4 sm:$0xff]  }
 0x27a   :  { %5836 = vmatprep.subr.bf16.mxu0 %v15693_v0  ;;  %5965 = vmatprep.subr.bf16.mxu1 %v15696_v1  ;;  %v15757_v0 = vld [vmem:[#allocation2 + $0x1390] ss:$80 sps:$4 sm:$0xff]   ;;  %v15760_v1 = vld [vmem:[#allocation2 + $0x1398] ss:$80 sps:$4 sm:$0xff]  }
 0x27d   :  { %5837 = vmatpush1.bf16.msra.mxu0 %v15691_v2  ;;  %5966 = vmatpush1.bf16.msra.mxu1 %v15694_v3  ;;  %v15765_v2 = vld [vmem:[#allocation2 + $0x1434] ss:$80 sps:$4 sm:$0xff]   ;;  %v15768_v3 = vld [vmem:[#allocation2 + $0x143c] ss:$80 sps:$4 sm:$0xff]  }
 0x27e   :  { %5838 = vmatprep.subr.bf16.mxu0 %v15699_v6  ;;  %5967 = vmatprep.subr.bf16.mxu1 %v15702_v7  ;;  %v15763_v6 = vld [vmem:[#allocation2 + $0x1430] ss:$80 sps:$4 sm:$0xff]   ;;  %v15766_v7 = vld [vmem:[#allocation2 + $0x1438] ss:$80 sps:$4 sm:$0xff]  }
 0x281   :  { %5839 = vmatpush1.bf16.msra.mxu0 %v15697_v10  ;;  %5968 = vmatpush1.bf16.msra.mxu1 %v15700_v11  ;;  %v15771_v10 = vld [vmem:[#allocation2 + $0x14d4] ss:$80 sps:$4 sm:$0xff]   ;;  %v15774_v11 = vld [vmem:[#allocation2 + $0x14dc] ss:$80 sps:$4 sm:$0xff]  }
 0x282   :  { %5840 = vmatprep.subr.bf16.mxu0 %v15705_v12  ;;  %5969 = vmatprep.subr.bf16.mxu1 %v15708_v13  ;;  %v17184_v12 = vld [vmem:[%s17658_s0 + $0x8] ss:$20 sps:$4 sm:$0xff]  }
 0x283   :  { %v15769_v13 = vld [vmem:[#allocation2 + $0x14d0] ss:$80 sps:$4 sm:$0xff]  }
 0x285   :  { %5841 = vmatpush1.bf16.msra.mxu0 %v15703_v14  ;;  %5970 = vmatpush1.bf16.msra.mxu1 %v15706_v16  ;;  %v15772_v14 = vld [vmem:[#allocation2 + $0x14d8] ss:$80 sps:$4 sm:$0xff]   ;;  %v15777_v16 = vld [vmem:[#allocation2 + $0x1574] ss:$80 sps:$4 sm:$0xff]  }
 0x286   :  { %5842 = vmatprep.subr.bf16.mxu0 %v15711_v17  ;;  %5971 = vmatprep.subr.bf16.mxu1 %v15714_v18  ;;  %v15780_v17 = vld [vmem:[#allocation2 + $0x157c] ss:$80 sps:$4 sm:$0xff]   ;;  %v15775_v18 = vld [vmem:[#allocation2 + $0x1570] ss:$80 sps:$4 sm:$0xff]  }
 0x289   :  { %5843 = vmatpush1.bf16.msra.mxu0 %v15709_v19  ;;  %5972 = vmatpush1.bf16.msra.mxu1 %v15712_v20  ;;  %v15778_v19 = vld [vmem:[#allocation2 + $0x1578] ss:$80 sps:$4 sm:$0xff]   ;;  %v15783_v20 = vld [vmem:[#allocation2 + $0x1614] ss:$80 sps:$4 sm:$0xff]  }
 0x28a   :  { %5844 = vmatprep.subr.bf16.mxu0 %v15717_v21  ;;  %5973 = vmatprep.subr.bf16.mxu1 %v15720_v22  ;;  %v15786_v21 = vld [vmem:[#allocation2 + $0x161c] ss:$80 sps:$4 sm:$0xff]   ;;  %v15781_v22 = vld [vmem:[#allocation2 + $0x1610] ss:$80 sps:$4 sm:$0xff]  }
 0x28d   :  { %5845 = vmatpush1.bf16.msra.mxu0 %v15715_v23  ;;  %5974 = vmatpush1.bf16.msra.mxu1 %v15718_v24  ;;  %v15784_v23 = vld [vmem:[#allocation2 + $0x1618] ss:$80 sps:$4 sm:$0xff]   ;;  %v15789_v24 = vld [vmem:[#allocation2 + $0x16b4] ss:$80 sps:$4 sm:$0xff]  }
 0x28e   :  { %5846 = vmatprep.subr.bf16.mxu0 %v15723_v25  ;;  %5975 = vmatprep.subr.bf16.mxu1 %v15726_v26  ;;  %v15792_v25 = vld [vmem:[#allocation2 + $0x16bc] ss:$80 sps:$4 sm:$0xff]   ;;  %v15787_v26 = vld [vmem:[#allocation2 + $0x16b0] ss:$80 sps:$4 sm:$0xff]  }
 0x291   :  { %5847 = vmatpush1.bf16.msra.mxu0 %v15721_v27  ;;  %5976 = vmatpush1.bf16.msra.mxu1 %v15724_v28  ;;  %v15790_v27 = vld [vmem:[#allocation2 + $0x16b8] ss:$80 sps:$4 sm:$0xff]   ;;  %v15795_v28 = vld [vmem:[#allocation2 + $0x1754] ss:$80 sps:$4 sm:$0xff]  }
 0x292   :  { %5848 = vmatprep.subr.bf16.mxu0 %v15729_v29  ;;  %5977 = vmatprep.subr.bf16.mxu1 %v15732_v30  ;;  %v15798_v29 = vld [vmem:[#allocation2 + $0x175c] ss:$80 sps:$4 sm:$0xff]   ;;  %v15793_v30 = vld [vmem:[#allocation2 + $0x1750] ss:$80 sps:$4 sm:$0xff]  }
 0x295   :  { %5849 = vmatpush1.bf16.msra.mxu0 %v15727_v31  ;;  %5978 = vmatpush1.bf16.msra.mxu1 %v15730_v32  ;;  %v15796_v31 = vld [vmem:[#allocation2 + $0x1758] ss:$80 sps:$4 sm:$0xff]   ;;  %v15801_v32 = vld [vmem:[#allocation2 + $0x17f4] ss:$80 sps:$4 sm:$0xff]  }
 0x296   :  { %5850 = vmatprep.subr.bf16.mxu0 %v15735_v35  ;;  %5979 = vmatprep.subr.bf16.mxu1 %v15738_v36  ;;  %v15804_v35 = vld [vmem:[#allocation2 + $0x17fc] ss:$80 sps:$4 sm:$0xff]   ;;  %v15799_v36 = vld [vmem:[#allocation2 + $0x17f0] ss:$80 sps:$4 sm:$0xff]  }
 0x299   :  { %5851 = vmatpush1.bf16.msra.mxu0 %v15733_v39  ;;  %5980 = vmatpush1.bf16.msra.mxu1 %v15736_v40  ;;  %v15802_v39 = vld [vmem:[#allocation2 + $0x17f8] ss:$80 sps:$4 sm:$0xff]   ;;  %v15807_v40 = vld [vmem:[#allocation2 + $0x1894] ss:$80 sps:$4 sm:$0xff]  }
 0x29a   :  { %5852 = vmatprep.subr.bf16.mxu0 %v15741_v43  ;;  %5981 = vmatprep.subr.bf16.mxu1 %v15744_v46  ;;  %v15810_v43 = vld [vmem:[#allocation2 + $0x189c] ss:$80 sps:$4 sm:$0xff]   ;;  %v15805_v46 = vld [vmem:[#allocation2 + $0x1890] ss:$80 sps:$4 sm:$0xff]  }
 0x29d   :  { %5853 = vmatpush1.bf16.msra.mxu0 %v15739_v48  ;;  %5982 = vmatpush1.bf16.msra.mxu1 %v15742_v49  ;;  %v15808_v48 = vld [vmem:[#allocation2 + $0x1898] ss:$80 sps:$4 sm:$0xff]   ;;  %v15813_v49 = vld [vmem:[#allocation2 + $0x44] ss:$80 sps:$4 sm:$0xff]  }
 0x29e   :  { %5854 = vmatprep.subr.bf16.mxu0 %v15747_v50  ;;  %5983 = vmatprep.subr.bf16.mxu1 %v15750_v51  ;;  %v15816_v50 = vld [vmem:[#allocation2 + $0x4c] ss:$80 sps:$4 sm:$0xff]   ;;  %v15811_v51 = vld [vmem:[#allocation2 + $0x40] ss:$80 sps:$4 sm:$0xff]  }
 0x2a1   :  { %5855 = vmatpush1.bf16.msra.mxu0 %v15745_v54  ;;  %5984 = vmatpush1.bf16.msra.mxu1 %v15748_v55  ;;  %v15814_v54 = vld [vmem:[#allocation2 + $0x48] ss:$80 sps:$4 sm:$0xff]   ;;  %v15819_v55 = vld [vmem:[#allocation2 + $0xe4] ss:$80 sps:$4 sm:$0xff]  }
 0x2a2   :  { %5856 = vmatprep.subr.bf16.mxu0 %v15753_v58  ;;  %5985 = vmatprep.subr.bf16.mxu1 %v15756_v47  ;;  %v15822_v58 = vld [vmem:[#allocation2 + $0xec] ss:$80 sps:$4 sm:$0xff]  }
 0x2a3   :  { %v17185_v47 = vld [vmem:[%s17658_s0 + $0x10] ss:$20 sps:$4 sm:$0xff]  }
 0x2a5   :  { %5857 = vmatpush1.bf16.msra.mxu0 %v15751_v59  ;;  %5986 = vmatpush1.bf16.msra.mxu1 %v15754_v60  ;;  %v15817_v59 = vld [vmem:[#allocation2 + $0xe0] ss:$80 sps:$4 sm:$0xff]   ;;  %v15820_v60 = vld [vmem:[#allocation2 + $0xe8] ss:$80 sps:$4 sm:$0xff]  }
 0x2a6   :  { %5858 = vmatprep.subr.bf16.mxu0 %v15759_v61  ;;  %5987 = vmatprep.subr.bf16.mxu1 %v15762_v63  ;;  %v15825_v61 = vld [vmem:[#allocation2 + $0x184] ss:$80 sps:$4 sm:$0xff]   ;;  %v15828_v63 = vld [vmem:[#allocation2 + $0x18c] ss:$80 sps:$4 sm:$0xff]  }
 0x2a9   :  { %5859 = vmatpush1.bf16.msra.mxu0 %v15757_v0  ;;  %5988 = vmatpush1.bf16.msra.mxu1 %v15760_v1  ;;  %v17186_v0 = vld [vmem:[%s17658_s0 + $0x4] ss:$20 sps:$4 sm:$0xff]  }
 0x2aa   :  { %5871 = vmatprep.subr.bf16.mxu0 %v15765_v2  ;;  %6000 = vmatprep.subr.bf16.mxu1 %v15768_v3  ;;  %v15823_v1 = vld [vmem:[#allocation2 + $0x180] ss:$80 sps:$4 sm:$0xff]   ;;  %v15826_v2 = vld [vmem:[#allocation2 + $0x188] ss:$80 sps:$4 sm:$0xff]   ;;  %v15831_v3 = vld [vmem:[#allocation2 + $0x224] ss:$80 sps:$4 sm:$0xff]  }
 0x2ac   :  { %5861 = vmatmul.mubr.bf16.vlgmr.msra.gmra.mrb[12].mxu0 %v17184_v12  ;;  %5990 = vmatmul.mubr.bf16.vlgmr.msra.gmra.mrb[12].mxu1 %v17184_v12  ;;  %v15840_v12 = vld [vmem:[#allocation2 + $0x2cc] ss:$80 sps:$4 sm:$0xff]  }
 0x2ad   :  { %5872 = vmatpush1.bf16.msra.mxu0 %v15763_v6  ;;  %6001 = vmatpush1.bf16.msra.mxu1 %v15766_v7  ;;  %v15834_v6 = vld [vmem:[#allocation2 + $0x22c] ss:$80 sps:$4 sm:$0xff]   ;;  %v15829_v7 = vld [vmem:[#allocation2 + $0x220] ss:$80 sps:$4 sm:$0xff]  }
 0x2ae   :  { %5873 = vmatprep.subr.bf16.mxu0 %v15771_v10  ;;  %6002 = vmatprep.subr.bf16.mxu1 %v15774_v11  ;;  %v15832_v10 = vld [vmem:[#allocation2 + $0x228] ss:$80 sps:$4 sm:$0xff]   ;;  %v15837_v11 = vld [vmem:[#allocation2 + $0x2c4] ss:$80 sps:$4 sm:$0xff]  }
 0x2af   :  { %5903 = vmatprep.mubr.bf16.mxu0 %v17318_v15  ;;  %6032 = vmatprep.mubr.bf16.mxu1 %v17318_v15 }
 0x2b1   :  { %5874 = vmatpush1.bf16.msra.mxu0 %v15769_v13  ;;  %6003 = vmatpush1.bf16.msra.mxu1 %v15772_v14  ;;  %v15835_v13 = vld [vmem:[#allocation2 + $0x2c0] ss:$80 sps:$4 sm:$0xff]   ;;  %v15838_v14 = vld [vmem:[#allocation2 + $0x2c8] ss:$80 sps:$4 sm:$0xff]  }
 0x2b2   :  { %5875 = vmatprep.subr.bf16.mxu0 %v15777_v16  ;;  %6004 = vmatprep.subr.bf16.mxu1 %v15780_v17  ;;  %v15843_v16 = vld [vmem:[#allocation2 + $0x364] ss:$80 sps:$4 sm:$0xff]   ;;  %v15846_v17 = vld [vmem:[#allocation2 + $0x36c] ss:$80 sps:$4 sm:$0xff]  }
 0x2b5   :  { %5876 = vmatpush1.bf16.msra.mxu0 %v15775_v18  ;;  %6005 = vmatpush1.bf16.msra.mxu1 %v15778_v19  ;;  %v15841_v18 = vld [vmem:[#allocation2 + $0x360] ss:$80 sps:$4 sm:$0xff]   ;;  %v15844_v19 = vld [vmem:[#allocation2 + $0x368] ss:$80 sps:$4 sm:$0xff]  }
 0x2b6   :  { %5877 = vmatprep.subr.bf16.mxu0 %v15783_v20  ;;  %6006 = vmatprep.subr.bf16.mxu1 %v15786_v21  ;;  %v15849_v20 = vld [vmem:[#allocation2 + $0x404] ss:$80 sps:$4 sm:$0xff]   ;;  %v15852_v21 = vld [vmem:[#allocation2 + $0x40c] ss:$80 sps:$4 sm:$0xff]  }
 0x2b9   :  { %5878 = vmatpush1.bf16.msra.mxu0 %v15781_v22  ;;  %6007 = vmatpush1.bf16.msra.mxu1 %v15784_v23  ;;  %v15847_v22 = vld [vmem:[#allocation2 + $0x400] ss:$80 sps:$4 sm:$0xff]   ;;  %v15850_v23 = vld [vmem:[#allocation2 + $0x408] ss:$80 sps:$4 sm:$0xff]  }
 0x2ba   :  { %5879 = vmatprep.subr.bf16.mxu0 %v15789_v24  ;;  %6008 = vmatprep.subr.bf16.mxu1 %v15792_v25  ;;  %v15855_v24 = vld [vmem:[#allocation2 + $0x4a4] ss:$80 sps:$4 sm:$0xff]   ;;  %v15858_v25 = vld [vmem:[#allocation2 + $0x4ac] ss:$80 sps:$4 sm:$0xff]  }
 0x2bd   :  { %5880 = vmatpush1.bf16.msra.mxu0 %v15787_v26  ;;  %6009 = vmatpush1.bf16.msra.mxu1 %v15790_v27  ;;  %v15853_v26 = vld [vmem:[#allocation2 + $0x4a0] ss:$80 sps:$4 sm:$0xff]   ;;  %v15856_v27 = vld [vmem:[#allocation2 + $0x4a8] ss:$80 sps:$4 sm:$0xff]  }
 0x2be   :  { %5881 = vmatprep.subr.bf16.mxu0 %v15795_v28  ;;  %6010 = vmatprep.subr.bf16.mxu1 %v15798_v29  ;;  %v15861_v28 = vld [vmem:[#allocation2 + $0x544] ss:$80 sps:$4 sm:$0xff]   ;;  %v15864_v29 = vld [vmem:[#allocation2 + $0x54c] ss:$80 sps:$4 sm:$0xff]  }
 0x2c1   :  { %5882 = vmatpush1.bf16.msra.mxu0 %v15793_v30  ;;  %6011 = vmatpush1.bf16.msra.mxu1 %v15796_v31  ;;  %v15859_v30 = vld [vmem:[#allocation2 + $0x540] ss:$80 sps:$4 sm:$0xff]   ;;  %v15862_v31 = vld [vmem:[#allocation2 + $0x548] ss:$80 sps:$4 sm:$0xff]  }
 0x2c2   :  { %5883 = vmatprep.subr.bf16.mxu0 %v15801_v32  ;;  %6012 = vmatprep.subr.bf16.mxu1 %v15804_v35  ;;  %v15867_v32 = vld [vmem:[#allocation2 + $0x5e4] ss:$80 sps:$4 sm:$0xff]   ;;  %v15870_v35 = vld [vmem:[#allocation2 + $0x5ec] ss:$80 sps:$4 sm:$0xff]  }
 0x2c5   :  { %5884 = vmatpush1.bf16.msra.mxu0 %v15799_v36  ;;  %6013 = vmatpush1.bf16.msra.mxu1 %v15802_v39  ;;  %v15865_v36 = vld [vmem:[#allocation2 + $0x5e0] ss:$80 sps:$4 sm:$0xff]   ;;  %v15868_v39 = vld [vmem:[#allocation2 + $0x5e8] ss:$80 sps:$4 sm:$0xff]  }
 0x2c6   :  { %5885 = vmatprep.subr.bf16.mxu0 %v15807_v40  ;;  %6014 = vmatprep.subr.bf16.mxu1 %v15810_v43  ;;  %v15873_v40 = vld [vmem:[#allocation2 + $0x684] ss:$80 sps:$4 sm:$0xff]   ;;  %v15876_v43 = vld [vmem:[#allocation2 + $0x68c] ss:$80 sps:$4 sm:$0xff]  }
 0x2c9   :  { %5886 = vmatpush1.bf16.msra.mxu0 %v15805_v46  ;;  %6015 = vmatpush1.bf16.msra.mxu1 %v15808_v48  ;;  %v15871_v46 = vld [vmem:[#allocation2 + $0x680] ss:$80 sps:$4 sm:$0xff]   ;;  %v15874_v48 = vld [vmem:[#allocation2 + $0x688] ss:$80 sps:$4 sm:$0xff]  }
 0x2ca   :  { %6043 = vmatprep.subr.bf16.mxu0 %v15813_v49  ;;  %6172 = vmatprep.subr.bf16.mxu1 %v15816_v50  ;;  %v15879_v49 = vld [vmem:[#allocation2 + $0x724] ss:$80 sps:$4 sm:$0xff]   ;;  %v15882_v50 = vld [vmem:[#allocation2 + $0x72c] ss:$80 sps:$4 sm:$0xff]  }
 0x2cc   :  { %5904 = vmatmul.mubr.bf16.vlgmr.msra.gmra.mrb[12].mxu0 %v17185_v47  ;;  %6033 = vmatmul.mubr.bf16.vlgmr.msra.gmra.mrb[12].mxu1 %v17185_v47  ;;  %v15883_v47 = vld [vmem:[#allocation2 + $0x7c0] ss:$80 sps:$4 sm:$0xff]  }
 0x2cd   :  { %6044 = vmatpush1.bf16.msra.mxu0 %v15811_v51  ;;  %6173 = vmatpush1.bf16.msra.mxu1 %v15814_v54  ;;  %v15877_v51 = vld [vmem:[#allocation2 + $0x720] ss:$80 sps:$4 sm:$0xff]   ;;  %v15880_v54 = vld [vmem:[#allocation2 + $0x728] ss:$80 sps:$4 sm:$0xff]  }
 0x2ce   :  { %6045 = vmatprep.subr.bf16.mxu0 %v15819_v55  ;;  %6174 = vmatprep.subr.bf16.mxu1 %v15822_v58  ;;  %v15885_v55 = vld [vmem:[#allocation2 + $0x7c4] ss:$80 sps:$4 sm:$0xff]   ;;  %v15888_v58 = vld [vmem:[#allocation2 + $0x7cc] ss:$80 sps:$4 sm:$0xff]  }
 0x2cf   :  { %6075 = vmatprep.mubr.bf16.mxu0 %v17186_v0  ;;  %6204 = vmatprep.mubr.bf16.mxu1 %v17186_v0  ;;  %v15889_v0 = vld [vmem:[#allocation2 + $0x860] ss:$80 sps:$4 sm:$0xff]  }
 0x2d1   :  { %6046 = vmatpush1.bf16.msra.mxu0 %v15817_v59  ;;  %6175 = vmatpush1.bf16.msra.mxu1 %v15820_v60  ;;  %v15886_v59 = vld [vmem:[#allocation2 + $0x7c8] ss:$80 sps:$4 sm:$0xff]  }
 0x2d2   :  { %6047 = vmatprep.subr.bf16.mxu0 %v15825_v61  ;;  %6176 = vmatprep.subr.bf16.mxu1 %v15828_v63  ;;  %v880_v60 = vld [vmem:[#allocation5 + $0x8] sm:$0xff]  ;;  %v15891_v61 = vld [vmem:[#allocation2 + $0x864] ss:$80 sps:$4 sm:$0xff]  }
 0x2d3   :  { %v15894_v63 = vld [vmem:[#allocation2 + $0x86c] ss:$80 sps:$4 sm:$0xff]  }
 0x2d5   :  { %6048 = vmatpush1.bf16.msra.mxu0 %v15823_v1  ;;  %6177 = vmatpush1.bf16.msra.mxu1 %v15826_v2  ;;  %v15892_v1 = vld [vmem:[#allocation2 + $0x868] ss:$80 sps:$4 sm:$0xff]   ;;  %v920_v2 = vrot.slane %v880_v60, %v17450_v4 }
 0x2d6   :  { %6049 = vmatprep.subr.bf16.mxu0 %v15831_v3  ;;  %6178 = vmatprep.subr.bf16.mxu1 %v15834_v6  ;;  %v928_v3 = vrot.slane %v880_v60, %v17453_v5  ;;  %v924_v6 = vrot.slane %v880_v60, %v17456_v8 }
 0x2d9   :  { %6050 = vmatpush1.bf16.msra.mxu0 %v15829_v7  ;;  %6179 = vmatpush1.bf16.msra.mxu1 %v15832_v10  ;;  %v932_v7 = vrot.slane %v880_v60, %v17459_v9  ;;  %v15897_v10 = vld [vmem:[#allocation2 + $0x904] ss:$80 sps:$4 sm:$0xff]  }
 0x2da   :  { %6051 = vmatprep.subr.bf16.mxu0 %v15837_v11  ;;  %6180 = vmatprep.subr.bf16.mxu1 %v15840_v12  ;;  %v15900_v11 = vld [vmem:[#allocation2 + $0x90c] ss:$80 sps:$4 sm:$0xff]  }
 0x2dd   :  { %6052 = vmatpush1.bf16.msra.mxu0 %v15835_v13  ;;  %6181 = vmatpush1.bf16.msra.mxu1 %v15838_v14  ;;  %v15895_v14 = vld [vmem:[#allocation2 + $0x900] ss:$80 sps:$4 sm:$0xff]  }
 0x2de   :  { %6053 = vmatprep.subr.bf16.mxu0 %v15843_v16  ;;  %6182 = vmatprep.subr.bf16.mxu1 %v15846_v17  ;;  %v15898_v16 = vld [vmem:[#allocation2 + $0x908] ss:$80 sps:$4 sm:$0xff]  }
 0x2e1   :  { %6054 = vmatpush1.bf16.msra.mxu0 %v15841_v18  ;;  %6183 = vmatpush1.bf16.msra.mxu1 %v15844_v19 }
 0x2e2   :  { %6055 = vmatprep.subr.bf16.mxu0 %v15849_v20  ;;  %6184 = vmatprep.subr.bf16.mxu1 %v15852_v21 }
 0x2e5   :  { %6056 = vmatpush1.bf16.msra.mxu0 %v15847_v22  ;;  %6185 = vmatpush1.bf16.msra.mxu1 %v15850_v23 }
 0x2e6   :  { %6057 = vmatprep.subr.bf16.mxu0 %v15855_v24  ;;  %6186 = vmatprep.subr.bf16.mxu1 %v15858_v25 }
 0x2e9   :  { %6058 = vmatpush1.bf16.msra.mxu0 %v15853_v26  ;;  %6187 = vmatpush1.bf16.msra.mxu1 %v15856_v27 }
 0x2ea   :  { %6059 = vmatprep.subr.bf16.mxu0 %v15861_v28  ;;  %6188 = vmatprep.subr.bf16.mxu1 %v15864_v29  ;;  %v15903_v29 = vld [vmem:[#allocation2 + $0x9a4] ss:$80 sps:$4 sm:$0xff]  }
 0x2ed   :  { %6060 = vmatpush1.bf16.msra.mxu0 %v15859_v30  ;;  %6189 = vmatpush1.bf16.msra.mxu1 %v15862_v31  ;;  %v15906_v30 = vld [vmem:[#allocation2 + $0x9ac] ss:$80 sps:$4 sm:$0xff]  }
 0x2ee   :  { %6061 = vmatprep.subr.bf16.mxu0 %v15867_v32  ;;  %6190 = vmatprep.subr.bf16.mxu1 %v15870_v35 }
 0x2f1   :  { %6062 = vmatpush1.bf16.msra.mxu0 %v15865_v36  ;;  %6191 = vmatpush1.bf16.msra.mxu1 %v15868_v39  ;;  %v15901_v36 = vld [vmem:[#allocation2 + $0x9a0] ss:$80 sps:$4 sm:$0xff]   ;;  %v15904_v39 = vld [vmem:[#allocation2 + $0x9a8] ss:$80 sps:$4 sm:$0xff]  }
 0x2f2   :  { %6063 = vmatprep.subr.bf16.mxu0 %v15873_v40  ;;  %6192 = vmatprep.subr.bf16.mxu1 %v15876_v43 }
 0x2f5   :  { %6064 = vmatpush1.bf16.msra.mxu0 %v15871_v46  ;;  %6193 = vmatpush1.bf16.msra.mxu1 %v15874_v48 }
 0x2f6   :  { %6065 = vmatprep.subr.bf16.mxu0 %v15879_v49  ;;  %6194 = vmatprep.subr.bf16.mxu1 %v15882_v50 }
 0x2f9   :  { %6066 = vmatpush1.bf16.msra.mxu0 %v15877_v51  ;;  %6195 = vmatpush1.bf16.msra.mxu1 %v15880_v54 }
 0x2fa   :  { %6067 = vmatprep.subr.bf16.mxu0 %v15885_v55  ;;  %6196 = vmatprep.subr.bf16.mxu1 %v15888_v58  ;;  %v15909_v58 = vld [vmem:[#allocation2 + $0xa44] ss:$80 sps:$4 sm:$0xff]  }
 0x2fd   :  { %6068 = vmatpush1.bf16.msra.mxu0 %v15883_v47  ;;  %6197 = vmatpush1.bf16.msra.mxu1 %v15886_v59  ;;  %v15912_v47 = vld [vmem:[#allocation2 + $0xa4c] ss:$80 sps:$4 sm:$0xff]  }
 0x2fe   :  { %6069 = vmatprep.subr.bf16.mxu0 %v15891_v61  ;;  %6198 = vmatprep.subr.bf16.mxu1 %v15894_v63  ;;  %v15907_v61 = vld [vmem:[#allocation2 + $0xa40] ss:$80 sps:$4 sm:$0xff]   ;;  %v15910_v63 = vld [vmem:[#allocation2 + $0xa48] ss:$80 sps:$4 sm:$0xff]  }
 0x2ff   :  { %v5647_v12 = vpop.f32.mrb[8].mxu0  ;;  %v5776_v13 = vpop.f32.mrb[8].mxu1 }
 0x300   :  { %v14648_v17 = vadd.f32 %v5647_v12, %v920_v2  ;;  %v14652_v18 = vadd.f32 %v5776_v13, %v928_v3  ;;  %v5649_v19 = vpop.f32.mrb[9].mxu0  ;;  %v5778_v20 = vpop.f32.mrb[9].mxu1  ;;  %v15922_v12 = vld [vmem:[#allocation2 + $0xb88] ss:$80 sps:$4 sm:$0xff]  }
 0x301   :  { %v14649_v21 = vadd.f32 %v5649_v19, %v924_v6  ;;  %v14653_v22 = vadd.f32 %v5778_v20, %v932_v7  ;;  %v5651_v23 = vpop.f32.mrb[10].mxu0  ;;  %v5780_v24 = vpop.f32.mrb[10].mxu1  ;;  %6070 = vmatpush1.bf16.msra.mxu0 %v15889_v0  ;;  %6199 = vmatpush1.bf16.msra.mxu1 %v15892_v1  ;;  %v15915_v0 = vld [vmem:[#allocation2 + $0xae4] ss:$80 sps:$4 sm:$0xff]   ;;  %v15918_v1 = vld [vmem:[#allocation2 + $0xaec] ss:$80 sps:$4 sm:$0xff]  }
 0x302   :  { %v14650_v25 = vadd.f32 %v5651_v23, %v920_v2  ;;  %v14654_v26 = vadd.f32 %v5780_v24, %v928_v3  ;;  %v5653_v27 = vpop.f32.mrb[11].mxu0  ;;  %v5782_v28 = vpop.f32.mrb[11].mxu1  ;;  %6071 = vmatprep.subr.bf16.mxu0 %v15897_v10  ;;  %6200 = vmatprep.subr.bf16.mxu1 %v15900_v11  ;;  %v6309_v31 = vmax.f32 %v14648_v17, 0.0  ;;  %v6311_v40 = vmax.f32 %v14652_v18, 0.0  ;;  %v15913_v2 = vld [vmem:[#allocation2 + $0xae0] ss:$80 sps:$4 sm:$0xff]  }
 0x303   :  { %v14651_v32 = vadd.f32 %v5653_v27, %v924_v6  ;;  %v14655_v35 = vadd.f32 %v5782_v28, %v932_v7  ;;  %v6310_v43 = vmax.f32 %v14649_v21, 0.0  ;;  %v6312_v49 = vmax.f32 %v14653_v22, 0.0  ;;  %v15916_v3 = vld [vmem:[#allocation2 + $0xae8] ss:$80 sps:$4 sm:$0xff]   ;;  %v15921_v7 = vld [vmem:[#allocation2 + $0xb84] ss:$80 sps:$4 sm:$0xff]  }
 0x304   :  { %v6329_v46 = vmax.f32 %v14650_v25, 0.0  ;;  %v6331_v48 = vmax.f32 %v14654_v26, 0.0  ;;  %v17187_v6 = vld [vmem:[%s17658_s0] ss:$20 sps:$4 sm:$0xff]   ;;  %v15919_v11 = vld [vmem:[#allocation2 + $0xb80] ss:$80 sps:$4 sm:$0xff]  }
 0x305   :  { %v6330_v50 = vmax.f32 %v14651_v32, 0.0  ;;  %v6332_v51 = vmax.f32 %v14655_v35, 0.0  ;;  %6072 = vmatpush1.bf16.msra.mxu0 %v15895_v14  ;;  %6201 = vmatpush1.bf16.msra.mxu1 %v15898_v16  ;;  %v15924_v10 = vld [vmem:[#allocation2 + $0xb8c] ss:$80 sps:$4 sm:$0xff]   ;;  %v17188_v13 = vld [vmem:[%s17658_s0 + $0xc] ss:$20 sps:$4 sm:$0xff]  }
 0x306   :  { %v17532_v54 = vpack.c.bf16 %v6329_v46, %v6309_v31  ;;  %v17534_v55 = vpack.c.bf16 %v6331_v48, %v6311_v40  ;;  %6073 = vmatprep.subr.bf16.mxu0 %v15903_v29  ;;  %6202 = vmatprep.subr.bf16.mxu1 %v15906_v30  ;;  %v15927_v14 = vld [vmem:[#allocation2 + $0xc24] ss:$80 sps:$4 sm:$0xff]   ;;  %v15930_v16 = vld [vmem:[#allocation2 + $0xc2c] ss:$80 sps:$4 sm:$0xff]   ;;  %v15925_v17 = vld [vmem:[#allocation2 + $0xc20] ss:$80 sps:$4 sm:$0xff]  }
 0x307   :  { %v17536_v59 = vpack.c.bf16 %v6330_v50, %v6310_v43  ;;  %v17538_v60 = vpack.c.bf16 %v6332_v51, %v6312_v49  ;;  %v15928_v18 = vld [vmem:[#allocation2 + $0xc28] ss:$80 sps:$4 sm:$0xff]   ;;  %v15933_v19 = vld [vmem:[#allocation2 + $0xcc4] ss:$80 sps:$4 sm:$0xff]   ;;  %v15936_v20 = vld [vmem:[#allocation2 + $0xccc] ss:$80 sps:$4 sm:$0xff]  }
 0x308   :  { %v15931_v21 = vld [vmem:[#allocation2 + $0xcc0] ss:$80 sps:$4 sm:$0xff]   ;;  %v15934_v22 = vld [vmem:[#allocation2 + $0xcc8] ss:$80 sps:$4 sm:$0xff]   ;;  %v15939_v23 = vld [vmem:[#allocation2 + $0xd64] ss:$80 sps:$4 sm:$0xff]  }
 0x309   :  { %6074 = vmatpush1.bf16.msra.mxu0 %v15901_v36  ;;  %6203 = vmatpush1.bf16.msra.mxu1 %v15904_v39  ;;  %v15942_v24 = vld [vmem:[#allocation2 + $0xd6c] ss:$80 sps:$4 sm:$0xff]   ;;  %v15937_v25 = vld [vmem:[#allocation2 + $0xd60] ss:$80 sps:$4 sm:$0xff]   ;;  %v15940_v26 = vld [vmem:[#allocation2 + $0xd68] ss:$80 sps:$4 sm:$0xff]  }
 0x30a   :  { %6086 = vmatprep.subr.bf16.mxu0 %v15909_v58  ;;  %6215 = vmatprep.subr.bf16.mxu1 %v15912_v47  ;;  %v15945_v27 = vld [vmem:[#allocation2 + $0xe04] ss:$80 sps:$4 sm:$0xff]   ;;  %v15948_v28 = vld [vmem:[#allocation2 + $0xe0c] ss:$80 sps:$4 sm:$0xff]   ;;  %v15943_v29 = vld [vmem:[#allocation2 + $0xe00] ss:$80 sps:$4 sm:$0xff]  }
 0x30b   :  { %v15946_v30 = vld [vmem:[#allocation2 + $0xe08] ss:$80 sps:$4 sm:$0xff]   ;;  %v15951_v31 = vld [vmem:[#allocation2 + $0xea4] ss:$80 sps:$4 sm:$0xff]   ;;  %v15954_v32 = vld [vmem:[#allocation2 + $0xeac] ss:$80 sps:$4 sm:$0xff]  }
 0x30c   :  { %6076 = vmatmul.mubr.bf16.vlgmr.msra.gmra.mrb[16].mxu0 %v17187_v6  ;;  %6205 = vmatmul.mubr.bf16.vlgmr.msra.gmra.mrb[16].mxu1 %v17187_v6  ;;  %v15949_v35 = vld [vmem:[#allocation2 + $0xea0] ss:$80 sps:$4 sm:$0xff]   ;;  %v15952_v36 = vld [vmem:[#allocation2 + $0xea8] ss:$80 sps:$4 sm:$0xff]   ;;  %v15957_v39 = vld [vmem:[#allocation2 + $0xf44] ss:$80 sps:$4 sm:$0xff]  }
 0x30d   :  { %6087 = vmatpush1.bf16.msra.mxu0 %v15907_v61  ;;  %6216 = vmatpush1.bf16.msra.mxu1 %v15910_v63  ;;  %v15960_v40 = vld [vmem:[#allocation2 + $0xf4c] ss:$80 sps:$4 sm:$0xff]   ;;  %v15955_v43 = vld [vmem:[#allocation2 + $0xf40] ss:$80 sps:$4 sm:$0xff]   ;;  %v15958_v46 = vld [vmem:[#allocation2 + $0xf48] ss:$80 sps:$4 sm:$0xff]  }
 0x30e   :  { %6088 = vmatprep.subr.bf16.mxu0 %v15915_v0  ;;  %6217 = vmatprep.subr.bf16.mxu1 %v15918_v1  ;;  %v15963_v48 = vld [vmem:[#allocation2 + $0xfe4] ss:$80 sps:$4 sm:$0xff]   ;;  %v15966_v49 = vld [vmem:[#allocation2 + $0xfec] ss:$80 sps:$4 sm:$0xff]   ;;  %v15961_v50 = vld [vmem:[#allocation2 + $0xfe0] ss:$80 sps:$4 sm:$0xff]  }
 0x30f   :  { %6118 = vmatprep.mubr.bf16.mxu0 %v17188_v13  ;;  %6247 = vmatprep.mubr.bf16.mxu1 %v17188_v13  ;;  %v15964_v51 = vld [vmem:[#allocation2 + $0xfe8] ss:$80 sps:$4 sm:$0xff]   ;;  %v15969_v58 = vld [vmem:[#allocation2 + $0x1084] ss:$80 sps:$4 sm:$0xff]   ;;  %v15972_v47 = vld [vmem:[#allocation2 + $0x108c] ss:$80 sps:$4 sm:$0xff]  }
 0x310   :  { %v15967_v61 = vld [vmem:[#allocation2 + $0x1080] ss:$80 sps:$4 sm:$0xff]   ;;  %v15970_v63 = vld [vmem:[#allocation2 + $0x1088] ss:$80 sps:$4 sm:$0xff]   ;;  %v15975_v0 = vld [vmem:[#allocation2 + $0x1124] ss:$80 sps:$4 sm:$0xff]  }
 0x311   :  { %6089 = vmatpush1.bf16.msra.mxu0 %v15913_v2  ;;  %6218 = vmatpush1.bf16.msra.mxu1 %v15916_v3  ;;  %v15978_v1 = vld [vmem:[#allocation2 + $0x112c] ss:$80 sps:$4 sm:$0xff]   ;;  %v15973_v2 = vld [vmem:[#allocation2 + $0x1120] ss:$80 sps:$4 sm:$0xff]   ;;  %v15976_v3 = vld [vmem:[#allocation2 + $0x1128] ss:$80 sps:$4 sm:$0xff]  }
 0x312   :  { %6090 = vmatprep.subr.bf16.mxu0 %v15921_v7  ;;  %6219 = vmatprep.subr.bf16.mxu1 %v15924_v10  ;;  %v15981_v6 = vld [vmem:[#allocation2 + $0x11c4] ss:$80 sps:$4 sm:$0xff]   ;;  %v15984_v7 = vld [vmem:[#allocation2 + $0x11cc] ss:$80 sps:$4 sm:$0xff]   ;;  %v15979_v10 = vld [vmem:[#allocation2 + $0x11c0] ss:$80 sps:$4 sm:$0xff]  }
 0x313   :  { %v15990_v13 = vld [vmem:[#allocation2 + $0x126c] ss:$80 sps:$4 sm:$0xff]  }
 0x315   :  { %6091 = vmatpush1.bf16.msra.mxu0 %v15919_v11  ;;  %6220 = vmatpush1.bf16.msra.mxu1 %v15922_v12  ;;  %v15982_v11 = vld [vmem:[#allocation2 + $0x11c8] ss:$80 sps:$4 sm:$0xff]   ;;  %v15987_v12 = vld [vmem:[#allocation2 + $0x1264] ss:$80 sps:$4 sm:$0xff]  }
 0x316   :  { %6092 = vmatprep.subr.bf16.mxu0 %v15927_v14  ;;  %6221 = vmatprep.subr.bf16.mxu1 %v15930_v16  ;;  %v15985_v14 = vld [vmem:[#allocation2 + $0x1260] ss:$80 sps:$4 sm:$0xff]   ;;  %v15988_v16 = vld [vmem:[#allocation2 + $0x1268] ss:$80 sps:$4 sm:$0xff]  }
 0x319   :  { %6093 = vmatpush1.bf16.msra.mxu0 %v15925_v17  ;;  %6222 = vmatpush1.bf16.msra.mxu1 %v15928_v18  ;;  %v15993_v17 = vld [vmem:[#allocation2 + $0x1304] ss:$80 sps:$4 sm:$0xff]   ;;  %v15996_v18 = vld [vmem:[#allocation2 + $0x130c] ss:$80 sps:$4 sm:$0xff]  }
 0x31a   :  { %6094 = vmatprep.subr.bf16.mxu0 %v15933_v19  ;;  %6223 = vmatprep.subr.bf16.mxu1 %v15936_v20  ;;  %v15991_v19 = vld [vmem:[#allocation2 + $0x1300] ss:$80 sps:$4 sm:$0xff]   ;;  %v15994_v20 = vld [vmem:[#allocation2 + $0x1308] ss:$80 sps:$4 sm:$0xff]  }
 0x31d   :  { %6095 = vmatpush1.bf16.msra.mxu0 %v15931_v21  ;;  %6224 = vmatpush1.bf16.msra.mxu1 %v15934_v22  ;;  %v15999_v21 = vld [vmem:[#allocation2 + $0x13a4] ss:$80 sps:$4 sm:$0xff]   ;;  %v16002_v22 = vld [vmem:[#allocation2 + $0x13ac] ss:$80 sps:$4 sm:$0xff]  }
 0x31e   :  { %6096 = vmatprep.subr.bf16.mxu0 %v15939_v23  ;;  %6225 = vmatprep.subr.bf16.mxu1 %v15942_v24  ;;  %v15997_v23 = vld [vmem:[#allocation2 + $0x13a0] ss:$80 sps:$4 sm:$0xff]   ;;  %v16000_v24 = vld [vmem:[#allocation2 + $0x13a8] ss:$80 sps:$4 sm:$0xff]  }
 0x321   :  { %6097 = vmatpush1.bf16.msra.mxu0 %v15937_v25  ;;  %6226 = vmatpush1.bf16.msra.mxu1 %v15940_v26  ;;  %v16005_v25 = vld [vmem:[#allocation2 + $0x1444] ss:$80 sps:$4 sm:$0xff]   ;;  %v16008_v26 = vld [vmem:[#allocation2 + $0x144c] ss:$80 sps:$4 sm:$0xff]  }
 0x322   :  { %6098 = vmatprep.subr.bf16.mxu0 %v15945_v27  ;;  %6227 = vmatprep.subr.bf16.mxu1 %v15948_v28  ;;  %v16003_v27 = vld [vmem:[#allocation2 + $0x1440] ss:$80 sps:$4 sm:$0xff]   ;;  %v16006_v28 = vld [vmem:[#allocation2 + $0x1448] ss:$80 sps:$4 sm:$0xff]  }
 0x325   :  { %6099 = vmatpush1.bf16.msra.mxu0 %v15943_v29  ;;  %6228 = vmatpush1.bf16.msra.mxu1 %v15946_v30  ;;  %v16011_v29 = vld [vmem:[#allocation2 + $0x14e4] ss:$80 sps:$4 sm:$0xff]   ;;  %v16014_v30 = vld [vmem:[#allocation2 + $0x14ec] ss:$80 sps:$4 sm:$0xff]  }
 0x326   :  { %6100 = vmatprep.subr.bf16.mxu0 %v15951_v31  ;;  %6229 = vmatprep.subr.bf16.mxu1 %v15954_v32  ;;  %v16009_v31 = vld [vmem:[#allocation2 + $0x14e0] ss:$80 sps:$4 sm:$0xff]   ;;  %v16012_v32 = vld [vmem:[#allocation2 + $0x14e8] ss:$80 sps:$4 sm:$0xff]  }
 0x329   :  { %6101 = vmatpush1.bf16.msra.mxu0 %v15949_v35  ;;  %6230 = vmatpush1.bf16.msra.mxu1 %v15952_v36  ;;  %v17189_v35 = vld [vmem:[%s17658_s0 + $0x8] ss:$20 sps:$4 sm:$0xff]  }
 0x32a   :  { %6102 = vmatprep.subr.bf16.mxu0 %v15957_v39  ;;  %6231 = vmatprep.subr.bf16.mxu1 %v15960_v40  ;;  %v16017_v36 = vld [vmem:[#allocation2 + $0x1584] ss:$80 sps:$4 sm:$0xff]   ;;  %v16020_v39 = vld [vmem:[#allocation2 + $0x158c] ss:$80 sps:$4 sm:$0xff]   ;;  %v16015_v40 = vld [vmem:[#allocation2 + $0x1580] ss:$80 sps:$4 sm:$0xff]  }
 0x32d   :  { %6103 = vmatpush1.bf16.msra.mxu0 %v15955_v43  ;;  %6232 = vmatpush1.bf16.msra.mxu1 %v15958_v46  ;;  %v16018_v43 = vld [vmem:[#allocation2 + $0x1588] ss:$80 sps:$4 sm:$0xff]   ;;  %v16023_v46 = vld [vmem:[#allocation2 + $0x1624] ss:$80 sps:$4 sm:$0xff]  }
 0x32e   :  { %6104 = vmatprep.subr.bf16.mxu0 %v15963_v48  ;;  %6233 = vmatprep.subr.bf16.mxu1 %v15966_v49  ;;  %v16026_v48 = vld [vmem:[#allocation2 + $0x162c] ss:$80 sps:$4 sm:$0xff]   ;;  %v16021_v49 = vld [vmem:[#allocation2 + $0x1620] ss:$80 sps:$4 sm:$0xff]  }
 0x331   :  { %6105 = vmatpush1.bf16.msra.mxu0 %v15961_v50  ;;  %6234 = vmatpush1.bf16.msra.mxu1 %v15964_v51  ;;  %v16024_v50 = vld [vmem:[#allocation2 + $0x1628] ss:$80 sps:$4 sm:$0xff]   ;;  %v16029_v51 = vld [vmem:[#allocation2 + $0x16c4] ss:$80 sps:$4 sm:$0xff]  }
 0x332   :  { %6106 = vmatprep.subr.bf16.mxu0 %v15969_v58  ;;  %6235 = vmatprep.subr.bf16.mxu1 %v15972_v47  ;;  %v16032_v58 = vld [vmem:[#allocation2 + $0x16cc] ss:$80 sps:$4 sm:$0xff]   ;;  %v16027_v47 = vld [vmem:[#allocation2 + $0x16c0] ss:$80 sps:$4 sm:$0xff]  }
 0x335   :  { %6107 = vmatpush1.bf16.msra.mxu0 %v15967_v61  ;;  %6236 = vmatpush1.bf16.msra.mxu1 %v15970_v63  ;;  %v16030_v61 = vld [vmem:[#allocation2 + $0x16c8] ss:$80 sps:$4 sm:$0xff]   ;;  %v16038_v63 = vld [vmem:[#allocation2 + $0x176c] ss:$80 sps:$4 sm:$0xff]  }
 0x336   :  { %6108 = vmatprep.subr.bf16.mxu0 %v15975_v0  ;;  %6237 = vmatprep.subr.bf16.mxu1 %v15978_v1  ;;  %v16033_v0 = vld [vmem:[#allocation2 + $0x1760] ss:$80 sps:$4 sm:$0xff]   ;;  %v16036_v1 = vld [vmem:[#allocation2 + $0x1768] ss:$80 sps:$4 sm:$0xff]  }
 0x339   :  { %6109 = vmatpush1.bf16.msra.mxu0 %v15973_v2  ;;  %6238 = vmatpush1.bf16.msra.mxu1 %v15976_v3  ;;  %v16041_v2 = vld [vmem:[#allocation2 + $0x1804] ss:$80 sps:$4 sm:$0xff]   ;;  %v16044_v3 = vld [vmem:[#allocation2 + $0x180c] ss:$80 sps:$4 sm:$0xff]  }
 0x33a   :  { %6110 = vmatprep.subr.bf16.mxu0 %v15981_v6  ;;  %6239 = vmatprep.subr.bf16.mxu1 %v15984_v7  ;;  %v16039_v6 = vld [vmem:[#allocation2 + $0x1800] ss:$80 sps:$4 sm:$0xff]   ;;  %v16042_v7 = vld [vmem:[#allocation2 + $0x1808] ss:$80 sps:$4 sm:$0xff]  }
 0x33d   :  { %6111 = vmatpush1.bf16.msra.mxu0 %v15979_v10  ;;  %6240 = vmatpush1.bf16.msra.mxu1 %v15982_v11  ;;  %v16047_v10 = vld [vmem:[#allocation2 + $0x18a4] ss:$80 sps:$4 sm:$0xff]   ;;  %v16050_v11 = vld [vmem:[#allocation2 + $0x18ac] ss:$80 sps:$4 sm:$0xff]  }
 0x33e   :  { %6112 = vmatprep.subr.bf16.mxu0 %v15987_v12  ;;  %6241 = vmatprep.subr.bf16.mxu1 %v15990_v13  ;;  %v16045_v12 = vld [vmem:[#allocation2 + $0x18a0] ss:$80 sps:$4 sm:$0xff]   ;;  %v16048_v13 = vld [vmem:[#allocation2 + $0x18a8] ss:$80 sps:$4 sm:$0xff]  }
 0x341   :  { %6113 = vmatpush1.bf16.msra.mxu0 %v15985_v14  ;;  %6242 = vmatpush1.bf16.msra.mxu1 %v15988_v16  ;;  %v16053_v14 = vld [vmem:[#allocation7 + $0x4] ss:$20 sps:$4 sm:$0xff]   ;;  %v16056_v16 = vld [vmem:[#allocation7 + $0xc] ss:$20 sps:$4 sm:$0xff]  }
 0x342   :  { %6114 = vmatprep.subr.bf16.mxu0 %v15993_v17  ;;  %6243 = vmatprep.subr.bf16.mxu1 %v15996_v18  ;;  %v16051_v17 = vld [vmem:[#allocation7] ss:$20 sps:$4 sm:$0xff]   ;;  %v16054_v18 = vld [vmem:[#allocation7 + $0x8] ss:$20 sps:$4 sm:$0xff]  }
 0x345   :  { %6115 = vmatpush1.bf16.msra.mxu0 %v15991_v19  ;;  %6244 = vmatpush1.bf16.msra.mxu1 %v15994_v20  ;;  %v16059_v19 = vld [vmem:[#allocation7 + $0x2c] ss:$20 sps:$4 sm:$0xff]   ;;  %v16062_v20 = vld [vmem:[#allocation7 + $0x34] ss:$20 sps:$4 sm:$0xff]  }
 0x346   :  { %6116 = vmatprep.subr.bf16.mxu0 %v15999_v21  ;;  %6245 = vmatprep.subr.bf16.mxu1 %v16002_v22  ;;  %v17190_v21 = vld [vmem:[%s17658_s0 + $0x10] ss:$20 sps:$4 sm:$0xff]   ;;  %s17319_s0 = smov [#allocation10]  }
 0x347   :  { %v16057_v22 = vld [vmem:[#allocation7 + $0x28] ss:$20 sps:$4 sm:$0xff]   ;;  %s12793_s9 = sshll.u32 %s17319_s0, 4  ;;  %s12794_s9 = int_to_ptr.vmem [resolvable:$true] %s12793_s9 }
 0x348   :  { %s17280_s10 = scalar_lea.vmem %s12794_s9, 1280  ;;  %p17285_p5 = scmp.lt.s32.totalorder %s12794_s9, %s12794_s9 }
 0x349   :  { %6117 = vmatpush1.bf16.msra.mxu0 %v15997_v23  ;;  %6246 = vmatpush1.bf16.msra.mxu1 %v16000_v24  ;;  %v16060_v23 = vld [vmem:[#allocation7 + $0x30] ss:$20 sps:$4 sm:$0xff]   ;;  %v16065_v24 = vld [vmem:[#allocation7 + $0x54] ss:$20 sps:$4 sm:$0xff]   ;;  %p17281_p4 = scmp.ne.s32.totalorder %s12794_s9, %s17280_s10  ;;  %p17286_p6 = scmp.lt.s32.totalorder %s17280_s10, %s17280_s10 }
 0x34a   :  { %6129 = vmatprep.subr.bf16.mxu0 %v16005_v25  ;;  %6258 = vmatprep.subr.bf16.mxu1 %v16008_v26  ;;  %v16068_v25 = vld [vmem:[#allocation7 + $0x5c] ss:$20 sps:$4 sm:$0xff]  }
 0x34b   :  { %v16063_v26 = vld [vmem:[#allocation7 + $0x50] ss:$20 sps:$4 sm:$0xff]   ;;  %p17287_p7 = por %p17286_p6, %p17285_p5 }
 0x34c   :  { %6119 = vmatmul.mubr.bf16.vlgmr.msra.gmra.mrb[16].mxu0 %v17189_v35  ;;  %6248 = vmatmul.mubr.bf16.vlgmr.msra.gmra.mrb[16].mxu1 %v17189_v35  ;;  %v16075_v35 = vld [vmem:[#allocation7 + $0xa0] ss:$20 sps:$4 sm:$0xff]  }
 0x34d   :  { %6130 = vmatpush1.bf16.msra.mxu0 %v16003_v27  ;;  %6259 = vmatpush1.bf16.msra.mxu1 %v16006_v28  ;;  %v16066_v27 = vld [vmem:[#allocation7 + $0x58] ss:$20 sps:$4 sm:$0xff]   ;;  %v16071_v28 = vld [vmem:[#allocation7 + $0x7c] ss:$20 sps:$4 sm:$0xff]   ;;  %p17288_p8 = pnand %p17287_p7, %p17281_p4 }
 0x34e   :  { %6131 = vmatprep.subr.bf16.mxu0 %v16011_v29  ;;  %6260 = vmatprep.subr.bf16.mxu1 %v16014_v30  ;;  %v16069_v29 = vld [vmem:[#allocation7 + $0x78] ss:$20 sps:$4 sm:$0xff]  }
 0x34f   :  { %6161 = vmatprep.mubr.bf16.mxu0 %v17318_v15  ;;  %6290 = vmatprep.mubr.bf16.mxu1 %v17318_v15  ;;  %v16035_v15 = vld [vmem:[#allocation2 + $0x1764] ss:$80 sps:$4 sm:$0xff]   ;;  %v16074_v30 = vld [vmem:[#allocation7 + $0x84] ss:$20 sps:$4 sm:$0xff]  }
 0x351   :  { %6132 = vmatpush1.bf16.msra.mxu0 %v16009_v31  ;;  %6261 = vmatpush1.bf16.msra.mxu1 %v16012_v32  ;;  %v16072_v31 = vld [vmem:[#allocation7 + $0x80] ss:$20 sps:$4 sm:$0xff]   ;;  %v16077_v32 = vld [vmem:[#allocation7 + $0xa4] ss:$20 sps:$4 sm:$0xff]  }
 0x352   :  { %6133 = vmatprep.subr.bf16.mxu0 %v16017_v36  ;;  %6262 = vmatprep.subr.bf16.mxu1 %v16020_v39  ;;  %v16080_v36 = vld [vmem:[#allocation7 + $0xac] ss:$20 sps:$4 sm:$0xff]   ;;  %v16078_v39 = vld [vmem:[#allocation7 + $0xa8] ss:$20 sps:$4 sm:$0xff]  }
 0x355   :  { %6134 = vmatpush1.bf16.msra.mxu0 %v16015_v40  ;;  %6263 = vmatpush1.bf16.msra.mxu1 %v16018_v43  ;;  %v16083_v40 = vld [vmem:[#allocation7 + $0xcc] ss:$20 sps:$4 sm:$0xff]   ;;  %v16081_v43 = vld [vmem:[#allocation7 + $0xc8] ss:$20 sps:$4 sm:$0xff]  }
 0x356   :  { %6135 = vmatprep.subr.bf16.mxu0 %v16023_v46  ;;  %6264 = vmatprep.subr.bf16.mxu1 %v16026_v48  ;;  %v16086_v46 = vld [vmem:[#allocation7 + $0xd4] ss:$20 sps:$4 sm:$0xff]   ;;  %v16084_v48 = vld [vmem:[#allocation7 + $0xd0] ss:$20 sps:$4 sm:$0xff]  }
 0x359   :  { %6136 = vmatpush1.bf16.msra.mxu0 %v16021_v49  ;;  %6265 = vmatpush1.bf16.msra.mxu1 %v16024_v50  ;;  %v16089_v49 = vld [vmem:[#allocation7 + $0xf4] ss:$20 sps:$4 sm:$0xff]   ;;  %v16087_v50 = vld [vmem:[#allocation7 + $0xf0] ss:$20 sps:$4 sm:$0xff]  }
 0x35a   :  { %6137 = vmatprep.subr.bf16.mxu0 %v16029_v51  ;;  %6266 = vmatprep.subr.bf16.mxu1 %v16032_v58  ;;  %v16092_v51 = vld [vmem:[#allocation7 + $0xfc] ss:$20 sps:$4 sm:$0xff]   ;;  %v16090_v58 = vld [vmem:[#allocation7 + $0xf8] ss:$20 sps:$4 sm:$0xff]  }
 0x35d   :  { %6138 = vmatpush1.bf16.msra.mxu0 %v16027_v47  ;;  %6267 = vmatpush1.bf16.msra.mxu1 %v16030_v61  ;;  %v16095_v47 = vld [vmem:[#allocation7 + $0x11c] ss:$20 sps:$4 sm:$0xff]   ;;  %v16093_v61 = vld [vmem:[#allocation7 + $0x118] ss:$20 sps:$4 sm:$0xff]  }
 0x35e   :  { %6139 = vmatprep.subr.bf16.mxu0 %v16035_v15  ;;  %6268 = vmatprep.subr.bf16.mxu1 %v16038_v63  ;;  %v16098_v15 = vld [vmem:[#allocation7 + $0x124] ss:$20 sps:$4 sm:$0xff]   ;;  %v16096_v63 = vld [vmem:[#allocation7 + $0x120] ss:$20 sps:$4 sm:$0xff]  }
 0x361   :  { %6140 = vmatpush1.bf16.msra.mxu0 %v16033_v0  ;;  %6269 = vmatpush1.bf16.msra.mxu1 %v16036_v1  ;;  %v16101_v0 = vld [vmem:[#allocation7 + $0x144] ss:$20 sps:$4 sm:$0xff]   ;;  %v16099_v1 = vld [vmem:[#allocation7 + $0x140] ss:$20 sps:$4 sm:$0xff]  }
 0x362   :  { %6141 = vmatprep.subr.bf16.mxu0 %v16041_v2  ;;  %6270 = vmatprep.subr.bf16.mxu1 %v16044_v3  ;;  %v16104_v2 = vld [vmem:[#allocation7 + $0x14c] ss:$20 sps:$4 sm:$0xff]   ;;  %v16102_v3 = vld [vmem:[#allocation7 + $0x148] ss:$20 sps:$4 sm:$0xff]  }
 0x365   :  { %6142 = vmatpush1.bf16.msra.mxu0 %v16039_v6  ;;  %6271 = vmatpush1.bf16.msra.mxu1 %v16042_v7  ;;  %v16107_v6 = vld [vmem:[#allocation7 + $0x16c] ss:$20 sps:$4 sm:$0xff]   ;;  %v16105_v7 = vld [vmem:[#allocation7 + $0x168] ss:$20 sps:$4 sm:$0xff]  }
 0x366   :  { %6143 = vmatprep.subr.bf16.mxu0 %v16047_v10  ;;  %6272 = vmatprep.subr.bf16.mxu1 %v16050_v11  ;;  %v16110_v10 = vld [vmem:[#allocation7 + $0x174] ss:$20 sps:$4 sm:$0xff]   ;;  %v16108_v11 = vld [vmem:[#allocation7 + $0x170] ss:$20 sps:$4 sm:$0xff]  }
 0x369   :  { %6144 = vmatpush1.bf16.msra.mxu0 %v16045_v12  ;;  %6273 = vmatpush1.bf16.msra.mxu1 %v16048_v13  ;;  %v16113_v12 = vld [vmem:[#allocation7 + $0x194] ss:$20 sps:$4 sm:$0xff]   ;;  %v16111_v13 = vld [vmem:[#allocation7 + $0x190] ss:$20 sps:$4 sm:$0xff]  }
 0x36a   :  { %11508 = vmatprep.subr.bf16.mxu0 %v16053_v14  ;;  %11938 = vmatprep.subr.bf16.mxu1 %v16056_v16  ;;  %v16116_v14 = vld [vmem:[#allocation7 + $0x19c] ss:$20 sps:$4 sm:$0xff]   ;;  %v16114_v16 = vld [vmem:[#allocation7 + $0x198] ss:$20 sps:$4 sm:$0xff]  }
 0x36c   :  { %6162 = vmatmul.mubr.bf16.vlgmr.msra.gmra.mrb[16].mxu0 %v17190_v21  ;;  %6291 = vmatmul.mubr.bf16.vlgmr.msra.gmra.mrb[16].mxu1 %v17190_v21  ;;  %v16125_v21 = vld [vmem:[#allocation7 + $0x1e4] ss:$20 sps:$4 sm:$0xff]  }
 0x36d   :  { %11509 = vmatpush1.bf16.msra.mxu0 %v16051_v17  ;;  %11540 = vmatprep.mubr.bf16.mxu0 %v17469_v56  ;;  %v16119_v17 = vld [vmem:[#allocation7 + $0x1bc] ss:$20 sps:$4 sm:$0xff]  }
 0x36e   :  { %11939 = vmatpush1.bf16.msra.mxu1 %v16054_v18  ;;  %11970 = vmatprep.mubr.bf16.mxu1 %v17469_v56  ;;  %v16117_v18 = vld [vmem:[#allocation7 + $0x1b8] ss:$20 sps:$4 sm:$0xff]  }
 0x36f   :  { %11510 = vmatprep.subr.bf16.mxu0 %v16059_v19  ;;  %11940 = vmatprep.subr.bf16.mxu1 %v16062_v20  ;;  %v16122_v19 = vld [vmem:[#allocation7 + $0x1c4] ss:$20 sps:$4 sm:$0xff]   ;;  %v16120_v20 = vld [vmem:[#allocation7 + $0x1c0] ss:$20 sps:$4 sm:$0xff]  }
 0x371   :  { %11511 = vmatpush1.bf16.msra.mxu0 %v16057_v22  ;;  %v16123_v22 = vld [vmem:[#allocation7 + $0x1e0] ss:$20 sps:$4 sm:$0xff]  }
 0x372   :  { %11941 = vmatpush1.bf16.msra.mxu1 %v16060_v23  ;;  %11512 = vmatprep.subr.bf16.mxu0 %v16065_v24  ;;  %v16128_v23 = vld [vmem:[#allocation7 + $0x1ec] ss:$20 sps:$4 sm:$0xff]   ;;  %v16126_v24 = vld [vmem:[#allocation7 + $0x1e8] ss:$20 sps:$4 sm:$0xff]  }
 0x373   :  { %11942 = vmatprep.subr.bf16.mxu1 %v16068_v25  ;;  %v16131_v25 = vld [vmem:[#allocation7 + $0x20c] ss:$20 sps:$4 sm:$0xff]  }
 0x375   :  { %11513 = vmatpush1.bf16.msra.mxu0 %v16063_v26  ;;  %v16134_v26 = vld [vmem:[#allocation7 + $0x214] ss:$20 sps:$4 sm:$0xff]  }
 0x376   :  { %11943 = vmatpush1.bf16.msra.mxu1 %v16066_v27  ;;  %11514 = vmatprep.subr.bf16.mxu0 %v16071_v28  ;;  %v16129_v27 = vld [vmem:[#allocation7 + $0x208] ss:$20 sps:$4 sm:$0xff]   ;;  %v17191_v28 = vld [vmem:[#allocation5 + $0x8] sm:$0xff] }
 0x377   :  { %11944 = vmatprep.subr.bf16.mxu1 %v16074_v30  ;;  %v944_v30 = vrot.slane %v17191_v28, %v911_v42 }
 0x379   :  { %11515 = vmatpush1.bf16.msra.mxu0 %v16069_v29  ;;  %v936_v29 = vrot.slane %v17191_v28, %v17491_v41 }
 0x37a   :  { %11945 = vmatpush1.bf16.msra.mxu1 %v16072_v31  ;;  %11516 = vmatprep.subr.bf16.mxu0 %v16077_v32  ;;  %v940_v31 = vrot.slane %v17191_v28, %v907_v44  ;;  %v948_v32 = vrot.slane %v17191_v28, %v915_v45  ;;  %v16153_v28 = vld [vmem:[#allocation7 + $0x2a8] ss:$20 sps:$4 sm:$0xff]  }
 0x37b   :  { %11946 = vmatprep.subr.bf16.mxu1 %v16080_v36  ;;  %v16137_v36 = vld [vmem:[#allocation7 + $0x234] ss:$20 sps:$4 sm:$0xff]  }
 0x37d   :  { %11517 = vmatpush1.bf16.msra.mxu0 %v16075_v35  ;;  %v16132_v35 = vld [vmem:[#allocation7 + $0x210] ss:$20 sps:$4 sm:$0xff]  }
 0x37e   :  { %11947 = vmatpush1.bf16.msra.mxu1 %v16078_v39  ;;  %11518 = vmatprep.subr.bf16.mxu0 %v16083_v40  ;;  %v16140_v39 = vld [vmem:[#allocation7 + $0x23c] ss:$20 sps:$4 sm:$0xff]  }
 0x37f   :  { %11948 = vmatprep.subr.bf16.mxu1 %v16086_v46  ;;  %v16135_v46 = vld [vmem:[#allocation7 + $0x230] ss:$20 sps:$4 sm:$0xff]  }
 0x381   :  { %11519 = vmatpush1.bf16.msra.mxu0 %v16081_v43 }
 0x382   :  { %11949 = vmatpush1.bf16.msra.mxu1 %v16084_v48  ;;  %11520 = vmatprep.subr.bf16.mxu0 %v16089_v49 }
 0x383   :  { %11950 = vmatprep.subr.bf16.mxu1 %v16092_v51 }
 0x385   :  { %11521 = vmatpush1.bf16.msra.mxu0 %v16087_v50 }
 0x386   :  { %11951 = vmatpush1.bf16.msra.mxu1 %v16090_v58  ;;  %11522 = vmatprep.subr.bf16.mxu0 %v16095_v47 }
 0x387   :  { %11952 = vmatprep.subr.bf16.mxu1 %v16098_v15 }
 0x389   :  { %11523 = vmatpush1.bf16.msra.mxu0 %v16093_v61 }
 0x38a   :  { %11953 = vmatpush1.bf16.msra.mxu1 %v16096_v63  ;;  %11524 = vmatprep.subr.bf16.mxu0 %v16101_v0  ;;  %v16138_v63 = vld [vmem:[#allocation7 + $0x238] ss:$20 sps:$4 sm:$0xff]   ;;  %v16143_v0 = vld [vmem:[#allocation7 + $0x25c] ss:$20 sps:$4 sm:$0xff]  }
 0x38b   :  { %11954 = vmatprep.subr.bf16.mxu1 %v16104_v2 }
 0x38d   :  { %11525 = vmatpush1.bf16.msra.mxu0 %v16099_v1 }
 0x38e   :  { %11955 = vmatpush1.bf16.msra.mxu1 %v16102_v3  ;;  %11526 = vmatprep.subr.bf16.mxu0 %v16107_v6 }
 0x38f   :  { %11956 = vmatprep.subr.bf16.mxu1 %v16110_v10  ;;  %v16146_v10 = vld [vmem:[#allocation7 + $0x264] ss:$20 sps:$4 sm:$0xff]  }
 0x391   :  { %11527 = vmatpush1.bf16.msra.mxu0 %v16105_v7  ;;  %v16141_v7 = vld [vmem:[#allocation7 + $0x258] ss:$20 sps:$4 sm:$0xff]  }
 0x392   :  { %11957 = vmatpush1.bf16.msra.mxu1 %v16108_v11  ;;  %11528 = vmatprep.subr.bf16.mxu0 %v16113_v12 }
 0x393   :  { %11958 = vmatprep.subr.bf16.mxu1 %v16116_v14 }
 0x395   :  { %11529 = vmatpush1.bf16.msra.mxu0 %v16111_v13 }
 0x396   :  { %11959 = vmatpush1.bf16.msra.mxu1 %v16114_v16  ;;  %11530 = vmatprep.subr.bf16.mxu0 %v16119_v17 }
 0x397   :  { %11960 = vmatprep.subr.bf16.mxu1 %v16122_v19 }
 0x399   :  { %11531 = vmatpush1.bf16.msra.mxu0 %v16117_v18 }
 0x39a   :  { %11961 = vmatpush1.bf16.msra.mxu1 %v16120_v20  ;;  %11532 = vmatprep.subr.bf16.mxu0 %v16125_v21  ;;  %v16144_v20 = vld [vmem:[#allocation7 + $0x260] ss:$20 sps:$4 sm:$0xff]   ;;  %v16149_v21 = vld [vmem:[#allocation7 + $0x284] ss:$20 sps:$4 sm:$0xff]  }
 0x39b   :  { %11962 = vmatprep.subr.bf16.mxu1 %v16128_v23 }
 0x39d   :  { %11533 = vmatpush1.bf16.msra.mxu0 %v16123_v22  ;;  %v16152_v22 = vld [vmem:[#allocation7 + $0x28c] ss:$20 sps:$4 sm:$0xff]  }
 0x39e   :  { %11963 = vmatpush1.bf16.msra.mxu1 %v16126_v24  ;;  %11534 = vmatprep.subr.bf16.mxu0 %v16131_v25  ;;  %v16147_v25 = vld [vmem:[#allocation7 + $0x280] ss:$20 sps:$4 sm:$0xff]  }
 0x39f   :  { %v5905_v40 = vpop.f32.mrb[12].mxu0  ;;  %v6034_v43 = vpop.f32.mrb[12].mxu1  ;;  %11964 = vmatprep.subr.bf16.mxu1 %v16134_v26  ;;  %v16150_v26 = vld [vmem:[#allocation7 + $0x288] ss:$20 sps:$4 sm:$0xff]  }
 0x3a0   :  { %v14656_v48 = vadd.f32 %v5905_v40, %v936_v29  ;;  %v14660_v49 = vadd.f32 %v6034_v43, %v944_v30  ;;  %v5907_v50 = vpop.f32.mrb[13].mxu0  ;;  %v6036_v42 = vpop.f32.mrb[13].mxu1  ;;  %v16165_v40 = vld [vmem:[#allocation7 + $0x2f8] ss:$20 sps:$4 sm:$0xff]  }
 0x3a1   :  { %v14657_v51 = vadd.f32 %v5907_v50, %v940_v31  ;;  %v14661_v58 = vadd.f32 %v6036_v42, %v948_v32  ;;  %v5909_v47 = vpop.f32.mrb[14].mxu0  ;;  %v6038_v44 = vpop.f32.mrb[14].mxu1  ;;  %11535 = vmatpush1.bf16.msra.mxu0 %v16129_v27  ;;  %v16155_v27 = vld [vmem:[#allocation7 + $0x2ac] ss:$20 sps:$4 sm:$0xff]   ;;  %v16170_v43 = vld [vmem:[#allocation7 + $0x304] ss:$20 sps:$4 sm:$0xff]  }
 0x3a2   :  { %v14658_v62 = vadd.f32 %v5909_v47, %v936_v29  ;;  %v14662_v45 = vadd.f32 %v6038_v44, %v944_v30  ;;  %11965 = vmatpush1.bf16.msra.mxu1 %v16132_v35  ;;  %v5911_v61 = vpop.f32.mrb[15].mxu0  ;;  %v6040_v15 = vpop.f32.mrb[15].mxu1  ;;  %11536 = vmatprep.subr.bf16.mxu0 %v16137_v36  ;;  %v6313_v1 = vmax.f32 %v14656_v48, 0.0  ;;  %v6315_v2 = vmax.f32 %v14660_v49, 0.0  ;;  %v16156_v29 = vld [vmem:[#allocation7 + $0x2b0] ss:$20 sps:$4 sm:$0xff]  }
 0x3a3   :  { %v14659_v3 = vadd.f32 %v5911_v61, %v940_v31  ;;  %v14663_v6 = vadd.f32 %v6040_v15, %v948_v32  ;;  %11966 = vmatprep.subr.bf16.mxu1 %v16140_v39  ;;  %v6314_v11 = vmax.f32 %v14657_v51, 0.0  ;;  %v6316_v12 = vmax.f32 %v14661_v58, 0.0  ;;  %v16158_v30 = vld [vmem:[#allocation7 + $0x2b4] ss:$20 sps:$4 sm:$0xff]   ;;  %v16164_v32 = vld [vmem:[#allocation7 + $0x2dc] ss:$20 sps:$4 sm:$0xff]  }
 0x3a4   :  { %v6333_v13 = vmax.f32 %v14658_v62, 0.0  ;;  %v6335_v14 = vmax.f32 %v14662_v45, 0.0  ;;  %v16161_v31 = vld [vmem:[#allocation7 + $0x2d4] ss:$20 sps:$4 sm:$0xff]   ;;  %v16159_v35 = vld [vmem:[#allocation7 + $0x2d0] ss:$20 sps:$4 sm:$0xff]  }
 0x3a5   :  { %v6334_v16 = vmax.f32 %v14659_v3, 0.0  ;;  %v6336_v17 = vmax.f32 %v14663_v6, 0.0  ;;  %11537 = vmatpush1.bf16.msra.mxu0 %v16135_v46  ;;  %v16162_v36 = vld [vmem:[#allocation7 + $0x2d8] ss:$20 sps:$4 sm:$0xff]   ;;  %v16167_v39 = vld [vmem:[#allocation7 + $0x2fc] ss:$20 sps:$4 sm:$0xff]  }
 0x3a6   :  { %v17563_v18 = vpack.c.bf16 %v6333_v13, %v6313_v1  ;;  %v17565_v19 = vpack.c.bf16 %v6335_v14, %v6315_v2  ;;  %11967 = vmatpush1.bf16.msra.mxu1 %v16138_v63  ;;  %11538 = vmatprep.subr.bf16.mxu0 %v16143_v0  ;;  %v16168_v46 = vld [vmem:[#allocation7 + $0x300] ss:$20 sps:$4 sm:$0xff]   ;;  %v16173_v48 = vld [vmem:[#allocation7 + $0x324] ss:$20 sps:$4 sm:$0xff]   ;;  %v16174_v42 = vld [vmem:[#allocation7 + $0x328] ss:$20 sps:$4 sm:$0xff]  }
 0x3a7   :  { %v17567_v23 = vpack.c.bf16 %v6334_v16, %v6314_v11  ;;  %v17569_v24 = vpack.c.bf16 %v6336_v17, %v6316_v12  ;;  %11968 = vmatprep.subr.bf16.mxu1 %v16146_v10  ;;  %v16171_v49 = vld [vmem:[#allocation7 + $0x320] ss:$20 sps:$4 sm:$0xff]   ;;  %v16177_v58 = vld [vmem:[#allocation7 + $0x348] ss:$20 sps:$4 sm:$0xff]   ;;  %v16180_v44 = vld [vmem:[#allocation7 + $0x350] ss:$20 sps:$4 sm:$0xff]  }
 0x3a8   :  { %v16176_v50 = vld [vmem:[#allocation7 + $0x32c] ss:$20 sps:$4 sm:$0xff]   ;;  %v16182_v47 = vld [vmem:[#allocation7 + $0x354] ss:$20 sps:$4 sm:$0xff]   ;;  %v16188_v45 = vld [vmem:[#allocation7 + $0x37c] ss:$20 sps:$4 sm:$0xff]  }
 0x3a9   :  { %11539 = vmatpush1.bf16.msra.mxu0 %v16141_v7  ;;  %v16179_v51 = vld [vmem:[#allocation7 + $0x34c] ss:$20 sps:$4 sm:$0xff]   ;;  %v16185_v62 = vld [vmem:[#allocation7 + $0x374] ss:$20 sps:$4 sm:$0xff]   ;;  %v16183_v61 = vld [vmem:[#allocation7 + $0x370] ss:$20 sps:$4 sm:$0xff]  }
 0x3aa   :  { %11969 = vmatpush1.bf16.msra.mxu1 %v16144_v20  ;;  %11551 = vmatprep.subr.bf16.mxu0 %v16149_v21  ;;  %v16186_v15 = vld [vmem:[#allocation7 + $0x378] ss:$20 sps:$4 sm:$0xff]   ;;  %v16191_v63 = vld [vmem:[#allocation7 + $0x39c] ss:$20 sps:$4 sm:$0xff]   ;;  %v16192_v2 = vld [vmem:[#allocation7 + $0x3a0] ss:$20 sps:$4 sm:$0xff]  }
 0x3ab   :  { %11981 = vmatprep.subr.bf16.mxu1 %v16152_v22  ;;  %v16194_v0 = vld [vmem:[#allocation7 + $0x3a4] ss:$20 sps:$4 sm:$0xff]   ;;  %v16200_v6 = vld [vmem:[#allocation7 + $0x3cc] ss:$20 sps:$4 sm:$0xff]   ;;  %v16198_v10 = vld [vmem:[#allocation7 + $0x3c8] ss:$20 sps:$4 sm:$0xff]  }
 0x3ac   :  { %11541 = vmatmul.mubr.bf16.vlgmr.msra.gmra.mrb[20].mxu0 %v17465_v52  ;;  %v16189_v1 = vld [vmem:[#allocation7 + $0x398] ss:$20 sps:$4 sm:$0xff]   ;;  %v16195_v7 = vld [vmem:[#allocation7 + $0x3c0] ss:$20 sps:$4 sm:$0xff]   ;;  %v16201_v12 = vld [vmem:[#allocation7 + $0x3e8] ss:$20 sps:$4 sm:$0xff]  }
 0x3ad   :  { %11971 = vmatmul.mubr.bf16.vlgmr.msra.gmra.mrb[20].mxu1 %v17465_v52  ;;  %11552 = vmatpush1.bf16.msra.mxu0 %v16147_v25  ;;  %v16197_v3 = vld [vmem:[#allocation7 + $0x3c4] ss:$20 sps:$4 sm:$0xff]   ;;  %v16203_v11 = vld [vmem:[#allocation7 + $0x3ec] ss:$20 sps:$4 sm:$0xff]   ;;  %v16206_v13 = vld [vmem:[#allocation7 + $0x3f4] ss:$20 sps:$4 sm:$0xff]  }
 0x3ae   :  { %11583 = vmatprep.mubr.bf16.mxu0 %v17471_v57  ;;  %11982 = vmatpush1.bf16.msra.mxu1 %v16150_v26  ;;  %v16204_v14 = vld [vmem:[#allocation7 + $0x3f0] ss:$20 sps:$4 sm:$0xff]   ;;  %v16209_v16 = vld [vmem:[#allocation7 + $0x414] ss:$20 sps:$4 sm:$0xff]   ;;  %v16210_v21 = vld [vmem:[#allocation7 + $0x418] ss:$20 sps:$4 sm:$0xff]  }
 0x3af   :  { %12013 = vmatprep.mubr.bf16.mxu1 %v17471_v57  ;;  %11553 = vmatprep.subr.bf16.mxu0 %v16155_v27  ;;  %v16207_v17 = vld [vmem:[#allocation7 + $0x410] ss:$20 sps:$4 sm:$0xff]   ;;  %v16213_v25 = vld [vmem:[#allocation7 + $0x438] ss:$20 sps:$4 sm:$0xff]   ;;  %v16216_v27 = vld [vmem:[#allocation7 + $0x440] ss:$20 sps:$4 sm:$0xff]  }
 0x3b0   :  { %11983 = vmatprep.subr.bf16.mxu1 %v16158_v30  ;;  %v16212_v20 = vld [vmem:[#allocation7 + $0x41c] ss:$20 sps:$4 sm:$0xff]   ;;  %v16218_v26 = vld [vmem:[#allocation7 + $0x444] ss:$20 sps:$4 sm:$0xff]   ;;  %v16224_v30 = vld [vmem:[#allocation7 + $0x46c] ss:$20 sps:$4 sm:$0xff]  }
 0x3b1   :  { %11554 = vmatpush1.bf16.msra.mxu0 %v16153_v28  ;;  %v16215_v22 = vld [vmem:[#allocation7 + $0x43c] ss:$20 sps:$4 sm:$0xff]   ;;  %v16221_v28 = vld [vmem:[#allocation7 + $0x464] ss:$20 sps:$4 sm:$0xff]  }
 0x3b2   :  { %11984 = vmatpush1.bf16.msra.mxu1 %v16156_v29  ;;  %11555 = vmatprep.subr.bf16.mxu0 %v16161_v31  ;;  %v16219_v29 = vld [vmem:[#allocation7 + $0x460] ss:$20 sps:$4 sm:$0xff]   ;;  %v16222_v31 = vld [vmem:[#allocation7 + $0x468] ss:$20 sps:$4 sm:$0xff]  }
 0x3b3   :  { %11985 = vmatprep.subr.bf16.mxu1 %v16164_v32  ;;  %v16227_v32 = vld [vmem:[#allocation7 + $0x48c] ss:$20 sps:$4 sm:$0xff]  }
 0x3b5   :  { %11556 = vmatpush1.bf16.msra.mxu0 %v16159_v35  ;;  %v16225_v35 = vld [vmem:[#allocation7 + $0x488] ss:$20 sps:$4 sm:$0xff]  }
 0x3b6   :  { %11986 = vmatpush1.bf16.msra.mxu1 %v16162_v36  ;;  %11557 = vmatprep.subr.bf16.mxu0 %v16167_v39  ;;  %v16230_v36 = vld [vmem:[#allocation7 + $0x494] ss:$20 sps:$4 sm:$0xff]   ;;  %v16228_v39 = vld [vmem:[#allocation7 + $0x490] ss:$20 sps:$4 sm:$0xff]  }
 0x3b7   :  { %11987 = vmatprep.subr.bf16.mxu1 %v16170_v43  ;;  %v16231_v43 = vld [vmem:[#allocation7 + $0x4b0] ss:$20 sps:$4 sm:$0xff]  }
 0x3b9   :  { %11558 = vmatpush1.bf16.msra.mxu0 %v16165_v40  ;;  %v16233_v40 = vld [vmem:[#allocation7 + $0x4b4] ss:$20 sps:$4 sm:$0xff]  }
 0x3ba   :  { %11988 = vmatpush1.bf16.msra.mxu1 %v16168_v46  ;;  %11559 = vmatprep.subr.bf16.mxu0 %v16173_v48  ;;  %v16236_v46 = vld [vmem:[#allocation7 + $0x4bc] ss:$20 sps:$4 sm:$0xff]   ;;  %v16234_v48 = vld [vmem:[#allocation7 + $0x4b8] ss:$20 sps:$4 sm:$0xff]  }
 0x3bb   :  { %11989 = vmatprep.subr.bf16.mxu1 %v16176_v50  ;;  %v16237_v50 = vld [vmem:[#allocation7 + $0x4d8] ss:$20 sps:$4 sm:$0xff]  }
 0x3bd   :  { %11560 = vmatpush1.bf16.msra.mxu0 %v16171_v49  ;;  %v16239_v49 = vld [vmem:[#allocation7 + $0x4dc] ss:$20 sps:$4 sm:$0xff]  }
 0x3be   :  { %11990 = vmatpush1.bf16.msra.mxu1 %v16174_v42  ;;  %11561 = vmatprep.subr.bf16.mxu0 %v16179_v51  ;;  %v16242_v42 = vld [vmem:[#allocation7 + $0x4e4] ss:$20 sps:$4 sm:$0xff]   ;;  %v16240_v51 = vld [vmem:[#allocation7 + $0x4e0] ss:$20 sps:$4 sm:$0xff]  }
 0x3bf   :  { %11991 = vmatprep.subr.bf16.mxu1 %v16182_v47  ;;  %v16243_v47 = vld [vmem:[#allocation7 + $0x500] ss:$20 sps:$4 sm:$0xff]  }
 0x3c1   :  { %11562 = vmatpush1.bf16.msra.mxu0 %v16177_v58  ;;  %v16245_v58 = vld [vmem:[#allocation7 + $0x504] ss:$20 sps:$4 sm:$0xff]  }
 0x3c2   :  { %11992 = vmatpush1.bf16.msra.mxu1 %v16180_v44  ;;  %11563 = vmatprep.subr.bf16.mxu0 %v16185_v62  ;;  %v16248_v44 = vld [vmem:[#allocation7 + $0x50c] ss:$20 sps:$4 sm:$0xff]   ;;  %v16246_v62 = vld [vmem:[#allocation7 + $0x508] ss:$20 sps:$4 sm:$0xff]  }
 0x3c3   :  { %11993 = vmatprep.subr.bf16.mxu1 %v16188_v45  ;;  %v16251_v45 = vld [vmem:[#allocation7 + $0x52c] ss:$20 sps:$4 sm:$0xff]  }
 0x3c5   :  { %11564 = vmatpush1.bf16.msra.mxu0 %v16183_v61  ;;  %v16249_v61 = vld [vmem:[#allocation7 + $0x528] ss:$20 sps:$4 sm:$0xff]  }
 0x3c6   :  { %11994 = vmatpush1.bf16.msra.mxu1 %v16186_v15  ;;  %11565 = vmatprep.subr.bf16.mxu0 %v16191_v63  ;;  %v16252_v15 = vld [vmem:[#allocation7 + $0x530] ss:$20 sps:$4 sm:$0xff]   ;;  %v16254_v63 = vld [vmem:[#allocation7 + $0x534] ss:$20 sps:$4 sm:$0xff]  }
 0x3c7   :  { %11995 = vmatprep.subr.bf16.mxu1 %v16194_v0  ;;  %v16257_v0 = vld [vmem:[#allocation7 + $0x554] ss:$20 sps:$4 sm:$0xff]  }
 0x3c9   :  { %11566 = vmatpush1.bf16.msra.mxu0 %v16189_v1  ;;  %v16260_v1 = vld [vmem:[#allocation7 + $0x55c] ss:$20 sps:$4 sm:$0xff]  }
 0x3ca   :  { %11996 = vmatpush1.bf16.msra.mxu1 %v16192_v2  ;;  %11567 = vmatprep.subr.bf16.mxu0 %v16197_v3  ;;  %v16255_v2 = vld [vmem:[#allocation7 + $0x550] ss:$20 sps:$4 sm:$0xff]   ;;  %v16258_v3 = vld [vmem:[#allocation7 + $0x558] ss:$20 sps:$4 sm:$0xff]  }
 0x3cb   :  { %11997 = vmatprep.subr.bf16.mxu1 %v16200_v6  ;;  %v16263_v6 = vld [vmem:[#allocation7 + $0x57c] ss:$20 sps:$4 sm:$0xff]  }
 0x3cd   :  { %11568 = vmatpush1.bf16.msra.mxu0 %v16195_v7  ;;  %v16261_v7 = vld [vmem:[#allocation7 + $0x578] ss:$20 sps:$4 sm:$0xff]  }
 0x3ce   :  { %11998 = vmatpush1.bf16.msra.mxu1 %v16198_v10  ;;  %11569 = vmatprep.subr.bf16.mxu0 %v16203_v11  ;;  %v16266_v10 = vld [vmem:[#allocation7 + $0x584] ss:$20 sps:$4 sm:$0xff]   ;;  %v16264_v11 = vld [vmem:[#allocation7 + $0x580] ss:$20 sps:$4 sm:$0xff]  }
 0x3cf   :  { %11999 = vmatprep.subr.bf16.mxu1 %v16206_v13  ;;  %v16267_v13 = vld [vmem:[#allocation7 + $0x5a0] ss:$20 sps:$4 sm:$0xff]  }
 0x3d1   :  { %11570 = vmatpush1.bf16.msra.mxu0 %v16201_v12  ;;  %v16269_v12 = vld [vmem:[#allocation7 + $0x5a4] ss:$20 sps:$4 sm:$0xff]  }
 0x3d2   :  { %12000 = vmatpush1.bf16.msra.mxu1 %v16204_v14  ;;  %11571 = vmatprep.subr.bf16.mxu0 %v16209_v16  ;;  %v16272_v14 = vld [vmem:[#allocation7 + $0x5ac] ss:$20 sps:$4 sm:$0xff]   ;;  %v16270_v16 = vld [vmem:[#allocation7 + $0x5a8] ss:$20 sps:$4 sm:$0xff]  }
 0x3d3   :  { %12001 = vmatprep.subr.bf16.mxu1 %v16212_v20  ;;  %v16273_v20 = vld [vmem:[#allocation7 + $0x5c8] ss:$20 sps:$4 sm:$0xff]  }
 0x3d5   :  { %11572 = vmatpush1.bf16.msra.mxu0 %v16207_v17  ;;  %v16275_v17 = vld [vmem:[#allocation7 + $0x5cc] ss:$20 sps:$4 sm:$0xff]  }
 0x3d6   :  { %12002 = vmatpush1.bf16.msra.mxu1 %v16210_v21  ;;  %11573 = vmatprep.subr.bf16.mxu0 %v16215_v22  ;;  %v16278_v21 = vld [vmem:[#allocation7 + $0x5d4] ss:$20 sps:$4 sm:$0xff]   ;;  %v16276_v22 = vld [vmem:[#allocation7 + $0x5d0] ss:$20 sps:$4 sm:$0xff]  }
 0x3d7   :  { %12003 = vmatprep.subr.bf16.mxu1 %v16218_v26  ;;  %v16279_v26 = vld [vmem:[#allocation7 + $0x5f0] ss:$20 sps:$4 sm:$0xff]  }
 0x3d9   :  { %11574 = vmatpush1.bf16.msra.mxu0 %v16213_v25  ;;  %v16281_v25 = vld [vmem:[#allocation7 + $0x5f4] ss:$20 sps:$4 sm:$0xff]  }
 0x3da   :  { %12004 = vmatpush1.bf16.msra.mxu1 %v16216_v27  ;;  %11575 = vmatprep.subr.bf16.mxu0 %v16221_v28  ;;  %v16284_v27 = vld [vmem:[#allocation7 + $0x5fc] ss:$20 sps:$4 sm:$0xff]   ;;  %v16282_v28 = vld [vmem:[#allocation7 + $0x5f8] ss:$20 sps:$4 sm:$0xff]  }
 0x3db   :  { %12005 = vmatprep.subr.bf16.mxu1 %v16224_v30  ;;  %v16285_v30 = vld [vmem:[#allocation7 + $0x618] ss:$20 sps:$4 sm:$0xff]  }
 0x3dd   :  { %11576 = vmatpush1.bf16.msra.mxu0 %v16219_v29  ;;  %v16287_v29 = vld [vmem:[#allocation7 + $0x61c] ss:$20 sps:$4 sm:$0xff]  }
 0x3de   :  { %12006 = vmatpush1.bf16.msra.mxu1 %v16222_v31  ;;  %11577 = vmatprep.subr.bf16.mxu0 %v16227_v32  ;;  %v16290_v31 = vld [vmem:[#allocation7 + $0x624] ss:$20 sps:$4 sm:$0xff]   ;;  %v16288_v32 = vld [vmem:[#allocation7 + $0x620] ss:$20 sps:$4 sm:$0xff]  }
 0x3df   :  { %12007 = vmatprep.subr.bf16.mxu1 %v16230_v36  ;;  %v16296_v36 = vld [vmem:[#allocation7 + $0x64c] ss:$20 sps:$4 sm:$0xff]  }
 0x3e1   :  { %11578 = vmatpush1.bf16.msra.mxu0 %v16225_v35  ;;  %v16293_v35 = vld [vmem:[#allocation7 + $0x644] ss:$20 sps:$4 sm:$0xff]  }
 0x3e2   :  { %12008 = vmatpush1.bf16.msra.mxu1 %v16228_v39  ;;  %11579 = vmatprep.subr.bf16.mxu0 %v16233_v40  ;;  %v16291_v39 = vld [vmem:[#allocation7 + $0x640] ss:$20 sps:$4 sm:$0xff]   ;;  %v16294_v40 = vld [vmem:[#allocation7 + $0x648] ss:$20 sps:$4 sm:$0xff]  }
 0x3e3   :  { %12009 = vmatprep.subr.bf16.mxu1 %v16236_v46  ;;  %v16302_v46 = vld [vmem:[#allocation7 + $0x674] ss:$20 sps:$4 sm:$0xff]  }
 0x3e5   :  { %11580 = vmatpush1.bf16.msra.mxu0 %v16231_v43  ;;  %v16299_v43 = vld [vmem:[#allocation7 + $0x66c] ss:$20 sps:$4 sm:$0xff]  }
 0x3e6   :  { %12010 = vmatpush1.bf16.msra.mxu1 %v16234_v48  ;;  %11581 = vmatprep.subr.bf16.mxu0 %v16239_v49  ;;  %v16297_v48 = vld [vmem:[#allocation7 + $0x668] ss:$20 sps:$4 sm:$0xff]   ;;  %v16300_v49 = vld [vmem:[#allocation7 + $0x670] ss:$20 sps:$4 sm:$0xff]  }
 0x3e7   :  { %12011 = vmatprep.subr.bf16.mxu1 %v16242_v42  ;;  %v16308_v42 = vld [vmem:[#allocation7 + $0x69c] ss:$20 sps:$4 sm:$0xff]  }
 0x3e9   :  { %11582 = vmatpush1.bf16.msra.mxu0 %v16237_v50  ;;  %v16305_v50 = vld [vmem:[#allocation7 + $0x694] ss:$20 sps:$4 sm:$0xff]  }
 0x3ea   :  { %12012 = vmatpush1.bf16.msra.mxu1 %v16240_v51  ;;  %11594 = vmatprep.subr.bf16.mxu0 %v16245_v58  ;;  %v16303_v51 = vld [vmem:[#allocation7 + $0x690] ss:$20 sps:$4 sm:$0xff]   ;;  %v16306_v58 = vld [vmem:[#allocation7 + $0x698] ss:$20 sps:$4 sm:$0xff]  }
 0x3eb   :  { %12024 = vmatprep.subr.bf16.mxu1 %v16248_v44  ;;  %v16314_v44 = vld [vmem:[#allocation7 + $0x6c4] ss:$20 sps:$4 sm:$0xff]  }
 0x3ec   :  { %11584 = vmatmul.mubr.bf16.vlgmr.msra.gmra.mrb[20].mxu0 %v17467_v53 }
 0x3ed   :  { %12014 = vmatmul.mubr.bf16.vlgmr.msra.gmra.mrb[20].mxu1 %v17467_v53  ;;  %11595 = vmatpush1.bf16.msra.mxu0 %v16243_v47  ;;  %v16311_v47 = vld [vmem:[#allocation7 + $0x6bc] ss:$20 sps:$4 sm:$0xff]  }
 0x3ee   :  { %11626 = vmatprep.mubr.bf16.mxu0 %v17507_v37  ;;  %12025 = vmatpush1.bf16.msra.mxu1 %v16246_v62  ;;  %v16309_v62 = vld [vmem:[#allocation7 + $0x6b8] ss:$20 sps:$4 sm:$0xff]  }
 0x3ef   :  { %12056 = vmatprep.mubr.bf16.mxu1 %v17507_v37  ;;  %11596 = vmatprep.subr.bf16.mxu0 %v16251_v45  ;;  %v16312_v45 = vld [vmem:[#allocation7 + $0x6c0] ss:$20 sps:$4 sm:$0xff]  }
 0x3f0   :  { %12026 = vmatprep.subr.bf16.mxu1 %v16254_v63  ;;  %v16315_v63 = vld [vmem:[#allocation7 + $0x6e0] ss:$20 sps:$4 sm:$0xff]  }
 0x3f1   :  { %11597 = vmatpush1.bf16.msra.mxu0 %v16249_v61  ;;  %v16317_v61 = vld [vmem:[#allocation7 + $0x6e4] ss:$20 sps:$4 sm:$0xff]  }
 0x3f2   :  { %12027 = vmatpush1.bf16.msra.mxu1 %v16252_v15  ;;  %11598 = vmatprep.subr.bf16.mxu0 %v16257_v0  ;;  %v16320_v15 = vld [vmem:[#allocation7 + $0x6ec] ss:$20 sps:$4 sm:$0xff]   ;;  %v16318_v0 = vld [vmem:[#allocation7 + $0x6e8] ss:$20 sps:$4 sm:$0xff]  }
 0x3f3   :  { %12028 = vmatprep.subr.bf16.mxu1 %v16260_v1  ;;  %v16323_v1 = vld [vmem:[#allocation7 + $0x70c] ss:$20 sps:$4 sm:$0xff]  }
 0x3f5   :  { %11599 = vmatpush1.bf16.msra.mxu0 %v16255_v2  ;;  %v16326_v2 = vld [vmem:[#allocation7 + $0x714] ss:$20 sps:$4 sm:$0xff]  }
 0x3f6   :  { %12029 = vmatpush1.bf16.msra.mxu1 %v16258_v3  ;;  %11600 = vmatprep.subr.bf16.mxu0 %v16263_v6  ;;  %v16321_v3 = vld [vmem:[#allocation7 + $0x708] ss:$20 sps:$4 sm:$0xff]   ;;  %v16324_v6 = vld [vmem:[#allocation7 + $0x710] ss:$20 sps:$4 sm:$0xff]  }
 0x3f7   :  { %12030 = vmatprep.subr.bf16.mxu1 %v16266_v10  ;;  %v16332_v10 = vld [vmem:[#allocation7 + $0x73c] ss:$20 sps:$4 sm:$0xff]  }
 0x3f9   :  { %11601 = vmatpush1.bf16.msra.mxu0 %v16261_v7  ;;  %v16329_v7 = vld [vmem:[#allocation7 + $0x734] ss:$20 sps:$4 sm:$0xff]  }
 0x3fa   :  { %12031 = vmatpush1.bf16.msra.mxu1 %v16264_v11  ;;  %11602 = vmatprep.subr.bf16.mxu0 %v16269_v12  ;;  %v16327_v11 = vld [vmem:[#allocation7 + $0x730] ss:$20 sps:$4 sm:$0xff]   ;;  %v16330_v12 = vld [vmem:[#allocation7 + $0x738] ss:$20 sps:$4 sm:$0xff]  }
 0x3fb   :  { %12032 = vmatprep.subr.bf16.mxu1 %v16272_v14  ;;  %v16338_v14 = vld [vmem:[#allocation7 + $0x764] ss:$20 sps:$4 sm:$0xff]  }
 0x3fd   :  { %11603 = vmatpush1.bf16.msra.mxu0 %v16267_v13  ;;  %v16335_v13 = vld [vmem:[#allocation7 + $0x75c] ss:$20 sps:$4 sm:$0xff]  }
 0x3fe   :  { %12033 = vmatpush1.bf16.msra.mxu1 %v16270_v16  ;;  %11604 = vmatprep.subr.bf16.mxu0 %v16275_v17  ;;  %v16333_v16 = vld [vmem:[#allocation7 + $0x758] ss:$20 sps:$4 sm:$0xff]   ;;  %v16336_v17 = vld [vmem:[#allocation7 + $0x760] ss:$20 sps:$4 sm:$0xff]  }
 0x3ff   :  { %12034 = vmatprep.subr.bf16.mxu1 %v16278_v21  ;;  %v16344_v21 = vld [vmem:[#allocation7 + $0x78c] ss:$20 sps:$4 sm:$0xff]  }
 0x401   :  { %11605 = vmatpush1.bf16.msra.mxu0 %v16273_v20  ;;  %v16341_v20 = vld [vmem:[#allocation7 + $0x784] ss:$20 sps:$4 sm:$0xff]  }
 0x402   :  { %12035 = vmatpush1.bf16.msra.mxu1 %v16276_v22  ;;  %11606 = vmatprep.subr.bf16.mxu0 %v16281_v25  ;;  %v16339_v22 = vld [vmem:[#allocation7 + $0x780] ss:$20 sps:$4 sm:$0xff]   ;;  %v16342_v25 = vld [vmem:[#allocation7 + $0x788] ss:$20 sps:$4 sm:$0xff]  }
 0x403   :  { %12036 = vmatprep.subr.bf16.mxu1 %v16284_v27  ;;  %v16350_v27 = vld [vmem:[#allocation7 + $0x7b4] ss:$20 sps:$4 sm:$0xff]  }
 0x405   :  { %11607 = vmatpush1.bf16.msra.mxu0 %v16279_v26  ;;  %v16347_v26 = vld [vmem:[#allocation7 + $0x7ac] ss:$20 sps:$4 sm:$0xff]  }
 0x406   :  { %12037 = vmatpush1.bf16.msra.mxu1 %v16282_v28  ;;  %11608 = vmatprep.subr.bf16.mxu0 %v16287_v29  ;;  %v16345_v28 = vld [vmem:[#allocation7 + $0x7a8] ss:$20 sps:$4 sm:$0xff]   ;;  %v16348_v29 = vld [vmem:[#allocation7 + $0x7b0] ss:$20 sps:$4 sm:$0xff]  }
 0x407   :  { %12038 = vmatprep.subr.bf16.mxu1 %v16290_v31  ;;  %v16356_v31 = vld [vmem:[#allocation7 + $0x7dc] ss:$20 sps:$4 sm:$0xff]  }
 0x409   :  { %11609 = vmatpush1.bf16.msra.mxu0 %v16285_v30  ;;  %v16353_v30 = vld [vmem:[#allocation7 + $0x7d4] ss:$20 sps:$4 sm:$0xff]  }
 0x40a   :  { %12039 = vmatpush1.bf16.msra.mxu1 %v16288_v32  ;;  %11610 = vmatprep.subr.bf16.mxu0 %v16293_v35  ;;  %v16351_v32 = vld [vmem:[#allocation7 + $0x7d0] ss:$20 sps:$4 sm:$0xff]   ;;  %v16354_v35 = vld [vmem:[#allocation7 + $0x7d8] ss:$20 sps:$4 sm:$0xff]  }
 0x40b   :  { %12040 = vmatprep.subr.bf16.mxu1 %v16296_v36  ;;  %v16359_v36 = vld [vmem:[#allocation7 + $0x7fc] ss:$20 sps:$4 sm:$0xff]  }
 0x40d   :  { %11611 = vmatpush1.bf16.msra.mxu0 %v16291_v39  ;;  %v16362_v39 = vld [vmem:[#allocation7 + $0x804] ss:$20 sps:$4 sm:$0xff]  }
 0x40e   :  { %12041 = vmatpush1.bf16.msra.mxu1 %v16294_v40  ;;  %11612 = vmatprep.subr.bf16.mxu0 %v16299_v43  ;;  %v16357_v40 = vld [vmem:[#allocation7 + $0x7f8] ss:$20 sps:$4 sm:$0xff]   ;;  %v16360_v43 = vld [vmem:[#allocation7 + $0x800] ss:$20 sps:$4 sm:$0xff]  }
 0x40f   :  { %12042 = vmatprep.subr.bf16.mxu1 %v16302_v46  ;;  %v16365_v46 = vld [vmem:[#allocation7 + $0x824] ss:$20 sps:$4 sm:$0xff]  }
 0x411   :  { %11613 = vmatpush1.bf16.msra.mxu0 %v16297_v48  ;;  %v16368_v48 = vld [vmem:[#allocation7 + $0x82c] ss:$20 sps:$4 sm:$0xff]  }
 0x412   :  { %12043 = vmatpush1.bf16.msra.mxu1 %v16300_v49  ;;  %11614 = vmatprep.subr.bf16.mxu0 %v16305_v50  ;;  %v16363_v49 = vld [vmem:[#allocation7 + $0x820] ss:$20 sps:$4 sm:$0xff]   ;;  %v881_v50 = vld [vmem:[#allocation5 + $0x10] sm:$0xf] }
 0x413   :  { %12044 = vmatprep.subr.bf16.mxu1 %v16308_v42  ;;  %v16366_v42 = vld [vmem:[#allocation7 + $0x828] ss:$20 sps:$4 sm:$0xff]  }
 0x415   :  { %11615 = vmatpush1.bf16.msra.mxu0 %v16303_v51  ;;  %v16371_v51 = vld [vmem:[#allocation7 + $0x84c] ss:$20 sps:$4 sm:$0xff]  }
 0x416   :  { %12045 = vmatpush1.bf16.msra.mxu1 %v16306_v58  ;;  %11616 = vmatprep.subr.bf16.mxu0 %v16311_v47  ;;  %v16374_v58 = vld [vmem:[#allocation7 + $0x854] ss:$20 sps:$4 sm:$0xff]   ;;  %v952_v47 = vrot.slane %v881_v50, %v17450_v4 }
 0x417   :  { %12046 = vmatprep.subr.bf16.mxu1 %v16314_v44  ;;  %v960_v44 = vrot.slane %v881_v50, %v17453_v5 }
 0x419   :  { %11617 = vmatpush1.bf16.msra.mxu0 %v16309_v62  ;;  %v956_v62 = vrot.slane %v881_v50, %v17456_v8 }
 0x41a   :  { %12047 = vmatpush1.bf16.msra.mxu1 %v16312_v45  ;;  %11618 = vmatprep.subr.bf16.mxu0 %v16317_v61  ;;  %v964_v45 = vrot.slane %v881_v50, %v17459_v9  ;;  %v16369_v61 = vld [vmem:[#allocation7 + $0x848] ss:$20 sps:$4 sm:$0xff]   ;;  %v16384_v50 = vld [vmem:[#allocation7 + $0x8a0] ss:$20 sps:$4 sm:$0xff]  }
 0x41b   :  { %12048 = vmatprep.subr.bf16.mxu1 %v16320_v15  ;;  %v16372_v15 = vld [vmem:[#allocation7 + $0x850] ss:$20 sps:$4 sm:$0xff]  }
 0x41d   :  { %11619 = vmatpush1.bf16.msra.mxu0 %v16315_v63  ;;  %v16377_v63 = vld [vmem:[#allocation7 + $0x874] ss:$20 sps:$4 sm:$0xff]  }
 0x41e   :  { %12049 = vmatpush1.bf16.msra.mxu1 %v16318_v0  ;;  %11620 = vmatprep.subr.bf16.mxu0 %v16323_v1 }
 0x41f   :  { %12050 = vmatprep.subr.bf16.mxu1 %v16326_v2  ;;  %v16380_v2 = vld [vmem:[#allocation7 + $0x87c] ss:$20 sps:$4 sm:$0xff]  }
 0x421   :  { %11621 = vmatpush1.bf16.msra.mxu0 %v16321_v3 }
 0x422   :  { %12051 = vmatpush1.bf16.msra.mxu1 %v16324_v6  ;;  %11622 = vmatprep.subr.bf16.mxu0 %v16329_v7 }
 0x423   :  { %12052 = vmatprep.subr.bf16.mxu1 %v16332_v10 }
 0x425   :  { %11623 = vmatpush1.bf16.msra.mxu0 %v16327_v11 }
 0x426   :  { %12053 = vmatpush1.bf16.msra.mxu1 %v16330_v12  ;;  %11624 = vmatprep.subr.bf16.mxu0 %v16335_v13 }
 0x427   :  { %12054 = vmatprep.subr.bf16.mxu1 %v16338_v14 }
 0x429   :  { %11625 = vmatpush1.bf16.msra.mxu0 %v16333_v16  ;;  %v16375_v16 = vld [vmem:[#allocation7 + $0x870] ss:$20 sps:$4 sm:$0xff]  }
 0x42a   :  { %12055 = vmatpush1.bf16.msra.mxu1 %v16336_v17  ;;  %11637 = vmatprep.subr.bf16.mxu0 %v16341_v20 }
 0x42b   :  { %12067 = vmatprep.subr.bf16.mxu1 %v16344_v21 }
 0x42c   :  { %11627 = vmatmul.mubr.bf16.vlgmr.msra.gmra.mrb[20].mxu0 %v17503_v33 }
 0x42d   :  { %12057 = vmatmul.mubr.bf16.vlgmr.msra.gmra.mrb[20].mxu1 %v17503_v33  ;;  %11638 = vmatpush1.bf16.msra.mxu0 %v16339_v22 }
 0x42e   :  { %11669 = vmatprep.mubr.bf16.mxu0 %v17509_v38  ;;  %12068 = vmatpush1.bf16.msra.mxu1 %v16342_v25  ;;  %v16378_v25 = vld [vmem:[#allocation7 + $0x878] ss:$20 sps:$4 sm:$0xff]  }
 0x42f   :  { %12099 = vmatprep.mubr.bf16.mxu1 %v17509_v38  ;;  %11639 = vmatprep.subr.bf16.mxu0 %v16347_v26  ;;  %v16383_v26 = vld [vmem:[#allocation7 + $0x89c] ss:$20 sps:$4 sm:$0xff]  }
 0x430   :  { %12069 = vmatprep.subr.bf16.mxu1 %v16350_v27 }
 0x431   :  { %11640 = vmatpush1.bf16.msra.mxu0 %v16345_v28 }
 0x432   :  { %12070 = vmatpush1.bf16.msra.mxu1 %v16348_v29  ;;  %11641 = vmatprep.subr.bf16.mxu0 %v16353_v30  ;;  %v16386_v29 = vld [vmem:[#allocation7 + $0x8a4] ss:$20 sps:$4 sm:$0xff]  }
 0x433   :  { %12071 = vmatprep.subr.bf16.mxu1 %v16356_v31 }
 0x435   :  { %11642 = vmatpush1.bf16.msra.mxu0 %v16351_v32 }
 0x436   :  { %12072 = vmatpush1.bf16.msra.mxu1 %v16354_v35  ;;  %11643 = vmatprep.subr.bf16.mxu0 %v16359_v36 }
 0x437   :  { %12073 = vmatprep.subr.bf16.mxu1 %v16362_v39 }
 0x439   :  { %11644 = vmatpush1.bf16.msra.mxu0 %v16357_v40 }
 0x43a   :  { %12074 = vmatpush1.bf16.msra.mxu1 %v16360_v43  ;;  %11645 = vmatprep.subr.bf16.mxu0 %v16365_v46  ;;  %v16381_v46 = vld [vmem:[#allocation7 + $0x898] ss:$20 sps:$4 sm:$0xff]  }
 0x43b   :  { %12075 = vmatprep.subr.bf16.mxu1 %v16368_v48 }
 0x43d   :  { %11646 = vmatpush1.bf16.msra.mxu0 %v16363_v49 }
 0x43e   :  { %12076 = vmatpush1.bf16.msra.mxu1 %v16366_v42  ;;  %11647 = vmatprep.subr.bf16.mxu0 %v16371_v51  ;;  %v16389_v42 = vld [vmem:[#allocation7 + $0x8c4] ss:$20 sps:$4 sm:$0xff]  }
 0x43f   :  { %v6163_v0 = vpop.f32.mrb[16].mxu0  ;;  %v6292_v1 = vpop.f32.mrb[16].mxu1  ;;  %12077 = vmatprep.subr.bf16.mxu1 %v16374_v58 }
 0x440   :  { %v14664_v3 = vadd.f32 %v6163_v0, %v952_v47  ;;  %v14668_v6 = vadd.f32 %v6292_v1, %v960_v44  ;;  %v6165_v7 = vpop.f32.mrb[17].mxu0  ;;  %v6294_v10 = vpop.f32.mrb[17].mxu1  ;;  %v16401_v0 = vld [vmem:[#allocation7 + $0x914] ss:$20 sps:$4 sm:$0xff]   ;;  %v16404_v1 = vld [vmem:[#allocation7 + $0x91c] ss:$20 sps:$4 sm:$0xff]  }
 0x441   :  { %v14665_v11 = vadd.f32 %v6165_v7, %v956_v62  ;;  %v14669_v12 = vadd.f32 %v6294_v10, %v964_v45  ;;  %v6167_v13 = vpop.f32.mrb[18].mxu0  ;;  %v6296_v14 = vpop.f32.mrb[18].mxu1  ;;  %11648 = vmatpush1.bf16.msra.mxu0 %v16369_v61  ;;  %v16398_v61 = vld [vmem:[#allocation7 + $0x8f4] ss:$20 sps:$4 sm:$0xff]   ;;  %v16410_v7 = vld [vmem:[#allocation7 + $0x944] ss:$20 sps:$4 sm:$0xff]  }
 0x442   :  { %v14666_v17 = vadd.f32 %v6167_v13, %v952_v47  ;;  %v14670_v20 = vadd.f32 %v6296_v14, %v960_v44  ;;  %12078 = vmatpush1.bf16.msra.mxu1 %v16372_v15  ;;  %v6169_v21 = vpop.f32.mrb[19].mxu0  ;;  %v6298_v22 = vpop.f32.mrb[19].mxu1  ;;  %11649 = vmatprep.subr.bf16.mxu0 %v16377_v63  ;;  %v6317_v30 = vmax.f32 %v14664_v3, 0.0  ;;  %v6319_v31 = vmax.f32 %v14668_v6, 0.0  ;;  %v16392_v47 = vld [vmem:[#allocation7 + $0x8cc] ss:$20 sps:$4 sm:$0xff]  }
 0x443   :  { %v14667_v27 = vadd.f32 %v6169_v21, %v956_v62  ;;  %v14671_v28 = vadd.f32 %v6298_v22, %v964_v45  ;;  %12079 = vmatprep.subr.bf16.mxu1 %v16380_v2  ;;  %v6318_v36 = vmax.f32 %v14665_v11, 0.0  ;;  %v6320_v39 = vmax.f32 %v14669_v12, 0.0  ;;  %v16387_v44 = vld [vmem:[#allocation7 + $0x8c0] ss:$20 sps:$4 sm:$0xff]   ;;  %v16390_v62 = vld [vmem:[#allocation7 + $0x8c8] ss:$20 sps:$4 sm:$0xff]  }
 0x444   :  { %v6337_v32 = vmax.f32 %v14666_v17, 0.0  ;;  %v6339_v35 = vmax.f32 %v14670_v20, 0.0  ;;  %v16395_v45 = vld [vmem:[#allocation7 + $0x8ec] ss:$20 sps:$4 sm:$0xff]   ;;  %v16393_v15 = vld [vmem:[#allocation7 + $0x8e8] ss:$20 sps:$4 sm:$0xff]  }
 0x445   :  { %v6338_v40 = vmax.f32 %v14667_v27, 0.0  ;;  %v6340_v43 = vmax.f32 %v14671_v28, 0.0  ;;  %11650 = vmatpush1.bf16.msra.mxu0 %v16375_v16  ;;  %v16396_v63 = vld [vmem:[#allocation7 + $0x8f0] ss:$20 sps:$4 sm:$0xff]   ;;  %v16402_v3 = vld [vmem:[#allocation7 + $0x918] ss:$20 sps:$4 sm:$0xff]  }
 0x446   :  { %v17587_v48 = vpack.c.bf16 %v6337_v32, %v6317_v30  ;;  %v17589_v49 = vpack.c.bf16 %v6339_v35, %v6319_v31  ;;  %12080 = vmatpush1.bf16.msra.mxu1 %v16378_v25  ;;  %11651 = vmatprep.subr.bf16.mxu0 %v16383_v26  ;;  %v16399_v2 = vld [vmem:[#allocation7 + $0x910] ss:$20 sps:$4 sm:$0xff]   ;;  %v16405_v10 = vld [vmem:[#allocation7 + $0x938] ss:$20 sps:$4 sm:$0xff]   ;;  %v16408_v11 = vld [vmem:[#allocation7 + $0x940] ss:$20 sps:$4 sm:$0xff]  }
 0x447   :  { %v17591_v51 = vpack.c.bf16 %v6338_v40, %v6318_v36  ;;  %v17593_v58 = vpack.c.bf16 %v6340_v43, %v6320_v39  ;;  %12081 = vmatprep.subr.bf16.mxu1 %v16386_v29  ;;  %v16407_v6 = vld [vmem:[#allocation7 + $0x93c] ss:$20 sps:$4 sm:$0xff]   ;;  %v16413_v12 = vld [vmem:[#allocation7 + $0x964] ss:$20 sps:$4 sm:$0xff]   ;;  %v16416_v13 = vld [vmem:[#allocation7 + $0x96c] ss:$20 sps:$4 sm:$0xff]  }
 0x448   :  { %v16411_v14 = vld [vmem:[#allocation7 + $0x960] ss:$20 sps:$4 sm:$0xff]   ;;  %v16414_v16 = vld [vmem:[#allocation7 + $0x968] ss:$20 sps:$4 sm:$0xff]   ;;  %v16420_v22 = vld [vmem:[#allocation7 + $0x990] ss:$20 sps:$4 sm:$0xff]  }
 0x449   :  { %11652 = vmatpush1.bf16.msra.mxu0 %v16381_v46  ;;  %v16419_v17 = vld [vmem:[#allocation7 + $0x98c] ss:$20 sps:$4 sm:$0xff]   ;;  %v16422_v20 = vld [vmem:[#allocation7 + $0x994] ss:$20 sps:$4 sm:$0xff]   ;;  %v16428_v26 = vld [vmem:[#allocation7 + $0x9bc] ss:$20 sps:$4 sm:$0xff]  }
 0x44a   :  { %12082 = vmatpush1.bf16.msra.mxu1 %v16384_v50  ;;  %11653 = vmatprep.subr.bf16.mxu0 %v16389_v42  ;;  %v16417_v21 = vld [vmem:[#allocation7 + $0x988] ss:$20 sps:$4 sm:$0xff]   ;;  %v16423_v27 = vld [vmem:[#allocation7 + $0x9b0] ss:$20 sps:$4 sm:$0xff]   ;;  %v16426_v28 = vld [vmem:[#allocation7 + $0x9b8] ss:$20 sps:$4 sm:$0xff]  }
 0x44b   :  { %12083 = vmatprep.subr.bf16.mxu1 %v16392_v47  ;;  %v16425_v25 = vld [vmem:[#allocation7 + $0x9b4] ss:$20 sps:$4 sm:$0xff]   ;;  %v16431_v29 = vld [vmem:[#allocation7 + $0x9dc] ss:$20 sps:$4 sm:$0xff]   ;;  %v16434_v30 = vld [vmem:[#allocation7 + $0x9e4] ss:$20 sps:$4 sm:$0xff]  }
 0x44c   :  { %v16429_v31 = vld [vmem:[#allocation7 + $0x9d8] ss:$20 sps:$4 sm:$0xff]   ;;  %v16432_v32 = vld [vmem:[#allocation7 + $0x9e0] ss:$20 sps:$4 sm:$0xff]   ;;  %v16438_v40 = vld [vmem:[#allocation7 + $0xa08] ss:$20 sps:$4 sm:$0xff]  }
 0x44d   :  { %11654 = vmatpush1.bf16.msra.mxu0 %v16387_v44  ;;  %v16437_v35 = vld [vmem:[#allocation7 + $0xa04] ss:$20 sps:$4 sm:$0xff]   ;;  %v16440_v36 = vld [vmem:[#allocation7 + $0xa0c] ss:$20 sps:$4 sm:$0xff]   ;;  %v16446_v46 = vld [vmem:[#allocation7 + $0xa34] ss:$20 sps:$4 sm:$0xff]  }
 0x44e   :  { %12084 = vmatpush1.bf16.msra.mxu1 %v16390_v62  ;;  %11655 = vmatprep.subr.bf16.mxu0 %v16395_v45  ;;  %v16435_v39 = vld [vmem:[#allocation7 + $0xa00] ss:$20 sps:$4 sm:$0xff]   ;;  %v16441_v50 = vld [vmem:[#allocation7 + $0xa28] ss:$20 sps:$4 sm:$0xff]   ;;  %v16444_v42 = vld [vmem:[#allocation7 + $0xa30] ss:$20 sps:$4 sm:$0xff]  }
 0x44f   :  { %12085 = vmatprep.subr.bf16.mxu1 %v16398_v61  ;;  %v16443_v43 = vld [vmem:[#allocation7 + $0xa2c] ss:$20 sps:$4 sm:$0xff]   ;;  %v16449_v47 = vld [vmem:[#allocation7 + $0xa54] ss:$20 sps:$4 sm:$0xff]   ;;  %v16452_v44 = vld [vmem:[#allocation7 + $0xa5c] ss:$20 sps:$4 sm:$0xff]  }
 0x450   :  { %v16447_v62 = vld [vmem:[#allocation7 + $0xa50] ss:$20 sps:$4 sm:$0xff]   ;;  %v16450_v45 = vld [vmem:[#allocation7 + $0xa58] ss:$20 sps:$4 sm:$0xff]  }
 0x451   :  { %11656 = vmatpush1.bf16.msra.mxu0 %v16393_v15  ;;  %v16455_v61 = vld [vmem:[#allocation7 + $0xa7c] ss:$20 sps:$4 sm:$0xff]   ;;  %v16458_v15 = vld [vmem:[#allocation7 + $0xa84] ss:$20 sps:$4 sm:$0xff]  }
 0x452   :  { %12086 = vmatpush1.bf16.msra.mxu1 %v16396_v63  ;;  %11657 = vmatprep.subr.bf16.mxu0 %v16401_v0  ;;  %v16453_v63 = vld [vmem:[#allocation7 + $0xa78] ss:$20 sps:$4 sm:$0xff]   ;;  %v16456_v0 = vld [vmem:[#allocation7 + $0xa80] ss:$20 sps:$4 sm:$0xff]  }
 0x453   :  { %12087 = vmatprep.subr.bf16.mxu1 %v16404_v1  ;;  %v16461_v1 = vld [vmem:[#allocation7 + $0xaa4] ss:$20 sps:$4 sm:$0xff]  }
 0x455   :  { %11658 = vmatpush1.bf16.msra.mxu0 %v16399_v2  ;;  %v16464_v2 = vld [vmem:[#allocation7 + $0xaac] ss:$20 sps:$4 sm:$0xff]  }
 0x456   :  { %12088 = vmatpush1.bf16.msra.mxu1 %v16402_v3  ;;  %11659 = vmatprep.subr.bf16.mxu0 %v16407_v6  ;;  %v16459_v3 = vld [vmem:[#allocation7 + $0xaa0] ss:$20 sps:$4 sm:$0xff]   ;;  %v16462_v6 = vld [vmem:[#allocation7 + $0xaa8] ss:$20 sps:$4 sm:$0xff]  }
 0x457   :  { %12089 = vmatprep.subr.bf16.mxu1 %v16410_v7  ;;  %v16467_v7 = vld [vmem:[#allocation7 + $0xacc] ss:$20 sps:$4 sm:$0xff]  }
 0x459   :  { %11660 = vmatpush1.bf16.msra.mxu0 %v16405_v10  ;;  %v16470_v10 = vld [vmem:[#allocation7 + $0xad4] ss:$20 sps:$4 sm:$0xff]  }
 0x45a   :  { %12090 = vmatpush1.bf16.msra.mxu1 %v16408_v11  ;;  %11661 = vmatprep.subr.bf16.mxu0 %v16413_v12  ;;  %v16465_v11 = vld [vmem:[#allocation7 + $0xac8] ss:$20 sps:$4 sm:$0xff]   ;;  %v16468_v12 = vld [vmem:[#allocation7 + $0xad0] ss:$20 sps:$4 sm:$0xff]  }
 0x45b   :  { %12091 = vmatprep.subr.bf16.mxu1 %v16416_v13  ;;  %v16473_v13 = vld [vmem:[#allocation7 + $0xaf4] ss:$20 sps:$4 sm:$0xff]  }
 0x45d   :  { %11662 = vmatpush1.bf16.msra.mxu0 %v16411_v14  ;;  %v16476_v14 = vld [vmem:[#allocation7 + $0xafc] ss:$20 sps:$4 sm:$0xff]  }
 0x45e   :  { %12092 = vmatpush1.bf16.msra.mxu1 %v16414_v16  ;;  %11663 = vmatprep.subr.bf16.mxu0 %v16419_v17  ;;  %v16471_v16 = vld [vmem:[#allocation7 + $0xaf0] ss:$20 sps:$4 sm:$0xff]   ;;  %v16474_v17 = vld [vmem:[#allocation7 + $0xaf8] ss:$20 sps:$4 sm:$0xff]  }
 0x45f   :  { %12093 = vmatprep.subr.bf16.mxu1 %v16422_v20  ;;  %v16479_v20 = vld [vmem:[#allocation7 + $0xb1c] ss:$20 sps:$4 sm:$0xff]  }
 0x461   :  { %11664 = vmatpush1.bf16.msra.mxu0 %v16417_v21  ;;  %v16482_v21 = vld [vmem:[#allocation7 + $0xb24] ss:$20 sps:$4 sm:$0xff]  }
 0x462   :  { %12094 = vmatpush1.bf16.msra.mxu1 %v16420_v22  ;;  %11665 = vmatprep.subr.bf16.mxu0 %v16425_v25  ;;  %v16477_v22 = vld [vmem:[#allocation7 + $0xb18] ss:$20 sps:$4 sm:$0xff]   ;;  %v16480_v25 = vld [vmem:[#allocation7 + $0xb20] ss:$20 sps:$4 sm:$0xff]  }
 0x463   :  { %12095 = vmatprep.subr.bf16.mxu1 %v16428_v26  ;;  %v16485_v26 = vld [vmem:[#allocation7 + $0xb44] ss:$20 sps:$4 sm:$0xff]  }
 0x465   :  { %11666 = vmatpush1.bf16.msra.mxu0 %v16423_v27  ;;  %v16488_v27 = vld [vmem:[#allocation7 + $0xb4c] ss:$20 sps:$4 sm:$0xff]  }
 0x466   :  { %12096 = vmatpush1.bf16.msra.mxu1 %v16426_v28  ;;  %11667 = vmatprep.subr.bf16.mxu0 %v16431_v29  ;;  %v16483_v28 = vld [vmem:[#allocation7 + $0xb40] ss:$20 sps:$4 sm:$0xff]   ;;  %v16486_v29 = vld [vmem:[#allocation7 + $0xb48] ss:$20 sps:$4 sm:$0xff]  }
 0x467   :  { %12097 = vmatprep.subr.bf16.mxu1 %v16434_v30  ;;  %v16491_v30 = vld [vmem:[#allocation7 + $0xb6c] ss:$20 sps:$4 sm:$0xff]  }
 0x469   :  { %11668 = vmatpush1.bf16.msra.mxu0 %v16429_v31  ;;  %v16494_v31 = vld [vmem:[#allocation7 + $0xb74] ss:$20 sps:$4 sm:$0xff]  }
 0x46a   :  { %12098 = vmatpush1.bf16.msra.mxu1 %v16432_v32  ;;  %11680 = vmatprep.subr.bf16.mxu0 %v16437_v35  ;;  %v16489_v32 = vld [vmem:[#allocation7 + $0xb68] ss:$20 sps:$4 sm:$0xff]   ;;  %v16492_v35 = vld [vmem:[#allocation7 + $0xb70] ss:$20 sps:$4 sm:$0xff]  }
 0x46b   :  { %12110 = vmatprep.subr.bf16.mxu1 %v16440_v36  ;;  %v16497_v36 = vld [vmem:[#allocation7 + $0xb94] ss:$20 sps:$4 sm:$0xff]  }
 0x46c   :  { %11670 = vmatmul.mubr.bf16.vlgmr.msra.gmra.mrb[20].mxu0 %v17505_v34 }
 0x46d   :  { %12100 = vmatmul.mubr.bf16.vlgmr.msra.gmra.mrb[20].mxu1 %v17505_v34  ;;  %11681 = vmatpush1.bf16.msra.mxu0 %v16435_v39  ;;  %v16500_v39 = vld [vmem:[#allocation7 + $0xb9c] ss:$20 sps:$4 sm:$0xff]  }
 0x46e   :  { %11712 = vmatprep.mubr.bf16.mxu0 %v17536_v59  ;;  %12111 = vmatpush1.bf16.msra.mxu1 %v16438_v40  ;;  %v16495_v40 = vld [vmem:[#allocation7 + $0xb90] ss:$20 sps:$4 sm:$0xff]  }
 0x46f   :  { %12142 = vmatprep.mubr.bf16.mxu1 %v17536_v59  ;;  %11682 = vmatprep.subr.bf16.mxu0 %v16443_v43  ;;  %v16498_v43 = vld [vmem:[#allocation7 + $0xb98] ss:$20 sps:$4 sm:$0xff]  }
 0x470   :  { %12112 = vmatprep.subr.bf16.mxu1 %v16446_v46  ;;  %v16503_v46 = vld [vmem:[#allocation7 + $0xbbc] ss:$20 sps:$4 sm:$0xff]  }
 0x471   :  { %11683 = vmatpush1.bf16.msra.mxu0 %v16441_v50  ;;  %v16506_v50 = vld [vmem:[#allocation7 + $0xbc4] ss:$20 sps:$4 sm:$0xff]  }
 0x472   :  { %12113 = vmatpush1.bf16.msra.mxu1 %v16444_v42  ;;  %11684 = vmatprep.subr.bf16.mxu0 %v16449_v47  ;;  %v16501_v42 = vld [vmem:[#allocation7 + $0xbb8] ss:$20 sps:$4 sm:$0xff]   ;;  %v16504_v47 = vld [vmem:[#allocation7 + $0xbc0] ss:$20 sps:$4 sm:$0xff]  }
 0x473   :  { %12114 = vmatprep.subr.bf16.mxu1 %v16452_v44  ;;  %v16509_v44 = vld [vmem:[#allocation7 + $0xbe4] ss:$20 sps:$4 sm:$0xff]  }
 0x475   :  { %11685 = vmatpush1.bf16.msra.mxu0 %v16447_v62  ;;  %v16512_v62 = vld [vmem:[#allocation7 + $0xbec] ss:$20 sps:$4 sm:$0xff]  }
 0x476   :  { %12115 = vmatpush1.bf16.msra.mxu1 %v16450_v45  ;;  %11686 = vmatprep.subr.bf16.mxu0 %v16455_v61  ;;  %v16507_v45 = vld [vmem:[#allocation7 + $0xbe0] ss:$20 sps:$4 sm:$0xff]   ;;  %v16510_v61 = vld [vmem:[#allocation7 + $0xbe8] ss:$20 sps:$4 sm:$0xff]  }
 0x477   :  { %12116 = vmatprep.subr.bf16.mxu1 %v16458_v15  ;;  %v16515_v15 = vld [vmem:[#allocation7 + $0xc0c] ss:$20 sps:$4 sm:$0xff]  }
 0x479   :  { %11687 = vmatpush1.bf16.msra.mxu0 %v16453_v63  ;;  %v16518_v63 = vld [vmem:[#allocation7 + $0xc14] ss:$20 sps:$4 sm:$0xff]  }
 0x47a   :  { %12117 = vmatpush1.bf16.msra.mxu1 %v16456_v0  ;;  %11688 = vmatprep.subr.bf16.mxu0 %v16461_v1  ;;  %v16513_v0 = vld [vmem:[#allocation7 + $0xc08] ss:$20 sps:$4 sm:$0xff]   ;;  %v16516_v1 = vld [vmem:[#allocation7 + $0xc10] ss:$20 sps:$4 sm:$0xff]  }
 0x47b   :  { %12118 = vmatprep.subr.bf16.mxu1 %v16464_v2  ;;  %v16521_v2 = vld [vmem:[#allocation7 + $0xc34] ss:$20 sps:$4 sm:$0xff]  }
 0x47d   :  { %11689 = vmatpush1.bf16.msra.mxu0 %v16459_v3  ;;  %v16524_v3 = vld [vmem:[#allocation7 + $0xc3c] ss:$20 sps:$4 sm:$0xff]  }
 0x47e   :  { %12119 = vmatpush1.bf16.msra.mxu1 %v16462_v6  ;;  %11690 = vmatprep.subr.bf16.mxu0 %v16467_v7  ;;  %v16519_v6 = vld [vmem:[#allocation7 + $0xc30] ss:$20 sps:$4 sm:$0xff]   ;;  %v16522_v7 = vld [vmem:[#allocation7 + $0xc38] ss:$20 sps:$4 sm:$0xff]  }
 0x47f   :  { %12120 = vmatprep.subr.bf16.mxu1 %v16470_v10  ;;  %v16527_v10 = vld [vmem:[#allocation7 + $0xc5c] ss:$20 sps:$4 sm:$0xff]  }
 0x481   :  { %11691 = vmatpush1.bf16.msra.mxu0 %v16465_v11  ;;  %v16530_v11 = vld [vmem:[#allocation7 + $0xc64] ss:$20 sps:$4 sm:$0xff]  }
 0x482   :  { %12121 = vmatpush1.bf16.msra.mxu1 %v16468_v12  ;;  %11692 = vmatprep.subr.bf16.mxu0 %v16473_v13  ;;  %v16525_v12 = vld [vmem:[#allocation7 + $0xc58] ss:$20 sps:$4 sm:$0xff]   ;;  %v16528_v13 = vld [vmem:[#allocation7 + $0xc60] ss:$20 sps:$4 sm:$0xff]  }
 0x483   :  { %12122 = vmatprep.subr.bf16.mxu1 %v16476_v14  ;;  %v16533_v14 = vld [vmem:[#allocation7 + $0xc84] ss:$20 sps:$4 sm:$0xff]  }
 0x485   :  { %11693 = vmatpush1.bf16.msra.mxu0 %v16471_v16  ;;  %v16536_v16 = vld [vmem:[#allocation7 + $0xc8c] ss:$20 sps:$4 sm:$0xff]  }
 0x486   :  { %12123 = vmatpush1.bf16.msra.mxu1 %v16474_v17  ;;  %11694 = vmatprep.subr.bf16.mxu0 %v16479_v20  ;;  %v16531_v17 = vld [vmem:[#allocation7 + $0xc80] ss:$20 sps:$4 sm:$0xff]   ;;  %v16534_v20 = vld [vmem:[#allocation7 + $0xc88] ss:$20 sps:$4 sm:$0xff]  }
 0x487   :  { %12124 = vmatprep.subr.bf16.mxu1 %v16482_v21  ;;  %v16539_v21 = vld [vmem:[#allocation7 + $0xcac] ss:$20 sps:$4 sm:$0xff]  }
 0x489   :  { %11695 = vmatpush1.bf16.msra.mxu0 %v16477_v22  ;;  %v16542_v22 = vld [vmem:[#allocation7 + $0xcb4] ss:$20 sps:$4 sm:$0xff]  }
 0x48a   :  { %12125 = vmatpush1.bf16.msra.mxu1 %v16480_v25  ;;  %11696 = vmatprep.subr.bf16.mxu0 %v16485_v26  ;;  %v16537_v25 = vld [vmem:[#allocation7 + $0xca8] ss:$20 sps:$4 sm:$0xff]   ;;  %v16540_v26 = vld [vmem:[#allocation7 + $0xcb0] ss:$20 sps:$4 sm:$0xff]  }
 0x48b   :  { %12126 = vmatprep.subr.bf16.mxu1 %v16488_v27  ;;  %v16545_v27 = vld [vmem:[#allocation7 + $0xcd4] ss:$20 sps:$4 sm:$0xff]  }
 0x48d   :  { %11697 = vmatpush1.bf16.msra.mxu0 %v16483_v28  ;;  %v16548_v28 = vld [vmem:[#allocation7 + $0xcdc] ss:$20 sps:$4 sm:$0xff]  }
 0x48e   :  { %12127 = vmatpush1.bf16.msra.mxu1 %v16486_v29  ;;  %11698 = vmatprep.subr.bf16.mxu0 %v16491_v30  ;;  %v16543_v29 = vld [vmem:[#allocation7 + $0xcd0] ss:$20 sps:$4 sm:$0xff]   ;;  %v16546_v30 = vld [vmem:[#allocation7 + $0xcd8] ss:$20 sps:$4 sm:$0xff]  }
 0x48f   :  { %12128 = vmatprep.subr.bf16.mxu1 %v16494_v31  ;;  %v16551_v31 = vld [vmem:[#allocation7 + $0xcfc] ss:$20 sps:$4 sm:$0xff]  }
 0x491   :  { %11699 = vmatpush1.bf16.msra.mxu0 %v16489_v32  ;;  %v16554_v32 = vld [vmem:[#allocation7 + $0xd04] ss:$20 sps:$4 sm:$0xff]  }
 0x492   :  { %12129 = vmatpush1.bf16.msra.mxu1 %v16492_v35  ;;  %11700 = vmatprep.subr.bf16.mxu0 %v16497_v36  ;;  %v16549_v35 = vld [vmem:[#allocation7 + $0xcf8] ss:$20 sps:$4 sm:$0xff]   ;;  %v16552_v36 = vld [vmem:[#allocation7 + $0xd00] ss:$20 sps:$4 sm:$0xff]  }
 0x493   :  { %12130 = vmatprep.subr.bf16.mxu1 %v16500_v39  ;;  %v16557_v39 = vld [vmem:[#allocation7 + $0xd24] ss:$20 sps:$4 sm:$0xff]  }
 0x495   :  { %11701 = vmatpush1.bf16.msra.mxu0 %v16495_v40  ;;  %v16560_v40 = vld [vmem:[#allocation7 + $0xd2c] ss:$20 sps:$4 sm:$0xff]  }
 0x496   :  { %12131 = vmatpush1.bf16.msra.mxu1 %v16498_v43  ;;  %11702 = vmatprep.subr.bf16.mxu0 %v16503_v46  ;;  %v16555_v43 = vld [vmem:[#allocation7 + $0xd20] ss:$20 sps:$4 sm:$0xff]   ;;  %v16558_v46 = vld [vmem:[#allocation7 + $0xd28] ss:$20 sps:$4 sm:$0xff]  }
 0x497   :  { %12132 = vmatprep.subr.bf16.mxu1 %v16506_v50  ;;  %v16563_v50 = vld [vmem:[#allocation7 + $0xd4c] ss:$20 sps:$4 sm:$0xff]  }
 0x499   :  { %11703 = vmatpush1.bf16.msra.mxu0 %v16501_v42  ;;  %v16566_v42 = vld [vmem:[#allocation7 + $0xd54] ss:$20 sps:$4 sm:$0xff]  }
 0x49a   :  { %12133 = vmatpush1.bf16.msra.mxu1 %v16504_v47  ;;  %11704 = vmatprep.subr.bf16.mxu0 %v16509_v44  ;;  %v16561_v47 = vld [vmem:[#allocation7 + $0xd48] ss:$20 sps:$4 sm:$0xff]   ;;  %v16564_v44 = vld [vmem:[#allocation7 + $0xd50] ss:$20 sps:$4 sm:$0xff]  }
 0x49b   :  { %12134 = vmatprep.subr.bf16.mxu1 %v16512_v62  ;;  %v16569_v62 = vld [vmem:[#allocation7 + $0xd74] ss:$20 sps:$4 sm:$0xff]  }
 0x49d   :  { %11705 = vmatpush1.bf16.msra.mxu0 %v16507_v45  ;;  %v16572_v45 = vld [vmem:[#allocation7 + $0xd7c] ss:$20 sps:$4 sm:$0xff]  }
 0x49e   :  { %12135 = vmatpush1.bf16.msra.mxu1 %v16510_v61  ;;  %11706 = vmatprep.subr.bf16.mxu0 %v16515_v15  ;;  %v16567_v61 = vld [vmem:[#allocation7 + $0xd70] ss:$20 sps:$4 sm:$0xff]   ;;  %v16570_v15 = vld [vmem:[#allocation7 + $0xd78] ss:$20 sps:$4 sm:$0xff]  }
 0x49f   :  { %12136 = vmatprep.subr.bf16.mxu1 %v16518_v63  ;;  %v16575_v63 = vld [vmem:[#allocation7 + $0xd9c] ss:$20 sps:$4 sm:$0xff]  }
 0x4a1   :  { %11707 = vmatpush1.bf16.msra.mxu0 %v16513_v0  ;;  %v16578_v0 = vld [vmem:[#allocation7 + $0xda4] ss:$20 sps:$4 sm:$0xff]  }
 0x4a2   :  { %12137 = vmatpush1.bf16.msra.mxu1 %v16516_v1  ;;  %11708 = vmatprep.subr.bf16.mxu0 %v16521_v2  ;;  %v16573_v1 = vld [vmem:[#allocation7 + $0xd98] ss:$20 sps:$4 sm:$0xff]   ;;  %v16576_v2 = vld [vmem:[#allocation7 + $0xda0] ss:$20 sps:$4 sm:$0xff]  }
 0x4a3   :  { %12138 = vmatprep.subr.bf16.mxu1 %v16524_v3  ;;  %v16581_v3 = vld [vmem:[#allocation7 + $0xdc4] ss:$20 sps:$4 sm:$0xff]  }
 0x4a5   :  { %11709 = vmatpush1.bf16.msra.mxu0 %v16519_v6  ;;  %v16584_v6 = vld [vmem:[#allocation7 + $0xdcc] ss:$20 sps:$4 sm:$0xff]  }
 0x4a6   :  { %12139 = vmatpush1.bf16.msra.mxu1 %v16522_v7  ;;  %11710 = vmatprep.subr.bf16.mxu0 %v16527_v10  ;;  %v16579_v7 = vld [vmem:[#allocation7 + $0xdc0] ss:$20 sps:$4 sm:$0xff]   ;;  %v16582_v10 = vld [vmem:[#allocation7 + $0xdc8] ss:$20 sps:$4 sm:$0xff]  }
 0x4a7   :  { %12140 = vmatprep.subr.bf16.mxu1 %v16530_v11  ;;  %v16587_v11 = vld [vmem:[#allocation7 + $0xdec] ss:$20 sps:$4 sm:$0xff]  }
 0x4a9   :  { %11711 = vmatpush1.bf16.msra.mxu0 %v16525_v12  ;;  %v16590_v12 = vld [vmem:[#allocation7 + $0xdf4] ss:$20 sps:$4 sm:$0xff]  }
 0x4aa   :  { %12141 = vmatpush1.bf16.msra.mxu1 %v16528_v13  ;;  %11723 = vmatprep.subr.bf16.mxu0 %v16533_v14  ;;  %v16585_v13 = vld [vmem:[#allocation7 + $0xde8] ss:$20 sps:$4 sm:$0xff]   ;;  %v16588_v14 = vld [vmem:[#allocation7 + $0xdf0] ss:$20 sps:$4 sm:$0xff]  }
 0x4ab   :  { %12153 = vmatprep.subr.bf16.mxu1 %v16536_v16  ;;  %v16593_v16 = vld [vmem:[#allocation7 + $0xe14] ss:$20 sps:$4 sm:$0xff]  }
 0x4ac   :  { %11713 = vmatmul.mubr.bf16.vlgmr.msra.gmra.mrb[20].mxu0 %v17532_v54 }
 0x4ad   :  { %12143 = vmatmul.mubr.bf16.vlgmr.msra.gmra.mrb[20].mxu1 %v17532_v54  ;;  %11724 = vmatpush1.bf16.msra.mxu0 %v16531_v17  ;;  %v16596_v17 = vld [vmem:[#allocation7 + $0xe1c] ss:$20 sps:$4 sm:$0xff]  }
 0x4ae   :  { %11755 = vmatprep.mubr.bf16.mxu0 %v17538_v60  ;;  %12154 = vmatpush1.bf16.msra.mxu1 %v16534_v20  ;;  %v16591_v20 = vld [vmem:[#allocation7 + $0xe10] ss:$20 sps:$4 sm:$0xff]  }
 0x4af   :  { %12185 = vmatprep.mubr.bf16.mxu1 %v17538_v60  ;;  %11725 = vmatprep.subr.bf16.mxu0 %v16539_v21  ;;  %v16594_v21 = vld [vmem:[#allocation7 + $0xe18] ss:$20 sps:$4 sm:$0xff]  }
 0x4b0   :  { %12155 = vmatprep.subr.bf16.mxu1 %v16542_v22  ;;  %v16599_v22 = vld [vmem:[#allocation7 + $0xe3c] ss:$20 sps:$4 sm:$0xff]  }
 0x4b1   :  { %11726 = vmatpush1.bf16.msra.mxu0 %v16537_v25  ;;  %v16602_v25 = vld [vmem:[#allocation7 + $0xe44] ss:$20 sps:$4 sm:$0xff]  }
 0x4b2   :  { %12156 = vmatpush1.bf16.msra.mxu1 %v16540_v26  ;;  %11727 = vmatprep.subr.bf16.mxu0 %v16545_v27  ;;  %v16597_v26 = vld [vmem:[#allocation7 + $0xe38] ss:$20 sps:$4 sm:$0xff]   ;;  %v16600_v27 = vld [vmem:[#allocation7 + $0xe40] ss:$20 sps:$4 sm:$0xff]  }
 0x4b3   :  { %12157 = vmatprep.subr.bf16.mxu1 %v16548_v28  ;;  %v16605_v28 = vld [vmem:[#allocation7 + $0xe64] ss:$20 sps:$4 sm:$0xff]  }
 0x4b5   :  { %11728 = vmatpush1.bf16.msra.mxu0 %v16543_v29  ;;  %v16608_v29 = vld [vmem:[#allocation7 + $0xe6c] ss:$20 sps:$4 sm:$0xff]  }
 0x4b6   :  { %12158 = vmatpush1.bf16.msra.mxu1 %v16546_v30  ;;  %11729 = vmatprep.subr.bf16.mxu0 %v16551_v31  ;;  %v16603_v30 = vld [vmem:[#allocation7 + $0xe60] ss:$20 sps:$4 sm:$0xff]   ;;  %v16606_v31 = vld [vmem:[#allocation7 + $0xe68] ss:$20 sps:$4 sm:$0xff]  }
 0x4b7   :  { %12159 = vmatprep.subr.bf16.mxu1 %v16554_v32  ;;  %v16611_v32 = vld [vmem:[#allocation7 + $0xe8c] ss:$20 sps:$4 sm:$0xff]  }
 0x4b9   :  { %11730 = vmatpush1.bf16.msra.mxu0 %v16549_v35  ;;  %v16614_v35 = vld [vmem:[#allocation7 + $0xe94] ss:$20 sps:$4 sm:$0xff]  }
 0x4ba   :  { %12160 = vmatpush1.bf16.msra.mxu1 %v16552_v36  ;;  %11731 = vmatprep.subr.bf16.mxu0 %v16557_v39  ;;  %v16609_v36 = vld [vmem:[#allocation7 + $0xe88] ss:$20 sps:$4 sm:$0xff]   ;;  %v16612_v39 = vld [vmem:[#allocation7 + $0xe90] ss:$20 sps:$4 sm:$0xff]  }
 0x4bb   :  { %12161 = vmatprep.subr.bf16.mxu1 %v16560_v40  ;;  %v16617_v40 = vld [vmem:[#allocation7 + $0xeb4] ss:$20 sps:$4 sm:$0xff]  }
 0x4bd   :  { %11732 = vmatpush1.bf16.msra.mxu0 %v16555_v43  ;;  %v16620_v43 = vld [vmem:[#allocation7 + $0xebc] ss:$20 sps:$4 sm:$0xff]  }
 0x4be   :  { %12162 = vmatpush1.bf16.msra.mxu1 %v16558_v46  ;;  %11733 = vmatprep.subr.bf16.mxu0 %v16563_v50  ;;  %v16615_v46 = vld [vmem:[#allocation7 + $0xeb0] ss:$20 sps:$4 sm:$0xff]   ;;  %v16618_v50 = vld [vmem:[#allocation7 + $0xeb8] ss:$20 sps:$4 sm:$0xff]  }
 0x4bf   :  { %12163 = vmatprep.subr.bf16.mxu1 %v16566_v42  ;;  %v16623_v42 = vld [vmem:[#allocation7 + $0xedc] ss:$20 sps:$4 sm:$0xff]  }
 0x4c1   :  { %11734 = vmatpush1.bf16.msra.mxu0 %v16561_v47  ;;  %v16626_v47 = vld [vmem:[#allocation7 + $0xee4] ss:$20 sps:$4 sm:$0xff]  }
 0x4c2   :  { %12164 = vmatpush1.bf16.msra.mxu1 %v16564_v44  ;;  %11735 = vmatprep.subr.bf16.mxu0 %v16569_v62  ;;  %v16621_v44 = vld [vmem:[#allocation7 + $0xed8] ss:$20 sps:$4 sm:$0xff]   ;;  %v16624_v62 = vld [vmem:[#allocation7 + $0xee0] ss:$20 sps:$4 sm:$0xff]  }
 0x4c3   :  { %12165 = vmatprep.subr.bf16.mxu1 %v16572_v45  ;;  %v16629_v45 = vld [vmem:[#allocation7 + $0xf04] ss:$20 sps:$4 sm:$0xff]  }
 0x4c5   :  { %11736 = vmatpush1.bf16.msra.mxu0 %v16567_v61  ;;  %v16632_v61 = vld [vmem:[#allocation7 + $0xf0c] ss:$20 sps:$4 sm:$0xff]  }
 0x4c6   :  { %12166 = vmatpush1.bf16.msra.mxu1 %v16570_v15  ;;  %11737 = vmatprep.subr.bf16.mxu0 %v16575_v63  ;;  %v16627_v15 = vld [vmem:[#allocation7 + $0xf00] ss:$20 sps:$4 sm:$0xff]   ;;  %v16630_v63 = vld [vmem:[#allocation7 + $0xf08] ss:$20 sps:$4 sm:$0xff]  }
 0x4c7   :  { %12167 = vmatprep.subr.bf16.mxu1 %v16578_v0  ;;  %v16635_v0 = vld [vmem:[#allocation7 + $0xf2c] ss:$20 sps:$4 sm:$0xff]  }
 0x4c9   :  { %11738 = vmatpush1.bf16.msra.mxu0 %v16573_v1  ;;  %v16638_v1 = vld [vmem:[#allocation7 + $0xf34] ss:$20 sps:$4 sm:$0xff]  }
 0x4ca   :  { %12168 = vmatpush1.bf16.msra.mxu1 %v16576_v2  ;;  %11739 = vmatprep.subr.bf16.mxu0 %v16581_v3  ;;  %v16633_v2 = vld [vmem:[#allocation7 + $0xf28] ss:$20 sps:$4 sm:$0xff]   ;;  %v16636_v3 = vld [vmem:[#allocation7 + $0xf30] ss:$20 sps:$4 sm:$0xff]  }
 0x4cb   :  { %12169 = vmatprep.subr.bf16.mxu1 %v16584_v6  ;;  %v16641_v6 = vld [vmem:[#allocation7 + $0xf54] ss:$20 sps:$4 sm:$0xff]  }
 0x4cd   :  { %11740 = vmatpush1.bf16.msra.mxu0 %v16579_v7  ;;  %v16644_v7 = vld [vmem:[#allocation7 + $0xf5c] ss:$20 sps:$4 sm:$0xff]  }
 0x4ce   :  { %12170 = vmatpush1.bf16.msra.mxu1 %v16582_v10  ;;  %11741 = vmatprep.subr.bf16.mxu0 %v16587_v11  ;;  %v16639_v10 = vld [vmem:[#allocation7 + $0xf50] ss:$20 sps:$4 sm:$0xff]   ;;  %v16642_v11 = vld [vmem:[#allocation7 + $0xf58] ss:$20 sps:$4 sm:$0xff]  }
 0x4cf   :  { %12171 = vmatprep.subr.bf16.mxu1 %v16590_v12  ;;  %v16647_v12 = vld [vmem:[#allocation7 + $0xf7c] ss:$20 sps:$4 sm:$0xff]  }
 0x4d1   :  { %11742 = vmatpush1.bf16.msra.mxu0 %v16585_v13  ;;  %v16650_v13 = vld [vmem:[#allocation7 + $0xf84] ss:$20 sps:$4 sm:$0xff]  }
 0x4d2   :  { %12172 = vmatpush1.bf16.msra.mxu1 %v16588_v14  ;;  %11743 = vmatprep.subr.bf16.mxu0 %v16593_v16  ;;  %v16645_v14 = vld [vmem:[#allocation7 + $0xf78] ss:$20 sps:$4 sm:$0xff]   ;;  %v16648_v16 = vld [vmem:[#allocation7 + $0xf80] ss:$20 sps:$4 sm:$0xff]  }
 0x4d3   :  { %12173 = vmatprep.subr.bf16.mxu1 %v16596_v17  ;;  %v16653_v17 = vld [vmem:[#allocation7 + $0xfa4] ss:$20 sps:$4 sm:$0xff]  }
 0x4d5   :  { %11744 = vmatpush1.bf16.msra.mxu0 %v16591_v20  ;;  %v16656_v20 = vld [vmem:[#allocation7 + $0xfac] ss:$20 sps:$4 sm:$0xff]  }
 0x4d6   :  { %12174 = vmatpush1.bf16.msra.mxu1 %v16594_v21  ;;  %11745 = vmatprep.subr.bf16.mxu0 %v16599_v22  ;;  %v16651_v21 = vld [vmem:[#allocation7 + $0xfa0] ss:$20 sps:$4 sm:$0xff]   ;;  %v16654_v22 = vld [vmem:[#allocation7 + $0xfa8] ss:$20 sps:$4 sm:$0xff]  }
 0x4d7   :  { %12175 = vmatprep.subr.bf16.mxu1 %v16602_v25  ;;  %v16659_v25 = vld [vmem:[#allocation7 + $0xfcc] ss:$20 sps:$4 sm:$0xff]  }
 0x4d9   :  { %11746 = vmatpush1.bf16.msra.mxu0 %v16597_v26  ;;  %v16662_v26 = vld [vmem:[#allocation7 + $0xfd4] ss:$20 sps:$4 sm:$0xff]  }
 0x4da   :  { %12176 = vmatpush1.bf16.msra.mxu1 %v16600_v27  ;;  %11747 = vmatprep.subr.bf16.mxu0 %v16605_v28  ;;  %v16657_v27 = vld [vmem:[#allocation7 + $0xfc8] ss:$20 sps:$4 sm:$0xff]   ;;  %v16660_v28 = vld [vmem:[#allocation7 + $0xfd0] ss:$20 sps:$4 sm:$0xff]  }
 0x4db   :  { %12177 = vmatprep.subr.bf16.mxu1 %v16608_v29  ;;  %v16665_v29 = vld [vmem:[#allocation7 + $0xff4] ss:$20 sps:$4 sm:$0xff]  }
 0x4dd   :  { %11748 = vmatpush1.bf16.msra.mxu0 %v16603_v30  ;;  %v16668_v30 = vld [vmem:[#allocation7 + $0xffc] ss:$20 sps:$4 sm:$0xff]  }
 0x4de   :  { %12178 = vmatpush1.bf16.msra.mxu1 %v16606_v31  ;;  %11749 = vmatprep.subr.bf16.mxu0 %v16611_v32  ;;  %v16663_v31 = vld [vmem:[#allocation7 + $0xff0] ss:$20 sps:$4 sm:$0xff]   ;;  %v16666_v32 = vld [vmem:[#allocation7 + $0xff8] ss:$20 sps:$4 sm:$0xff]  }
 0x4df   :  { %12179 = vmatprep.subr.bf16.mxu1 %v16614_v35  ;;  %v16671_v35 = vld [vmem:[#allocation7 + $0x101c] ss:$20 sps:$4 sm:$0xff]  }
 0x4e1   :  { %11750 = vmatpush1.bf16.msra.mxu0 %v16609_v36  ;;  %v16674_v36 = vld [vmem:[#allocation7 + $0x1024] ss:$20 sps:$4 sm:$0xff]  }
 0x4e2   :  { %12180 = vmatpush1.bf16.msra.mxu1 %v16612_v39  ;;  %11751 = vmatprep.subr.bf16.mxu0 %v16617_v40  ;;  %v16669_v39 = vld [vmem:[#allocation7 + $0x1018] ss:$20 sps:$4 sm:$0xff]   ;;  %v16672_v40 = vld [vmem:[#allocation7 + $0x1020] ss:$20 sps:$4 sm:$0xff]  }
 0x4e3   :  { %12181 = vmatprep.subr.bf16.mxu1 %v16620_v43  ;;  %v16677_v43 = vld [vmem:[#allocation7 + $0x1044] ss:$20 sps:$4 sm:$0xff]  }
 0x4e5   :  { %11752 = vmatpush1.bf16.msra.mxu0 %v16615_v46  ;;  %v16680_v46 = vld [vmem:[#allocation7 + $0x104c] ss:$20 sps:$4 sm:$0xff]  }
 0x4e6   :  { %12182 = vmatpush1.bf16.msra.mxu1 %v16618_v50  ;;  %11753 = vmatprep.subr.bf16.mxu0 %v16623_v42  ;;  %v16675_v50 = vld [vmem:[#allocation7 + $0x1040] ss:$20 sps:$4 sm:$0xff]   ;;  %v16678_v42 = vld [vmem:[#allocation7 + $0x1048] ss:$20 sps:$4 sm:$0xff]  }
 0x4e7   :  { %12183 = vmatprep.subr.bf16.mxu1 %v16626_v47  ;;  %v16683_v47 = vld [vmem:[#allocation7 + $0x106c] ss:$20 sps:$4 sm:$0xff]  }
 0x4e9   :  { %11754 = vmatpush1.bf16.msra.mxu0 %v16621_v44  ;;  %v16686_v44 = vld [vmem:[#allocation7 + $0x1074] ss:$20 sps:$4 sm:$0xff]  }
 0x4ea   :  { %12184 = vmatpush1.bf16.msra.mxu1 %v16624_v62  ;;  %11766 = vmatprep.subr.bf16.mxu0 %v16629_v45  ;;  %v16681_v62 = vld [vmem:[#allocation7 + $0x1068] ss:$20 sps:$4 sm:$0xff]   ;;  %v16684_v45 = vld [vmem:[#allocation7 + $0x1070] ss:$20 sps:$4 sm:$0xff]  }
 0x4eb   :  { %12196 = vmatprep.subr.bf16.mxu1 %v16632_v61  ;;  %v16689_v61 = vld [vmem:[#allocation7 + $0x1094] ss:$20 sps:$4 sm:$0xff]  }
 0x4ec   :  { %11756 = vmatmul.mubr.bf16.vlgmr.msra.gmra.mrb[20].mxu0 %v17534_v55 }
 0x4ed   :  { %12186 = vmatmul.mubr.bf16.vlgmr.msra.gmra.mrb[20].mxu1 %v17534_v55  ;;  %11767 = vmatpush1.bf16.msra.mxu0 %v16627_v15  ;;  %v16692_v15 = vld [vmem:[#allocation7 + $0x109c] ss:$20 sps:$4 sm:$0xff]  }
 0x4ee   :  { %11798 = vmatprep.mubr.bf16.mxu0 %v17567_v23  ;;  %12197 = vmatpush1.bf16.msra.mxu1 %v16630_v63  ;;  %v16687_v63 = vld [vmem:[#allocation7 + $0x1090] ss:$20 sps:$4 sm:$0xff]  }
 0x4ef   :  { %12228 = vmatprep.mubr.bf16.mxu1 %v17567_v23  ;;  %11768 = vmatprep.subr.bf16.mxu0 %v16635_v0  ;;  %v16690_v0 = vld [vmem:[#allocation7 + $0x1098] ss:$20 sps:$4 sm:$0xff]  }
 0x4f0   :  { %12198 = vmatprep.subr.bf16.mxu1 %v16638_v1  ;;  %v16695_v1 = vld [vmem:[#allocation7 + $0x10bc] ss:$20 sps:$4 sm:$0xff]  }
 0x4f1   :  { %11769 = vmatpush1.bf16.msra.mxu0 %v16633_v2  ;;  %v16698_v2 = vld [vmem:[#allocation7 + $0x10c4] ss:$20 sps:$4 sm:$0xff]  }
 0x4f2   :  { %12199 = vmatpush1.bf16.msra.mxu1 %v16636_v3  ;;  %11770 = vmatprep.subr.bf16.mxu0 %v16641_v6  ;;  %v16693_v3 = vld [vmem:[#allocation7 + $0x10b8] ss:$20 sps:$4 sm:$0xff]   ;;  %v16696_v6 = vld [vmem:[#allocation7 + $0x10c0] ss:$20 sps:$4 sm:$0xff]  }
 0x4f3   :  { %12200 = vmatprep.subr.bf16.mxu1 %v16644_v7  ;;  %v16701_v7 = vld [vmem:[#allocation7 + $0x10e4] ss:$20 sps:$4 sm:$0xff]  }
 0x4f5   :  { %11771 = vmatpush1.bf16.msra.mxu0 %v16639_v10  ;;  %v16704_v10 = vld [vmem:[#allocation7 + $0x10ec] ss:$20 sps:$4 sm:$0xff]  }
 0x4f6   :  { %12201 = vmatpush1.bf16.msra.mxu1 %v16642_v11  ;;  %11772 = vmatprep.subr.bf16.mxu0 %v16647_v12  ;;  %v16699_v11 = vld [vmem:[#allocation7 + $0x10e0] ss:$20 sps:$4 sm:$0xff]   ;;  %v16702_v12 = vld [vmem:[#allocation7 + $0x10e8] ss:$20 sps:$4 sm:$0xff]  }
 0x4f7   :  { %12202 = vmatprep.subr.bf16.mxu1 %v16650_v13  ;;  %v16707_v13 = vld [vmem:[#allocation7 + $0x110c] ss:$20 sps:$4 sm:$0xff]  }
 0x4f9   :  { %11773 = vmatpush1.bf16.msra.mxu0 %v16645_v14  ;;  %v16710_v14 = vld [vmem:[#allocation7 + $0x1114] ss:$20 sps:$4 sm:$0xff]  }
 0x4fa   :  { %12203 = vmatpush1.bf16.msra.mxu1 %v16648_v16  ;;  %11774 = vmatprep.subr.bf16.mxu0 %v16653_v17  ;;  %v16705_v16 = vld [vmem:[#allocation7 + $0x1108] ss:$20 sps:$4 sm:$0xff]   ;;  %v16708_v17 = vld [vmem:[#allocation7 + $0x1110] ss:$20 sps:$4 sm:$0xff]  }
 0x4fb   :  { %12204 = vmatprep.subr.bf16.mxu1 %v16656_v20  ;;  %v16713_v20 = vld [vmem:[#allocation7 + $0x1134] ss:$20 sps:$4 sm:$0xff]  }
 0x4fd   :  { %11775 = vmatpush1.bf16.msra.mxu0 %v16651_v21  ;;  %v16716_v21 = vld [vmem:[#allocation7 + $0x113c] ss:$20 sps:$4 sm:$0xff]  }
 0x4fe   :  { %12205 = vmatpush1.bf16.msra.mxu1 %v16654_v22  ;;  %11776 = vmatprep.subr.bf16.mxu0 %v16659_v25  ;;  %v16711_v22 = vld [vmem:[#allocation7 + $0x1130] ss:$20 sps:$4 sm:$0xff]   ;;  %v16714_v25 = vld [vmem:[#allocation7 + $0x1138] ss:$20 sps:$4 sm:$0xff]  }
 0x4ff   :  { %12206 = vmatprep.subr.bf16.mxu1 %v16662_v26  ;;  %v16719_v26 = vld [vmem:[#allocation7 + $0x115c] ss:$20 sps:$4 sm:$0xff]  }
 0x501   :  { %11777 = vmatpush1.bf16.msra.mxu0 %v16657_v27  ;;  %v16722_v27 = vld [vmem:[#allocation7 + $0x1164] ss:$20 sps:$4 sm:$0xff]  }
 0x502   :  { %12207 = vmatpush1.bf16.msra.mxu1 %v16660_v28  ;;  %11778 = vmatprep.subr.bf16.mxu0 %v16665_v29  ;;  %v16717_v28 = vld [vmem:[#allocation7 + $0x1158] ss:$20 sps:$4 sm:$0xff]   ;;  %v16720_v29 = vld [vmem:[#allocation7 + $0x1160] ss:$20 sps:$4 sm:$0xff]  }
 0x503   :  { %12208 = vmatprep.subr.bf16.mxu1 %v16668_v30  ;;  %v16725_v30 = vld [vmem:[#allocation7 + $0x1184] ss:$20 sps:$4 sm:$0xff]  }
 0x505   :  { %11779 = vmatpush1.bf16.msra.mxu0 %v16663_v31  ;;  %v16728_v31 = vld [vmem:[#allocation7 + $0x118c] ss:$20 sps:$4 sm:$0xff]  }
 0x506   :  { %12209 = vmatpush1.bf16.msra.mxu1 %v16666_v32  ;;  %11780 = vmatprep.subr.bf16.mxu0 %v16671_v35  ;;  %v16723_v32 = vld [vmem:[#allocation7 + $0x1180] ss:$20 sps:$4 sm:$0xff]   ;;  %v16726_v35 = vld [vmem:[#allocation7 + $0x1188] ss:$20 sps:$4 sm:$0xff]  }
 0x507   :  { %12210 = vmatprep.subr.bf16.mxu1 %v16674_v36  ;;  %v16731_v36 = vld [vmem:[#allocation7 + $0x11ac] ss:$20 sps:$4 sm:$0xff]  }
 0x509   :  { %11781 = vmatpush1.bf16.msra.mxu0 %v16669_v39  ;;  %v16734_v39 = vld [vmem:[#allocation7 + $0x11b4] ss:$20 sps:$4 sm:$0xff]  }
 0x50a   :  { %12211 = vmatpush1.bf16.msra.mxu1 %v16672_v40  ;;  %11782 = vmatprep.subr.bf16.mxu0 %v16677_v43  ;;  %v16729_v40 = vld [vmem:[#allocation7 + $0x11a8] ss:$20 sps:$4 sm:$0xff]   ;;  %v16732_v43 = vld [vmem:[#allocation7 + $0x11b0] ss:$20 sps:$4 sm:$0xff]  }
 0x50b   :  { %12212 = vmatprep.subr.bf16.mxu1 %v16680_v46  ;;  %v16737_v46 = vld [vmem:[#allocation7 + $0x11d4] ss:$20 sps:$4 sm:$0xff]  }
 0x50d   :  { %11783 = vmatpush1.bf16.msra.mxu0 %v16675_v50  ;;  %v16740_v50 = vld [vmem:[#allocation7 + $0x11dc] ss:$20 sps:$4 sm:$0xff]  }
 0x50e   :  { %12213 = vmatpush1.bf16.msra.mxu1 %v16678_v42  ;;  %11784 = vmatprep.subr.bf16.mxu0 %v16683_v47  ;;  %v16735_v42 = vld [vmem:[#allocation7 + $0x11d0] ss:$20 sps:$4 sm:$0xff]   ;;  %v16738_v47 = vld [vmem:[#allocation7 + $0x11d8] ss:$20 sps:$4 sm:$0xff]  }
 0x50f   :  { %12214 = vmatprep.subr.bf16.mxu1 %v16686_v44  ;;  %v16743_v44 = vld [vmem:[#allocation7 + $0x11fc] ss:$20 sps:$4 sm:$0xff]  }
 0x511   :  { %11785 = vmatpush1.bf16.msra.mxu0 %v16681_v62  ;;  %v16746_v62 = vld [vmem:[#allocation7 + $0x1204] ss:$20 sps:$4 sm:$0xff]  }
 0x512   :  { %12215 = vmatpush1.bf16.msra.mxu1 %v16684_v45  ;;  %11786 = vmatprep.subr.bf16.mxu0 %v16689_v61  ;;  %v16741_v45 = vld [vmem:[#allocation7 + $0x11f8] ss:$20 sps:$4 sm:$0xff]   ;;  %v16744_v61 = vld [vmem:[#allocation7 + $0x1200] ss:$20 sps:$4 sm:$0xff]  }
 0x513   :  { %12216 = vmatprep.subr.bf16.mxu1 %v16692_v15  ;;  %v16749_v15 = vld [vmem:[#allocation7 + $0x1224] ss:$20 sps:$4 sm:$0xff]  }
 0x515   :  { %11787 = vmatpush1.bf16.msra.mxu0 %v16687_v63  ;;  %v16752_v63 = vld [vmem:[#allocation7 + $0x122c] ss:$20 sps:$4 sm:$0xff]  }
 0x516   :  { %12217 = vmatpush1.bf16.msra.mxu1 %v16690_v0  ;;  %11788 = vmatprep.subr.bf16.mxu0 %v16695_v1  ;;  %v16747_v0 = vld [vmem:[#allocation7 + $0x1220] ss:$20 sps:$4 sm:$0xff]   ;;  %v16750_v1 = vld [vmem:[#allocation7 + $0x1228] ss:$20 sps:$4 sm:$0xff]  }
 0x517   :  { %12218 = vmatprep.subr.bf16.mxu1 %v16698_v2  ;;  %v16755_v2 = vld [vmem:[#allocation7 + $0x124c] ss:$20 sps:$4 sm:$0xff]  }
 0x519   :  { %11789 = vmatpush1.bf16.msra.mxu0 %v16693_v3  ;;  %v16758_v3 = vld [vmem:[#allocation7 + $0x1254] ss:$20 sps:$4 sm:$0xff]  }
 0x51a   :  { %12219 = vmatpush1.bf16.msra.mxu1 %v16696_v6  ;;  %11790 = vmatprep.subr.bf16.mxu0 %v16701_v7  ;;  %v16753_v6 = vld [vmem:[#allocation7 + $0x1248] ss:$20 sps:$4 sm:$0xff]   ;;  %v16756_v7 = vld [vmem:[#allocation7 + $0x1250] ss:$20 sps:$4 sm:$0xff]  }
 0x51b   :  { %12220 = vmatprep.subr.bf16.mxu1 %v16704_v10  ;;  %v16761_v10 = vld [vmem:[#allocation7 + $0x1274] ss:$20 sps:$4 sm:$0xff]  }
 0x51d   :  { %11791 = vmatpush1.bf16.msra.mxu0 %v16699_v11  ;;  %v16764_v11 = vld [vmem:[#allocation7 + $0x127c] ss:$20 sps:$4 sm:$0xff]  }
 0x51e   :  { %12221 = vmatpush1.bf16.msra.mxu1 %v16702_v12  ;;  %11792 = vmatprep.subr.bf16.mxu0 %v16707_v13  ;;  %v16759_v12 = vld [vmem:[#allocation7 + $0x1270] ss:$20 sps:$4 sm:$0xff]   ;;  %v16762_v13 = vld [vmem:[#allocation7 + $0x1278] ss:$20 sps:$4 sm:$0xff]  }
 0x51f   :  { %12222 = vmatprep.subr.bf16.mxu1 %v16710_v14  ;;  %v16767_v14 = vld [vmem:[#allocation7 + $0x129c] ss:$20 sps:$4 sm:$0xff]  }
 0x521   :  { %11793 = vmatpush1.bf16.msra.mxu0 %v16705_v16  ;;  %v16770_v16 = vld [vmem:[#allocation7 + $0x12a4] ss:$20 sps:$4 sm:$0xff]  }
 0x522   :  { %12223 = vmatpush1.bf16.msra.mxu1 %v16708_v17  ;;  %11794 = vmatprep.subr.bf16.mxu0 %v16713_v20  ;;  %v16765_v17 = vld [vmem:[#allocation7 + $0x1298] ss:$20 sps:$4 sm:$0xff]   ;;  %v16768_v20 = vld [vmem:[#allocation7 + $0x12a0] ss:$20 sps:$4 sm:$0xff]  }
 0x523   :  { %12224 = vmatprep.subr.bf16.mxu1 %v16716_v21  ;;  %v16773_v21 = vld [vmem:[#allocation7 + $0x12c4] ss:$20 sps:$4 sm:$0xff]  }
 0x525   :  { %11795 = vmatpush1.bf16.msra.mxu0 %v16711_v22  ;;  %v16776_v22 = vld [vmem:[#allocation7 + $0x12cc] ss:$20 sps:$4 sm:$0xff]  }
 0x526   :  { %12225 = vmatpush1.bf16.msra.mxu1 %v16714_v25  ;;  %11796 = vmatprep.subr.bf16.mxu0 %v16719_v26  ;;  %v16771_v25 = vld [vmem:[#allocation7 + $0x12c0] ss:$20 sps:$4 sm:$0xff]   ;;  %v16774_v26 = vld [vmem:[#allocation7 + $0x12c8] ss:$20 sps:$4 sm:$0xff]  }
 0x527   :  { %12226 = vmatprep.subr.bf16.mxu1 %v16722_v27  ;;  %v16779_v27 = vld [vmem:[#allocation7 + $0x12ec] ss:$20 sps:$4 sm:$0xff]  }
 0x529   :  { %11797 = vmatpush1.bf16.msra.mxu0 %v16717_v28  ;;  %v16782_v28 = vld [vmem:[#allocation7 + $0x12f4] ss:$20 sps:$4 sm:$0xff]  }
 0x52a   :  { %12227 = vmatpush1.bf16.msra.mxu1 %v16720_v29  ;;  %11809 = vmatprep.subr.bf16.mxu0 %v16725_v30  ;;  %v16777_v29 = vld [vmem:[#allocation7 + $0x12e8] ss:$20 sps:$4 sm:$0xff]   ;;  %v16780_v30 = vld [vmem:[#allocation7 + $0x12f0] ss:$20 sps:$4 sm:$0xff]  }
 0x52b   :  { %12239 = vmatprep.subr.bf16.mxu1 %v16728_v31  ;;  %v16785_v31 = vld [vmem:[#allocation7 + $0x1314] ss:$20 sps:$4 sm:$0xff]  }
 0x52c   :  { %11799 = vmatmul.mubr.bf16.vlgmr.msra.gmra.mrb[20].mxu0 %v17563_v18 }
 0x52d   :  { %12229 = vmatmul.mubr.bf16.vlgmr.msra.gmra.mrb[20].mxu1 %v17563_v18  ;;  %11810 = vmatpush1.bf16.msra.mxu0 %v16723_v32  ;;  %v16788_v32 = vld [vmem:[#allocation7 + $0x131c] ss:$20 sps:$4 sm:$0xff]  }
 0x52e   :  { %11841 = vmatprep.mubr.bf16.mxu0 %v17569_v24  ;;  %12240 = vmatpush1.bf16.msra.mxu1 %v16726_v35  ;;  %v16783_v35 = vld [vmem:[#allocation7 + $0x1310] ss:$20 sps:$4 sm:$0xff]  }
 0x52f   :  { %12271 = vmatprep.mubr.bf16.mxu1 %v17569_v24  ;;  %11811 = vmatprep.subr.bf16.mxu0 %v16731_v36  ;;  %v16786_v36 = vld [vmem:[#allocation7 + $0x1318] ss:$20 sps:$4 sm:$0xff]  }
 0x530   :  { %12241 = vmatprep.subr.bf16.mxu1 %v16734_v39  ;;  %v16791_v39 = vld [vmem:[#allocation7 + $0x133c] ss:$20 sps:$4 sm:$0xff]  }
 0x531   :  { %11812 = vmatpush1.bf16.msra.mxu0 %v16729_v40  ;;  %v16794_v40 = vld [vmem:[#allocation7 + $0x1344] ss:$20 sps:$4 sm:$0xff]  }
 0x532   :  { %12242 = vmatpush1.bf16.msra.mxu1 %v16732_v43  ;;  %11813 = vmatprep.subr.bf16.mxu0 %v16737_v46  ;;  %v16789_v43 = vld [vmem:[#allocation7 + $0x1338] ss:$20 sps:$4 sm:$0xff]   ;;  %v16792_v46 = vld [vmem:[#allocation7 + $0x1340] ss:$20 sps:$4 sm:$0xff]  }
 0x533   :  { %12243 = vmatprep.subr.bf16.mxu1 %v16740_v50  ;;  %v16797_v50 = vld [vmem:[#allocation7 + $0x1364] ss:$20 sps:$4 sm:$0xff]  }
 0x535   :  { %11814 = vmatpush1.bf16.msra.mxu0 %v16735_v42  ;;  %v16800_v42 = vld [vmem:[#allocation7 + $0x136c] ss:$20 sps:$4 sm:$0xff]  }
 0x536   :  { %12244 = vmatpush1.bf16.msra.mxu1 %v16738_v47  ;;  %11815 = vmatprep.subr.bf16.mxu0 %v16743_v44  ;;  %v16795_v47 = vld [vmem:[#allocation7 + $0x1360] ss:$20 sps:$4 sm:$0xff]   ;;  %v16798_v44 = vld [vmem:[#allocation7 + $0x1368] ss:$20 sps:$4 sm:$0xff]  }
 0x537   :  { %12245 = vmatprep.subr.bf16.mxu1 %v16746_v62  ;;  %v16803_v62 = vld [vmem:[#allocation7 + $0x138c] ss:$20 sps:$4 sm:$0xff]  }
 0x539   :  { %11816 = vmatpush1.bf16.msra.mxu0 %v16741_v45  ;;  %v16806_v45 = vld [vmem:[#allocation7 + $0x1394] ss:$20 sps:$4 sm:$0xff]  }
 0x53a   :  { %12246 = vmatpush1.bf16.msra.mxu1 %v16744_v61  ;;  %11817 = vmatprep.subr.bf16.mxu0 %v16749_v15  ;;  %v16801_v61 = vld [vmem:[#allocation7 + $0x1388] ss:$20 sps:$4 sm:$0xff]   ;;  %v16804_v15 = vld [vmem:[#allocation7 + $0x1390] ss:$20 sps:$4 sm:$0xff]  }
 0x53b   :  { %12247 = vmatprep.subr.bf16.mxu1 %v16752_v63  ;;  %v16809_v63 = vld [vmem:[#allocation7 + $0x13b4] ss:$20 sps:$4 sm:$0xff]  }
 0x53d   :  { %11818 = vmatpush1.bf16.msra.mxu0 %v16747_v0  ;;  %v16812_v0 = vld [vmem:[#allocation7 + $0x13bc] ss:$20 sps:$4 sm:$0xff]  }
 0x53e   :  { %12248 = vmatpush1.bf16.msra.mxu1 %v16750_v1  ;;  %11819 = vmatprep.subr.bf16.mxu0 %v16755_v2  ;;  %v16807_v1 = vld [vmem:[#allocation7 + $0x13b0] ss:$20 sps:$4 sm:$0xff]   ;;  %v16810_v2 = vld [vmem:[#allocation7 + $0x13b8] ss:$20 sps:$4 sm:$0xff]  }
 0x53f   :  { %12249 = vmatprep.subr.bf16.mxu1 %v16758_v3  ;;  %v16815_v3 = vld [vmem:[#allocation7 + $0x13dc] ss:$20 sps:$4 sm:$0xff]  }
 0x541   :  { %11820 = vmatpush1.bf16.msra.mxu0 %v16753_v6  ;;  %v16818_v6 = vld [vmem:[#allocation7 + $0x13e4] ss:$20 sps:$4 sm:$0xff]  }
 0x542   :  { %12250 = vmatpush1.bf16.msra.mxu1 %v16756_v7  ;;  %11821 = vmatprep.subr.bf16.mxu0 %v16761_v10  ;;  %v16813_v7 = vld [vmem:[#allocation7 + $0x13d8] ss:$20 sps:$4 sm:$0xff]   ;;  %v16816_v10 = vld [vmem:[#allocation7 + $0x13e0] ss:$20 sps:$4 sm:$0xff]  }
 0x543   :  { %12251 = vmatprep.subr.bf16.mxu1 %v16764_v11  ;;  %v16821_v11 = vld [vmem:[#allocation7 + $0x1404] ss:$20 sps:$4 sm:$0xff]  }
 0x545   :  { %11822 = vmatpush1.bf16.msra.mxu0 %v16759_v12  ;;  %v16824_v12 = vld [vmem:[#allocation7 + $0x140c] ss:$20 sps:$4 sm:$0xff]  }
 0x546   :  { %12252 = vmatpush1.bf16.msra.mxu1 %v16762_v13  ;;  %11823 = vmatprep.subr.bf16.mxu0 %v16767_v14  ;;  %v16819_v13 = vld [vmem:[#allocation7 + $0x1400] ss:$20 sps:$4 sm:$0xff]   ;;  %v16822_v14 = vld [vmem:[#allocation7 + $0x1408] ss:$20 sps:$4 sm:$0xff]  }
 0x547   :  { %12253 = vmatprep.subr.bf16.mxu1 %v16770_v16  ;;  %v16827_v16 = vld [vmem:[#allocation7 + $0x142c] ss:$20 sps:$4 sm:$0xff]  }
 0x549   :  { %11824 = vmatpush1.bf16.msra.mxu0 %v16765_v17  ;;  %v16830_v17 = vld [vmem:[#allocation7 + $0x1434] ss:$20 sps:$4 sm:$0xff]  }
 0x54a   :  { %12254 = vmatpush1.bf16.msra.mxu1 %v16768_v20  ;;  %11825 = vmatprep.subr.bf16.mxu0 %v16773_v21  ;;  %v16825_v20 = vld [vmem:[#allocation7 + $0x1428] ss:$20 sps:$4 sm:$0xff]   ;;  %v16828_v21 = vld [vmem:[#allocation7 + $0x1430] ss:$20 sps:$4 sm:$0xff]  }
 0x54b   :  { %12255 = vmatprep.subr.bf16.mxu1 %v16776_v22  ;;  %v16833_v22 = vld [vmem:[#allocation7 + $0x1454] ss:$20 sps:$4 sm:$0xff]  }
 0x54d   :  { %11826 = vmatpush1.bf16.msra.mxu0 %v16771_v25  ;;  %v16836_v25 = vld [vmem:[#allocation7 + $0x145c] ss:$20 sps:$4 sm:$0xff]  }
 0x54e   :  { %12256 = vmatpush1.bf16.msra.mxu1 %v16774_v26  ;;  %11827 = vmatprep.subr.bf16.mxu0 %v16779_v27  ;;  %v16831_v26 = vld [vmem:[#allocation7 + $0x1450] ss:$20 sps:$4 sm:$0xff]   ;;  %v16834_v27 = vld [vmem:[#allocation7 + $0x1458] ss:$20 sps:$4 sm:$0xff]  }
 0x54f   :  { %12257 = vmatprep.subr.bf16.mxu1 %v16782_v28  ;;  %v16839_v28 = vld [vmem:[#allocation7 + $0x147c] ss:$20 sps:$4 sm:$0xff]  }
 0x551   :  { %11828 = vmatpush1.bf16.msra.mxu0 %v16777_v29  ;;  %v16842_v29 = vld [vmem:[#allocation7 + $0x1484] ss:$20 sps:$4 sm:$0xff]  }
 0x552   :  { %12258 = vmatpush1.bf16.msra.mxu1 %v16780_v30  ;;  %11829 = vmatprep.subr.bf16.mxu0 %v16785_v31  ;;  %v16837_v30 = vld [vmem:[#allocation7 + $0x1478] ss:$20 sps:$4 sm:$0xff]   ;;  %v16840_v31 = vld [vmem:[#allocation7 + $0x1480] ss:$20 sps:$4 sm:$0xff]  }
 0x553   :  { %12259 = vmatprep.subr.bf16.mxu1 %v16788_v32  ;;  %v16845_v32 = vld [vmem:[#allocation7 + $0x14a4] ss:$20 sps:$4 sm:$0xff]  }
 0x555   :  { %11830 = vmatpush1.bf16.msra.mxu0 %v16783_v35  ;;  %v16848_v35 = vld [vmem:[#allocation7 + $0x14ac] ss:$20 sps:$4 sm:$0xff]  }
 0x556   :  { %12260 = vmatpush1.bf16.msra.mxu1 %v16786_v36  ;;  %11831 = vmatprep.subr.bf16.mxu0 %v16791_v39  ;;  %v16843_v36 = vld [vmem:[#allocation7 + $0x14a0] ss:$20 sps:$4 sm:$0xff]   ;;  %v16846_v39 = vld [vmem:[#allocation7 + $0x14a8] ss:$20 sps:$4 sm:$0xff]  }
 0x557   :  { %12261 = vmatprep.subr.bf16.mxu1 %v16794_v40  ;;  %v16851_v40 = vld [vmem:[#allocation7 + $0x14cc] ss:$20 sps:$4 sm:$0xff]  }
 0x559   :  { %11832 = vmatpush1.bf16.msra.mxu0 %v16789_v43  ;;  %v16854_v43 = vld [vmem:[#allocation7 + $0x14d4] ss:$20 sps:$4 sm:$0xff]  }
 0x55a   :  { %12262 = vmatpush1.bf16.msra.mxu1 %v16792_v46  ;;  %11833 = vmatprep.subr.bf16.mxu0 %v16797_v50  ;;  %v16849_v46 = vld [vmem:[#allocation7 + $0x14c8] ss:$20 sps:$4 sm:$0xff]   ;;  %v16852_v50 = vld [vmem:[#allocation7 + $0x14d0] ss:$20 sps:$4 sm:$0xff]  }
 0x55b   :  { %12263 = vmatprep.subr.bf16.mxu1 %v16800_v42  ;;  %v16857_v42 = vld [vmem:[#allocation7 + $0x14f4] ss:$20 sps:$4 sm:$0xff]  }
 0x55d   :  { %11834 = vmatpush1.bf16.msra.mxu0 %v16795_v47  ;;  %v16860_v47 = vld [vmem:[#allocation7 + $0x14fc] ss:$20 sps:$4 sm:$0xff]  }
 0x55e   :  { %12264 = vmatpush1.bf16.msra.mxu1 %v16798_v44  ;;  %11835 = vmatprep.subr.bf16.mxu0 %v16803_v62  ;;  %v16855_v44 = vld [vmem:[#allocation7 + $0x14f0] ss:$20 sps:$4 sm:$0xff]   ;;  %v16858_v62 = vld [vmem:[#allocation7 + $0x14f8] ss:$20 sps:$4 sm:$0xff]  }
 0x55f   :  { %12265 = vmatprep.subr.bf16.mxu1 %v16806_v45  ;;  %v16863_v45 = vld [vmem:[#allocation7 + $0x151c] ss:$20 sps:$4 sm:$0xff]  }
 0x561   :  { %11836 = vmatpush1.bf16.msra.mxu0 %v16801_v61  ;;  %v16866_v61 = vld [vmem:[#allocation7 + $0x1524] ss:$20 sps:$4 sm:$0xff]  }
 0x562   :  { %12266 = vmatpush1.bf16.msra.mxu1 %v16804_v15  ;;  %11837 = vmatprep.subr.bf16.mxu0 %v16809_v63  ;;  %v16861_v15 = vld [vmem:[#allocation7 + $0x1518] ss:$20 sps:$4 sm:$0xff]   ;;  %v16864_v63 = vld [vmem:[#allocation7 + $0x1520] ss:$20 sps:$4 sm:$0xff]  }
 0x563   :  { %12267 = vmatprep.subr.bf16.mxu1 %v16812_v0  ;;  %v16869_v0 = vld [vmem:[#allocation7 + $0x1544] ss:$20 sps:$4 sm:$0xff]  }
 0x565   :  { %11838 = vmatpush1.bf16.msra.mxu0 %v16807_v1  ;;  %v16872_v1 = vld [vmem:[#allocation7 + $0x154c] ss:$20 sps:$4 sm:$0xff]  }
 0x566   :  { %12268 = vmatpush1.bf16.msra.mxu1 %v16810_v2  ;;  %11839 = vmatprep.subr.bf16.mxu0 %v16815_v3  ;;  %v16867_v2 = vld [vmem:[#allocation7 + $0x1540] ss:$20 sps:$4 sm:$0xff]   ;;  %v16870_v3 = vld [vmem:[#allocation7 + $0x1548] ss:$20 sps:$4 sm:$0xff]  }
 0x567   :  { %12269 = vmatprep.subr.bf16.mxu1 %v16818_v6  ;;  %v16875_v6 = vld [vmem:[#allocation7 + $0x156c] ss:$20 sps:$4 sm:$0xff]  }
 0x569   :  { %11840 = vmatpush1.bf16.msra.mxu0 %v16813_v7  ;;  %v16878_v7 = vld [vmem:[#allocation7 + $0x1574] ss:$20 sps:$4 sm:$0xff]  }
 0x56a   :  { %12270 = vmatpush1.bf16.msra.mxu1 %v16816_v10  ;;  %11852 = vmatprep.subr.bf16.mxu0 %v16821_v11  ;;  %v16873_v10 = vld [vmem:[#allocation7 + $0x1568] ss:$20 sps:$4 sm:$0xff]   ;;  %v16876_v11 = vld [vmem:[#allocation7 + $0x1570] ss:$20 sps:$4 sm:$0xff]  }
 0x56b   :  { %12282 = vmatprep.subr.bf16.mxu1 %v16824_v12  ;;  %v16881_v12 = vld [vmem:[#allocation7 + $0x1594] ss:$20 sps:$4 sm:$0xff]  }
 0x56c   :  { %11842 = vmatmul.mubr.bf16.vlgmr.msra.gmra.mrb[20].mxu0 %v17565_v19 }
 0x56d   :  { %12272 = vmatmul.mubr.bf16.vlgmr.msra.gmra.mrb[20].mxu1 %v17565_v19  ;;  %11853 = vmatpush1.bf16.msra.mxu0 %v16819_v13  ;;  %v16884_v13 = vld [vmem:[#allocation7 + $0x159c] ss:$20 sps:$4 sm:$0xff]  }
 0x56e   :  { %11884 = vmatprep.mubr.bf16.mxu0 %v17591_v51  ;;  %12283 = vmatpush1.bf16.msra.mxu1 %v16822_v14  ;;  %v16879_v14 = vld [vmem:[#allocation7 + $0x1590] ss:$20 sps:$4 sm:$0xff]  }
 0x56f   :  { %12314 = vmatprep.mubr.bf16.mxu1 %v17591_v51  ;;  %11854 = vmatprep.subr.bf16.mxu0 %v16827_v16  ;;  %v16882_v16 = vld [vmem:[#allocation7 + $0x1598] ss:$20 sps:$4 sm:$0xff]  }
 0x570   :  { %12284 = vmatprep.subr.bf16.mxu1 %v16830_v17  ;;  %v16887_v17 = vld [vmem:[#allocation7 + $0x15bc] ss:$20 sps:$4 sm:$0xff]  }
 0x571   :  { %11855 = vmatpush1.bf16.msra.mxu0 %v16825_v20  ;;  %v16890_v20 = vld [vmem:[#allocation7 + $0x15c4] ss:$20 sps:$4 sm:$0xff]  }
 0x572   :  { %12285 = vmatpush1.bf16.msra.mxu1 %v16828_v21  ;;  %11856 = vmatprep.subr.bf16.mxu0 %v16833_v22  ;;  %v16885_v21 = vld [vmem:[#allocation7 + $0x15b8] ss:$20 sps:$4 sm:$0xff]   ;;  %v16888_v22 = vld [vmem:[#allocation7 + $0x15c0] ss:$20 sps:$4 sm:$0xff]  }
 0x573   :  { %12286 = vmatprep.subr.bf16.mxu1 %v16836_v25  ;;  %v16893_v25 = vld [vmem:[#allocation7 + $0x15e4] ss:$20 sps:$4 sm:$0xff]  }
 0x575   :  { %11857 = vmatpush1.bf16.msra.mxu0 %v16831_v26  ;;  %v16896_v26 = vld [vmem:[#allocation7 + $0x15ec] ss:$20 sps:$4 sm:$0xff]  }
 0x576   :  { %12287 = vmatpush1.bf16.msra.mxu1 %v16834_v27  ;;  %11858 = vmatprep.subr.bf16.mxu0 %v16839_v28  ;;  %v16891_v27 = vld [vmem:[#allocation7 + $0x15e0] ss:$20 sps:$4 sm:$0xff]   ;;  %v16894_v28 = vld [vmem:[#allocation7 + $0x15e8] ss:$20 sps:$4 sm:$0xff]  }
 0x577   :  { %12288 = vmatprep.subr.bf16.mxu1 %v16842_v29  ;;  %v16899_v29 = vld [vmem:[#allocation7 + $0x160c] ss:$20 sps:$4 sm:$0xff]  }
 0x579   :  { %11859 = vmatpush1.bf16.msra.mxu0 %v16837_v30  ;;  %v16902_v30 = vld [vmem:[#allocation7 + $0x1614] ss:$20 sps:$4 sm:$0xff]  }
 0x57a   :  { %12289 = vmatpush1.bf16.msra.mxu1 %v16840_v31  ;;  %11860 = vmatprep.subr.bf16.mxu0 %v16845_v32  ;;  %v16897_v31 = vld [vmem:[#allocation7 + $0x1608] ss:$20 sps:$4 sm:$0xff]   ;;  %v16900_v32 = vld [vmem:[#allocation7 + $0x1610] ss:$20 sps:$4 sm:$0xff]  }
 0x57b   :  { %12290 = vmatprep.subr.bf16.mxu1 %v16848_v35  ;;  %v16905_v35 = vld [vmem:[#allocation7 + $0x1634] ss:$20 sps:$4 sm:$0xff]  }
 0x57d   :  { %11861 = vmatpush1.bf16.msra.mxu0 %v16843_v36  ;;  %v16908_v36 = vld [vmem:[#allocation7 + $0x163c] ss:$20 sps:$4 sm:$0xff]  }
 0x57e   :  { %12291 = vmatpush1.bf16.msra.mxu1 %v16846_v39  ;;  %11862 = vmatprep.subr.bf16.mxu0 %v16851_v40  ;;  %v16903_v39 = vld [vmem:[#allocation7 + $0x1630] ss:$20 sps:$4 sm:$0xff]   ;;  %v16906_v40 = vld [vmem:[#allocation7 + $0x1638] ss:$20 sps:$4 sm:$0xff]  }
 0x57f   :  { %12292 = vmatprep.subr.bf16.mxu1 %v16854_v43  ;;  %v16911_v43 = vld [vmem:[#allocation7 + $0x165c] ss:$20 sps:$4 sm:$0xff]  }
 0x581   :  { %11863 = vmatpush1.bf16.msra.mxu0 %v16849_v46  ;;  %v16914_v46 = vld [vmem:[#allocation7 + $0x1664] ss:$20 sps:$4 sm:$0xff]  }
 0x582   :  { %12293 = vmatpush1.bf16.msra.mxu1 %v16852_v50  ;;  %11864 = vmatprep.subr.bf16.mxu0 %v16857_v42  ;;  %v16909_v50 = vld [vmem:[#allocation7 + $0x1658] ss:$20 sps:$4 sm:$0xff]   ;;  %v16912_v42 = vld [vmem:[#allocation7 + $0x1660] ss:$20 sps:$4 sm:$0xff]  }
 0x583   :  { %12294 = vmatprep.subr.bf16.mxu1 %v16860_v47  ;;  %v16917_v47 = vld [vmem:[#allocation7 + $0x1684] ss:$20 sps:$4 sm:$0xff]  }
 0x585   :  { %11865 = vmatpush1.bf16.msra.mxu0 %v16855_v44  ;;  %v16920_v44 = vld [vmem:[#allocation7 + $0x168c] ss:$20 sps:$4 sm:$0xff]  }
 0x586   :  { %12295 = vmatpush1.bf16.msra.mxu1 %v16858_v62  ;;  %11866 = vmatprep.subr.bf16.mxu0 %v16863_v45  ;;  %v16915_v62 = vld [vmem:[#allocation7 + $0x1680] ss:$20 sps:$4 sm:$0xff]   ;;  %v16918_v45 = vld [vmem:[#allocation7 + $0x1688] ss:$20 sps:$4 sm:$0xff]  }
 0x587   :  { %12296 = vmatprep.subr.bf16.mxu1 %v16866_v61  ;;  %v16923_v61 = vld [vmem:[#allocation7 + $0x16ac] ss:$20 sps:$4 sm:$0xff]  }
 0x589   :  { %11867 = vmatpush1.bf16.msra.mxu0 %v16861_v15  ;;  %v16926_v15 = vld [vmem:[#allocation7 + $0x16b4] ss:$20 sps:$4 sm:$0xff]  }
 0x58a   :  { %12297 = vmatpush1.bf16.msra.mxu1 %v16864_v63  ;;  %11868 = vmatprep.subr.bf16.mxu0 %v16869_v0  ;;  %v16921_v63 = vld [vmem:[#allocation7 + $0x16a8] ss:$20 sps:$4 sm:$0xff]   ;;  %v16924_v0 = vld [vmem:[#allocation7 + $0x16b0] ss:$20 sps:$4 sm:$0xff]  }
 0x58b   :  { %12298 = vmatprep.subr.bf16.mxu1 %v16872_v1  ;;  %v16929_v1 = vld [vmem:[#allocation7 + $0x16d4] ss:$20 sps:$4 sm:$0xff]  }
 0x58d   :  { %11869 = vmatpush1.bf16.msra.mxu0 %v16867_v2  ;;  %v16932_v2 = vld [vmem:[#allocation7 + $0x16dc] ss:$20 sps:$4 sm:$0xff]  }
 0x58e   :  { %12299 = vmatpush1.bf16.msra.mxu1 %v16870_v3  ;;  %11870 = vmatprep.subr.bf16.mxu0 %v16875_v6  ;;  %v16927_v3 = vld [vmem:[#allocation7 + $0x16d0] ss:$20 sps:$4 sm:$0xff]   ;;  %v16930_v6 = vld [vmem:[#allocation7 + $0x16d8] ss:$20 sps:$4 sm:$0xff]  }
 0x58f   :  { %12300 = vmatprep.subr.bf16.mxu1 %v16878_v7  ;;  %v16935_v7 = vld [vmem:[#allocation7 + $0x16fc] ss:$20 sps:$4 sm:$0xff]  }
 0x591   :  { %11871 = vmatpush1.bf16.msra.mxu0 %v16873_v10  ;;  %v16938_v10 = vld [vmem:[#allocation7 + $0x1704] ss:$20 sps:$4 sm:$0xff]  }
 0x592   :  { %12301 = vmatpush1.bf16.msra.mxu1 %v16876_v11  ;;  %11872 = vmatprep.subr.bf16.mxu0 %v16881_v12  ;;  %v16933_v11 = vld [vmem:[#allocation7 + $0x16f8] ss:$20 sps:$4 sm:$0xff]   ;;  %v16936_v12 = vld [vmem:[#allocation7 + $0x1700] ss:$20 sps:$4 sm:$0xff]  }
 0x593   :  { %12302 = vmatprep.subr.bf16.mxu1 %v16884_v13  ;;  %v16941_v13 = vld [vmem:[#allocation7 + $0x1724] ss:$20 sps:$4 sm:$0xff]  }
 0x595   :  { %11873 = vmatpush1.bf16.msra.mxu0 %v16879_v14  ;;  %v16944_v14 = vld [vmem:[#allocation7 + $0x172c] ss:$20 sps:$4 sm:$0xff]  }
 0x596   :  { %12303 = vmatpush1.bf16.msra.mxu1 %v16882_v16  ;;  %11874 = vmatprep.subr.bf16.mxu0 %v16887_v17  ;;  %v16939_v16 = vld [vmem:[#allocation7 + $0x1720] ss:$20 sps:$4 sm:$0xff]   ;;  %v16942_v17 = vld [vmem:[#allocation7 + $0x1728] ss:$20 sps:$4 sm:$0xff]  }
 0x597   :  { %12304 = vmatprep.subr.bf16.mxu1 %v16890_v20  ;;  %v16947_v20 = vld [vmem:[#allocation7 + $0x174c] ss:$20 sps:$4 sm:$0xff]  }
 0x599   :  { %11875 = vmatpush1.bf16.msra.mxu0 %v16885_v21  ;;  %v16950_v21 = vld [vmem:[#allocation7 + $0x1754] ss:$20 sps:$4 sm:$0xff]  }
 0x59a   :  { %12305 = vmatpush1.bf16.msra.mxu1 %v16888_v22  ;;  %11876 = vmatprep.subr.bf16.mxu0 %v16893_v25  ;;  %v16945_v22 = vld [vmem:[#allocation7 + $0x1748] ss:$20 sps:$4 sm:$0xff]   ;;  %v16948_v25 = vld [vmem:[#allocation7 + $0x1750] ss:$20 sps:$4 sm:$0xff]  }
 0x59b   :  { %12306 = vmatprep.subr.bf16.mxu1 %v16896_v26  ;;  %v16953_v26 = vld [vmem:[#allocation7 + $0x1774] ss:$20 sps:$4 sm:$0xff]  }
 0x59d   :  { %11877 = vmatpush1.bf16.msra.mxu0 %v16891_v27  ;;  %v16956_v27 = vld [vmem:[#allocation7 + $0x177c] ss:$20 sps:$4 sm:$0xff]  }
 0x59e   :  { %12307 = vmatpush1.bf16.msra.mxu1 %v16894_v28  ;;  %11878 = vmatprep.subr.bf16.mxu0 %v16899_v29  ;;  %v16951_v28 = vld [vmem:[#allocation7 + $0x1770] ss:$20 sps:$4 sm:$0xff]   ;;  %v16954_v29 = vld [vmem:[#allocation7 + $0x1778] ss:$20 sps:$4 sm:$0xff]  }
 0x59f   :  { %12308 = vmatprep.subr.bf16.mxu1 %v16902_v30  ;;  %v16959_v30 = vld [vmem:[#allocation7 + $0x179c] ss:$20 sps:$4 sm:$0xff]  }
 0x5a1   :  { %11879 = vmatpush1.bf16.msra.mxu0 %v16897_v31  ;;  %v16962_v31 = vld [vmem:[#allocation7 + $0x17a4] ss:$20 sps:$4 sm:$0xff]  }
 0x5a2   :  { %12309 = vmatpush1.bf16.msra.mxu1 %v16900_v32  ;;  %11880 = vmatprep.subr.bf16.mxu0 %v16905_v35  ;;  %v16957_v32 = vld [vmem:[#allocation7 + $0x1798] ss:$20 sps:$4 sm:$0xff]   ;;  %v16960_v35 = vld [vmem:[#allocation7 + $0x17a0] ss:$20 sps:$4 sm:$0xff]  }
 0x5a3   :  { %12310 = vmatprep.subr.bf16.mxu1 %v16908_v36  ;;  %v16965_v36 = vld [vmem:[#allocation7 + $0x17c4] ss:$20 sps:$4 sm:$0xff]  }
 0x5a5   :  { %11881 = vmatpush1.bf16.msra.mxu0 %v16903_v39  ;;  %v16968_v39 = vld [vmem:[#allocation7 + $0x17cc] ss:$20 sps:$4 sm:$0xff]  }
 0x5a6   :  { %12311 = vmatpush1.bf16.msra.mxu1 %v16906_v40  ;;  %11882 = vmatprep.subr.bf16.mxu0 %v16911_v43  ;;  %v16963_v40 = vld [vmem:[#allocation7 + $0x17c0] ss:$20 sps:$4 sm:$0xff]   ;;  %v16966_v43 = vld [vmem:[#allocation7 + $0x17c8] ss:$20 sps:$4 sm:$0xff]  }
 0x5a7   :  { %12312 = vmatprep.subr.bf16.mxu1 %v16914_v46  ;;  %v16971_v46 = vld [vmem:[#allocation7 + $0x17ec] ss:$20 sps:$4 sm:$0xff]  }
 0x5a9   :  { %11883 = vmatpush1.bf16.msra.mxu0 %v16909_v50  ;;  %v16974_v50 = vld [vmem:[#allocation7 + $0x17f4] ss:$20 sps:$4 sm:$0xff]  }
 0x5aa   :  { %12313 = vmatpush1.bf16.msra.mxu1 %v16912_v42  ;;  %11895 = vmatprep.subr.bf16.mxu0 %v16917_v47  ;;  %v16969_v42 = vld [vmem:[#allocation7 + $0x17e8] ss:$20 sps:$4 sm:$0xff]   ;;  %v16972_v47 = vld [vmem:[#allocation7 + $0x17f0] ss:$20 sps:$4 sm:$0xff]  }
 0x5ab   :  { %12325 = vmatprep.subr.bf16.mxu1 %v16920_v44  ;;  %v16977_v44 = vld [vmem:[#allocation7 + $0x1814] ss:$20 sps:$4 sm:$0xff]  }
 0x5ac   :  { %11885 = vmatmul.mubr.bf16.vlgmr.msra.gmra.mrb[20].mxu0 %v17587_v48 }
 0x5ad   :  { %12315 = vmatmul.mubr.bf16.vlgmr.msra.gmra.mrb[20].mxu1 %v17587_v48  ;;  %11896 = vmatpush1.bf16.msra.mxu0 %v16915_v62  ;;  %v16980_v62 = vld [vmem:[#allocation7 + $0x181c] ss:$20 sps:$4 sm:$0xff]  }
 0x5ae   :  { %11927 = vmatprep.mubr.bf16.mxu0 %v17593_v58  ;;  %12326 = vmatpush1.bf16.msra.mxu1 %v16918_v45  ;;  %v16975_v45 = vld [vmem:[#allocation7 + $0x1810] ss:$20 sps:$4 sm:$0xff]  }
 0x5af   :  { %12357 = vmatprep.mubr.bf16.mxu1 %v17593_v58  ;;  %11897 = vmatprep.subr.bf16.mxu0 %v16923_v61  ;;  %v16978_v61 = vld [vmem:[#allocation7 + $0x1818] ss:$20 sps:$4 sm:$0xff]  }
 0x5b0   :  { %12327 = vmatprep.subr.bf16.mxu1 %v16926_v15  ;;  %v16983_v15 = vld [vmem:[#allocation7 + $0x183c] ss:$20 sps:$4 sm:$0xff]  }
 0x5b1   :  { %11898 = vmatpush1.bf16.msra.mxu0 %v16921_v63  ;;  %v16986_v63 = vld [vmem:[#allocation7 + $0x1844] ss:$20 sps:$4 sm:$0xff]  }
 0x5b2   :  { %12328 = vmatpush1.bf16.msra.mxu1 %v16924_v0  ;;  %11899 = vmatprep.subr.bf16.mxu0 %v16929_v1  ;;  %v16981_v0 = vld [vmem:[#allocation7 + $0x1838] ss:$20 sps:$4 sm:$0xff]   ;;  %v16984_v1 = vld [vmem:[#allocation7 + $0x1840] ss:$20 sps:$4 sm:$0xff]  }
 0x5b3   :  { %12329 = vmatprep.subr.bf16.mxu1 %v16932_v2  ;;  %v16989_v2 = vld [vmem:[#allocation7 + $0x1864] ss:$20 sps:$4 sm:$0xff]  }
 0x5b5   :  { %11900 = vmatpush1.bf16.msra.mxu0 %v16927_v3  ;;  %v16992_v3 = vld [vmem:[#allocation7 + $0x186c] ss:$20 sps:$4 sm:$0xff]  }
 0x5b6   :  { %12330 = vmatpush1.bf16.msra.mxu1 %v16930_v6  ;;  %11901 = vmatprep.subr.bf16.mxu0 %v16935_v7  ;;  %v16987_v6 = vld [vmem:[#allocation7 + $0x1860] ss:$20 sps:$4 sm:$0xff]   ;;  %v16990_v7 = vld [vmem:[#allocation7 + $0x1868] ss:$20 sps:$4 sm:$0xff]  }
 0x5b7   :  { %12331 = vmatprep.subr.bf16.mxu1 %v16938_v10  ;;  %v16995_v10 = vld [vmem:[#allocation7 + $0x188c] ss:$20 sps:$4 sm:$0xff]  }
 0x5b9   :  { %11902 = vmatpush1.bf16.msra.mxu0 %v16933_v11  ;;  %v16998_v11 = vld [vmem:[#allocation7 + $0x1894] ss:$20 sps:$4 sm:$0xff]  }
 0x5ba   :  { %12332 = vmatpush1.bf16.msra.mxu1 %v16936_v12  ;;  %11903 = vmatprep.subr.bf16.mxu0 %v16941_v13  ;;  %v16993_v12 = vld [vmem:[#allocation7 + $0x1888] ss:$20 sps:$4 sm:$0xff]   ;;  %v16996_v13 = vld [vmem:[#allocation7 + $0x1890] ss:$20 sps:$4 sm:$0xff]  }
 0x5bb   :  { %12333 = vmatprep.subr.bf16.mxu1 %v16944_v14  ;;  %v17001_v14 = vld [vmem:[#allocation7 + $0x18b4] ss:$20 sps:$4 sm:$0xff]  }
 0x5bd   :  { %11904 = vmatpush1.bf16.msra.mxu0 %v16939_v16  ;;  %v17004_v16 = vld [vmem:[#allocation7 + $0x18bc] ss:$20 sps:$4 sm:$0xff]  }
 0x5be   :  { %12334 = vmatpush1.bf16.msra.mxu1 %v16942_v17  ;;  %11905 = vmatprep.subr.bf16.mxu0 %v16947_v20  ;;  %v16999_v17 = vld [vmem:[#allocation7 + $0x18b0] ss:$20 sps:$4 sm:$0xff]   ;;  %v17002_v20 = vld [vmem:[#allocation7 + $0x18b8] ss:$20 sps:$4 sm:$0xff]  }
 0x5bf   :  { %12335 = vmatprep.subr.bf16.mxu1 %v16950_v21  ;;  %v17007_v21 = vld [vmem:[#allocation7 + $0x18dc] ss:$20 sps:$4 sm:$0xff]  }
 0x5c1   :  { %11906 = vmatpush1.bf16.msra.mxu0 %v16945_v22  ;;  %v17010_v22 = vld [vmem:[#allocation7 + $0x18e4] ss:$20 sps:$4 sm:$0xff]  }
 0x5c2   :  { %12336 = vmatpush1.bf16.msra.mxu1 %v16948_v25  ;;  %11907 = vmatprep.subr.bf16.mxu0 %v16953_v26  ;;  %v17005_v25 = vld [vmem:[#allocation7 + $0x18d8] ss:$20 sps:$4 sm:$0xff]   ;;  %v17008_v26 = vld [vmem:[#allocation7 + $0x18e0] ss:$20 sps:$4 sm:$0xff]  }
 0x5c3   :  { %12337 = vmatprep.subr.bf16.mxu1 %v16956_v27  ;;  %v17011_v27 = vld [vmem:[#allocation7 + $0x150] ss:$20 sps:$4 sm:$0xff]  }
 0x5c5   :  { %11908 = vmatpush1.bf16.msra.mxu0 %v16951_v28  ;;  %v17012_v28 = vld [vmem:[#allocation7 + $0x3d0] ss:$20 sps:$4 sm:$0xff]  }
 0x5c6   :  { %12338 = vmatpush1.bf16.msra.mxu1 %v16954_v29  ;;  %11909 = vmatprep.subr.bf16.mxu0 %v16959_v30  ;;  %v17013_v29 = vld [vmem:[#allocation7 + $0x10] ss:$20 sps:$4 sm:$0xff]  }
 0x5c7   :  { %12339 = vmatprep.subr.bf16.mxu1 %v16962_v31  ;;  %v17014_v30 = vld [vmem:[#allocation7 + $0x290] ss:$20 sps:$4 sm:$0xff]   ;;  %v17015_v31 = vld [vmem:[#allocation7 + $0x178] ss:$20 sps:$4 sm:$0xff]  }
 0x5c9   :  { %11910 = vmatpush1.bf16.msra.mxu0 %v16957_v32  ;;  %v17016_v32 = vld [vmem:[#allocation7 + $0x3f8] ss:$20 sps:$4 sm:$0xff]  }
 0x5ca   :  { %12340 = vmatpush1.bf16.msra.mxu1 %v16960_v35  ;;  %11911 = vmatprep.subr.bf16.mxu0 %v16965_v36  ;;  %v17017_v35 = vld [vmem:[#allocation7 + $0x38] ss:$20 sps:$4 sm:$0xff]  }
 0x5cb   :  { %12341 = vmatprep.subr.bf16.mxu1 %v16968_v39  ;;  %v17018_v36 = vld [vmem:[#allocation7 + $0x2b8] ss:$20 sps:$4 sm:$0xff]   ;;  %v17019_v39 = vld [vmem:[#allocation7 + $0x1a0] ss:$20 sps:$4 sm:$0xff]  }
 0x5cd   :  { %11912 = vmatpush1.bf16.msra.mxu0 %v16963_v40  ;;  %v17020_v40 = vld [vmem:[#allocation7 + $0x420] ss:$20 sps:$4 sm:$0xff]  }
 0x5ce   :  { %12342 = vmatpush1.bf16.msra.mxu1 %v16966_v43  ;;  %11913 = vmatprep.subr.bf16.mxu0 %v16971_v46  ;;  %v17021_v43 = vld [vmem:[#allocation7 + $0x60] ss:$20 sps:$4 sm:$0xff]  }
 0x5cf   :  { %12343 = vmatprep.subr.bf16.mxu1 %v16974_v50  ;;  %v17022_v46 = vld [vmem:[#allocation7 + $0x2e0] ss:$20 sps:$4 sm:$0xff]   ;;  %v17023_v50 = vld [vmem:[#allocation7 + $0x1c8] ss:$20 sps:$4 sm:$0xff]  }
 0x5d1   :  { %11914 = vmatpush1.bf16.msra.mxu0 %v16969_v42  ;;  %v17024_v42 = vld [vmem:[#allocation7 + $0x448] ss:$20 sps:$4 sm:$0xff]  }
 0x5d2   :  { %12344 = vmatpush1.bf16.msra.mxu1 %v16972_v47  ;;  %11915 = vmatprep.subr.bf16.mxu0 %v16977_v44  ;;  %v17025_v47 = vld [vmem:[#allocation7 + $0x88] ss:$20 sps:$4 sm:$0xff]   ;;  %v17027_v44 = vld [vmem:[#allocation7 + $0x1f0] ss:$20 sps:$4 sm:$0xff]  }
 0x5d3   :  { %12345 = vmatprep.subr.bf16.mxu1 %v16980_v62  ;;  %v17028_v62 = vld [vmem:[#allocation7 + $0x470] ss:$20 sps:$4 sm:$0xff]  }
 0x5d5   :  { %11916 = vmatpush1.bf16.msra.mxu0 %v16975_v45  ;;  %v17030_v45 = vld [vmem:[#allocation7 + $0x330] ss:$20 sps:$4 sm:$0xff]  }
 0x5d6   :  { %12346 = vmatpush1.bf16.msra.mxu1 %v16978_v61  ;;  %11917 = vmatprep.subr.bf16.mxu0 %v16983_v15  ;;  %v17031_v61 = vld [vmem:[#allocation7 + $0x218] ss:$20 sps:$4 sm:$0xff]  }
 0x5d7   :  { %12347 = vmatprep.subr.bf16.mxu1 %v16986_v63  ;;  %v17032_v15 = vld [vmem:[#allocation7 + $0x498] ss:$20 sps:$4 sm:$0xff]  }
 0x5d8   :  { %v17033_v63 = vld [vmem:[#allocation7 + $0xd8] ss:$20 sps:$4 sm:$0xff]  }
 0x5d9   :  { %11918 = vmatpush1.bf16.msra.mxu0 %v16981_v0  ;;  %v17034_v0 = vld [vmem:[#allocation7 + $0x358] ss:$20 sps:$4 sm:$0xff]  }
 0x5da   :  { %12348 = vmatpush1.bf16.msra.mxu1 %v16984_v1  ;;  %11919 = vmatprep.subr.bf16.mxu0 %v16989_v2  ;;  %v17035_v1 = vld [vmem:[#allocation7 + $0x240] ss:$20 sps:$4 sm:$0xff]  }
 0x5db   :  { %12349 = vmatprep.subr.bf16.mxu1 %v16992_v3  ;;  %v17036_v2 = vld [vmem:[#allocation7 + $0x4c0] ss:$20 sps:$4 sm:$0xff]  }
 0x5dc   :  { %v17037_v3 = vld [vmem:[#allocation7 + $0x100] ss:$20 sps:$4 sm:$0xff]  }
 0x5dd   :  { %11920 = vmatpush1.bf16.msra.mxu0 %v16987_v6  ;;  %v17038_v6 = vld [vmem:[#allocation7 + $0x380] ss:$20 sps:$4 sm:$0xff]  }
 0x5de   :  { %12350 = vmatpush1.bf16.msra.mxu1 %v16990_v7  ;;  %11921 = vmatprep.subr.bf16.mxu0 %v16995_v10  ;;  %v17039_v7 = vld [vmem:[#allocation7 + $0x268] ss:$20 sps:$4 sm:$0xff]  }
 0x5df   :  { %12351 = vmatprep.subr.bf16.mxu1 %v16998_v11  ;;  %v17040_v10 = vld [vmem:[#allocation7 + $0x4e8] ss:$20 sps:$4 sm:$0xff]  }
 0x5e0   :  { %v17041_v11 = vld [vmem:[#allocation7 + $0x128] ss:$20 sps:$4 sm:$0xff]  }
 0x5e1   :  { %11922 = vmatpush1.bf16.msra.mxu0 %v16993_v12  ;;  %v17042_v12 = vld [vmem:[#allocation7 + $0x3a8] ss:$20 sps:$4 sm:$0xff]  }
 0x5e2   :  { %12352 = vmatpush1.bf16.msra.mxu1 %v16996_v13  ;;  %11923 = vmatprep.subr.bf16.mxu0 %v17001_v14  ;;  %v17043_v13 = vld [vmem:[#allocation7 + $0x650] ss:$20 sps:$4 sm:$0xff]  }
 0x5e3   :  { %12353 = vmatprep.subr.bf16.mxu1 %v17004_v16  ;;  %v17044_v14 = vld [vmem:[#allocation7 + $0x8d0] ss:$20 sps:$4 sm:$0xff]  }
 0x5e4   :  { %v17045_v16 = vld [vmem:[#allocation7 + $0x510] ss:$20 sps:$4 sm:$0xff]  }
 0x5e5   :  { %11924 = vmatpush1.bf16.msra.mxu0 %v16999_v17  ;;  %v17046_v17 = vld [vmem:[#allocation7 + $0x790] ss:$20 sps:$4 sm:$0xff]  }
 0x5e6   :  { %12354 = vmatpush1.bf16.msra.mxu1 %v17002_v20  ;;  %11925 = vmatprep.subr.bf16.mxu0 %v17007_v21  ;;  %v17047_v20 = vld [vmem:[#allocation7 + $0x678] ss:$20 sps:$4 sm:$0xff]  }
 0x5e7   :  { %12355 = vmatprep.subr.bf16.mxu1 %v17010_v22  ;;  %v17048_v21 = vld [vmem:[#allocation7 + $0x8f8] ss:$20 sps:$4 sm:$0xff]  }
 0x5e8   :  { %v17049_v22 = vld [vmem:[#allocation7 + $0x538] ss:$20 sps:$4 sm:$0xff]  }
 0x5e9   :  { %11926 = vmatpush1.bf16.msra.mxu0 %v17005_v25  ;;  %v17050_v25 = vld [vmem:[#allocation7 + $0x7b8] ss:$20 sps:$4 sm:$0xff]  }
 0x5ea   :  { %12356 = vmatpush1.bf16.msra.mxu1 %v17008_v26  ;;  %14412 = vmatprep.subr.bf16.mxu0 %v17011_v27  ;;  %v17051_v26 = vld [vmem:[#allocation7 + $0x6a0] ss:$20 sps:$4 sm:$0xff]  }
 0x5eb   :  { %14434 = vmatprep.subr.bf16.mxu1 %v17012_v28  ;;  %v17052_v27 = vld [vmem:[#allocation7 + $0x920] ss:$20 sps:$4 sm:$0xff]  }
 0x5ec   :  { %11928 = vmatmul.mubr.bf16.vlgmr.msra.gmra.mrb[20].mxu0 %v17589_v49  ;;  %v17053_v28 = vld [vmem:[#allocation7 + $0x560] ss:$20 sps:$4 sm:$0xff]  }
 0x5ed   :  { %12358 = vmatmul.mubr.bf16.vlgmr.msra.gmra.mrb[20].mxu1 %v17589_v49  ;;  %14413 = vmatpush3.bf16.msra.mxu0 %v17013_v29  ;;  %v17055_v29 = vld [vmem:[#allocation7 + $0x6c8] ss:$20 sps:$4 sm:$0xff]  }
 0x5ee   :  { %12400 = vmatprep.mubr.bf16.mxu0 %v17469_v56  ;;  %14435 = vmatpush3.bf16.msra.mxu1 %v17014_v30  ;;  %v17026_v56 = vld [vmem:[#allocation7 + $0x308] ss:$20 sps:$4 sm:$0xff]  }
 0x5ef   :  { %12441 = vmatprep.mubr.bf16.mxu1 %v17471_v57  ;;  %14414 = vmatprep.subr.bf16.mxu0 %v17015_v31  ;;  %v17029_v57 = vld [vmem:[#allocation7 + $0xb0] ss:$20 sps:$4 sm:$0xff]   ;;  %v17057_v30 = vld [vmem:[#allocation7 + $0x588] ss:$20 sps:$4 sm:$0xff]  }
 0x5f0   :  { %14436 = vmatprep.subr.bf16.mxu1 %v17016_v32  ;;  %v17059_v31 = vld [vmem:[#allocation7 + $0x6f0] ss:$20 sps:$4 sm:$0xff]  }
 0x5f1   :  { %14415 = vmatpush3.bf16.msra.mxu0 %v17017_v35  ;;  %v17060_v32 = vld [vmem:[#allocation7 + $0x970] ss:$20 sps:$4 sm:$0xff]  }
 0x5f2   :  { %14437 = vmatpush3.bf16.msra.mxu1 %v17018_v36  ;;  %14416 = vmatprep.subr.bf16.mxu0 %v17019_v39  ;;  %v17062_v35 = vld [vmem:[#allocation7 + $0x830] ss:$20 sps:$4 sm:$0xff]   ;;  %v17063_v36 = vld [vmem:[#allocation7 + $0x718] ss:$20 sps:$4 sm:$0xff]  }
 0x5f3   :  { %14438 = vmatprep.subr.bf16.mxu1 %v17020_v40  ;;  %v17064_v39 = vld [vmem:[#allocation7 + $0x998] ss:$20 sps:$4 sm:$0xff]  }
 0x5f4   :  { %v17065_v40 = vld [vmem:[#allocation7 + $0x5d8] ss:$20 sps:$4 sm:$0xff]  }
 0x5f5   :  { %14417 = vmatpush3.bf16.msra.mxu0 %v17021_v43  ;;  %v17066_v43 = vld [vmem:[#allocation7 + $0x858] ss:$20 sps:$4 sm:$0xff]  }
 0x5f6   :  { %14439 = vmatpush3.bf16.msra.mxu1 %v17022_v46  ;;  %14418 = vmatprep.subr.bf16.mxu0 %v17023_v50  ;;  %v17067_v46 = vld [vmem:[#allocation7 + $0x740] ss:$20 sps:$4 sm:$0xff]  }
 0x5f7   :  { %14440 = vmatprep.subr.bf16.mxu1 %v17024_v42  ;;  %v17068_v50 = vld [vmem:[#allocation7 + $0x9c0] ss:$20 sps:$4 sm:$0xff]  }
 0x5f8   :  { %v17069_v42 = vld [vmem:[#allocation7 + $0x600] ss:$20 sps:$4 sm:$0xff]  }
 0x5f9   :  { %14419 = vmatpush3.bf16.msra.mxu0 %v17025_v47  ;;  %v17070_v47 = vld [vmem:[#allocation7 + $0x880] ss:$20 sps:$4 sm:$0xff]  }
 0x5fa   :  { %14441 = vmatpush3.bf16.msra.mxu1 %v17026_v56  ;;  %14420 = vmatprep.subr.bf16.mxu0 %v17027_v44  ;;  %v17071_v56 = vld [vmem:[#allocation7 + $0x768] ss:$20 sps:$4 sm:$0xff]  }
 0x5fb   :  { %14442 = vmatprep.subr.bf16.mxu1 %v17028_v62  ;;  %v17072_v44 = vld [vmem:[#allocation7 + $0x9e8] ss:$20 sps:$4 sm:$0xff]  }
 0x5fc   :  { %v17073_v62 = vld [vmem:[#allocation7 + $0x628] ss:$20 sps:$4 sm:$0xff]  }
 0x5fd   :  { %14421 = vmatpush3.bf16.msra.mxu0 %v17029_v57  ;;  %v17074_v57 = vld [vmem:[#allocation7 + $0x8a8] ss:$20 sps:$4 sm:$0xff]  }
 0x5fe   :  { %14443 = vmatpush3.bf16.msra.mxu1 %v17030_v45  ;;  %14422 = vmatprep.subr.bf16.mxu0 %v17031_v61  ;;  %v17075_v45 = vld [vmem:[#allocation7 + $0xb50] ss:$20 sps:$4 sm:$0xff]  }
 0x5ff   :  { %14444 = vmatprep.subr.bf16.mxu1 %v17032_v15  ;;  %v17076_v61 = vld [vmem:[#allocation7 + $0xdd0] ss:$20 sps:$4 sm:$0xff]  }
 0x600   :  { %v17077_v15 = vld [vmem:[#allocation7 + $0xa10] ss:$20 sps:$4 sm:$0xff]  }
 0x601   :  { %14423 = vmatpush3.bf16.msra.mxu0 %v17033_v63  ;;  %v17078_v63 = vld [vmem:[#allocation7 + $0xc90] ss:$20 sps:$4 sm:$0xff]  }
 0x602   :  { %14445 = vmatpush3.bf16.msra.mxu1 %v17034_v0  ;;  %14424 = vmatprep.subr.bf16.mxu0 %v17035_v1  ;;  %v17079_v0 = vld [vmem:[#allocation7 + $0xb78] ss:$20 sps:$4 sm:$0xff]  }
 0x603   :  { %14446 = vmatprep.subr.bf16.mxu1 %v17036_v2  ;;  %v17080_v1 = vld [vmem:[#allocation7 + $0xdf8] ss:$20 sps:$4 sm:$0xff]  }
 0x604   :  { %v17081_v2 = vld [vmem:[#allocation7 + $0xa38] ss:$20 sps:$4 sm:$0xff]  }
 0x605   :  { %14425 = vmatpush3.bf16.msra.mxu0 %v17037_v3  ;;  %v17082_v3 = vld [vmem:[#allocation7 + $0xcb8] ss:$20 sps:$4 sm:$0xff]  }
 0x606   :  { %14447 = vmatpush3.bf16.msra.mxu1 %v17038_v6  ;;  %14426 = vmatprep.subr.bf16.mxu0 %v17039_v7  ;;  %v17083_v6 = vld [vmem:[#allocation7 + $0xba0] ss:$20 sps:$4 sm:$0xff]  }
 0x607   :  { %14448 = vmatprep.subr.bf16.mxu1 %v17040_v10  ;;  %v17084_v7 = vld [vmem:[#allocation7 + $0xe20] ss:$20 sps:$4 sm:$0xff]  }
 0x608   :  { %v17085_v10 = vld [vmem:[#allocation7 + $0xa60] ss:$20 sps:$4 sm:$0xff]  }
 0x609   :  { %14427 = vmatpush3.bf16.msra.mxu0 %v17041_v11  ;;  %v17087_v11 = vld [vmem:[#allocation7 + $0xbc8] ss:$20 sps:$4 sm:$0xff]  }
 0x60a   :  { %14449 = vmatpush3.bf16.msra.mxu1 %v17042_v12  ;;  %14456 = vmatprep.subr.bf16.mxu0 %v17043_v13  ;;  %v17089_v12 = vld [vmem:[#allocation7 + $0xa88] ss:$20 sps:$4 sm:$0xff]   ;;  %v17091_v13 = vld [vmem:[#allocation7 + $0xbf0] ss:$20 sps:$4 sm:$0xff]  }
 0x60b   :  { %14478 = vmatprep.subr.bf16.mxu1 %v17044_v14  ;;  %v17092_v14 = vld [vmem:[#allocation7 + $0xe70] ss:$20 sps:$4 sm:$0xff]  }
 0x60c   :  { %12401 = vmatmul.mubr.bf16.vlgmr.msra.gmra.mrb[24].mxu0 %v17465_v52  ;;  %v17054_v52 = vld [vmem:[#allocation7 + $0x7e0] ss:$20 sps:$4 sm:$0xff]  }
 0x60d   :  { %12442 = vmatmul.mubr.bf16.vlgmr.msra.gmra.mrb[24].mxu1 %v17467_v53  ;;  %14457 = vmatpush3.bf16.msra.mxu0 %v17045_v16  ;;  %v17056_v53 = vld [vmem:[#allocation7 + $0x948] ss:$20 sps:$4 sm:$0xff]   ;;  %v17094_v16 = vld [vmem:[#allocation7 + $0xd30] ss:$20 sps:$4 sm:$0xff]  }
 0x60e   :  { %12482 = vmatprep.mubr.bf16.mxu0 %v17507_v37  ;;  %14479 = vmatpush3.bf16.msra.mxu1 %v17046_v17  ;;  %v17058_v37 = vld [vmem:[#allocation7 + $0x808] ss:$20 sps:$4 sm:$0xff]   ;;  %v17095_v17 = vld [vmem:[#allocation7 + $0xc18] ss:$20 sps:$4 sm:$0xff]  }
 0x60f   :  { %12523 = vmatprep.mubr.bf16.mxu1 %v17509_v38  ;;  %14458 = vmatprep.subr.bf16.mxu0 %v17047_v20  ;;  %v17061_v38 = vld [vmem:[#allocation7 + $0x5b0] ss:$20 sps:$4 sm:$0xff]   ;;  %v17096_v20 = vld [vmem:[#allocation7 + $0xe98] ss:$20 sps:$4 sm:$0xff]  }
 0x610   :  { %14480 = vmatprep.subr.bf16.mxu1 %v17048_v21  ;;  %v17097_v21 = vld [vmem:[#allocation7 + $0xad8] ss:$20 sps:$4 sm:$0xff]  }
 0x611   :  { %14459 = vmatpush3.bf16.msra.mxu0 %v17049_v22  ;;  %v17098_v22 = vld [vmem:[#allocation7 + $0xd58] ss:$20 sps:$4 sm:$0xff]  }
 0x612   :  { %14481 = vmatpush3.bf16.msra.mxu1 %v17050_v25  ;;  %14460 = vmatprep.subr.bf16.mxu0 %v17051_v26  ;;  %v17099_v25 = vld [vmem:[#allocation7 + $0xc40] ss:$20 sps:$4 sm:$0xff]  }
 0x613   :  { %14482 = vmatprep.subr.bf16.mxu1 %v17052_v27  ;;  %v17100_v26 = vld [vmem:[#allocation7 + $0xec0] ss:$20 sps:$4 sm:$0xff]  }
 0x614   :  { %v17101_v27 = vld [vmem:[#allocation7 + $0xb00] ss:$20 sps:$4 sm:$0xff]  }
 0x615   :  { %14461 = vmatpush3.bf16.msra.mxu0 %v17053_v28  ;;  %v17102_v28 = vld [vmem:[#allocation7 + $0xd80] ss:$20 sps:$4 sm:$0xff]  }
 0x616   :  { %14483 = vmatpush3.bf16.msra.mxu1 %v17054_v52  ;;  %14462 = vmatprep.subr.bf16.mxu0 %v17055_v29  ;;  %v17103_v52 = vld [vmem:[#allocation7 + $0xc68] ss:$20 sps:$4 sm:$0xff]  }
 0x617   :  { %14484 = vmatprep.subr.bf16.mxu1 %v17056_v53  ;;  %v17104_v29 = vld [vmem:[#allocation7 + $0xee8] ss:$20 sps:$4 sm:$0xff]  }
 0x618   :  { %v17105_v53 = vld [vmem:[#allocation7 + $0xb28] ss:$20 sps:$4 sm:$0xff]  }
 0x619   :  { %14463 = vmatpush3.bf16.msra.mxu0 %v17057_v30  ;;  %v17106_v30 = vld [vmem:[#allocation7 + $0xda8] ss:$20 sps:$4 sm:$0xff]  }
 0x61a   :  { %14485 = vmatpush3.bf16.msra.mxu1 %v17058_v37  ;;  %14464 = vmatprep.subr.bf16.mxu0 %v17059_v31  ;;  %v17107_v37 = vld [vmem:[#allocation7 + $0x1050] ss:$20 sps:$4 sm:$0xff]  }
 0x61b   :  { %14486 = vmatprep.subr.bf16.mxu1 %v17060_v32  ;;  %v17108_v31 = vld [vmem:[#allocation7 + $0x12d0] ss:$20 sps:$4 sm:$0xff]  }
 0x61c   :  { %v17109_v32 = vld [vmem:[#allocation7 + $0xf10] ss:$20 sps:$4 sm:$0xff]  }
 0x61d   :  { %14465 = vmatpush3.bf16.msra.mxu0 %v17061_v38  ;;  %v17110_v38 = vld [vmem:[#allocation7 + $0x1190] ss:$20 sps:$4 sm:$0xff]  }
 0x61e   :  { %14487 = vmatpush3.bf16.msra.mxu1 %v17062_v35  ;;  %14466 = vmatprep.subr.bf16.mxu0 %v17063_v36  ;;  %v17111_v35 = vld [vmem:[#allocation7 + $0x1078] ss:$20 sps:$4 sm:$0xff]  }
 0x61f   :  { %14488 = vmatprep.subr.bf16.mxu1 %v17064_v39  ;;  %v17112_v36 = vld [vmem:[#allocation7 + $0x12f8] ss:$20 sps:$4 sm:$0xff]  }
 0x620   :  { %v17113_v39 = vld [vmem:[#allocation7 + $0xf38] ss:$20 sps:$4 sm:$0xff]  }
 0x621   :  { %14467 = vmatpush3.bf16.msra.mxu0 %v17065_v40  ;;  %v17114_v40 = vld [vmem:[#allocation7 + $0x11b8] ss:$20 sps:$4 sm:$0xff]  }
 0x622   :  { %14489 = vmatpush3.bf16.msra.mxu1 %v17066_v43  ;;  %14468 = vmatprep.subr.bf16.mxu0 %v17067_v46  ;;  %v17115_v43 = vld [vmem:[#allocation7 + $0x10a0] ss:$20 sps:$4 sm:$0xff]  }
 0x623   :  { %14490 = vmatprep.subr.bf16.mxu1 %v17068_v50  ;;  %v17116_v46 = vld [vmem:[#allocation7 + $0x1320] ss:$20 sps:$4 sm:$0xff]  }
 0x624   :  { %v17117_v50 = vld [vmem:[#allocation7 + $0xf60] ss:$20 sps:$4 sm:$0xff]  }
 0x625   :  { %14469 = vmatpush3.bf16.msra.mxu0 %v17069_v42  ;;  %v17119_v42 = vld [vmem:[#allocation7 + $0x10c8] ss:$20 sps:$4 sm:$0xff]  }
 0x626   :  { %14491 = vmatpush3.bf16.msra.mxu1 %v17070_v47  ;;  %14470 = vmatprep.subr.bf16.mxu0 %v17071_v56  ;;  %v17121_v47 = vld [vmem:[#allocation7 + $0xf88] ss:$20 sps:$4 sm:$0xff]   ;;  %v17123_v56 = vld [vmem:[#allocation7 + $0x10f0] ss:$20 sps:$4 sm:$0xff]  }
 0x627   :  { %14492 = vmatprep.subr.bf16.mxu1 %v17072_v44  ;;  %v17124_v44 = vld [vmem:[#allocation7 + $0x1370] ss:$20 sps:$4 sm:$0xff]  }
 0x629   :  { %14471 = vmatpush3.bf16.msra.mxu0 %v17073_v62  ;;  %v17126_v62 = vld [vmem:[#allocation7 + $0x1230] ss:$20 sps:$4 sm:$0xff]  }
 0x62a   :  { %14493 = vmatpush3.bf16.msra.mxu1 %v17074_v57  ;;  %14500 = vmatprep.subr.bf16.mxu0 %v17075_v45  ;;  %v17127_v57 = vld [vmem:[#allocation7 + $0x1118] ss:$20 sps:$4 sm:$0xff]  }
 0x62b   :  { %14522 = vmatprep.subr.bf16.mxu1 %v17076_v61  ;;  %v17128_v45 = vld [vmem:[#allocation7 + $0x1398] ss:$20 sps:$4 sm:$0xff]  }
 0x62c   :  { %12483 = vmatmul.mubr.bf16.vlgmr.msra.gmra.mrb[28].mxu0 %v17503_v33  ;;  %v17086_v33 = vld [vmem:[#allocation7 + $0xce0] ss:$20 sps:$4 sm:$0xff]   ;;  %v17129_v61 = vld [vmem:[#allocation7 + $0xfd8] ss:$20 sps:$4 sm:$0xff]  }
 0x62d   :  { %12524 = vmatmul.mubr.bf16.vlgmr.msra.gmra.mrb[28].mxu1 %v17505_v34  ;;  %14501 = vmatpush3.bf16.msra.mxu0 %v17077_v15  ;;  %v17088_v34 = vld [vmem:[#allocation7 + $0xe48] ss:$20 sps:$4 sm:$0xff]   ;;  %v17130_v15 = vld [vmem:[#allocation7 + $0x1258] ss:$20 sps:$4 sm:$0xff]  }
 0x62e   :  { %12564 = vmatprep.mubr.bf16.mxu0 %v17536_v59  ;;  %14523 = vmatpush3.bf16.msra.mxu1 %v17078_v63  ;;  %v17090_v59 = vld [vmem:[#allocation7 + $0xd08] ss:$20 sps:$4 sm:$0xff]   ;;  %v17131_v63 = vld [vmem:[#allocation7 + $0x1140] ss:$20 sps:$4 sm:$0xff]  }
 0x62f   :  { %12605 = vmatprep.mubr.bf16.mxu1 %v17538_v60  ;;  %14502 = vmatprep.subr.bf16.mxu0 %v17079_v0  ;;  %v17093_v60 = vld [vmem:[#allocation7 + $0xab0] ss:$20 sps:$4 sm:$0xff]   ;;  %v17132_v0 = vld [vmem:[#allocation7 + $0x13c0] ss:$20 sps:$4 sm:$0xff]  }
 0x630   :  { %14524 = vmatprep.subr.bf16.mxu1 %v17080_v1  ;;  %v17133_v1 = vld [vmem:[#allocation7 + $0x1000] ss:$20 sps:$4 sm:$0xff]  }
 0x631   :  { %14503 = vmatpush3.bf16.msra.mxu0 %v17081_v2  ;;  %v17134_v2 = vld [vmem:[#allocation7 + $0x1280] ss:$20 sps:$4 sm:$0xff]  }
 0x632   :  { %14525 = vmatpush3.bf16.msra.mxu1 %v17082_v3  ;;  %14504 = vmatprep.subr.bf16.mxu0 %v17083_v6  ;;  %v17135_v3 = vld [vmem:[#allocation7 + $0x1168] ss:$20 sps:$4 sm:$0xff]  }
 0x633   :  { %14526 = vmatprep.subr.bf16.mxu1 %v17084_v7  ;;  %v17136_v6 = vld [vmem:[#allocation7 + $0x13e8] ss:$20 sps:$4 sm:$0xff]  }
 0x634   :  { %v17137_v7 = vld [vmem:[#allocation7 + $0x1028] ss:$20 sps:$4 sm:$0xff]  }
 0x635   :  { %14505 = vmatpush3.bf16.msra.mxu0 %v17085_v10  ;;  %v17138_v10 = vld [vmem:[#allocation7 + $0x12a8] ss:$20 sps:$4 sm:$0xff]  }
 0x636   :  { %14527 = vmatpush3.bf16.msra.mxu1 %v17086_v33  ;;  %14506 = vmatprep.subr.bf16.mxu0 %v17087_v11  ;;  %v17139_v33 = vld [vmem:[#allocation7 + $0x1550] ss:$20 sps:$4 sm:$0xff]  }
 0x637   :  { %14528 = vmatprep.subr.bf16.mxu1 %v17088_v34  ;;  %v17140_v11 = vld [vmem:[#allocation7 + $0x17d0] ss:$20 sps:$4 sm:$0xff]  }
 0x638   :  { %v17141_v34 = vld [vmem:[#allocation7 + $0x1410] ss:$20 sps:$4 sm:$0xff]  }
 0x639   :  { %14507 = vmatpush3.bf16.msra.mxu0 %v17089_v12  ;;  %v17142_v12 = vld [vmem:[#allocation7 + $0x1690] ss:$20 sps:$4 sm:$0xff]  }
 0x63a   :  { %14529 = vmatpush3.bf16.msra.mxu1 %v17090_v59  ;;  %14508 = vmatprep.subr.bf16.mxu0 %v17091_v13  ;;  %v17143_v59 = vld [vmem:[#allocation7 + $0x1578] ss:$20 sps:$4 sm:$0xff]  }
 0x63b   :  { %14530 = vmatprep.subr.bf16.mxu1 %v17092_v14  ;;  %v17144_v13 = vld [vmem:[#allocation7 + $0x17f8] ss:$20 sps:$4 sm:$0xff]  }
 0x63c   :  { %v17145_v14 = vld [vmem:[#allocation7 + $0x1438] ss:$20 sps:$4 sm:$0xff]  }
 0x63d   :  { %14509 = vmatpush3.bf16.msra.mxu0 %v17093_v60  ;;  %v17146_v60 = vld [vmem:[#allocation7 + $0x16b8] ss:$20 sps:$4 sm:$0xff]  }
 0x63e   :  { %14531 = vmatpush3.bf16.msra.mxu1 %v17094_v16  ;;  %14510 = vmatprep.subr.bf16.mxu0 %v17095_v17  ;;  %v17147_v16 = vld [vmem:[#allocation7 + $0x15a0] ss:$20 sps:$4 sm:$0xff]  }
 0x63f   :  { %14532 = vmatprep.subr.bf16.mxu1 %v17096_v20  ;;  %v17148_v17 = vld [vmem:[#allocation7 + $0x1820] ss:$20 sps:$4 sm:$0xff]  }
 0x640   :  { %v17149_v20 = vld [vmem:[#allocation7 + $0x1460] ss:$20 sps:$4 sm:$0xff]  }
 0x641   :  { %14511 = vmatpush3.bf16.msra.mxu0 %v17097_v21  ;;  %v17151_v21 = vld [vmem:[#allocation7 + $0x15c8] ss:$20 sps:$4 sm:$0xff]  }
 0x642   :  { %14533 = vmatpush3.bf16.msra.mxu1 %v17098_v22  ;;  %14512 = vmatprep.subr.bf16.mxu0 %v17099_v25  ;;  %v17153_v22 = vld [vmem:[#allocation7 + $0x1488] ss:$20 sps:$4 sm:$0xff]   ;;  %v17155_v25 = vld [vmem:[#allocation7 + $0x15f0] ss:$20 sps:$4 sm:$0xff]  }
 0x643   :  { %14534 = vmatprep.subr.bf16.mxu1 %v17100_v26  ;;  %v17156_v26 = vld [vmem:[#allocation7 + $0x1870] ss:$20 sps:$4 sm:$0xff]  }
 0x645   :  { %14513 = vmatpush3.bf16.msra.mxu0 %v17101_v27  ;;  %v17158_v27 = vld [vmem:[#allocation7 + $0x1730] ss:$20 sps:$4 sm:$0xff]  }
 0x646   :  { %14535 = vmatpush3.bf16.msra.mxu1 %v17102_v28  ;;  %14514 = vmatprep.subr.bf16.mxu0 %v17103_v52  ;;  %v17159_v28 = vld [vmem:[#allocation7 + $0x1618] ss:$20 sps:$4 sm:$0xff]  }
 0x647   :  { %14536 = vmatprep.subr.bf16.mxu1 %v17104_v29  ;;  %v17160_v52 = vld [vmem:[#allocation7 + $0x1898] ss:$20 sps:$4 sm:$0xff]  }
 0x648   :  { %v17161_v29 = vld [vmem:[#allocation7 + $0x14d8] ss:$20 sps:$4 sm:$0xff]  }
 0x649   :  { %14515 = vmatpush3.bf16.msra.mxu0 %v17105_v53  ;;  %v17162_v53 = vld [vmem:[#allocation7 + $0x1758] ss:$20 sps:$4 sm:$0xff]  }
 0x64a   :  { %14537 = vmatpush3.bf16.msra.mxu1 %v17106_v30  ;;  %14544 = vmatprep.subr.bf16.mxu0 %v17107_v37  ;;  %v17163_v30 = vld [vmem:[#allocation7 + $0x1640] ss:$20 sps:$4 sm:$0xff]  }
 0x64b   :  { %14566 = vmatprep.subr.bf16.mxu1 %v17108_v31  ;;  %v17164_v37 = vld [vmem:[#allocation7 + $0x18c0] ss:$20 sps:$4 sm:$0xff]  }
 0x64c   :  { %12565 = vmatmul.mubr.bf16.vlgmr.msra.gmra.mrb[32].mxu0 %v17532_v54  ;;  %v17118_v54 = vld [vmem:[#allocation7 + $0x11e0] ss:$20 sps:$4 sm:$0xff]  }
 0x64d   :  { %12606 = vmatmul.mubr.bf16.vlgmr.msra.gmra.mrb[32].mxu1 %v17534_v55  ;;  %14545 = vmatpush3.bf16.msra.mxu0 %v17109_v32  ;;  %v17120_v55 = vld [vmem:[#allocation7 + $0x1348] ss:$20 sps:$4 sm:$0xff]   ;;  %v17165_v31 = vld [vmem:[#allocation7 + $0x1500] ss:$20 sps:$4 sm:$0xff]  }
 0x64e   :  { %12646 = vmatprep.mubr.bf16.mxu0 %v17567_v23  ;;  %14567 = vmatpush3.bf16.msra.mxu1 %v17110_v38  ;;  %v17122_v23 = vld [vmem:[#allocation7 + $0x1208] ss:$20 sps:$4 sm:$0xff]   ;;  %v17166_v32 = vld [vmem:[#allocation7 + $0x1780] ss:$20 sps:$4 sm:$0xff]  }
 0x64f   :  { %12687 = vmatprep.mubr.bf16.mxu1 %v17569_v24  ;;  %14546 = vmatprep.subr.bf16.mxu0 %v17111_v35  ;;  %v17125_v24 = vld [vmem:[#allocation7 + $0xfb0] ss:$20 sps:$4 sm:$0xff]   ;;  %v17167_v38 = vld [vmem:[#allocation7 + $0x1668] ss:$20 sps:$4 sm:$0xff]  }
 0x650   :  { %14568 = vmatprep.subr.bf16.mxu1 %v17112_v36  ;;  %v17168_v35 = vld [vmem:[#allocation7 + $0x18e8] ss:$20 sps:$4 sm:$0xff]  }
 0x651   :  { %14547 = vmatpush3.bf16.msra.mxu0 %v17113_v39  ;;  %v17169_v36 = vld [vmem:[#allocation7 + $0x1528] ss:$20 sps:$4 sm:$0xff]  }
 0x652   :  { %14569 = vmatpush3.bf16.msra.mxu1 %v17114_v40  ;;  %14548 = vmatprep.subr.bf16.mxu0 %v17115_v43  ;;  %v17170_v39 = vld [vmem:[#allocation7 + $0x17a8] ss:$20 sps:$4 sm:$0xff]   ;;  %v7321_v40 = vld [vmem:[#allocation8] sm:$0x1f] }
 0x653   :  { %14570 = vmatprep.subr.bf16.mxu1 %v17116_v46  ;;  %v7326_v43 = vrot.slane %v7321_v40, %v17450_v4  ;;  %v7334_v46 = vrot.slane %v7321_v40, %v17453_v5 }
 0x655   :  { %14549 = vmatpush3.bf16.msra.mxu0 %v17117_v50  ;;  %v7330_v50 = vrot.slane %v7321_v40, %v17456_v8 }
 0x656   :  { %14571 = vmatpush3.bf16.msra.mxu1 %v17118_v54  ;;  %14550 = vmatprep.subr.bf16.mxu0 %v17119_v42  ;;  %v7338_v54 = vrot.slane %v7321_v40, %v17459_v9 }
 0x657   :  { %14572 = vmatprep.subr.bf16.mxu1 %v17120_v55 }
 0x659   :  { %14551 = vmatpush3.bf16.msra.mxu0 %v17121_v47 }
 0x65a   :  { %14573 = vmatpush3.bf16.msra.mxu1 %v17122_v23  ;;  %14552 = vmatprep.subr.bf16.mxu0 %v17123_v56 }
 0x65b   :  { %14574 = vmatprep.subr.bf16.mxu1 %v17124_v44 }
 0x65d   :  { %14553 = vmatpush3.bf16.msra.mxu0 %v17125_v24 }
 0x65e   :  { %14575 = vmatpush3.bf16.msra.mxu1 %v17126_v62  ;;  %14554 = vmatprep.subr.bf16.mxu0 %v17127_v57 }
 0x65f   :  { %14576 = vmatprep.subr.bf16.mxu1 %v17128_v45 }
 0x661   :  { %14555 = vmatpush3.bf16.msra.mxu0 %v17129_v61 }
 0x662   :  { %14577 = vmatpush3.bf16.msra.mxu1 %v17130_v15  ;;  %14556 = vmatprep.subr.bf16.mxu0 %v17131_v63  ;;  %v7342_v15 = vrot.slane %v7321_v40, %v17491_v41 }
 0x663   :  { %14578 = vmatprep.subr.bf16.mxu1 %v17132_v0 }
 0x665   :  { %14557 = vmatpush3.bf16.msra.mxu0 %v17133_v1 }
 0x666   :  { %14579 = vmatpush3.bf16.msra.mxu1 %v17134_v2  ;;  %14558 = vmatprep.subr.bf16.mxu0 %v17135_v3 }
 0x667   :  { %14580 = vmatprep.subr.bf16.mxu1 %v17136_v6 }
 0x669   :  { %14559 = vmatpush3.bf16.msra.mxu0 %v17137_v7 }
 0x66a   :  { %14581 = vmatpush3.bf16.msra.mxu1 %v17138_v10  ;;  %14588 = vmatprep.subr.bf16.mxu0 %v17139_v33 }
 0x66b   :  { %14610 = vmatprep.subr.bf16.mxu1 %v17140_v11 }
 0x66c   :  { %12647 = vmatmul.mubr.bf16.vlgmr.msra.gmra.mrb[36].mxu0 %v17563_v18  ;;  %v17150_v18 = vld [vmem:[#allocation7 + $0x16e0] ss:$20 sps:$4 sm:$0xff]  }
 0x66d   :  { %12688 = vmatmul.mubr.bf16.vlgmr.msra.gmra.mrb[36].mxu1 %v17565_v19  ;;  %14589 = vmatpush3.bf16.msra.mxu0 %v17141_v34  ;;  %v17152_v19 = vld [vmem:[#allocation7 + $0x1848] ss:$20 sps:$4 sm:$0xff]  }
 0x66e   :  { %12728 = vmatprep.mubr.bf16.mxu0 %v17591_v51  ;;  %14611 = vmatpush3.bf16.msra.mxu1 %v17142_v12  ;;  %v17154_v51 = vld [vmem:[#allocation7 + $0x1708] ss:$20 sps:$4 sm:$0xff]  }
 0x66f   :  { %12769 = vmatprep.mubr.bf16.mxu1 %v17593_v58  ;;  %14590 = vmatprep.subr.bf16.mxu0 %v17143_v59  ;;  %v17157_v58 = vld [vmem:[#allocation7 + $0x14b0] ss:$20 sps:$4 sm:$0xff]  }
 0x670   :  { %14612 = vmatprep.subr.bf16.mxu1 %v17144_v13 }
 0x671   :  { %14591 = vmatpush3.bf16.msra.mxu0 %v17145_v14 }
 0x672   :  { %14613 = vmatpush3.bf16.msra.mxu1 %v17146_v60  ;;  %14592 = vmatprep.subr.bf16.mxu0 %v17147_v16 }
 0x673   :  { %14614 = vmatprep.subr.bf16.mxu1 %v17148_v17 }
 0x675   :  { %14593 = vmatpush3.bf16.msra.mxu0 %v17149_v20 }
 0x676   :  { %14615 = vmatpush3.bf16.msra.mxu1 %v17150_v18  ;;  %14594 = vmatprep.subr.bf16.mxu0 %v17151_v21 }
 0x677   :  { %14616 = vmatprep.subr.bf16.mxu1 %v17152_v19 }
 0x679   :  { %14595 = vmatpush3.bf16.msra.mxu0 %v17153_v22 }
 0x67a   :  { %14617 = vmatpush3.bf16.msra.mxu1 %v17154_v51  ;;  %14596 = vmatprep.subr.bf16.mxu0 %v17155_v25 }
 0x67b   :  { %14618 = vmatprep.subr.bf16.mxu1 %v17156_v26 }
 0x67d   :  { %14597 = vmatpush3.bf16.msra.mxu0 %v17157_v58 }
 0x67e   :  { %14619 = vmatpush3.bf16.msra.mxu1 %v17158_v27  ;;  %14598 = vmatprep.subr.bf16.mxu0 %v17159_v28 }
 0x67f   :  { %14620 = vmatprep.subr.bf16.mxu1 %v17160_v52 }
 0x681   :  { %14599 = vmatpush3.bf16.msra.mxu0 %v17161_v29 }
 0x682   :  { %14621 = vmatpush3.bf16.msra.mxu1 %v17162_v53  ;;  %14600 = vmatprep.subr.bf16.mxu0 %v17163_v30 }
 0x683   :  { %14622 = vmatprep.subr.bf16.mxu1 %v17164_v37 }
 0x685   :  { %14601 = vmatpush3.bf16.msra.mxu0 %v17165_v31 }
 0x686   :  { %14623 = vmatpush3.bf16.msra.mxu1 %v17166_v32  ;;  %14602 = vmatprep.subr.bf16.mxu0 %v17167_v38 }
 0x687   :  { %14624 = vmatprep.subr.bf16.mxu1 %v17168_v35 }
 0x689   :  { %14603 = vmatpush3.bf16.msra.mxu0 %v17169_v36 }
 0x68a   :  { %14625 = vmatpush3.bf16.msra.mxu1 %v17170_v39 }
 0x68c   :  { %12729 = vmatmul.mubr.bf16.vlgmr.msra.gmra.mrb[40].mxu0 %v17587_v48 }
 0x68d   :  { %12770 = vmatmul.mubr.bf16.vlgmr.msra.gmra.mrb[40].mxu1 %v17589_v49 }
 0x6bf   :  { %v11929_v42 = vpop.f32.mrb[20].mxu0 }
 0x6c0   :  { %v14672_v55 = vadd.f32 %v11929_v42, %v7326_v43  ;;  %v12359_v47 = vpop.f32.mrb[20].mxu1  ;;  %v11931_v23 = vpop.f32.mrb[21].mxu0 }
 0x6c1   :  { %v14676_v56 = vadd.f32 %v12359_v47, %v7334_v46  ;;  %v14673_v44 = vadd.f32 %v11931_v23, %v7330_v50  ;;  %v12361_v24 = vpop.f32.mrb[21].mxu1  ;;  %v11933_v62 = vpop.f32.mrb[22].mxu0 }
 0x6c2   :  { %12778 = vst [vmem:[#allocation10] sm:$0xff] %v14672_v55  ;;  %v14677_v48 = vadd.f32 %v12361_v24, %v7338_v54  ;;  %v14674_v49 = vadd.f32 %v11933_v62, %v7326_v43  ;;  %v12363_v57 = vpop.f32.mrb[22].mxu1  ;;  %v11935_v45 = vpop.f32.mrb[23].mxu0 }
 0x6c3   :  { %12780 = vst [vmem:[#allocation10 + $0x10] sm:$0xff] %v14676_v56  ;;  %12779 = vst [vmem:[#allocation10 + $0x8] sm:$0xff] %v14673_v44  ;;  %v14678_v4 = vadd.f32 %v12363_v57, %v7334_v46  ;;  %v14675_v5 = vadd.f32 %v11935_v45, %v7330_v50  ;;  %v12365_v8 = vpop.f32.mrb[23].mxu1 }
 0x6c4   :  { %12781 = vst [vmem:[#allocation10 + $0x18] sm:$0xff] %v14677_v48  ;;  %12783 = vst [vmem:[#allocation10 + $0x28] sm:$0xff] %v14674_v49  ;;  %v14679_v9 = vadd.f32 %v12365_v8, %v7338_v54 }
 0x6c5   :  { %12785 = vst [vmem:[#allocation10 + $0x38] sm:$0xff] %v14678_v4  ;;  %12784 = vst [vmem:[#allocation10 + $0x30] sm:$0xff] %v14675_v5 }
 0x6c6   :  { %12786 = vst [vmem:[#allocation10 + $0x40] sm:$0xff] %v14679_v9 }
 0x6df   :  { %v14428_v61 = vpop.f32.mrb[24].mxu0 }
 0x6e0   :  { %v14450_v63 = vpop.f32.mrb[24].mxu1  ;;  %v14429_v0 = vpop.f32.mrb[25].mxu0 }
 0x6e1   :  { %v14430_v1 = vadd.f32 %v14429_v0, %v14428_v61  ;;  %v14451_v2 = vpop.f32.mrb[25].mxu1  ;;  %v14431_v3 = vpop.f32.mrb[26].mxu0 }
 0x6e2   :  { %v14452_v6 = vadd.f32 %v14451_v2, %v14450_v63  ;;  %v14453_v7 = vpop.f32.mrb[26].mxu1  ;;  %v14432_v10 = vpop.f32.mrb[27].mxu0 }
 0x6e3   :  { %v12403_v33 = vadd.f32 %v14430_v1, %v7342_v15  ;;  %v14433_v11 = vadd.f32 %v14432_v10, %v14431_v3  ;;  %v14454_v34 = vpop.f32.mrb[27].mxu1 }
 0x6e4   :  { %v14455_v12 = vadd.f32 %v14454_v34, %v14453_v7 }
 0x6e5   :  { %v12444_v59 = vadd.f32 %v14452_v6, %v12403_v33  ;;  %v12406_v13 = vadd.f32 %v14433_v11, %v7342_v15 }
 0x6e7   :  { %v12447_v14 = vadd.f32 %v14455_v12, %v12406_v13 }
 0x6ff   :  { %v14472_v60 = vpop.f32.mrb[28].mxu0 }
 0x700   :  { %v14494_v16 = vpop.f32.mrb[28].mxu1  ;;  %v14473_v17 = vpop.f32.mrb[29].mxu0 }
 0x701   :  { %v14474_v20 = vadd.f32 %v14473_v17, %v14472_v60  ;;  %v14495_v41 = vpop.f32.mrb[29].mxu1  ;;  %v14475_v18 = vpop.f32.mrb[30].mxu0 }
 0x702   :  { %v14496_v21 = vadd.f32 %v14495_v41, %v14494_v16  ;;  %v14497_v19 = vpop.f32.mrb[30].mxu1  ;;  %v14476_v22 = vpop.f32.mrb[31].mxu0 }
 0x703   :  { %v12485_v51 = vadd.f32 %v14474_v20, %v12444_v59  ;;  %v14477_v25 = vadd.f32 %v14476_v22, %v14475_v18  ;;  %v14498_v26 = vpop.f32.mrb[31].mxu1 }
 0x704   :  { %v14499_v58 = vadd.f32 %v14498_v26, %v14497_v19 }
 0x705   :  { %v12526_v27 = vadd.f32 %v14496_v21, %v12485_v51  ;;  %v12488_v28 = vadd.f32 %v14477_v25, %v12447_v14 }
 0x707   :  { %v12529_v52 = vadd.f32 %v14499_v58, %v12488_v28 }
 0x71f   :  { %v14516_v29 = vpop.f32.mrb[32].mxu0 }
 0x720   :  { %v14538_v53 = vpop.f32.mrb[32].mxu1  ;;  %v14517_v30 = vpop.f32.mrb[33].mxu0 }
 0x721   :  { %v14518_v37 = vadd.f32 %v14517_v30, %v14516_v29  ;;  %v14539_v31 = vpop.f32.mrb[33].mxu1  ;;  %v14519_v32 = vpop.f32.mrb[34].mxu0 }
 0x722   :  { %v14540_v38 = vadd.f32 %v14539_v31, %v14538_v53  ;;  %v14541_v35 = vpop.f32.mrb[34].mxu1  ;;  %v14520_v36 = vpop.f32.mrb[35].mxu0 }
 0x723   :  { %v12567_v39 = vadd.f32 %v14518_v37, %v12526_v27  ;;  %v14521_v40 = vadd.f32 %v14520_v36, %v14519_v32  ;;  %v14542_v43 = vpop.f32.mrb[35].mxu1 }
 0x724   :  { %v14543_v46 = vadd.f32 %v14542_v43, %v14541_v35 }
 0x725   :  { %v12608_v50 = vadd.f32 %v14540_v38, %v12567_v39  ;;  %v12570_v54 = vadd.f32 %v14521_v40, %v12529_v52 }
 0x727   :  { %v12611_v42 = vadd.f32 %v14543_v46, %v12570_v54 }
 0x73f   :  { %v14560_v55 = vpop.f32.mrb[36].mxu0 }
 0x740   :  { %v14582_v47 = vpop.f32.mrb[36].mxu1  ;;  %v14561_v23 = vpop.f32.mrb[37].mxu0 }
 0x741   :  { %v14562_v56 = vadd.f32 %v14561_v23, %v14560_v55  ;;  %v14583_v44 = vpop.f32.mrb[37].mxu1  ;;  %v14563_v24 = vpop.f32.mrb[38].mxu0 }
 0x742   :  { %v14584_v62 = vadd.f32 %v14583_v44, %v14582_v47  ;;  %v14585_v48 = vpop.f32.mrb[38].mxu1  ;;  %v14564_v49 = vpop.f32.mrb[39].mxu0 }
 0x743   :  { %v12649_v57 = vadd.f32 %v14562_v56, %v12608_v50  ;;  %v14565_v45 = vadd.f32 %v14564_v49, %v14563_v24  ;;  %v14586_v4 = vpop.f32.mrb[39].mxu1 }
 0x744   :  { %v14587_v5 = vadd.f32 %v14586_v4, %v14585_v48 }
 0x745   :  { %v12690_v8 = vadd.f32 %v14584_v62, %v12649_v57  ;;  %v12652_v9 = vadd.f32 %v14565_v45, %v12611_v42 }
 0x747   :  { %v12693_v61 = vadd.f32 %v14587_v5, %v12652_v9 }
 0x75f   :  { %v14604_v15 = vpop.f32.mrb[40].mxu0 }
 0x760   :  { %v14626_v63 = vpop.f32.mrb[40].mxu1  ;;  %v14605_v0 = vpop.f32.mrb[41].mxu0 }
 0x761   :  { %v14606_v1 = vadd.f32 %v14605_v0, %v14604_v15  ;;  %v14627_v2 = vpop.f32.mrb[41].mxu1  ;;  %v14607_v3 = vpop.f32.mrb[42].mxu0 }
 0x762   :  { %v14628_v6 = vadd.f32 %v14627_v2, %v14626_v63  ;;  %v14629_v7 = vpop.f32.mrb[42].mxu1  ;;  %v14608_v10 = vpop.f32.mrb[43].mxu0 }
 0x763   :  { %v12731_v33 = vadd.f32 %v14606_v1, %v12690_v8  ;;  %v14609_v11 = vadd.f32 %v14608_v10, %v14607_v3  ;;  %v14630_v34 = vpop.f32.mrb[43].mxu1 }
 0x764   :  { %v14631_v12 = vadd.f32 %v14630_v34, %v14629_v7 }
 0x765   :  { %v12772_v59 = vadd.f32 %v14628_v6, %v12731_v33  ;;  %v12734_v13 = vadd.f32 %v14609_v11, %v12693_v61 }
 0x767   :  { %12782 = vst [vmem:[#allocation10 + $0x20] sm:$0xff] %v12772_v59  ;;  %v12775_v14 = vadd.f32 %v14631_v12, %v12734_v13 }
 0x769   :  { %12787 = vst [vmem:[#allocation10 + $0x48] sm:$0xff] %v12775_v14 }
 0x76a   :  { %17291 = shalt.err (!%p17288_p8)
}
 0x76b   :  { %s17292_s13 = scalar_lea.hbm %s17663_s5, 1280 }
 0x76c   :  { %p17293_p9 = scmp.ne.s32.totalorder %s17663_s5, %s17292_s13  ;;  %p17296_p10 = scmp.lt.u32.totalorder %s17292_s13, %s17663_s5 }
 0x76e   :  { %p17298_p11 = pnand %p17296_p10, %p17293_p9 }
 0x770   :  { %17301 = shalt.err (!%p17298_p11)
}
 0x771   :  { %s17320_s16 = smov 640   ;;  %s17321_s4 = smov 40  }
 0x772   :  { %12799 = dma.vmem_to_hbm [thread:$0]  %s12794_s9, 1280, %s17663_s5, [#allocation4], %s17320_s16, %s17320_s16, %s17321_s4  }
 0x773   :  { %17308 = dma.done.wait [#allocation4], 1280  }
 0x774   :  { %17309 = vsyncadd [#allocation4], 4294966016 }
 0x775   :  { %12803 = vsyncpa [#allocation3], 1 }
 0x776   :  { %12804 = vsyncpa [#allocation6], 1 }
 0x777   :  { %12805 = vsyncpa [#allocation9], 1 }
 0x778   :  { %12806 = vsyncpa [#allocation4], 1 }

</bundles_post_ra>
